<compile_context>
chip_gen: v6e
topology: v6e:2x2x1
jax: 0.10.0
libtpu: 0.0.40
codegen_flags: <defaults>
</compile_context>

<pallas_src>
import functools

import numpy as np
import jax
import jax.numpy as jnp
from jax.experimental import pallas as pl
from jax.experimental.pallas import tpu as pltpu

# ------------------------------------------------------------------ static geometry
H_IN, W_IN = 10, 15          # input spatial dims (x is NCHW: (B, 2, 10, 15))
C0, C1, C2 = 2, 4, 8         # channels: input -> conv1 -> conv2
H1, W1 = 11, 16              # conv1 output spatial dims (k=2, s=1, p=1)
H2, W2 = 12, 17              # conv2 output spatial dims
K1 = C0 * H_IN * W_IN        # 300  : flattened input size
K1_PAD = 384                 # 3*128: lane-padded input
D1 = C1 * H1 * W1            # 704  : conv1 output flatten
D1_PAD = 768                 # 6*128
D2 = C2 * H2 * W2            # 1632 : conv2 output flatten == fc1 input (torch .view order)
D2_PAD = 1664                # 13*128
N_FC1, N_FC2 = 1024, 512


# ------------------------------------------------------------------ fused kernel
def _critic_kernel(use_tanh,
                   x_ref, t1_ref, b1_ref, t2_ref, b2_ref,
                   fc1w_ref, fc1b_ref, fc2w_ref, fc2b_ref, fc3w_ref, fc3b_ref,
                   o_ref):
    act = jnp.tanh if use_tanh else (lambda v: jnp.maximum(v, 0.0))

    # conv1 as a dense Toeplitz matmul on the MXU (zero rows/cols encode zero-padding).
    h = jnp.dot(x_ref[...].astype(jnp.bfloat16), t1_ref[...],
                preferred_element_type=jnp.float32)                 # (Bt, 768)
    h = jnp.maximum(h + b1_ref[...], 0.0)                           # convs always use F.relu

    # conv2 as a Toeplitz matmul; columns are already in torch-.view() flatten order.
    h = jnp.dot(h.astype(jnp.bfloat16), t2_ref[...],
                preferred_element_type=jnp.float32)                 # (Bt, 1664)
    h = jnp.maximum(h + b2_ref[...], 0.0)

    # MLP: bf16-in / f32-acc MXU for fc1, fc2.
    h = jnp.dot(h.astype(jnp.bfloat16), fc1w_ref[...],
                preferred_element_type=jnp.float32)                 # (Bt, 1024)
    h = act(h + fc1b_ref[...])
    h = jnp.dot(h.astype(jnp.bfloat16), fc2w_ref[...],
                preferred_element_type=jnp.float32)                 # (Bt, 512)
    h = act(h + fc2b_ref[...])

    # fc3 (512 -> 1): VPU multiply + lane reduction (avoids an N=1 MXU pass).
    v = jnp.sum(h * fc3w_ref[...], axis=-1, keepdims=True) + fc3b_ref[...]
    o_ref[...] = v.astype(o_ref.dtype)


# ------------------------------------------------------------------ host-side parameter prep
def prepare_params(tp):
    """One-time conversion of PyTorch-layout parameters into Toeplitz/MXU layout."""
    w1 = np.asarray(tp["conv1_w"], np.float32)    # (4, 2, 2, 2)
    b1 = np.asarray(tp["conv1_b"], np.float32)
    w2 = np.asarray(tp["conv2_w"], np.float32)    # (8, 4, 2, 2)
    b2 = np.asarray(tp["conv2_b"], np.float32)

    # conv1 Toeplitz: row = input (c, p, q) flat index, col = output (oc, i, j) flat index.
    t1 = np.zeros((K1_PAD, D1_PAD), np.float32)
    b1v = np.zeros((1, D1_PAD), np.float32)
    for oc in range(C1):
        for i in range(H1):
            for j in range(W1):
                col = (oc * H1 + i) * W1 + j
                b1v[0, col] = b1[oc]
                for c in range(C0):
                    for ki in range(2):
                        for kj in range(2):
                            p, q = i + ki - 1, j + kj - 1        # padding = 1
                            if 0 <= p < H_IN and 0 <= q < W_IN:
                                t1[(c * H_IN + p) * W_IN + q, col] = w1[oc, c, ki, kj]

    # conv2 Toeplitz: rows index conv1's output flatten, cols are torch .view() flatten.
    t2 = np.zeros((D1_PAD, D2_PAD), np.float32)
    b2v = np.zeros((1, D2_PAD), np.float32)
    for oc in range(C2):
        for i in range(H2):
            for j in range(W2):
                col = (oc * H2 + i) * W2 + j
                b2v[0, col] = b2[oc]
                for c in range(C1):
                    for ki in range(2):
                        for kj in range(2):
                            p, q = i + ki - 1, j + kj - 1
                            if 0 <= p < H1 and 0 <= q < W1:
                                t2[(c * H1 + p) * W1 + q, col] = w2[oc, c, ki, kj]

    # fc1: transpose to (in, out) and pad K from 1632 -> 1664 with zero rows.
    fc1_w = np.zeros((D2_PAD, N_FC1), np.float32)
    fc1_w[:D2] = np.asarray(tp["fc1_w"], np.float32).T

    return {
        "t1": jnp.asarray(t1, jnp.bfloat16),                          # (384, 768)
        "b1": jnp.asarray(b1v, jnp.float32),                          # (1, 768), 0 on pad cols
        "t2": jnp.asarray(t2, jnp.bfloat16),                          # (768, 1664)
        "b2": jnp.asarray(b2v, jnp.float32),                          # (1, 1664), 0 on pad cols
        "fc1_w": jnp.asarray(fc1_w, jnp.bfloat16),                    # (1664, 1024)
        "fc1_b": jnp.asarray(tp["fc1_b"]).reshape(1, -1).astype(jnp.float32),
        "fc2_w": jnp.asarray(tp["fc2_w"]).T.astype(jnp.bfloat16),     # (1024, 512)
        "fc2_b": jnp.asarray(tp["fc2_b"]).reshape(1, -1).astype(jnp.float32),
        "fc3_w": jnp.asarray(tp["fc3_w"]).astype(jnp.float32),        # (1, 512)
        "fc3_b": jnp.asarray(tp["fc3_b"]).reshape(1, -1).astype(jnp.float32),
    }


def critic_forward(params, x, use_tanh=False):
    # x: (B, 2, 10, 15) float32, NCHW like the PyTorch module.
    B = x.shape[0]
    x2d = x.reshape(B, K1).astype(jnp.float32)                        # (B, 300)
    x2d = jnp.pad(x2d, ((0, 0), (0, K1_PAD - K1)))                    # (B, 384)

    bt = min(B, 256)                        # bigger batch tile (review); grid >= 2 for B > 256
    grid = (pl.cdiv(B, bt),)
    const = lambda i: (0, 0)

    kernel = functools.partial(_critic_kernel, use_tanh)
    return pl.pallas_call(
        kernel,
        out_shape=jax.ShapeDtypeStruct((B, 1), jnp.float32),
        grid=grid,
        in_specs=[
            pl.BlockSpec((bt, K1_PAD), lambda i: (i, 0)),             # x (padded, flattened)
            # Weight/bias blocks have constant index maps, so Pallas only DMAs them once;
            # at ~7.3 MiB of bf16 weights the default buffering fits the 32 MiB limit easily.
            pl.BlockSpec((K1_PAD, D1_PAD), const),                    # T1 (conv1 Toeplitz)
            pl.BlockSpec((1, D1_PAD), const),                         # conv1 bias (masked)
            pl.BlockSpec((D1_PAD, D2_PAD), const),                    # T2 (conv2 Toeplitz)
            pl.BlockSpec((1, D2_PAD), const),                         # conv2 bias (masked)
            pl.BlockSpec((D2_PAD, N_FC1), const),                     # fc1_w
            pl.BlockSpec((1, N_FC1), const),                          # fc1_b
            pl.BlockSpec((N_FC1, N_FC2), const),                      # fc2_w
            pl.BlockSpec((1, N_FC2), const),                          # fc2_b
            pl.BlockSpec((1, N_FC2), const),                          # fc3_w
            pl.BlockSpec((1, 1), const),                              # fc3_b
        ],
        out_specs=pl.BlockSpec((bt, 1), lambda i: (i, 0)),
        compiler_params=pltpu.CompilerParams(
            dimension_semantics=("parallel",),       # shard batch grid across v7x's 2 TCs
            vmem_limit_bytes=32 << 20,               # fits v7x's 64 MiB physical VMEM
        ),
    )(
        x2d,
        params["t1"], params["b1"], params["t2"], params["b2"],
        params["fc1_w"], params["fc1_b"], params["fc2_w"], params["fc2_b"],
        params["fc3_w"], params["fc3_b"],
    )


# ------------------------------------------------------------------ params + reference
def init_torch_params(key):
    # Same tensor shapes as the PyTorch module; biases 0 like constant_(bias, 0).
    # TODO(synk): uses He-scaled normal init instead of exact nn.init.orthogonal_.
    ks = jax.random.split(key, 5)

    def nrm(k, shape, fan_in):
        return (jnp.sqrt(2.0 / fan_in) * jax.random.normal(k, shape)).astype(jnp.float32)

    return {
        "conv1_w": nrm(ks[0], (C1, C0, 2, 2), C0 * 4),
        "conv1_b": jnp.zeros((C1,), jnp.float32),
        "conv2_w": nrm(ks[1], (C2, C1, 2, 2), C1 * 4),
        "conv2_b": jnp.zeros((C2,), jnp.float32),
        "fc1_w": nrm(ks[2], (N_FC1, D2), D2),
        "fc1_b": jnp.zeros((N_FC1,), jnp.float32),
        "fc2_w": nrm(ks[3], (N_FC2, N_FC1), N_FC1),
        "fc2_b": jnp.zeros((N_FC2,), jnp.float32),
        "fc3_w": nrm(ks[4], (1, N_FC2), N_FC2),
        "fc3_b": jnp.zeros((1,), jnp.float32),
    }


def critic_reference(tp, x, use_tanh=False):
    # Plain-JAX reference mirroring the PyTorch forward (weights bf16-rounded to match the
    # kernel's stored weights; activations stay f32).
    act = jnp.tanh if use_tanh else jax.nn.relu
    hi = jax.lax.Precision.HIGHEST
    bf = lambda w: w.astype(jnp.bfloat16).astype(jnp.float32)
    h = jax.lax.conv_general_dilated(x, bf(tp["conv1_w"]), (1, 1), [(1, 1), (1, 1)],
                                     dimension_numbers=("NCHW", "OIHW", "NCHW"), precision=hi)
    h = jax.nn.relu(h + tp["conv1_b"].reshape(1, -1, 1, 1))
    h = jax.lax.conv_general_dilated(h, bf(tp["conv2_w"]), (1, 1), [(1, 1), (1, 1)],
                                     dimension_numbers=("NCHW", "OIHW", "NCHW"), precision=hi)
    h = jax.nn.relu(h + tp["conv2_b"].reshape(1, -1, 1, 1))
    s = h.reshape(h.shape[0], -1)                                     # (B, 1632), torch .view
    s = act(jnp.dot(s, bf(tp["fc1_w"]).T, precision=hi) + tp["fc1_b"])
    s = act(jnp.dot(s, bf(tp["fc2_w"]).T, precision=hi) + tp["fc2_b"])
    return jnp.dot(s, tp["fc3_w"].T, precision=hi) + tp["fc3_b"]


if __name__ == "__main__":
    key = jax.random.PRNGKey(0)
    kp, kx = jax.random.split(key)
    torch_params = init_torch_params(kp)
    params = prepare_params(torch_params)

    # (B, C, H, W) = (2, 2, 10, 15): conv2 output is (B, 8, 12, 17), 8*12*17 = 1632 = fc1 in.
    x = jax.random.normal(kx, (2, C0, H_IN, W_IN), dtype=jnp.float32)

    v = jax.jit(critic_forward)(params, x)
    jax.block_until_ready(v)
    assert v.shape == (2, 1) and v.dtype == jnp.float32

    v_ref = critic_reference(torch_params, x)
    assert np.allclose(np.asarray(v), np.asarray(v_ref), rtol=5e-2, atol=5e-2), (
        f"pallas={np.asarray(v).ravel()} ref={np.asarray(v_ref).ravel()}")

    print("KERNEL_OK")
</pallas_src>

<mosaic_0001>
module attributes {stable_mosaic.version = 11 : i64} {
  func.func @_critic_kernel(%arg0: i32, %arg1: memref<2x384xf32, #tpu.memory_space<vmem>>, %arg2: memref<384x768xbf16, #tpu.memory_space<vmem>>, %arg3: memref<1x768xf32, #tpu.memory_space<vmem>>, %arg4: memref<768x1664xbf16, #tpu.memory_space<vmem>>, %arg5: memref<1x1664xf32, #tpu.memory_space<vmem>>, %arg6: memref<1664x1024xbf16, #tpu.memory_space<vmem>>, %arg7: memref<1x1024xf32, #tpu.memory_space<vmem>>, %arg8: memref<1024x512xbf16, #tpu.memory_space<vmem>>, %arg9: memref<1x512xf32, #tpu.memory_space<vmem>>, %arg10: memref<1x512xf32, #tpu.memory_space<vmem>>, %arg11: memref<1x1xf32, #tpu.memory_space<vmem>>, %arg12: memref<2x1xf32, #tpu.memory_space<vmem>>) attributes {dimension_semantics = [#tpu.dimension_semantics<parallel>], iteration_bounds = array<i64: 1>, scalar_prefetch = 0 : i64, scratch_operands = 0 : i64, tpu.core_type = #tpu.core_type<tc>, window_params = [{transform_indices = @transform_0, window_bounds = array<i64: 2, 384>}, {pipeline_mode = #tpu.pipeline_mode<synchronous>, transform_indices = @transform_1, window_bounds = array<i64: 384, 768>}, {pipeline_mode = #tpu.pipeline_mode<synchronous>, transform_indices = @transform_2, window_bounds = array<i64: 1, 768>}, {pipeline_mode = #tpu.pipeline_mode<synchronous>, transform_indices = @transform_3, window_bounds = array<i64: 768, 1664>}, {pipeline_mode = #tpu.pipeline_mode<synchronous>, transform_indices = @transform_4, window_bounds = array<i64: 1, 1664>}, {pipeline_mode = #tpu.pipeline_mode<synchronous>, transform_indices = @transform_5, window_bounds = array<i64: 1664, 1024>}, {pipeline_mode = #tpu.pipeline_mode<synchronous>, transform_indices = @transform_6, window_bounds = array<i64: 1, 1024>}, {pipeline_mode = #tpu.pipeline_mode<synchronous>, transform_indices = @transform_7, window_bounds = array<i64: 1024, 512>}, {pipeline_mode = #tpu.pipeline_mode<synchronous>, transform_indices = @transform_8, window_bounds = array<i64: 1, 512>}, {pipeline_mode = #tpu.pipeline_mode<synchronous>, transform_indices = @transform_9, window_bounds = array<i64: 1, 512>}, {pipeline_mode = #tpu.pipeline_mode<synchronous>, transform_indices = @transform_10, window_bounds = array<i64: 1, 1>}, {transform_indices = @transform_11, window_bounds = array<i64: 2, 1>}]} {
    %c0 = arith.constant 0 : index
    %c0_0 = arith.constant 0 : index
    %0 = vector.load %arg1[%c0, %c0_0] : memref<2x384xf32, #tpu.memory_space<vmem>>, vector<2x384xf32>
    %1 = arith.truncf %0 : vector<2x384xf32> to vector<2x384xbf16>
    %c0_1 = arith.constant 0 : index
    %c0_2 = arith.constant 0 : index
    %2 = vector.load %arg2[%c0_1, %c0_2] : memref<384x768xbf16, #tpu.memory_space<vmem>>, vector<384x768xbf16>
    %cst = arith.constant dense<0.000000e+00> : vector<2x768xf32>
    %3 = tpu.matmul %1, %2, %cst {dimension_numbers = #tpu.dot_dimension_numbers<[1], [0], [0], [1], [0, 0, 1, 1], [], []>} : vector<2x384xbf16>, vector<384x768xbf16>, vector<2x768xf32> -> vector<2x768xf32>
    %c0_3 = arith.constant 0 : index
    %c0_4 = arith.constant 0 : index
    %4 = vector.load %arg3[%c0_3, %c0_4] : memref<1x768xf32, #tpu.memory_space<vmem>>, vector<1x768xf32>
    %5 = vector.broadcast %4 : vector<1x768xf32> to vector<2x768xf32>
    %6 = arith.addf %3, %5 : vector<2x768xf32>
    %cst_5 = arith.constant 0.000000e+00 : f32
    %7 = vector.broadcast %cst_5 : f32 to vector<2x768xf32>
    %8 = arith.maximumf %6, %7 : vector<2x768xf32>
    %9 = arith.truncf %8 : vector<2x768xf32> to vector<2x768xbf16>
    %c0_6 = arith.constant 0 : index
    %c0_7 = arith.constant 0 : index
    %10 = vector.load %arg4[%c0_6, %c0_7] : memref<768x1664xbf16, #tpu.memory_space<vmem>>, vector<768x1664xbf16>
    %cst_8 = arith.constant dense<0.000000e+00> : vector<2x1664xf32>
    %11 = tpu.matmul %9, %10, %cst_8 {dimension_numbers = #tpu.dot_dimension_numbers<[1], [0], [0], [1], [0, 0, 1, 1], [], []>} : vector<2x768xbf16>, vector<768x1664xbf16>, vector<2x1664xf32> -> vector<2x1664xf32>
    %c0_9 = arith.constant 0 : index
    %c0_10 = arith.constant 0 : index
    %12 = vector.load %arg5[%c0_9, %c0_10] : memref<1x1664xf32, #tpu.memory_space<vmem>>, vector<1x1664xf32>
    %13 = vector.broadcast %12 : vector<1x1664xf32> to vector<2x1664xf32>
    %14 = arith.addf %11, %13 : vector<2x1664xf32>
    %cst_11 = arith.constant 0.000000e+00 : f32
    %15 = vector.broadcast %cst_11 : f32 to vector<2x1664xf32>
    %16 = arith.maximumf %14, %15 : vector<2x1664xf32>
    %17 = arith.truncf %16 : vector<2x1664xf32> to vector<2x1664xbf16>
    %c0_12 = arith.constant 0 : index
    %c0_13 = arith.constant 0 : index
    %18 = vector.load %arg6[%c0_12, %c0_13] : memref<1664x1024xbf16, #tpu.memory_space<vmem>>, vector<1664x1024xbf16>
    %cst_14 = arith.constant dense<0.000000e+00> : vector<2x1024xf32>
    %19 = tpu.matmul %17, %18, %cst_14 {dimension_numbers = #tpu.dot_dimension_numbers<[1], [0], [0], [1], [0, 0, 1, 1], [], []>} : vector<2x1664xbf16>, vector<1664x1024xbf16>, vector<2x1024xf32> -> vector<2x1024xf32>
    %c0_15 = arith.constant 0 : index
    %c0_16 = arith.constant 0 : index
    %20 = vector.load %arg7[%c0_15, %c0_16] : memref<1x1024xf32, #tpu.memory_space<vmem>>, vector<1x1024xf32>
    %21 = vector.broadcast %20 : vector<1x1024xf32> to vector<2x1024xf32>
    %22 = arith.addf %19, %21 : vector<2x1024xf32>
    %cst_17 = arith.constant 0.000000e+00 : f32
    %23 = vector.broadcast %cst_17 : f32 to vector<2x1024xf32>
    %24 = arith.maximumf %22, %23 : vector<2x1024xf32>
    %25 = arith.truncf %24 : vector<2x1024xf32> to vector<2x1024xbf16>
    %c0_18 = arith.constant 0 : index
    %c0_19 = arith.constant 0 : index
    %26 = vector.load %arg8[%c0_18, %c0_19] : memref<1024x512xbf16, #tpu.memory_space<vmem>>, vector<1024x512xbf16>
    %cst_20 = arith.constant dense<0.000000e+00> : vector<2x512xf32>
    %27 = tpu.matmul %25, %26, %cst_20 {dimension_numbers = #tpu.dot_dimension_numbers<[1], [0], [0], [1], [0, 0, 1, 1], [], []>} : vector<2x1024xbf16>, vector<1024x512xbf16>, vector<2x512xf32> -> vector<2x512xf32>
    %c0_21 = arith.constant 0 : index
    %c0_22 = arith.constant 0 : index
    %28 = vector.load %arg9[%c0_21, %c0_22] : memref<1x512xf32, #tpu.memory_space<vmem>>, vector<1x512xf32>
    %29 = vector.broadcast %28 : vector<1x512xf32> to vector<2x512xf32>
    %30 = arith.addf %27, %29 : vector<2x512xf32>
    %cst_23 = arith.constant 0.000000e+00 : f32
    %31 = vector.broadcast %cst_23 : f32 to vector<2x512xf32>
    %32 = arith.maximumf %30, %31 : vector<2x512xf32>
    %c0_24 = arith.constant 0 : index
    %c0_25 = arith.constant 0 : index
    %33 = vector.load %arg10[%c0_24, %c0_25] : memref<1x512xf32, #tpu.memory_space<vmem>>, vector<1x512xf32>
    %34 = vector.broadcast %33 : vector<1x512xf32> to vector<2x512xf32>
    %35 = arith.mulf %32, %34 : vector<2x512xf32>
    %cst_26 = arith.constant dense<0.000000e+00> : vector<2xf32>
    %36 = vector.multi_reduction <add>, %35, %cst_26 [1] : vector<2x512xf32> to vector<2xf32>
    %37 = vector.shape_cast %36 : vector<2xf32> to vector<2x1xf32>
    %c0_27 = arith.constant 0 : index
    %c0_28 = arith.constant 0 : index
    %38 = vector.load %arg11[%c0_27, %c0_28] : memref<1x1xf32, #tpu.memory_space<vmem>>, vector<1x1xf32>
    %39 = vector.broadcast %38 : vector<1x1xf32> to vector<2x1xf32>
    %40 = arith.addf %37, %39 : vector<2x1xf32>
    %c0_29 = arith.constant 0 : index
    %c0_30 = arith.constant 0 : index
    %41 = vector.load %arg12[%c0_29, %c0_30] : memref<2x1xf32, #tpu.memory_space<vmem>>, vector<2x1xf32>
    tpu.vector_store %arg12[%c0_29, %c0_30], %40 {strides = array<i32>} : memref<2x1xf32, #tpu.memory_space<vmem>>, vector<2x1xf32>,
    return
  }
  func.func @transform_0(%arg0: i32) -> (i32, i32) {
    %c0_i32 = arith.constant 0 : i32
    %c0_i32_0 = arith.constant 0 : i32
    return %arg0, %c0_i32 : i32, i32
  }
  func.func @transform_1(%arg0: i32) -> (i32, i32) {
    %c0_i32 = arith.constant 0 : i32
    %c0_i32_0 = arith.constant 0 : i32
    %c0_i32_1 = arith.constant 0 : i32
    return %c0_i32, %c0_i32_0 : i32, i32
  }
  func.func @transform_2(%arg0: i32) -> (i32, i32) {
    %c0_i32 = arith.constant 0 : i32
    %c0_i32_0 = arith.constant 0 : i32
    %c0_i32_1 = arith.constant 0 : i32
    return %c0_i32, %c0_i32_0 : i32, i32
  }
  func.func @transform_3(%arg0: i32) -> (i32, i32) {
    %c0_i32 = arith.constant 0 : i32
    %c0_i32_0 = arith.constant 0 : i32
    %c0_i32_1 = arith.constant 0 : i32
    return %c0_i32, %c0_i32_0 : i32, i32
  }
  func.func @transform_4(%arg0: i32) -> (i32, i32) {
    %c0_i32 = arith.constant 0 : i32
    %c0_i32_0 = arith.constant 0 : i32
    %c0_i32_1 = arith.constant 0 : i32
    return %c0_i32, %c0_i32_0 : i32, i32
  }
  func.func @transform_5(%arg0: i32) -> (i32, i32) {
    %c0_i32 = arith.constant 0 : i32
    %c0_i32_0 = arith.constant 0 : i32
    %c0_i32_1 = arith.constant 0 : i32
    return %c0_i32, %c0_i32_0 : i32, i32
  }
  func.func @transform_6(%arg0: i32) -> (i32, i32) {
    %c0_i32 = arith.constant 0 : i32
    %c0_i32_0 = arith.constant 0 : i32
    %c0_i32_1 = arith.constant 0 : i32
    return %c0_i32, %c0_i32_0 : i32, i32
  }
  func.func @transform_7(%arg0: i32) -> (i32, i32) {
    %c0_i32 = arith.constant 0 : i32
    %c0_i32_0 = arith.constant 0 : i32
    %c0_i32_1 = arith.constant 0 : i32
    return %c0_i32, %c0_i32_0 : i32, i32
  }
  func.func @transform_8(%arg0: i32) -> (i32, i32) {
    %c0_i32 = arith.constant 0 : i32
    %c0_i32_0 = arith.constant 0 : i32
    %c0_i32_1 = arith.constant 0 : i32
    return %c0_i32, %c0_i32_0 : i32, i32
  }
  func.func @transform_9(%arg0: i32) -> (i32, i32) {
    %c0_i32 = arith.constant 0 : i32
    %c0_i32_0 = arith.constant 0 : i32
    %c0_i32_1 = arith.constant 0 : i32
    return %c0_i32, %c0_i32_0 : i32, i32
  }
  func.func @transform_10(%arg0: i32) -> (i32, i32) {
    %c0_i32 = arith.constant 0 : i32
    %c0_i32_0 = arith.constant 0 : i32
    %c0_i32_1 = arith.constant 0 : i32
    return %c0_i32, %c0_i32_0 : i32, i32
  }
  func.func @transform_11(%arg0: i32) -> (i32, i32) {
    %c0_i32 = arith.constant 0 : i32
    %c0_i32_0 = arith.constant 0 : i32
    return %arg0, %c0_i32 : i32, i32
  }
}

</mosaic_0001>

<bundles_post_ra>
// kernel: critic_forward.1
= control target key start
LH: loop header
LB: loop body
LE: loop exit
PB: predicated region body
PF: predicated region fallthrough
CT: control target
= control target key end

     0   :  { %s18526_s0 = inlined_call_operand.vmem [shape: f32[2,384], index: 0, kind: input, shape index: {}]   ;;  %s18527_s1 = inlined_call_operand.hbm [shape: bf16[384,768], index: 1, kind: input, shape index: {}]   ;;  %s18528_s2 = inlined_call_operand.hbm [shape: f32[1,768], index: 2, kind: input, shape index: {}]   ;;  %s18529_s3 = inlined_call_operand.hbm [shape: bf16[768,1664], index: 3, kind: input, shape index: {}]   ;;  %s18530_s4 = inlined_call_operand.hbm [shape: f32[1,1664], index: 4, kind: input, shape index: {}]   ;;  %s18531_s5 = inlined_call_operand.hbm [shape: bf16[1664,1024], index: 5, kind: input, shape index: {}]   ;;  %s18532_s6 = inlined_call_operand.hbm [shape: f32[1,1024], index: 6, kind: input, shape index: {}]   ;;  %s18533_s7 = inlined_call_operand.hbm [shape: bf16[1024,512], index: 7, kind: input, shape index: {}]   ;;  %s18534_s8 = inlined_call_operand.hbm [shape: f32[1,512], index: 8, kind: input, shape index: {}]   ;;  %s18535_s9 = inlined_call_operand.hbm [shape: f32[1,512], index: 9, kind: input, shape index: {}]   ;;  %s18536_s10 = inlined_call_operand.<no memory space> [shape: f32[1,1], index: 10, kind: input, shape index: {}]   ;;  %s18537_s11 = inlined_call_operand.vmem [shape: f32[2,1], index: 11, kind: output, shape index: {}]  }
   0x1   :  { %v16_v0 = vstv %s18536_s10 }
   0x2   :  { %17 = vst [vmem:[#allocation2] sm:$0x1] %v16_v0 }
   0x3   :  { %18 = vsyncpa [#allocation4], 0 }
   0x4   :  { %19 = vsyncpa [#allocation6], 0 }
   0x5   :  { %20 = vsyncpa [#allocation9], 0 }
   0x6   :  { %21 = vsyncpa [#allocation12], 0 }
   0x7   :  { %22 = vsyncpa [#allocation15], 0  ;;  %s17917_s19 = smov [#allocation5]   ;;  %s17918_s21 = smov [#allocation8]  }
   0x8   :  { %s43_s20 = sshll.u32 %s17917_s19, 4  ;;  %s65_s22 = sshll.u32 %s17918_s21, 4  ;;  %s44_s20 = int_to_ptr.vmem [resolvable:$true] %s43_s20  ;;  %s66_s22 = int_to_ptr.vmem [resolvable:$true] %s65_s22 }
   0x9   :  { %s17735_s23 = scalar_lea.vmem %s44_s20, 96  ;;  %p17740_p1 = scmp.lt.s32.totalorder %s44_s20, %s44_s20 }
   0xa   :  { %p17736_p0 = scmp.ne.s32.totalorder %s44_s20, %s17735_s23  ;;  %p17741_p2 = scmp.lt.s32.totalorder %s17735_s23, %s17735_s23 }
   0xc   :  { %p17742_p3 = por %p17741_p2, %p17740_p1 }
   0xe   :  { %p17743_p4 = pnand %p17742_p3, %p17736_p0 }
  0x10   :  { %17746 = shalt.err (!%p17743_p4)
}
  0x11   :  { %46 = dma.hbm_to_vmem [thread:$0]  %s18528_s2, 96, %s44_s20, [#allocation6]  }
  0x12   :  { %s17755_s25 = scalar_lea.vmem %s66_s22, 208  ;;  %s17759_s26 = scalar_lea.vmem %s66_s22, 224 }
  0x13   :  { %p17756_p5 = scmp.ne.s32.totalorder %s66_s22, %s17755_s25  ;;  %p17760_p6 = scmp.lt.s32.totalorder %s66_s22, %s66_s22 }
  0x14   :  { %p17761_p7 = scmp.lt.s32.totalorder %s17759_s26, %s17755_s25 }
  0x16   :  { %p17762_p8 = por %p17761_p7, %p17760_p6 }
  0x18   :  { %p17763_p9 = pnand %p17762_p8, %p17756_p5 }
  0x1a   :  { %17766 = shalt.err (!%p17763_p9)
}
  0x1b   :  { %68 = dma.hbm_to_vmem [thread:$0]  %s18530_s4, 208, %s66_s22, [#allocation9]  }
  0x1c   :  { %s17919_s29 = smov [#allocation11]   ;;  %s17920_s12 = smov [#allocation14]  }
  0x1d   :  { %s87_s30 = sshll.u32 %s17919_s29, 4  ;;  %s109_s13 = sshll.u32 %s17920_s12, 4  ;;  %s88_s30 = int_to_ptr.vmem [resolvable:$true] %s87_s30  ;;  %s110_s13 = int_to_ptr.vmem [resolvable:$true] %s109_s13 }
  0x1e   :  { %s17775_s14 = scalar_lea.vmem %s88_s30, 128  ;;  %p17780_p11 = scmp.lt.s32.totalorder %s88_s30, %s88_s30 }
  0x1f   :  { %p17776_p10 = scmp.ne.s32.totalorder %s88_s30, %s17775_s14  ;;  %p17781_p12 = scmp.lt.s32.totalorder %s17775_s14, %s17775_s14 }
  0x21   :  { %p17782_p13 = por %p17781_p12, %p17780_p11 }
  0x23   :  { %p17783_p0 = pnand %p17782_p13, %p17776_p10 }
  0x25   :  { %17786 = shalt.err (!%p17783_p0)
}
  0x26   :  { %90 = dma.hbm_to_vmem [thread:$0]  %s18532_s6, 128, %s88_s30, [#allocation12]  }
  0x27   :  { %s17795_s16 = scalar_lea.vmem %s110_s13, 64  ;;  %p17800_p2 = scmp.lt.s32.totalorder %s110_s13, %s110_s13 }
  0x28   :  { %p17796_p1 = scmp.ne.s32.totalorder %s110_s13, %s17795_s16  ;;  %p17801_p3 = scmp.lt.s32.totalorder %s17795_s16, %s17795_s16 }
  0x2a   :  { %p17802_p4 = por %p17801_p3, %p17800_p2 }
  0x2c   :  { %p17803_p5 = pnand %p17802_p4, %p17796_p1 }
  0x2e   :  { %17806 = shalt.err (!%p17803_p5)
}
  0x2f   :  { %112 = dma.hbm_to_vmem [thread:$0]  %s18534_s8, 64, %s110_s13, [#allocation15]  }
  0x30   :  { %s17921_s18 = smov [#allocation3]  }
  0x31   :  { %s30_s19 = sshll.u32 %s17921_s18, 4  ;;  %s31_s19 = int_to_ptr.vmem [resolvable:$true] %s30_s19 }
  0x32   :  { %s17815_s20 = scalar_lea.vmem %s31_s19, 18432  ;;  %p17820_p7 = scmp.lt.s32.totalorder %s31_s19, %s31_s19 }
  0x33   :  { %p17816_p6 = scmp.ne.s32.totalorder %s31_s19, %s17815_s20  ;;  %p17821_p8 = scmp.lt.s32.totalorder %s17815_s20, %s17815_s20 }
  0x35   :  { %p17822_p9 = por %p17821_p8, %p17820_p7 }
  0x37   :  { %p17823_p10 = pnand %p17822_p9, %p17816_p6 }
  0x39   :  { %17826 = shalt.err (!%p17823_p10)
}
  0x3a   :  { %s17922_s6 = smov 384   ;;  %s17923_s21 = smov 24  }
  0x3b   :  { %36 = dma.hbm_to_vmem [thread:$0]  %s18527_s1, 18432, %s31_s19, [#allocation4], %s17922_s6, %s17922_s6, %s17923_s21  }
  0x3c   :  { %s17924_s10 = smov [#allocation7]  }
  0x3d   :  { %s52_s24 = sshll.u32 %s17924_s10, 4  ;;  %s53_s24 = int_to_ptr.vmem [resolvable:$true] %s52_s24 }
  0x3e   :  { %s17835_s8 = scalar_lea.vmem %s53_s24, 79872  ;;  %p17840_p12 = scmp.lt.s32.totalorder %s53_s24, %s53_s24 }
  0x3f   :  { %p17836_p11 = scmp.ne.s32.totalorder %s53_s24, %s17835_s8  ;;  %p17841_p13 = scmp.lt.s32.totalorder %s17835_s8, %s17835_s8 }
  0x41   :  { %p17842_p0 = por %p17841_p13, %p17840_p12 }
  0x43   :  { %p17843_p1 = pnand %p17842_p0, %p17836_p11 }
  0x45   :  { %17846 = shalt.err (!%p17843_p1)
}
  0x46   :  { %s17925_s25 = smov 832   ;;  %s17926_s26 = smov 52  }
  0x47   :  { %58 = dma.hbm_to_vmem [thread:$0]  %s18529_s3, 79872, %s53_s24, [#allocation6], %s17925_s25, %s17925_s25, %s17926_s26  }
  0x48   :  { %s17927_s29 = smov [#allocation10]  }
  0x49   :  { %s74_s30 = sshll.u32 %s17927_s29, 4  ;;  %s75_s30 = int_to_ptr.vmem [resolvable:$true] %s74_s30 }
  0x4a   :  { %s17855_s1 = scalar_lea.vmem %s75_s30, 106496  ;;  %p17860_p3 = scmp.lt.s32.totalorder %s75_s30, %s75_s30 }
  0x4b   :  { %p17856_p2 = scmp.ne.s32.totalorder %s75_s30, %s17855_s1  ;;  %p17861_p4 = scmp.lt.s32.totalorder %s17855_s1, %s17855_s1 }
  0x4d   :  { %p17862_p5 = por %p17861_p4, %p17860_p3 }
  0x4f   :  { %p17863_p6 = pnand %p17862_p5, %p17856_p2 }
  0x51   :  { %17866 = shalt.err (!%p17863_p6)
}
  0x52   :  { %s17928_s12 = smov 512   ;;  %s17929_s13 = smov 32  }
  0x53   :  { %80 = dma.hbm_to_vmem [thread:$0]  %s18531_s5, 106496, %s75_s30, [#allocation9], %s17928_s12, %s17928_s12, %s17929_s13  }
  0x54   :  { %s17930_s15 = smov [#allocation13]  }
  0x55   :  { %s96_s16 = sshll.u32 %s17930_s15, 4  ;;  %s97_s16 = int_to_ptr.vmem [resolvable:$true] %s96_s16 }
  0x56   :  { %s17875_s3 = scalar_lea.vmem %s97_s16, 32768  ;;  %p17880_p8 = scmp.lt.s32.totalorder %s97_s16, %s97_s16 }
  0x57   :  { %p17876_p7 = scmp.ne.s32.totalorder %s97_s16, %s17875_s3  ;;  %p17881_p9 = scmp.lt.s32.totalorder %s17875_s3, %s17875_s3 }
  0x59   :  { %p17882_p10 = por %p17881_p9, %p17880_p8 }
  0x5b   :  { %p17883_p11 = pnand %p17882_p10, %p17876_p7 }
  0x5d   :  { %17886 = shalt.err (!%p17883_p11)
}
  0x5e   :  { %s17931_s4 = smov 256   ;;  %s17932_s17 = smov 16  }
  0x5f   :  { %102 = dma.hbm_to_vmem [thread:$0]  %s18533_s7, 32768, %s97_s16, [#allocation12], %s17931_s4, %s17931_s4, %s17932_s17  }
  0x60   :  { %s17933_s20 = smov [#allocation16]  }
  0x61   :  { %s119_s6 = sshll.u32 %s17933_s20, 4  ;;  %s120_s6 = int_to_ptr.vmem [resolvable:$true] %s119_s6 }
  0x62   :  { %s17895_s5 = scalar_lea.vmem %s120_s6, 64  ;;  %p17900_p13 = scmp.lt.s32.totalorder %s120_s6, %s120_s6 }
  0x63   :  { %p17896_p12 = scmp.ne.s32.totalorder %s120_s6, %s17895_s5  ;;  %p17901_p0 = scmp.lt.s32.totalorder %s17895_s5, %s17895_s5 }
  0x65   :  { %p17902_p1 = por %p17901_p0, %p17900_p13 }
  0x67   :  { %p17903_p2 = pnand %p17902_p1, %p17896_p12 }
  0x69   :  { %17906 = shalt.err (!%p17903_p2)
}
  0x6a   :  { %122 = dma.hbm_to_vmem [thread:$0]  %s18535_s9, 64, %s120_s6, [#allocation15]  }
  0x6b   :  { %17907 = dma.done.wait [#allocation4], 18432  }
  0x6c   :  { %17908 = vsyncadd [#allocation4], 4294948864 }
  0x6d   :  { %17909 = dma.done.wait [#allocation6], 79968  }
  0x6e   :  { %17910 = vsyncadd [#allocation6], 4294887328 }
  0x6f   :  { %17911 = dma.done.wait [#allocation9], 106704  }
  0x70   :  { %17912 = vsyncadd [#allocation9], 4294860592 }
  0x71   :  { %17913 = dma.done.wait [#allocation12], 32896  }
  0x72   :  { %17914 = vsyncadd [#allocation12], 4294934400 }
  0x73   :  { %17915 = dma.done.wait [#allocation15], 128  }
  0x74   :  { %17916 = vsyncadd [#allocation15], 4294967168  ;;  %v17934_v1 = vmov 0   ;;  %v16209_v2 = vld [vmem:[#allocation3 + $0x154] ss:$24 sps:$4 sm:$0xff]   ;;  %v159_v24 = vlaneseq  ;;  %vm14238_vm0 = vcmask 1041408  }
  0x75   :  { %1146 = vmatprep.mubr.bf16.mxu1 %v17934_v1  ;;  %v16211_v3 = vld [vmem:[#allocation3 + $0x454] ss:$24 sps:$4 sm:$0xff]   ;;  %1073 = vmatprep.subr.bf16.mxu0 %v16209_v2  ;;  %v16213_v4 = vld [vmem:[#allocation3 + $0x150] ss:$24 sps:$4 sm:$0xff]   ;;  %v16215_v6 = vld [vmem:[#allocation3 + $0x124] ss:$24 sps:$4 sm:$0xff]  }
  0x76   :  { %v16214_v5 = vld [vmem:[#allocation3 + $0x450] ss:$24 sps:$4 sm:$0xff]   ;;  %1114 = vmatprep.subr.bf16.mxu1 %v16211_v3  ;;  %1074 = vmatpush1.bf16.msra.mxu0 %v16213_v4  ;;  %v16217_v7 = vld [vmem:[#allocation3 + $0x424] ss:$24 sps:$4 sm:$0xff]   ;;  %v16219_v8 = vld [vmem:[#allocation3 + $0x120] ss:$24 sps:$4 sm:$0xff]  }
  0x77   :  { %1115 = vmatpush1.bf16.msra.mxu1 %v16214_v5  ;;  %1075 = vmatprep.subr.bf16.mxu0 %v16215_v6  ;;  %v16220_v9 = vld [vmem:[#allocation3 + $0x420] ss:$24 sps:$4 sm:$0xff]   ;;  %v16221_v10 = vld [vmem:[#allocation3 + $0xf4] ss:$24 sps:$4 sm:$0xff]   ;;  %v16225_v12 = vld [vmem:[#allocation3 + $0xf0] ss:$24 sps:$4 sm:$0xff]  }
  0x78   :  { %1116 = vmatprep.subr.bf16.mxu1 %v16217_v7  ;;  %v16223_v11 = vld [vmem:[#allocation3 + $0x3f4] ss:$24 sps:$4 sm:$0xff]   ;;  %v16226_v13 = vld [vmem:[#allocation3 + $0x3f0] ss:$24 sps:$4 sm:$0xff]   ;;  %v16227_v14 = vld [vmem:[#allocation3 + $0xc4] ss:$24 sps:$4 sm:$0xff]  }
  0x79   :  { %v16229_v15 = vld [vmem:[#allocation3 + $0x3c4] ss:$24 sps:$4 sm:$0xff]   ;;  %v16231_v16 = vld [vmem:[#allocation3 + $0xc0] ss:$24 sps:$4 sm:$0xff]   ;;  %v16233_v18 = vld [vmem:[#allocation3 + $0x94] ss:$24 sps:$4 sm:$0xff]  }
  0x7a   :  { %1076 = vmatpush1.bf16.msra.mxu0 %v16219_v8  ;;  %v16232_v17 = vld [vmem:[#allocation3 + $0x3c0] ss:$24 sps:$4 sm:$0xff]   ;;  %v16235_v19 = vld [vmem:[#allocation3 + $0x394] ss:$24 sps:$4 sm:$0xff]   ;;  %v16237_v20 = vld [vmem:[#allocation3 + $0x90] ss:$24 sps:$4 sm:$0xff]  }
  0x7b   :  { %1117 = vmatpush1.bf16.msra.mxu1 %v16220_v9  ;;  %1077 = vmatprep.subr.bf16.mxu0 %v16221_v10  ;;  %v16238_v21 = vld [vmem:[#allocation3 + $0x390] ss:$24 sps:$4 sm:$0xff]   ;;  %v17935_v22 = vmov 1983009808   ;;  %v16239_v25 = vld [vmem:[#allocation3 + $0x64] ss:$24 sps:$4 sm:$0xff]  }
  0x7c   :  { %1118 = vmatprep.subr.bf16.mxu1 %v16223_v11  ;;  %v157_v23 = vunpack.c.l.s4 %v17935_v22  ;;  %v16241_v26 = vld [vmem:[#allocation3 + $0x364] ss:$24 sps:$4 sm:$0xff]   ;;  %v16243_v27 = vld [vmem:[#allocation3 + $0x60] ss:$24 sps:$4 sm:$0xff]   ;;  %v18027_v29 = vshrl.u32 %v159_v24, 7  ;;  %vm14256_vm1 = vcmask 1024  }
  0x7d   :  { %v16244_v30 = vld [vmem:[#allocation3 + $0x360] ss:$24 sps:$4 sm:$0xff]   ;;  %v16245_v31 = vld [vmem:[#allocation3 + $0x34] ss:$24 sps:$4 sm:$0xff]   ;;  %v16249_v33 = vld [vmem:[#allocation3 + $0x30] ss:$24 sps:$4 sm:$0xff]  }
  0x7e   :  { %1078 = vmatpush1.bf16.msra.mxu0 %v16225_v12  ;;  %v158_v28 = vunpack.c.0.s8 %v157_v23  ;;  %v16247_v32 = vld [vmem:[#allocation3 + $0x334] ss:$24 sps:$4 sm:$0xff]   ;;  %v16250_v34 = vld [vmem:[#allocation3 + $0x330] ss:$24 sps:$4 sm:$0xff]   ;;  %v16251_v35 = vld [vmem:[#allocation3 + $0x4] ss:$24 sps:$4 sm:$0xff]  }
  0x7f   :  { %1119 = vmatpush1.bf16.msra.mxu1 %v16226_v13  ;;  %1079 = vmatprep.subr.bf16.mxu0 %v16227_v14  ;;  %v153_v37 = vld [vmem:[%s18526_s0] sm:$0x3f]  ;;  %v16257_v45 = vld [vmem:[#allocation3 + $0x2d4] ss:$24 sps:$4 sm:$0xff]   ;;  %v16259_v48 = vld [vmem:[#allocation3 + $0x158] ss:$24 sps:$4 sm:$0xff]  }
  0x80   :  { %1120 = vmatprep.subr.bf16.mxu1 %v16229_v15  ;;  %v161_v36 = vsub.s32 %v158_v28, %v18027_v29  ;;  %v16253_v38 = vld [vmem:[#allocation3 + $0x304] ss:$24 sps:$4 sm:$0xff]   ;;  %v155_v39 = vcombine.high %v153_v37, %v153_v37  ;;  %v16255_v41 = vld [vmem:[#allocation3] ss:$24 sps:$4 sm:$0xff]   ;;  %v16262_v49 = vld [vmem:[#allocation3 + $0x2d0] ss:$24 sps:$4 sm:$0xff]  }
  0x81   :  { %v16256_v44 = vld [vmem:[#allocation3 + $0x300] ss:$24 sps:$4 sm:$0xff]   ;;  %v16261_v46 = vld [vmem:[#allocation3 + $0x15c] ss:$24 sps:$4 sm:$0xff]   ;;  %v16268_v52 = vld [vmem:[#allocation3 + $0x12c] ss:$24 sps:$4 sm:$0xff]  }
  0x82   :  { %1080 = vmatpush1.bf16.msra.mxu0 %v16231_v16  ;;  %v18033_v40 = vrot.slane %v153_v37, %v161_v36  ;;  %v169_v42 = vrot.slane %v155_v39, %v161_v36  ;;  %v16264_v51 = vld [vmem:[#allocation3 + $0x2a4] ss:$24 sps:$4 sm:$0xff]   ;;  %v16266_v53 = vld [vmem:[#allocation3 + $0x128] ss:$24 sps:$4 sm:$0xff]   ;;  %v16270_v55 = vld [vmem:[#allocation3 + $0x274] ss:$24 sps:$4 sm:$0xff]  }
  0x83   :  { %1121 = vmatpush1.bf16.msra.mxu1 %v16232_v17  ;;  %1081 = vmatprep.subr.bf16.mxu0 %v16233_v18  ;;  %v16269_v54 = vld [vmem:[#allocation3 + $0x2a0] ss:$24 sps:$4 sm:$0xff]   ;;  %v16274_v56 = vld [vmem:[#allocation3 + $0xfc] ss:$24 sps:$4 sm:$0xff]   ;;  %v16275_v58 = vld [vmem:[#allocation3 + $0x270] ss:$24 sps:$4 sm:$0xff]  }
  0x84   :  { %1122 = vmatprep.subr.bf16.mxu1 %v16235_v19  ;;  %v170_v43 = vcombine.high %v18033_v40, %v18033_v40  ;;  %v18039_v50 = vpack.c.bf16 %v169_v42, %v169_v42  ;;  %v16272_v57 = vld [vmem:[#allocation3 + $0xf8] ss:$24 sps:$4 sm:$0xff]   ;;  %v16276_v59 = vld [vmem:[#allocation3 + $0x244] ss:$24 sps:$4 sm:$0xff]   ;;  %v16278_v61 = vld [vmem:[#allocation3 + $0xc8] ss:$24 sps:$4 sm:$0xff]   ;;  %v18046_v18 = vpack.c.bf16 %v18033_v40, %v18033_v40 }
  0x85   :  { %v16280_v60 = vld [vmem:[#allocation3 + $0xcc] ss:$24 sps:$4 sm:$0xff]   ;;  %v16281_v62 = vld [vmem:[#allocation3 + $0x240] ss:$24 sps:$4 sm:$0xff]   ;;  %v16286_v0 = vld [vmem:[#allocation3 + $0x9c] ss:$24 sps:$4 sm:$0xff]  }
  0x86   :  { %1082 = vmatpush1.bf16.msra.mxu0 %v16237_v20  ;;  %v18037_v47 = vpack.c.bf16 %v170_v43, %v170_v43  ;;  %v16282_v63 = vld [vmem:[#allocation3 + $0x214] ss:$24 sps:$4 sm:$0xff]   ;;  %v16284_v2 = vld [vmem:[#allocation3 + $0x98] ss:$24 sps:$4 sm:$0xff]   ;;  %v16288_v4 = vld [vmem:[#allocation3 + $0x1e4] ss:$24 sps:$4 sm:$0xff]  }
  0x87   :  { %1123 = vmatpush1.bf16.msra.mxu1 %v16238_v21  ;;  %1083 = vmatprep.subr.bf16.mxu0 %v16239_v25  ;;  %v16287_v3 = vld [vmem:[#allocation3 + $0x210] ss:$24 sps:$4 sm:$0xff]   ;;  %v16292_v5 = vld [vmem:[#allocation3 + $0x6c] ss:$24 sps:$4 sm:$0xff]   ;;  %v16293_v7 = vld [vmem:[#allocation3 + $0x1e0] ss:$24 sps:$4 sm:$0xff]  }
  0x88   :  { %1124 = vmatprep.subr.bf16.mxu1 %v16241_v26  ;;  %1105 = vmatprep.mubr.bf16.mxu0 %v18037_v47  ;;  %v16290_v6 = vld [vmem:[#allocation3 + $0x68] ss:$24 sps:$4 sm:$0xff]   ;;  %v16294_v8 = vld [vmem:[#allocation3 + $0x1b4] ss:$24 sps:$4 sm:$0xff]   ;;  %v16296_v10 = vld [vmem:[#allocation3 + $0x38] ss:$24 sps:$4 sm:$0xff]  }
  0x89   :  { %v16298_v9 = vld [vmem:[#allocation3 + $0x3c] ss:$24 sps:$4 sm:$0xff]   ;;  %v16299_v11 = vld [vmem:[#allocation3 + $0x1b0] ss:$24 sps:$4 sm:$0xff]   ;;  %v16304_v13 = vld [vmem:[#allocation3 + $0xc] ss:$24 sps:$4 sm:$0xff]  }
  0x8a   :  { %1084 = vmatpush1.bf16.msra.mxu0 %v16243_v27  ;;  %v16300_v12 = vld [vmem:[#allocation3 + $0x184] ss:$24 sps:$4 sm:$0xff]   ;;  %v16302_v14 = vld [vmem:[#allocation3 + $0x8] ss:$24 sps:$4 sm:$0xff]   ;;  %v16306_v19 = vld [vmem:[#allocation3 + $0x2d8] ss:$24 sps:$4 sm:$0xff]  }
  0x8b   :  { %1125 = vmatpush1.bf16.msra.mxu1 %v16244_v30  ;;  %1085 = vmatprep.subr.bf16.mxu0 %v16245_v31  ;;  %v16305_v15 = vld [vmem:[#allocation3 + $0x180] ss:$24 sps:$4 sm:$0xff]   ;;  %v16308_v16 = vld [vmem:[#allocation3 + $0x2dc] ss:$24 sps:$4 sm:$0xff]   ;;  %v16314_v21 = vld [vmem:[#allocation3 + $0x2ac] ss:$24 sps:$4 sm:$0xff]  }
  0x8c   :  { %1126 = vmatprep.subr.bf16.mxu1 %v16247_v32  ;;  %v16311_v17 = vld [vmem:[#allocation3 + $0x45c] ss:$24 sps:$4 sm:$0xff]   ;;  %v16309_v20 = vld [vmem:[#allocation3 + $0x458] ss:$24 sps:$4 sm:$0xff]   ;;  %v16317_v22 = vld [vmem:[#allocation3 + $0x42c] ss:$24 sps:$4 sm:$0xff]  }
  0x8d   :  { %v16312_v23 = vld [vmem:[#allocation3 + $0x2a8] ss:$24 sps:$4 sm:$0xff]   ;;  %v16320_v25 = vld [vmem:[#allocation3 + $0x27c] ss:$24 sps:$4 sm:$0xff]   ;;  %v16318_v27 = vld [vmem:[#allocation3 + $0x278] ss:$24 sps:$4 sm:$0xff]  }
  0x8e   :  { %1086 = vmatpush1.bf16.msra.mxu0 %v16249_v33  ;;  %v16315_v24 = vld [vmem:[#allocation3 + $0x428] ss:$24 sps:$4 sm:$0xff]   ;;  %v16323_v26 = vld [vmem:[#allocation3 + $0x3fc] ss:$24 sps:$4 sm:$0xff]   ;;  %v16321_v28 = vld [vmem:[#allocation3 + $0x3f8] ss:$24 sps:$4 sm:$0xff]  }
  0x8f   :  { %1127 = vmatpush1.bf16.msra.mxu1 %v16250_v34  ;;  %1087 = vmatprep.subr.bf16.mxu0 %v16251_v35  ;;  %v16326_v30 = vld [vmem:[#allocation3 + $0x24c] ss:$24 sps:$4 sm:$0xff]   ;;  %v16324_v32 = vld [vmem:[#allocation3 + $0x248] ss:$24 sps:$4 sm:$0xff]   ;;  %v16332_v34 = vld [vmem:[#allocation3 + $0x21c] ss:$24 sps:$4 sm:$0xff]  }
  0x90   :  { %1128 = vmatprep.subr.bf16.mxu1 %v16253_v38  ;;  %v16329_v31 = vld [vmem:[#allocation3 + $0x3cc] ss:$24 sps:$4 sm:$0xff]   ;;  %v16327_v33 = vld [vmem:[#allocation3 + $0x3c8] ss:$24 sps:$4 sm:$0xff]   ;;  %v16335_v35 = vld [vmem:[#allocation3 + $0x39c] ss:$24 sps:$4 sm:$0xff]  }
  0x91   :  { %v16330_v36 = vld [vmem:[#allocation3 + $0x218] ss:$24 sps:$4 sm:$0xff]   ;;  %v16338_v38 = vld [vmem:[#allocation3 + $0x1ec] ss:$24 sps:$4 sm:$0xff]   ;;  %v16336_v40 = vld [vmem:[#allocation3 + $0x1e8] ss:$24 sps:$4 sm:$0xff]  }
  0x92   :  { %1088 = vmatpush1.bf16.msra.mxu0 %v16255_v41  ;;  %v16333_v37 = vld [vmem:[#allocation3 + $0x398] ss:$24 sps:$4 sm:$0xff]   ;;  %v16341_v39 = vld [vmem:[#allocation3 + $0x36c] ss:$24 sps:$4 sm:$0xff]   ;;  %v16339_v41 = vld [vmem:[#allocation3 + $0x368] ss:$24 sps:$4 sm:$0xff]  }
  0x93   :  { %1129 = vmatpush1.bf16.msra.mxu1 %v16256_v44  ;;  %1089 = vmatprep.subr.bf16.mxu0 %v16257_v45  ;;  %v16344_v42 = vld [vmem:[#allocation3 + $0x1bc] ss:$24 sps:$4 sm:$0xff]   ;;  %v16342_v44 = vld [vmem:[#allocation3 + $0x1b8] ss:$24 sps:$4 sm:$0xff]  }
  0x94   :  { %1155 = vmatprep.subr.bf16.mxu1 %v16261_v46  ;;  %v16347_v43 = vld [vmem:[#allocation3 + $0x33c] ss:$24 sps:$4 sm:$0xff]   ;;  %v16345_v45 = vld [vmem:[#allocation3 + $0x338] ss:$24 sps:$4 sm:$0xff]   ;;  %v16350_v46 = vld [vmem:[#allocation3 + $0x18c] ss:$24 sps:$4 sm:$0xff]  }
  0x96   :  { %1147 = vmatmul.mubr.bf16.vlgmr.msra.gmra.mxu1 %v18039_v50  ;;  %1090 = vmatpush2.bf16.msra.mxu0 %v16262_v49  ;;  %v16348_v49 = vld [vmem:[#allocation3 + $0x188] ss:$24 sps:$4 sm:$0xff]  }
  0x97   :  { %1156 = vmatpush1.bf16.msra.mxu1 %v16259_v48  ;;  %1091 = vmatprep.subr.bf16.mxu0 %v16264_v51  ;;  %v16353_v48 = vld [vmem:[#allocation3 + $0x30c] ss:$24 sps:$4 sm:$0xff]   ;;  %v16351_v51 = vld [vmem:[#allocation3 + $0x308] ss:$24 sps:$4 sm:$0xff]  }
  0x98   :  { %1157 = vmatprep.subr.bf16.mxu1 %v16268_v52  ;;  %1187 = vmatprep.mubr.bf16.mxu1 %v18037_v47  ;;  %v16356_v52 = vld [vmem:[#allocation3 + $0x164] ss:$24 sps:$4 sm:$0xff]  }
  0x9a   :  { %1092 = vmatpush2.bf16.msra.mxu0 %v16269_v54  ;;  %v16354_v54 = vld [vmem:[#allocation3 + $0x160] ss:$24 sps:$4 sm:$0xff]  }
  0x9b   :  { %1158 = vmatpush1.bf16.msra.mxu1 %v16266_v53  ;;  %1093 = vmatprep.subr.bf16.mxu0 %v16270_v55  ;;  %v16380_v53 = vld [vmem:[#allocation3 + $0x464] ss:$24 sps:$4 sm:$0xff]   ;;  %v16378_v55 = vld [vmem:[#allocation3 + $0x460] ss:$24 sps:$4 sm:$0xff]  }
  0x9c   :  { %1159 = vmatprep.subr.bf16.mxu1 %v16274_v56  ;;  %v16359_v56 = vld [vmem:[#allocation3 + $0x134] ss:$24 sps:$4 sm:$0xff]  }
  0x9e   :  { %1094 = vmatpush2.bf16.msra.mxu0 %v16275_v58  ;;  %v16357_v58 = vld [vmem:[#allocation3 + $0x130] ss:$24 sps:$4 sm:$0xff]  }
  0x9f   :  { %1160 = vmatpush1.bf16.msra.mxu1 %v16272_v57  ;;  %1095 = vmatprep.subr.bf16.mxu0 %v16276_v59  ;;  %v16386_v57 = vld [vmem:[#allocation3 + $0x434] ss:$24 sps:$4 sm:$0xff]   ;;  %v16384_v59 = vld [vmem:[#allocation3 + $0x430] ss:$24 sps:$4 sm:$0xff]  }
  0xa0   :  { %1161 = vmatprep.subr.bf16.mxu1 %v16280_v60  ;;  %v16362_v60 = vld [vmem:[#allocation3 + $0x104] ss:$24 sps:$4 sm:$0xff]  }
  0xa2   :  { %1096 = vmatpush2.bf16.msra.mxu0 %v16281_v62  ;;  %v16360_v62 = vld [vmem:[#allocation3 + $0x100] ss:$24 sps:$4 sm:$0xff]  }
  0xa3   :  { %1162 = vmatpush1.bf16.msra.mxu1 %v16278_v61  ;;  %1097 = vmatprep.subr.bf16.mxu0 %v16282_v63  ;;  %v16392_v61 = vld [vmem:[#allocation3 + $0x404] ss:$24 sps:$4 sm:$0xff]   ;;  %v16390_v63 = vld [vmem:[#allocation3 + $0x400] ss:$24 sps:$4 sm:$0xff]  }
  0xa4   :  { %1163 = vmatprep.subr.bf16.mxu1 %v16286_v0  ;;  %v16365_v0 = vld [vmem:[#allocation3 + $0xd4] ss:$24 sps:$4 sm:$0xff]  }
  0xa6   :  { %1098 = vmatpush2.bf16.msra.mxu0 %v16287_v3  ;;  %v16363_v3 = vld [vmem:[#allocation3 + $0xd0] ss:$24 sps:$4 sm:$0xff]  }
  0xa7   :  { %1164 = vmatpush1.bf16.msra.mxu1 %v16284_v2  ;;  %1099 = vmatprep.subr.bf16.mxu0 %v16288_v4  ;;  %v16398_v2 = vld [vmem:[#allocation3 + $0x3d4] ss:$24 sps:$4 sm:$0xff]   ;;  %v16396_v4 = vld [vmem:[#allocation3 + $0x3d0] ss:$24 sps:$4 sm:$0xff]  }
  0xa8   :  { %1165 = vmatprep.subr.bf16.mxu1 %v16292_v5  ;;  %v16368_v5 = vld [vmem:[#allocation3 + $0xa4] ss:$24 sps:$4 sm:$0xff]  }
  0xaa   :  { %1100 = vmatpush2.bf16.msra.mxu0 %v16293_v7  ;;  %v16366_v7 = vld [vmem:[#allocation3 + $0xa0] ss:$24 sps:$4 sm:$0xff]  }
  0xab   :  { %1166 = vmatpush1.bf16.msra.mxu1 %v16290_v6  ;;  %1101 = vmatprep.subr.bf16.mxu0 %v16294_v8  ;;  %v16404_v6 = vld [vmem:[#allocation3 + $0x3a4] ss:$24 sps:$4 sm:$0xff]   ;;  %v16371_v8 = vld [vmem:[#allocation3 + $0x74] ss:$24 sps:$4 sm:$0xff]  }
  0xac   :  { %1167 = vmatprep.subr.bf16.mxu1 %v16298_v9  ;;  %v16410_v9 = vld [vmem:[#allocation3 + $0x374] ss:$24 sps:$4 sm:$0xff]  }
  0xae   :  { %1102 = vmatpush2.bf16.msra.mxu0 %v16299_v11  ;;  %v16408_v11 = vld [vmem:[#allocation3 + $0x370] ss:$24 sps:$4 sm:$0xff]  }
  0xaf   :  { %1168 = vmatpush1.bf16.msra.mxu1 %v16296_v10  ;;  %1103 = vmatprep.subr.bf16.mxu0 %v16300_v12  ;;  %v16369_v10 = vld [vmem:[#allocation3 + $0x70] ss:$24 sps:$4 sm:$0xff]   ;;  %v16374_v12 = vld [vmem:[#allocation3 + $0x44] ss:$24 sps:$4 sm:$0xff]  }
  0xb0   :  { %1169 = vmatprep.subr.bf16.mxu1 %v16304_v13  ;;  %v16416_v13 = vld [vmem:[#allocation3 + $0x344] ss:$24 sps:$4 sm:$0xff]  }
  0xb2   :  { %1104 = vmatpush2.bf16.msra.mxu0 %v16305_v15  ;;  %v16414_v15 = vld [vmem:[#allocation3 + $0x340] ss:$24 sps:$4 sm:$0xff]  }
  0xb3   :  { %1170 = vmatpush1.bf16.msra.mxu1 %v16302_v14  ;;  %1196 = vmatprep.subr.bf16.mxu0 %v16311_v17  ;;  %v16372_v14 = vld [vmem:[#allocation3 + $0x40] ss:$24 sps:$4 sm:$0xff]   ;;  %v16422_v17 = vld [vmem:[#allocation3 + $0x314] ss:$24 sps:$4 sm:$0xff]  }
  0xb4   :  { %1171 = vmatprep.subr.bf16.mxu1 %v16308_v16  ;;  %v16377_v16 = vld [vmem:[#allocation3 + $0x14] ss:$24 sps:$4 sm:$0xff]  }
  0xb5   :  { %1106 = vmatmul.mubr.bf16.vlgmr.msra.gmra.mxu0 %v18046_v18 }
  0xb6   :  { %1197 = vmatpush1.bf16.msra.mxu0 %v16309_v20  ;;  %1228 = vmatprep.mubr.bf16.mxu0 %v17934_v1  ;;  %v16420_v20 = vld [vmem:[#allocation3 + $0x310] ss:$24 sps:$4 sm:$0xff]  }
  0xb7   :  { %1172 = vmatpush2.bf16.msra.mxu1 %v16306_v19  ;;  %1198 = vmatprep.subr.bf16.mxu0 %v16317_v22  ;;  %v16375_v19 = vld [vmem:[#allocation3 + $0x10] ss:$24 sps:$4 sm:$0xff]   ;;  %v16428_v22 = vld [vmem:[#allocation7 + $0x2dc] ss:$52 sps:$4 sm:$0xff]  }
  0xb8   :  { %1173 = vmatprep.subr.bf16.mxu1 %v16314_v21  ;;  %v16383_v21 = vld [vmem:[#allocation3 + $0x2e4] ss:$24 sps:$4 sm:$0xff]  }
  0xba   :  { %1199 = vmatpush1.bf16.msra.mxu0 %v16315_v24  ;;  %v16426_v24 = vld [vmem:[#allocation7 + $0x2d8] ss:$52 sps:$4 sm:$0xff]  }
  0xbb   :  { %1174 = vmatpush2.bf16.msra.mxu1 %v16312_v23  ;;  %1200 = vmatprep.subr.bf16.mxu0 %v16323_v26  ;;  %v16381_v23 = vld [vmem:[#allocation3 + $0x2e0] ss:$24 sps:$4 sm:$0xff]  }
  0xbc   :  { %1175 = vmatprep.subr.bf16.mxu1 %v16320_v25  ;;  %v16389_v25 = vld [vmem:[#allocation3 + $0x2b4] ss:$24 sps:$4 sm:$0xff]  }
  0xbd   :  { %v16431_v26 = vld [vmem:[#allocation7 + $0x274] ss:$52 sps:$4 sm:$0xff]  }
  0xbe   :  { %1201 = vmatpush1.bf16.msra.mxu0 %v16321_v28  ;;  %v16429_v28 = vld [vmem:[#allocation7 + $0x270] ss:$52 sps:$4 sm:$0xff]  }
  0xbf   :  { %1176 = vmatpush2.bf16.msra.mxu1 %v16318_v27  ;;  %1202 = vmatprep.subr.bf16.mxu0 %v16329_v31  ;;  %v16387_v27 = vld [vmem:[#allocation3 + $0x2b0] ss:$24 sps:$4 sm:$0xff]  }
  0xc0   :  { %1177 = vmatprep.subr.bf16.mxu1 %v16326_v30  ;;  %v16395_v30 = vld [vmem:[#allocation3 + $0x284] ss:$24 sps:$4 sm:$0xff]  }
  0xc1   :  { %v16434_v31 = vld [vmem:[#allocation7 + $0x20c] ss:$52 sps:$4 sm:$0xff]  }
  0xc2   :  { %1203 = vmatpush1.bf16.msra.mxu0 %v16327_v33  ;;  %v16432_v33 = vld [vmem:[#allocation7 + $0x208] ss:$52 sps:$4 sm:$0xff]  }
  0xc3   :  { %1178 = vmatpush2.bf16.msra.mxu1 %v16324_v32  ;;  %1204 = vmatprep.subr.bf16.mxu0 %v16335_v35  ;;  %v16393_v32 = vld [vmem:[#allocation3 + $0x280] ss:$24 sps:$4 sm:$0xff]  }
  0xc4   :  { %1179 = vmatprep.subr.bf16.mxu1 %v16332_v34  ;;  %v16401_v34 = vld [vmem:[#allocation3 + $0x254] ss:$24 sps:$4 sm:$0xff]  }
  0xc5   :  { %v16437_v35 = vld [vmem:[#allocation7 + $0x1a4] ss:$52 sps:$4 sm:$0xff]  }
  0xc6   :  { %1205 = vmatpush1.bf16.msra.mxu0 %v16333_v37  ;;  %v16407_v37 = vld [vmem:[#allocation3 + $0x224] ss:$24 sps:$4 sm:$0xff]  }
  0xc7   :  { %1180 = vmatpush2.bf16.msra.mxu1 %v16330_v36  ;;  %1206 = vmatprep.subr.bf16.mxu0 %v16341_v39  ;;  %v16399_v36 = vld [vmem:[#allocation3 + $0x250] ss:$24 sps:$4 sm:$0xff]   ;;  %v16405_v39 = vld [vmem:[#allocation3 + $0x220] ss:$24 sps:$4 sm:$0xff]  }
  0xc8   :  { %1181 = vmatprep.subr.bf16.mxu1 %v16338_v38  ;;  %v16440_v38 = vld [vmem:[#allocation7 + $0x13c] ss:$52 sps:$4 sm:$0xff]  }
  0xca   :  { %1207 = vmatpush1.bf16.msra.mxu0 %v16339_v41  ;;  %v16413_v41 = vld [vmem:[#allocation3 + $0x1f4] ss:$24 sps:$4 sm:$0xff]  }
  0xcb   :  { %1182 = vmatpush2.bf16.msra.mxu1 %v16336_v40  ;;  %1208 = vmatprep.subr.bf16.mxu0 %v16347_v43  ;;  %v16438_v40 = vld [vmem:[#allocation7 + $0x138] ss:$52 sps:$4 sm:$0xff]  }
  0xcc   :  { %1183 = vmatprep.subr.bf16.mxu1 %v16344_v42  ;;  %v16443_v42 = vld [vmem:[#allocation7 + $0xd4] ss:$52 sps:$4 sm:$0xff]  }
  0xcd   :  { %v16411_v43 = vld [vmem:[#allocation3 + $0x1f0] ss:$24 sps:$4 sm:$0xff]  }
  0xce   :  { %1209 = vmatpush1.bf16.msra.mxu0 %v16345_v45  ;;  %v16419_v45 = vld [vmem:[#allocation3 + $0x1c4] ss:$24 sps:$4 sm:$0xff]  }
  0xcf   :  { %1184 = vmatpush2.bf16.msra.mxu1 %v16342_v44  ;;  %1210 = vmatprep.subr.bf16.mxu0 %v16353_v48  ;;  %v16441_v44 = vld [vmem:[#allocation7 + $0xd0] ss:$52 sps:$4 sm:$0xff]  }
  0xd0   :  { %1185 = vmatprep.subr.bf16.mxu1 %v16350_v46  ;;  %v16446_v46 = vld [vmem:[#allocation7 + $0x6c] ss:$52 sps:$4 sm:$0xff]   ;;  %v16417_v48 = vld [vmem:[#allocation3 + $0x1c0] ss:$24 sps:$4 sm:$0xff]  }
  0xd2   :  { %1211 = vmatpush1.bf16.msra.mxu0 %v16351_v51  ;;  %v16425_v51 = vld [vmem:[#allocation3 + $0x194] ss:$24 sps:$4 sm:$0xff]  }
  0xd3   :  { %1186 = vmatpush2.bf16.msra.mxu1 %v16348_v49  ;;  %1237 = vmatprep.subr.bf16.mxu0 %v16356_v52  ;;  %v16444_v49 = vld [vmem:[#allocation7 + $0x68] ss:$52 sps:$4 sm:$0xff]   ;;  %v16449_v52 = vld [vmem:[#allocation7 + $0x4] ss:$52 sps:$4 sm:$0xff]  }
  0xd4   :  { %1278 = vmatprep.subr.bf16.mxu1 %v16380_v53  ;;  %v16423_v53 = vld [vmem:[#allocation3 + $0x190] ss:$24 sps:$4 sm:$0xff]  }
  0xd5   :  { %1229 = vmatmul.mubr.bf16.vlgmr.msra.gmra.mxu0 %v18039_v50 }
  0xd6   :  { %1188 = vmatmul.mubr.bf16.vlgmr.msra.gmra.mxu1 %v18046_v18  ;;  %1238 = vmatpush1.bf16.msra.mxu0 %v16354_v54  ;;  %v16447_v54 = vld [vmem:[#allocation7] ss:$52 sps:$4 sm:$0xff]  }
  0xd7   :  { %1279 = vmatpush1.bf16.msra.mxu1 %v16378_v55  ;;  %1239 = vmatprep.subr.bf16.mxu0 %v16359_v56  ;;  %v16452_v55 = vld [vmem:[#allocation7 + $0x95c] ss:$52 sps:$4 sm:$0xff]  }
  0xd8   :  { %1280 = vmatprep.subr.bf16.mxu1 %v16386_v57  ;;  %1310 = vmatprep.mubr.bf16.mxu1 %v17934_v1  ;;  %v16455_v56 = vld [vmem:[#allocation7 + $0x61c] ss:$52 sps:$4 sm:$0xff]   ;;  %v16450_v57 = vld [vmem:[#allocation7 + $0x958] ss:$52 sps:$4 sm:$0xff]  }
  0xd9   :  { %1269 = vmatprep.mubr.bf16.mxu0 %v18037_v47  ;;  %v16402_v47 = vld [vmem:[#allocation3 + $0x3a0] ss:$24 sps:$4 sm:$0xff]  }
  0xda   :  { %1240 = vmatpush1.bf16.msra.mxu0 %v16357_v58  ;;  %v16453_v58 = vld [vmem:[#allocation7 + $0x618] ss:$52 sps:$4 sm:$0xff]  }
  0xdb   :  { %1281 = vmatpush1.bf16.msra.mxu1 %v16384_v59  ;;  %1241 = vmatprep.subr.bf16.mxu0 %v16362_v60  ;;  %v16458_v59 = vld [vmem:[#allocation7 + $0x8f4] ss:$52 sps:$4 sm:$0xff]  }
  0xdc   :  { %1282 = vmatprep.subr.bf16.mxu1 %v16392_v61  ;;  %v16461_v60 = vld [vmem:[#allocation7 + $0x5b4] ss:$52 sps:$4 sm:$0xff]   ;;  %v16456_v61 = vld [vmem:[#allocation7 + $0x8f0] ss:$52 sps:$4 sm:$0xff]  }
  0xde   :  { %1242 = vmatpush1.bf16.msra.mxu0 %v16360_v62  ;;  %v16459_v62 = vld [vmem:[#allocation7 + $0x5b0] ss:$52 sps:$4 sm:$0xff]  }
  0xdf   :  { %1283 = vmatpush1.bf16.msra.mxu1 %v16390_v63  ;;  %1243 = vmatprep.subr.bf16.mxu0 %v16365_v0  ;;  %v16464_v63 = vld [vmem:[#allocation7 + $0x88c] ss:$52 sps:$4 sm:$0xff]  }
  0xe0   :  { %1284 = vmatprep.subr.bf16.mxu1 %v16398_v2  ;;  %v16467_v0 = vld [vmem:[#allocation7 + $0x54c] ss:$52 sps:$4 sm:$0xff]   ;;  %v16462_v2 = vld [vmem:[#allocation7 + $0x888] ss:$52 sps:$4 sm:$0xff]  }
  0xe2   :  { %1244 = vmatpush1.bf16.msra.mxu0 %v16363_v3  ;;  %v16465_v3 = vld [vmem:[#allocation7 + $0x548] ss:$52 sps:$4 sm:$0xff]  }
  0xe3   :  { %1285 = vmatpush1.bf16.msra.mxu1 %v16396_v4  ;;  %1245 = vmatprep.subr.bf16.mxu0 %v16368_v5  ;;  %v16470_v4 = vld [vmem:[#allocation7 + $0x824] ss:$52 sps:$4 sm:$0xff]  }
  0xe4   :  { %1286 = vmatprep.subr.bf16.mxu1 %v16404_v6  ;;  %v16473_v5 = vld [vmem:[#allocation7 + $0x4e4] ss:$52 sps:$4 sm:$0xff]   ;;  %v16468_v6 = vld [vmem:[#allocation7 + $0x820] ss:$52 sps:$4 sm:$0xff]  }
  0xe6   :  { %1246 = vmatpush1.bf16.msra.mxu0 %v16366_v7  ;;  %v16471_v7 = vld [vmem:[#allocation7 + $0x4e0] ss:$52 sps:$4 sm:$0xff]  }
  0xe7   :  { %1287 = vmatpush1.bf16.msra.mxu1 %v16402_v47  ;;  %1247 = vmatprep.subr.bf16.mxu0 %v16371_v8  ;;  %v16479_v47 = vld [vmem:[#allocation7 + $0x47c] ss:$52 sps:$4 sm:$0xff]   ;;  %v16474_v8 = vld [vmem:[#allocation7 + $0x7b8] ss:$52 sps:$4 sm:$0xff]  }
  0xe8   :  { %1288 = vmatprep.subr.bf16.mxu1 %v16410_v9  ;;  %v16477_v9 = vld [vmem:[#allocation7 + $0x478] ss:$52 sps:$4 sm:$0xff]  }
  0xea   :  { %1248 = vmatpush1.bf16.msra.mxu0 %v16369_v10  ;;  %v16482_v10 = vld [vmem:[#allocation7 + $0x754] ss:$52 sps:$4 sm:$0xff]  }
  0xeb   :  { %1289 = vmatpush1.bf16.msra.mxu1 %v16408_v11  ;;  %1249 = vmatprep.subr.bf16.mxu0 %v16374_v12  ;;  %v16485_v11 = vld [vmem:[#allocation7 + $0x414] ss:$52 sps:$4 sm:$0xff]   ;;  %v16480_v12 = vld [vmem:[#allocation7 + $0x750] ss:$52 sps:$4 sm:$0xff]  }
  0xec   :  { %1290 = vmatprep.subr.bf16.mxu1 %v16416_v13  ;;  %v16483_v13 = vld [vmem:[#allocation7 + $0x410] ss:$52 sps:$4 sm:$0xff]  }
  0xee   :  { %1250 = vmatpush1.bf16.msra.mxu0 %v16372_v14  ;;  %v16488_v14 = vld [vmem:[#allocation7 + $0x6ec] ss:$52 sps:$4 sm:$0xff]  }
  0xef   :  { %1291 = vmatpush1.bf16.msra.mxu1 %v16414_v15  ;;  %1251 = vmatprep.subr.bf16.mxu0 %v16377_v16  ;;  %v16491_v15 = vld [vmem:[#allocation7 + $0x3ac] ss:$52 sps:$4 sm:$0xff]   ;;  %v16486_v16 = vld [vmem:[#allocation7 + $0x6e8] ss:$52 sps:$4 sm:$0xff]  }
  0xf0   :  { %1292 = vmatprep.subr.bf16.mxu1 %v16422_v17  ;;  %v16489_v17 = vld [vmem:[#allocation7 + $0x3a8] ss:$52 sps:$4 sm:$0xff]  }
  0xf2   :  { %1252 = vmatpush1.bf16.msra.mxu0 %v16375_v19  ;;  %v16494_v19 = vld [vmem:[#allocation7 + $0x684] ss:$52 sps:$4 sm:$0xff]  }
  0xf3   :  { %1293 = vmatpush1.bf16.msra.mxu1 %v16420_v20  ;;  %1253 = vmatprep.subr.bf16.mxu0 %v16383_v21  ;;  %v16497_v20 = vld [vmem:[#allocation7 + $0x344] ss:$52 sps:$4 sm:$0xff]   ;;  %v16492_v21 = vld [vmem:[#allocation7 + $0x680] ss:$52 sps:$4 sm:$0xff]  }
  0xf4   :  { %5240 = vmatprep.subr.bf16.mxu1 %v16428_v22  ;;  %v16495_v22 = vld [vmem:[#allocation7 + $0x340] ss:$52 sps:$4 sm:$0xff]  }
  0xf6   :  { %1311 = vmatmul.mubr.bf16.vlgmr.msra.gmra.mxu1 %v18039_v50  ;;  %1254 = vmatpush2.bf16.msra.mxu0 %v16381_v23  ;;  %v16435_v50 = vld [vmem:[#allocation7 + $0x1a0] ss:$52 sps:$4 sm:$0xff]   ;;  %v16500_v23 = vld [vmem:[#allocation7 + $0xc9c] ss:$52 sps:$4 sm:$0xff]  }
  0xf7   :  { %5241 = vmatpush1.bf16.msra.mxu1 %v16426_v24  ;;  %1255 = vmatprep.subr.bf16.mxu0 %v16389_v25  ;;  %v16524_v24 = vld [vmem:[#allocation7 + $0xfdc] ss:$52 sps:$4 sm:$0xff]   ;;  %v16498_v25 = vld [vmem:[#allocation7 + $0xc98] ss:$52 sps:$4 sm:$0xff]  }
  0xf8   :  { %5242 = vmatprep.subr.bf16.mxu1 %v16431_v26  ;;  %v16503_v26 = vld [vmem:[#allocation7 + $0xc34] ss:$52 sps:$4 sm:$0xff]  }
  0xfa   :  { %1256 = vmatpush2.bf16.msra.mxu0 %v16387_v27  ;;  %v16501_v27 = vld [vmem:[#allocation7 + $0xc30] ss:$52 sps:$4 sm:$0xff]  }
  0xfb   :  { %5243 = vmatpush1.bf16.msra.mxu1 %v16429_v28  ;;  %1257 = vmatprep.subr.bf16.mxu0 %v16395_v30  ;;  %v16506_v28 = vld [vmem:[#allocation7 + $0xbcc] ss:$52 sps:$4 sm:$0xff]   ;;  %v16504_v30 = vld [vmem:[#allocation7 + $0xbc8] ss:$52 sps:$4 sm:$0xff]  }
  0xfc   :  { %5244 = vmatprep.subr.bf16.mxu1 %v16434_v31  ;;  %v16509_v31 = vld [vmem:[#allocation7 + $0xb64] ss:$52 sps:$4 sm:$0xff]  }
  0xfe   :  { %1258 = vmatpush2.bf16.msra.mxu0 %v16393_v32  ;;  %v16507_v32 = vld [vmem:[#allocation7 + $0xb60] ss:$52 sps:$4 sm:$0xff]  }
  0xff   :  { %5245 = vmatpush1.bf16.msra.mxu1 %v16432_v33  ;;  %1259 = vmatprep.subr.bf16.mxu0 %v16401_v34  ;;  %v16512_v33 = vld [vmem:[#allocation7 + $0xafc] ss:$52 sps:$4 sm:$0xff]   ;;  %v16510_v34 = vld [vmem:[#allocation7 + $0xaf8] ss:$52 sps:$4 sm:$0xff]  }
 0x100   :  { %5246 = vmatprep.subr.bf16.mxu1 %v16437_v35  ;;  %v16515_v35 = vld [vmem:[#allocation7 + $0xa94] ss:$52 sps:$4 sm:$0xff]  }
 0x102   :  { %1260 = vmatpush2.bf16.msra.mxu0 %v16399_v36  ;;  %v16513_v36 = vld [vmem:[#allocation7 + $0xa90] ss:$52 sps:$4 sm:$0xff]  }
 0x103   :  { %5247 = vmatpush1.bf16.msra.mxu1 %v16435_v50  ;;  %1261 = vmatprep.subr.bf16.mxu0 %v16407_v37  ;;  %v16518_v37 = vld [vmem:[#allocation7 + $0xa2c] ss:$52 sps:$4 sm:$0xff]   ;;  %v16516_v50 = vld [vmem:[#allocation7 + $0xa28] ss:$52 sps:$4 sm:$0xff]  }
 0x104   :  { %5248 = vmatprep.subr.bf16.mxu1 %v16440_v38  ;;  %v16521_v38 = vld [vmem:[#allocation7 + $0x9c4] ss:$52 sps:$4 sm:$0xff]  }
 0x106   :  { %1262 = vmatpush2.bf16.msra.mxu0 %v16405_v39  ;;  %v16519_v39 = vld [vmem:[#allocation7 + $0x9c0] ss:$52 sps:$4 sm:$0xff]  }
 0x107   :  { %5249 = vmatpush1.bf16.msra.mxu1 %v16438_v40  ;;  %1263 = vmatprep.subr.bf16.mxu0 %v16413_v41  ;;  %v16527_v40 = vld [vmem:[#allocation7 + $0x2e4] ss:$52 sps:$4 sm:$0xff]  }
 0x108   :  { %5250 = vmatprep.subr.bf16.mxu1 %v16443_v42 }
 0x10a   :  { %1264 = vmatpush2.bf16.msra.mxu0 %v16411_v43 }
 0x10b   :  { %5251 = vmatpush1.bf16.msra.mxu1 %v16441_v44  ;;  %1265 = vmatprep.subr.bf16.mxu0 %v16419_v45  ;;  %v18057_v45 = vsub.s32 0, %v18027_v29 }
 0x10c   :  { %5252 = vmatprep.subr.bf16.mxu1 %v16446_v46  ;;  %v18059_v46 = vld [vmem:[#allocation5] sm:$0x3f] }
 0x10e   :  { %1266 = vmatpush2.bf16.msra.mxu0 %v16417_v48  ;;  %v18062_v48 = vsub.s32 1, %v18027_v29 }
 0x10f   :  { %5253 = vmatpush1.bf16.msra.mxu1 %v16444_v49  ;;  %1267 = vmatprep.subr.bf16.mxu0 %v16425_v51  ;;  %v326_v49 = vrot.slane %v18059_v46, %v18057_v45 }
 0x110   :  { %5254 = vmatprep.subr.bf16.mxu1 %v16449_v52  ;;  %v330_v51 = vrot.slane %v18059_v46, %v18062_v48 }
 0x112   :  { %1268 = vmatpush2.bf16.msra.mxu0 %v16423_v53 }
 0x113   :  { %5255 = vmatpush1.bf16.msra.mxu1 %v16447_v54  ;;  %5281 = vmatprep.subr.bf16.mxu0 %v16452_v55 }
 0x114   :  { %5256 = vmatprep.subr.bf16.mxu1 %v16455_v56 }
 0x115   :  { %1270 = vmatmul.mubr.bf16.vlgmr.msra.gmra.mxu0 %v18046_v18  ;;  %v16476_v18 = vld [vmem:[#allocation7 + $0x7bc] ss:$52 sps:$4 sm:$0xff]  }
 0x116   :  { %5282 = vmatpush1.bf16.msra.mxu0 %v16450_v57 }
 0x117   :  { %5257 = vmatpush2.bf16.msra.mxu1 %v16453_v58  ;;  %5283 = vmatprep.subr.bf16.mxu0 %v16458_v59 }
 0x118   :  { %5258 = vmatprep.subr.bf16.mxu1 %v16461_v60 }
 0x11a   :  { %5284 = vmatpush1.bf16.msra.mxu0 %v16456_v61 }
 0x11b   :  { %5259 = vmatpush2.bf16.msra.mxu1 %v16459_v62  ;;  %5285 = vmatprep.subr.bf16.mxu0 %v16464_v63  ;;  %v16522_v63 = vld [vmem:[#allocation7 + $0xfd8] ss:$52 sps:$4 sm:$0xff]  }
 0x11c   :  { %5260 = vmatprep.subr.bf16.mxu1 %v16467_v0 }
 0x11e   :  { %5286 = vmatpush1.bf16.msra.mxu0 %v16462_v2  ;;  %v16530_v2 = vld [vmem:[#allocation7 + $0xf74] ss:$52 sps:$4 sm:$0xff]  }
 0x11f   :  { %5261 = vmatpush2.bf16.msra.mxu1 %v16465_v3  ;;  %5287 = vmatprep.subr.bf16.mxu0 %v16470_v4  ;;  %v16528_v3 = vld [vmem:[#allocation7 + $0xf70] ss:$52 sps:$4 sm:$0xff]   ;;  %v16536_v4 = vld [vmem:[#allocation7 + $0xf0c] ss:$52 sps:$4 sm:$0xff]  }
 0x120   :  { %5262 = vmatprep.subr.bf16.mxu1 %v16473_v5  ;;  %v16534_v5 = vld [vmem:[#allocation7 + $0xf08] ss:$52 sps:$4 sm:$0xff]  }
 0x122   :  { %5288 = vmatpush1.bf16.msra.mxu0 %v16468_v6  ;;  %v16542_v6 = vld [vmem:[#allocation7 + $0xea4] ss:$52 sps:$4 sm:$0xff]  }
 0x123   :  { %5263 = vmatpush2.bf16.msra.mxu1 %v16471_v7  ;;  %5289 = vmatprep.subr.bf16.mxu0 %v16476_v18  ;;  %v16540_v7 = vld [vmem:[#allocation7 + $0xea0] ss:$52 sps:$4 sm:$0xff]   ;;  %v16548_v18 = vld [vmem:[#allocation7 + $0xe3c] ss:$52 sps:$4 sm:$0xff]  }
 0x124   :  { %5264 = vmatprep.subr.bf16.mxu1 %v16479_v47  ;;  %v18075_v47 = vsub.s32 2, %v18027_v29 }
 0x126   :  { %5290 = vmatpush1.bf16.msra.mxu0 %v16474_v8  ;;  %v16546_v8 = vld [vmem:[#allocation7 + $0xe38] ss:$52 sps:$4 sm:$0xff]  }
 0x127   :  { %5265 = vmatpush2.bf16.msra.mxu1 %v16477_v9  ;;  %5291 = vmatprep.subr.bf16.mxu0 %v16482_v10  ;;  %v16554_v9 = vld [vmem:[#allocation7 + $0xdd4] ss:$52 sps:$4 sm:$0xff]   ;;  %v18078_v10 = vsub.s32 3, %v18027_v29 }
 0x128   :  { %5266 = vmatprep.subr.bf16.mxu1 %v16485_v11  ;;  %v334_v11 = vrot.slane %v18059_v46, %v18075_v47 }
 0x12a   :  { %5292 = vmatpush1.bf16.msra.mxu0 %v16480_v12  ;;  %v16552_v12 = vld [vmem:[#allocation7 + $0xdd0] ss:$52 sps:$4 sm:$0xff]  }
 0x12b   :  { %5267 = vmatpush2.bf16.msra.mxu1 %v16483_v13  ;;  %5293 = vmatprep.subr.bf16.mxu0 %v16488_v14  ;;  %v16560_v13 = vld [vmem:[#allocation7 + $0xd6c] ss:$52 sps:$4 sm:$0xff]   ;;  %v338_v14 = vrot.slane %v18059_v46, %v18078_v10 }
 0x12c   :  { %5268 = vmatprep.subr.bf16.mxu1 %v16491_v15 }
 0x12e   :  { %5294 = vmatpush1.bf16.msra.mxu0 %v16486_v16 }
 0x12f   :  { %5269 = vmatpush2.bf16.msra.mxu1 %v16489_v17  ;;  %5295 = vmatprep.subr.bf16.mxu0 %v16494_v19  ;;  %v16558_v19 = vld [vmem:[#allocation7 + $0xd68] ss:$52 sps:$4 sm:$0xff]  }
 0x130   :  { %5270 = vmatprep.subr.bf16.mxu1 %v16497_v20 }
 0x132   :  { %5296 = vmatpush1.bf16.msra.mxu0 %v16492_v21 }
 0x133   :  { %5271 = vmatpush2.bf16.msra.mxu1 %v16495_v22  ;;  %5297 = vmatprep.subr.bf16.mxu0 %v16500_v23  ;;  %v16566_v22 = vld [vmem:[#allocation7 + $0xd04] ss:$52 sps:$4 sm:$0xff]  }
 0x134   :  { %5322 = vmatprep.subr.bf16.mxu1 %v16524_v24 }
 0x136   :  { %5298 = vmatpush2.bf16.msra.mxu0 %v16498_v25 }
 0x137   :  { %5299 = vmatprep.subr.bf16.mxu0 %v16503_v26 }
 0x13a   :  { %5300 = vmatpush2.bf16.msra.mxu0 %v16501_v27 }
 0x13b   :  { %5301 = vmatprep.subr.bf16.mxu0 %v16506_v28  ;;  %v16564_v28 = vld [vmem:[#allocation7 + $0xd00] ss:$52 sps:$4 sm:$0xff]  }
 0x13e   :  { %5302 = vmatpush2.bf16.msra.mxu0 %v16504_v30 }
 0x13f   :  { %5303 = vmatprep.subr.bf16.mxu0 %v16509_v31 }
 0x142   :  { %5304 = vmatpush2.bf16.msra.mxu0 %v16507_v32 }
 0x143   :  { %5305 = vmatprep.subr.bf16.mxu0 %v16512_v33  ;;  %v16572_v33 = vld [vmem:[#allocation7 + $0x131c] ss:$52 sps:$4 sm:$0xff]  }
 0x146   :  { %5306 = vmatpush2.bf16.msra.mxu0 %v16510_v34 }
 0x147   :  { %5307 = vmatprep.subr.bf16.mxu0 %v16515_v35  ;;  %v16525_v35 = vld [vmem:[#allocation7 + $0x2e0] ss:$52 sps:$4 sm:$0xff]  }
 0x14a   :  { %5308 = vmatpush2.bf16.msra.mxu0 %v16513_v36  ;;  %v16533_v36 = vld [vmem:[#allocation7 + $0x27c] ss:$52 sps:$4 sm:$0xff]  }
 0x14b   :  { %5309 = vmatprep.subr.bf16.mxu0 %v16518_v37  ;;  %v16570_v37 = vld [vmem:[#allocation7 + $0x1318] ss:$52 sps:$4 sm:$0xff]  }
 0x14e   :  { %5310 = vmatpush2.bf16.msra.mxu0 %v16516_v50 }
 0x14f   :  { %5311 = vmatprep.subr.bf16.mxu0 %v16521_v38 }
 0x152   :  { %5312 = vmatpush2.bf16.msra.mxu0 %v16519_v39  ;;  %v16578_v39 = vld [vmem:[#allocation7 + $0x12b4] ss:$52 sps:$4 sm:$0xff]  }
 0x153   :  { %5363 = vmatprep.subr.bf16.mxu0 %v16527_v40  ;;  %v16531_v40 = vld [vmem:[#allocation7 + $0x278] ss:$52 sps:$4 sm:$0xff]  }
 0x156   :  { %v1148_v41 = vpop.f32.mrf.mxu1 }
 0x158   :  { %v1150_v42 = vpop.f32.mrf.mxu1 }
 0x15a   :  { %v1152_v43 = vpop.f32.mrf.mxu1 }
 0x15b   :  { %v16537_v43 = vld [vmem:[#allocation7 + $0x210] ss:$52 sps:$4 sm:$0xff]  }
 0x15c   :  { %v1153_v44 = vpop.f32.mrf.mxu1 }
 0x15d   :  { %v16584_v44 = vld [vmem:[#allocation7 + $0x124c] ss:$52 sps:$4 sm:$0xff]  }
 0x175   :  { %v1107_v52 = vpop.f32.mrf.mxu0 }
 0x176   :  { %v1108_v53 = vadd.f32 %v1107_v52, %v326_v49  ;;  %v16545_v49 = vld [vmem:[#allocation7 + $0x1ac] ss:$52 sps:$4 sm:$0xff]   ;;  %v16543_v52 = vld [vmem:[#allocation7 + $0x1a8] ss:$52 sps:$4 sm:$0xff]  }
 0x177   :  { %v1109_v54 = vpop.f32.mrf.mxu0 }
 0x178   :  { %v1149_v55 = vadd.f32 %v1148_v41, %v1108_v53  ;;  %v1110_v56 = vadd.f32 %v1109_v54, %v330_v51  ;;  %v16539_v41 = vld [vmem:[#allocation7 + $0x214] ss:$52 sps:$4 sm:$0xff]   ;;  %v16590_v53 = vld [vmem:[#allocation7 + $0x11e4] ss:$52 sps:$4 sm:$0xff]  }
 0x179   :  { %v1111_v57 = vpop.f32.mrf.mxu0  ;;  %v16582_v51 = vld [vmem:[#allocation7 + $0x1248] ss:$52 sps:$4 sm:$0xff]   ;;  %v16551_v54 = vld [vmem:[#allocation7 + $0x144] ss:$52 sps:$4 sm:$0xff]  }
 0x17a   :  { %v1151_v58 = vadd.f32 %v1150_v42, %v1110_v56  ;;  %v1319_v59 = vmax.f32 %v1149_v55, 0.0  ;;  %v16576_v42 = vld [vmem:[#allocation7 + $0x12b0] ss:$52 sps:$4 sm:$0xff]   ;;  %v16588_v55 = vld [vmem:[#allocation7 + $0x11e0] ss:$52 sps:$4 sm:$0xff]  }
 0x17b   :  { %v1112_v60 = vpop.f32.mrf.mxu0  ;;  %v16549_v56 = vld [vmem:[#allocation7 + $0x140] ss:$52 sps:$4 sm:$0xff]   ;;  %v16596_v57 = vld [vmem:[#allocation7 + $0x117c] ss:$52 sps:$4 sm:$0xff]  }
 0x17c   :  { %v1320_v61 = vmax.f32 %v1151_v58, 0.0  ;;  %v18070_v0 = vpack.c.bf16 %v1319_v59, %v1319_v59  ;;  %v16557_v58 = vld [vmem:[#allocation7 + $0xdc] ss:$52 sps:$4 sm:$0xff]   ;;  %v16594_v59 = vld [vmem:[#allocation7 + $0x1178] ss:$52 sps:$4 sm:$0xff]  }
 0x17d   :  { %v16555_v60 = vld [vmem:[#allocation7 + $0xd8] ss:$52 sps:$4 sm:$0xff]  }
 0x17e   :  { %v18068_v62 = vpack.c.bf16 %v1320_v61, %v1320_v61  ;;  %v16602_v61 = vld [vmem:[#allocation7 + $0x1114] ss:$52 sps:$4 sm:$0xff]  }
 0x180   :  { %5272 = vmatprep.mubr.bf16.mxu1 %v18068_v62 }
 0x181   :  { %5273 = vmatmul.mubr.bf16.vlgmr.msra.gmra.mxu1 %v18070_v0 }
 0x182   :  { %5323 = vmatpush1.bf16.msra.mxu1 %v16522_v63  ;;  %v16563_v63 = vld [vmem:[#allocation7 + $0x74] ss:$52 sps:$4 sm:$0xff]  }
 0x183   :  { %5324 = vmatprep.subr.bf16.mxu1 %v16530_v2  ;;  %v16600_v2 = vld [vmem:[#allocation7 + $0x1110] ss:$52 sps:$4 sm:$0xff]  }
 0x186   :  { %5325 = vmatpush1.bf16.msra.mxu1 %v16528_v3  ;;  %v16561_v3 = vld [vmem:[#allocation7 + $0x70] ss:$52 sps:$4 sm:$0xff]  }
 0x187   :  { %5326 = vmatprep.subr.bf16.mxu1 %v16536_v4  ;;  %v16608_v4 = vld [vmem:[#allocation7 + $0x10ac] ss:$52 sps:$4 sm:$0xff]  }
 0x18a   :  { %5327 = vmatpush1.bf16.msra.mxu1 %v16534_v5 }
 0x18b   :  { %5328 = vmatprep.subr.bf16.mxu1 %v16542_v6  ;;  %v16569_v6 = vld [vmem:[#allocation7 + $0xc] ss:$52 sps:$4 sm:$0xff]  }
 0x18e   :  { %5329 = vmatpush1.bf16.msra.mxu1 %v16540_v7 }
 0x18f   :  { %5330 = vmatprep.subr.bf16.mxu1 %v16548_v18  ;;  %v16606_v18 = vld [vmem:[#allocation7 + $0x10a8] ss:$52 sps:$4 sm:$0xff]  }
 0x192   :  { %5331 = vmatpush1.bf16.msra.mxu1 %v16546_v8  ;;  %v16567_v8 = vld [vmem:[#allocation7 + $0x8] ss:$52 sps:$4 sm:$0xff]  }
 0x193   :  { %5332 = vmatprep.subr.bf16.mxu1 %v16554_v9  ;;  %v16614_v9 = vld [vmem:[#allocation7 + $0x1044] ss:$52 sps:$4 sm:$0xff]  }
 0x195   :  { %v1230_v16 = vpop.f32.mrf.mxu0 }
 0x196   :  { %v1189_v15 = vpop.f32.mrf.mxu1  ;;  %5333 = vmatpush1.bf16.msra.mxu1 %v16552_v12  ;;  %v16575_v12 = vld [vmem:[#allocation7 + $0x624] ss:$52 sps:$4 sm:$0xff]  }
 0x197   :  { %v1190_v17 = vadd.f32 %v1189_v15, %v334_v11  ;;  %v1232_v21 = vpop.f32.mrf.mxu0  ;;  %5334 = vmatprep.subr.bf16.mxu1 %v16560_v13  ;;  %v16573_v15 = vld [vmem:[#allocation7 + $0x620] ss:$52 sps:$4 sm:$0xff]  }
 0x198   :  { %v1191_v20 = vpop.f32.mrf.mxu1 }
 0x199   :  { %v1231_v23 = vadd.f32 %v1230_v16, %v1190_v17  ;;  %v1192_v24 = vadd.f32 %v1191_v20, %v338_v14  ;;  %v1234_v25 = vpop.f32.mrf.mxu0  ;;  %v16612_v14 = vld [vmem:[#allocation7 + $0x1040] ss:$52 sps:$4 sm:$0xff]   ;;  %v16620_v16 = vld [vmem:[#allocation7 + $0x964] ss:$52 sps:$4 sm:$0xff]   ;;  %v16581_v17 = vld [vmem:[#allocation7 + $0x5bc] ss:$52 sps:$4 sm:$0xff]  }
 0x19a   :  { %v1193_v26 = vpop.f32.mrf.mxu1  ;;  %5335 = vmatpush1.bf16.msra.mxu1 %v16558_v19  ;;  %v16579_v19 = vld [vmem:[#allocation7 + $0x5b8] ss:$52 sps:$4 sm:$0xff]   ;;  %v16587_v20 = vld [vmem:[#allocation7 + $0x554] ss:$52 sps:$4 sm:$0xff]  }
 0x19b   :  { %v1233_v27 = vadd.f32 %v1232_v21, %v1192_v24  ;;  %v1321_v30 = vmax.f32 %v1231_v23, 0.0  ;;  %v1235_v31 = vpop.f32.mrf.mxu0  ;;  %5336 = vmatprep.subr.bf16.mxu1 %v16566_v22  ;;  %v16585_v21 = vld [vmem:[#allocation7 + $0x550] ss:$52 sps:$4 sm:$0xff]   ;;  %v16593_v22 = vld [vmem:[#allocation7 + $0x4ec] ss:$52 sps:$4 sm:$0xff]   ;;  %v18092_v26 = vsub.s32 4, %v18027_v29 }
 0x19c   :  { %v1194_v32 = vpop.f32.mrf.mxu1  ;;  %v16591_v23 = vld [vmem:[#allocation7 + $0x4e8] ss:$52 sps:$4 sm:$0xff]   ;;  %v16599_v24 = vld [vmem:[#allocation7 + $0x484] ss:$52 sps:$4 sm:$0xff]   ;;  %v16597_v25 = vld [vmem:[#allocation7 + $0x480] ss:$52 sps:$4 sm:$0xff]  }
 0x19d   :  { %v1322_v34 = vmax.f32 %v1233_v27, 0.0  ;;  %v18086_v38 = vpack.c.bf16 %v1321_v30, %v1321_v30  ;;  %v16605_v27 = vld [vmem:[#allocation7 + $0x41c] ss:$52 sps:$4 sm:$0xff]   ;;  %v18095_v30 = vsub.s32 5, %v18027_v29  ;;  %v342_v31 = vrot.slane %v18059_v46, %v18092_v26  ;;  %v16611_v32 = vld [vmem:[#allocation7 + $0x3b4] ss:$52 sps:$4 sm:$0xff]  }
 0x19e   :  { %5337 = vmatpush1.bf16.msra.mxu1 %v16564_v28  ;;  %v16603_v28 = vld [vmem:[#allocation7 + $0x418] ss:$52 sps:$4 sm:$0xff]  }
 0x19f   :  { %v18084_v50 = vpack.c.bf16 %v1322_v34, %v1322_v34  ;;  %5338 = vmatprep.subr.bf16.mxu1 %v16572_v33  ;;  %v346_v33 = vrot.slane %v18059_v46, %v18095_v30  ;;  %v16609_v34 = vld [vmem:[#allocation7 + $0x3b0] ss:$52 sps:$4 sm:$0xff]   ;;  %v16621_v46 = vld [vmem:[#allocation7 + $0xfe0] ss:$52 sps:$4 sm:$0xff]  }
 0x1a1   :  { %5313 = vmatprep.mubr.bf16.mxu0 %v18084_v50 }
 0x1a2   :  { %5314 = vmatmul.mubr.bf16.vlgmr.msra.gmra.mxu0 %v18086_v38  ;;  %5339 = vmatpush2.bf16.msra.mxu1 %v16570_v37 }
 0x1a3   :  { %5364 = vmatpush1.bf16.msra.mxu0 %v16525_v35  ;;  %5395 = vmatprep.mubr.bf16.mxu0 %v18068_v62 }
 0x1a4   :  { %5365 = vmatprep.subr.bf16.mxu0 %v16533_v36  ;;  %5340 = vmatprep.subr.bf16.mxu1 %v16578_v39  ;;  %v16617_v39 = vld [vmem:[#allocation7 + $0x34c] ss:$52 sps:$4 sm:$0xff]  }
 0x1a6   :  { %5341 = vmatpush2.bf16.msra.mxu1 %v16576_v42  ;;  %v16615_v42 = vld [vmem:[#allocation7 + $0x348] ss:$52 sps:$4 sm:$0xff]  }
 0x1a7   :  { %5366 = vmatpush1.bf16.msra.mxu0 %v16531_v40  ;;  %5342 = vmatprep.subr.bf16.mxu1 %v16584_v44 }
 0x1a8   :  { %5367 = vmatprep.subr.bf16.mxu0 %v16539_v41 }
 0x1aa   :  { %5343 = vmatpush2.bf16.msra.mxu1 %v16582_v51 }
 0x1ab   :  { %5368 = vmatpush1.bf16.msra.mxu0 %v16537_v43  ;;  %5344 = vmatprep.subr.bf16.mxu1 %v16590_v53 }
 0x1ac   :  { %5369 = vmatprep.subr.bf16.mxu0 %v16545_v49 }
 0x1ae   :  { %5345 = vmatpush2.bf16.msra.mxu1 %v16588_v55 }
 0x1af   :  { %5370 = vmatpush1.bf16.msra.mxu0 %v16543_v52  ;;  %5346 = vmatprep.subr.bf16.mxu1 %v16596_v57  ;;  %v16623_v52 = vld [vmem:[#allocation7 + $0xfe4] ss:$52 sps:$4 sm:$0xff]  }
 0x1b0   :  { %5371 = vmatprep.subr.bf16.mxu0 %v16551_v54  ;;  %v16618_v54 = vld [vmem:[#allocation7 + $0x960] ss:$52 sps:$4 sm:$0xff]  }
 0x1b2   :  { %5347 = vmatpush2.bf16.msra.mxu1 %v16594_v59  ;;  %v16627_v59 = vld [vmem:[#allocation7 + $0xf78] ss:$52 sps:$4 sm:$0xff]  }
 0x1b3   :  { %5372 = vmatpush1.bf16.msra.mxu0 %v16549_v56  ;;  %5348 = vmatprep.subr.bf16.mxu1 %v16602_v61  ;;  %v16626_v56 = vld [vmem:[#allocation7 + $0x8fc] ss:$52 sps:$4 sm:$0xff]   ;;  %v16632_v61 = vld [vmem:[#allocation7 + $0x894] ss:$52 sps:$4 sm:$0xff]  }
 0x1b4   :  { %5373 = vmatprep.subr.bf16.mxu0 %v16557_v58  ;;  %v16624_v58 = vld [vmem:[#allocation7 + $0x8f8] ss:$52 sps:$4 sm:$0xff]  }
 0x1b6   :  { %v1312_v5 = vpop.f32.mrf.mxu1  ;;  %5349 = vmatpush2.bf16.msra.mxu1 %v16600_v2  ;;  %v16630_v2 = vld [vmem:[#allocation7 + $0x890] ss:$52 sps:$4 sm:$0xff]  }
 0x1b7   :  { %5374 = vmatpush1.bf16.msra.mxu0 %v16555_v60  ;;  %5350 = vmatprep.subr.bf16.mxu1 %v16608_v4  ;;  %v16629_v60 = vld [vmem:[#allocation7 + $0xf7c] ss:$52 sps:$4 sm:$0xff]   ;;  %v16638_v4 = vld [vmem:[#allocation7 + $0x82c] ss:$52 sps:$4 sm:$0xff]  }
 0x1b8   :  { %5375 = vmatprep.subr.bf16.mxu0 %v16563_v63  ;;  %v1314_v7 = vpop.f32.mrf.mxu1  ;;  %v16635_v63 = vld [vmem:[#allocation7 + $0xf14] ss:$52 sps:$4 sm:$0xff]  }
 0x1ba   :  { %v1316_v11 = vpop.f32.mrf.mxu1  ;;  %5351 = vmatpush2.bf16.msra.mxu1 %v16606_v18  ;;  %v16644_v18 = vld [vmem:[#allocation7 + $0x7c4] ss:$52 sps:$4 sm:$0xff]  }
 0x1bb   :  { %5376 = vmatpush1.bf16.msra.mxu0 %v16561_v3  ;;  %5352 = vmatprep.subr.bf16.mxu1 %v16614_v9  ;;  %v16633_v3 = vld [vmem:[#allocation7 + $0xf10] ss:$52 sps:$4 sm:$0xff]   ;;  %v16642_v9 = vld [vmem:[#allocation7 + $0x7c0] ss:$52 sps:$4 sm:$0xff]  }
 0x1bc   :  { %5377 = vmatprep.subr.bf16.mxu0 %v16569_v6  ;;  %v1317_v13 = vpop.f32.mrf.mxu1  ;;  %v16636_v6 = vld [vmem:[#allocation7 + $0x828] ss:$52 sps:$4 sm:$0xff]   ;;  %v16645_v11 = vld [vmem:[#allocation7 + $0xe40] ss:$52 sps:$4 sm:$0xff]  }
 0x1bd   :  { %v16653_v13 = vld [vmem:[#allocation7 + $0xddc] ss:$52 sps:$4 sm:$0xff]  }
 0x1be   :  { %5353 = vmatpush2.bf16.msra.mxu1 %v16612_v14  ;;  %v16648_v14 = vld [vmem:[#allocation7 + $0x758] ss:$52 sps:$4 sm:$0xff]  }
 0x1bf   :  { %5378 = vmatpush1.bf16.msra.mxu0 %v16567_v8  ;;  %5404 = vmatprep.subr.bf16.mxu1 %v16620_v16  ;;  %v16647_v8 = vld [vmem:[#allocation7 + $0xe44] ss:$52 sps:$4 sm:$0xff]   ;;  %v16656_v16 = vld [vmem:[#allocation7 + $0x6f4] ss:$52 sps:$4 sm:$0xff]  }
 0x1c0   :  { %5379 = vmatprep.subr.bf16.mxu0 %v16575_v12  ;;  %v16650_v12 = vld [vmem:[#allocation7 + $0x75c] ss:$52 sps:$4 sm:$0xff]  }
 0x1c3   :  { %5380 = vmatpush2.bf16.msra.mxu0 %v16573_v15  ;;  %v16651_v15 = vld [vmem:[#allocation7 + $0xdd8] ss:$52 sps:$4 sm:$0xff]  }
 0x1c4   :  { %5381 = vmatprep.subr.bf16.mxu0 %v16581_v17  ;;  %v16659_v17 = vld [vmem:[#allocation7 + $0xd74] ss:$52 sps:$4 sm:$0xff]  }
 0x1c7   :  { %5382 = vmatpush2.bf16.msra.mxu0 %v16579_v19  ;;  %v16654_v19 = vld [vmem:[#allocation7 + $0x6f0] ss:$52 sps:$4 sm:$0xff]  }
 0x1c8   :  { %5383 = vmatprep.subr.bf16.mxu0 %v16587_v20  ;;  %v16657_v20 = vld [vmem:[#allocation7 + $0xd70] ss:$52 sps:$4 sm:$0xff]  }
 0x1cb   :  { %5384 = vmatpush2.bf16.msra.mxu0 %v16585_v21  ;;  %v16662_v21 = vld [vmem:[#allocation7 + $0x68c] ss:$52 sps:$4 sm:$0xff]  }
 0x1cc   :  { %5385 = vmatprep.subr.bf16.mxu0 %v16593_v22  ;;  %v16665_v22 = vld [vmem:[#allocation7 + $0xd0c] ss:$52 sps:$4 sm:$0xff]  }
 0x1cf   :  { %5386 = vmatpush2.bf16.msra.mxu0 %v16591_v23  ;;  %v16660_v23 = vld [vmem:[#allocation7 + $0x688] ss:$52 sps:$4 sm:$0xff]  }
 0x1d0   :  { %5387 = vmatprep.subr.bf16.mxu0 %v16599_v24  ;;  %v16663_v24 = vld [vmem:[#allocation7 + $0xd08] ss:$52 sps:$4 sm:$0xff]  }
 0x1d3   :  { %5388 = vmatpush2.bf16.msra.mxu0 %v16597_v25  ;;  %v16668_v25 = vld [vmem:[#allocation7 + $0xca4] ss:$52 sps:$4 sm:$0xff]  }
 0x1d4   :  { %5389 = vmatprep.subr.bf16.mxu0 %v16605_v27  ;;  %v16671_v27 = vld [vmem:[#allocation7 + $0x1324] ss:$52 sps:$4 sm:$0xff]  }
 0x1d5   :  { %v1271_v35 = vpop.f32.mrf.mxu0 }
 0x1d6   :  { %v1272_v36 = vadd.f32 %v1271_v35, %v342_v31  ;;  %v16669_v31 = vld [vmem:[#allocation7 + $0x1320] ss:$52 sps:$4 sm:$0xff]   ;;  %v16675_v35 = vld [vmem:[#allocation7 + $0x12b8] ss:$52 sps:$4 sm:$0xff]  }
 0x1d7   :  { %5390 = vmatpush2.bf16.msra.mxu0 %v16603_v28  ;;  %v1273_v37 = vpop.f32.mrf.mxu0  ;;  %v16666_v28 = vld [vmem:[#allocation7 + $0xca0] ss:$52 sps:$4 sm:$0xff]  }
 0x1d8   :  { %5391 = vmatprep.subr.bf16.mxu0 %v16611_v32  ;;  %v1313_v40 = vadd.f32 %v1312_v5, %v1272_v36  ;;  %v1274_v41 = vadd.f32 %v1273_v37, %v346_v33  ;;  %v16641_v5 = vld [vmem:[#allocation7 + $0xeac] ss:$52 sps:$4 sm:$0xff]   ;;  %v16674_v32 = vld [vmem:[#allocation7 + $0xc3c] ss:$52 sps:$4 sm:$0xff]   ;;  %v16680_v36 = vld [vmem:[#allocation7 + $0xbd4] ss:$52 sps:$4 sm:$0xff]  }
 0x1d9   :  { %v1275_v43 = vpop.f32.mrf.mxu0  ;;  %v16677_v33 = vld [vmem:[#allocation7 + $0x12bc] ss:$52 sps:$4 sm:$0xff]   ;;  %v16683_v37 = vld [vmem:[#allocation7 + $0x1254] ss:$52 sps:$4 sm:$0xff]  }
 0x1da   :  { %v1315_v44 = vadd.f32 %v1314_v7, %v1274_v41  ;;  %v1323_v49 = vmax.f32 %v1313_v40, 0.0  ;;  %v16639_v7 = vld [vmem:[#allocation7 + $0xea8] ss:$52 sps:$4 sm:$0xff]   ;;  %v16681_v40 = vld [vmem:[#allocation7 + $0x1250] ss:$52 sps:$4 sm:$0xff]  }
 0x1db   :  { %5392 = vmatpush2.bf16.msra.mxu0 %v16609_v34  ;;  %v1276_v51 = vpop.f32.mrf.mxu0  ;;  %v16672_v34 = vld [vmem:[#allocation7 + $0xc38] ss:$52 sps:$4 sm:$0xff]   ;;  %v16684_v43 = vld [vmem:[#allocation7 + $0xb68] ss:$52 sps:$4 sm:$0xff]  }
 0x1dc   :  { %5393 = vmatprep.subr.bf16.mxu0 %v16617_v39  ;;  %v1324_v53 = vmax.f32 %v1315_v44, 0.0  ;;  %v18103_v57 = vpack.c.bf16 %v1323_v49, %v1323_v49  ;;  %v16678_v39 = vld [vmem:[#allocation7 + $0xbd0] ss:$52 sps:$4 sm:$0xff]   ;;  %v16686_v41 = vld [vmem:[#allocation7 + $0xb6c] ss:$52 sps:$4 sm:$0xff]  }
 0x1dd   :  { %v16687_v44 = vld [vmem:[#allocation7 + $0x11e8] ss:$52 sps:$4 sm:$0xff]   ;;  %v16692_v49 = vld [vmem:[#allocation7 + $0xb04] ss:$52 sps:$4 sm:$0xff]  }
 0x1de   :  { %v18101_v55 = vpack.c.bf16 %v1324_v53, %v1324_v53  ;;  %v16695_v51 = vld [vmem:[#allocation7 + $0x1184] ss:$52 sps:$4 sm:$0xff]   ;;  %v16693_v53 = vld [vmem:[#allocation7 + $0x1180] ss:$52 sps:$4 sm:$0xff]  }
 0x1df   :  { %5394 = vmatpush2.bf16.msra.mxu0 %v16615_v42  ;;  %v16689_v42 = vld [vmem:[#allocation7 + $0x11ec] ss:$52 sps:$4 sm:$0xff]  }
 0x1e0   :  { %5445 = vmatprep.subr.bf16.mxu0 %v16623_v52  ;;  %5354 = vmatprep.mubr.bf16.mxu1 %v18101_v55  ;;  %v16690_v52 = vld [vmem:[#allocation7 + $0xb00] ss:$52 sps:$4 sm:$0xff]  }
 0x1e1   :  { %5355 = vmatmul.mubr.bf16.vlgmr.msra.gmra.mxu1 %v18103_v57 }
 0x1e2   :  { %5396 = vmatmul.mubr.bf16.vlgmr.msra.gmra.mxu0 %v18070_v0  ;;  %5405 = vmatpush1.bf16.msra.mxu1 %v16618_v54  ;;  %v16698_v54 = vld [vmem:[#allocation7 + $0xa9c] ss:$52 sps:$4 sm:$0xff]  }
 0x1e3   :  { %5446 = vmatpush1.bf16.msra.mxu0 %v16621_v46  ;;  %5477 = vmatprep.mubr.bf16.mxu0 %v18101_v55  ;;  %v16701_v46 = vld [vmem:[#allocation7 + $0x111c] ss:$52 sps:$4 sm:$0xff]  }
 0x1e4   :  { %5436 = vmatprep.mubr.bf16.mxu1 %v18084_v50  ;;  %5406 = vmatprep.subr.bf16.mxu1 %v16626_v56  ;;  %v16696_v56 = vld [vmem:[#allocation7 + $0xa98] ss:$52 sps:$4 sm:$0xff]  }
 0x1e5   :  { %5447 = vmatprep.subr.bf16.mxu0 %v16629_v60  ;;  %v16707_v60 = vld [vmem:[#allocation7 + $0x10b4] ss:$52 sps:$4 sm:$0xff]  }
 0x1e6   :  { %5407 = vmatpush1.bf16.msra.mxu1 %v16624_v58  ;;  %v16699_v58 = vld [vmem:[#allocation7 + $0x1118] ss:$52 sps:$4 sm:$0xff]  }
 0x1e7   :  { %5448 = vmatpush1.bf16.msra.mxu0 %v16627_v59  ;;  %5408 = vmatprep.subr.bf16.mxu1 %v16632_v61  ;;  %v16704_v59 = vld [vmem:[#allocation7 + $0xa34] ss:$52 sps:$4 sm:$0xff]   ;;  %v16702_v61 = vld [vmem:[#allocation7 + $0xa30] ss:$52 sps:$4 sm:$0xff]  }
 0x1e8   :  { %5449 = vmatprep.subr.bf16.mxu0 %v16635_v63  ;;  %v16705_v63 = vld [vmem:[#allocation7 + $0x10b0] ss:$52 sps:$4 sm:$0xff]  }
 0x1ea   :  { %5409 = vmatpush1.bf16.msra.mxu1 %v16630_v2  ;;  %v16710_v2 = vld [vmem:[#allocation7 + $0x9cc] ss:$52 sps:$4 sm:$0xff]  }
 0x1eb   :  { %5450 = vmatpush1.bf16.msra.mxu0 %v16633_v3  ;;  %5410 = vmatprep.subr.bf16.mxu1 %v16638_v4  ;;  %v16713_v3 = vld [vmem:[#allocation7 + $0x104c] ss:$52 sps:$4 sm:$0xff]   ;;  %v16708_v4 = vld [vmem:[#allocation7 + $0x9c8] ss:$52 sps:$4 sm:$0xff]  }
 0x1ec   :  { %5451 = vmatprep.subr.bf16.mxu0 %v16641_v5  ;;  %v16711_v5 = vld [vmem:[#allocation7 + $0x1048] ss:$52 sps:$4 sm:$0xff]  }
 0x1ee   :  { %5411 = vmatpush1.bf16.msra.mxu1 %v16636_v6  ;;  %v16716_v6 = vld [vmem:[#allocation7 + $0x2ec] ss:$52 sps:$4 sm:$0xff]  }
 0x1ef   :  { %5452 = vmatpush1.bf16.msra.mxu0 %v16639_v7  ;;  %5412 = vmatprep.subr.bf16.mxu1 %v16644_v18  ;;  %v16719_v7 = vld [vmem:[#allocation7 + $0x96c] ss:$52 sps:$4 sm:$0xff]   ;;  %v16714_v18 = vld [vmem:[#allocation7 + $0x2e8] ss:$52 sps:$4 sm:$0xff]  }
 0x1f0   :  { %5453 = vmatprep.subr.bf16.mxu0 %v16647_v8  ;;  %v16717_v8 = vld [vmem:[#allocation7 + $0x968] ss:$52 sps:$4 sm:$0xff]  }
 0x1f2   :  { %5413 = vmatpush1.bf16.msra.mxu1 %v16642_v9  ;;  %v16722_v9 = vld [vmem:[#allocation7 + $0x284] ss:$52 sps:$4 sm:$0xff]  }
 0x1f3   :  { %5454 = vmatpush1.bf16.msra.mxu0 %v16645_v11  ;;  %5414 = vmatprep.subr.bf16.mxu1 %v16650_v12  ;;  %v16725_v11 = vld [vmem:[#allocation7 + $0x904] ss:$52 sps:$4 sm:$0xff]   ;;  %v16720_v12 = vld [vmem:[#allocation7 + $0x280] ss:$52 sps:$4 sm:$0xff]  }
 0x1f4   :  { %5455 = vmatprep.subr.bf16.mxu0 %v16653_v13  ;;  %v16723_v13 = vld [vmem:[#allocation7 + $0x900] ss:$52 sps:$4 sm:$0xff]  }
 0x1f6   :  { %5415 = vmatpush1.bf16.msra.mxu1 %v16648_v14  ;;  %v16728_v14 = vld [vmem:[#allocation7 + $0x21c] ss:$52 sps:$4 sm:$0xff]  }
 0x1f7   :  { %5456 = vmatpush1.bf16.msra.mxu0 %v16651_v15  ;;  %5416 = vmatprep.subr.bf16.mxu1 %v16656_v16  ;;  %v16731_v15 = vld [vmem:[#allocation7 + $0x89c] ss:$52 sps:$4 sm:$0xff]   ;;  %v16726_v16 = vld [vmem:[#allocation7 + $0x218] ss:$52 sps:$4 sm:$0xff]  }
 0x1f8   :  { %5457 = vmatprep.subr.bf16.mxu0 %v16659_v17  ;;  %v16729_v17 = vld [vmem:[#allocation7 + $0x898] ss:$52 sps:$4 sm:$0xff]  }
 0x1fa   :  { %5417 = vmatpush1.bf16.msra.mxu1 %v16654_v19  ;;  %v16734_v19 = vld [vmem:[#allocation7 + $0x1b4] ss:$52 sps:$4 sm:$0xff]  }
 0x1fb   :  { %5458 = vmatpush1.bf16.msra.mxu0 %v16657_v20  ;;  %5418 = vmatprep.subr.bf16.mxu1 %v16662_v21  ;;  %v16737_v20 = vld [vmem:[#allocation7 + $0x834] ss:$52 sps:$4 sm:$0xff]   ;;  %v16732_v21 = vld [vmem:[#allocation7 + $0x1b0] ss:$52 sps:$4 sm:$0xff]  }
 0x1fc   :  { %5459 = vmatprep.subr.bf16.mxu0 %v16665_v22  ;;  %v16735_v22 = vld [vmem:[#allocation7 + $0x830] ss:$52 sps:$4 sm:$0xff]  }
 0x1fe   :  { %5419 = vmatpush1.bf16.msra.mxu1 %v16660_v23  ;;  %v16740_v23 = vld [vmem:[#allocation7 + $0x14c] ss:$52 sps:$4 sm:$0xff]  }
 0x1ff   :  { %5460 = vmatpush1.bf16.msra.mxu0 %v16663_v24  ;;  %5420 = vmatprep.subr.bf16.mxu1 %v16668_v25  ;;  %v16738_v24 = vld [vmem:[#allocation7 + $0x148] ss:$52 sps:$4 sm:$0xff]   ;;  %v16743_v25 = vld [vmem:[#allocation7 + $0x7cc] ss:$52 sps:$4 sm:$0xff]  }
 0x200   :  { %5461 = vmatprep.subr.bf16.mxu0 %v16671_v27  ;;  %v16741_v27 = vld [vmem:[#allocation7 + $0x7c8] ss:$52 sps:$4 sm:$0xff]  }
 0x202   :  { %5421 = vmatpush2.bf16.msra.mxu1 %v16666_v28  ;;  %v16746_v28 = vld [vmem:[#allocation7 + $0xe4] ss:$52 sps:$4 sm:$0xff]  }
 0x203   :  { %5462 = vmatpush2.bf16.msra.mxu0 %v16669_v31  ;;  %5422 = vmatprep.subr.bf16.mxu1 %v16674_v32  ;;  %v16744_v31 = vld [vmem:[#allocation7 + $0xe0] ss:$52 sps:$4 sm:$0xff]   ;;  %v16749_v32 = vld [vmem:[#allocation7 + $0x764] ss:$52 sps:$4 sm:$0xff]  }
 0x204   :  { %5463 = vmatprep.subr.bf16.mxu0 %v16677_v33  ;;  %v16747_v33 = vld [vmem:[#allocation7 + $0x760] ss:$52 sps:$4 sm:$0xff]  }
 0x206   :  { %5423 = vmatpush2.bf16.msra.mxu1 %v16672_v34  ;;  %v16752_v34 = vld [vmem:[#allocation7 + $0x7c] ss:$52 sps:$4 sm:$0xff]  }
 0x207   :  { %5464 = vmatpush2.bf16.msra.mxu0 %v16675_v35  ;;  %5424 = vmatprep.subr.bf16.mxu1 %v16680_v36  ;;  %v16750_v35 = vld [vmem:[#allocation7 + $0x78] ss:$52 sps:$4 sm:$0xff]   ;;  %v16755_v36 = vld [vmem:[#allocation7 + $0x6fc] ss:$52 sps:$4 sm:$0xff]  }
 0x208   :  { %5465 = vmatprep.subr.bf16.mxu0 %v16683_v37  ;;  %v16753_v37 = vld [vmem:[#allocation7 + $0x6f8] ss:$52 sps:$4 sm:$0xff]  }
 0x20a   :  { %5425 = vmatpush2.bf16.msra.mxu1 %v16678_v39  ;;  %v16758_v39 = vld [vmem:[#allocation7 + $0x14] ss:$52 sps:$4 sm:$0xff]  }
 0x20b   :  { %5466 = vmatpush2.bf16.msra.mxu0 %v16681_v40  ;;  %5426 = vmatprep.subr.bf16.mxu1 %v16686_v41  ;;  %v16756_v40 = vld [vmem:[#allocation7 + $0x10] ss:$52 sps:$4 sm:$0xff]   ;;  %v16761_v41 = vld [vmem:[#allocation7 + $0x694] ss:$52 sps:$4 sm:$0xff]  }
 0x20c   :  { %5467 = vmatprep.subr.bf16.mxu0 %v16689_v42  ;;  %v16759_v42 = vld [vmem:[#allocation7 + $0x690] ss:$52 sps:$4 sm:$0xff]  }
 0x20e   :  { %5427 = vmatpush2.bf16.msra.mxu1 %v16684_v43  ;;  %v16764_v43 = vld [vmem:[#allocation7 + $0x62c] ss:$52 sps:$4 sm:$0xff]  }
 0x20f   :  { %5468 = vmatpush2.bf16.msra.mxu0 %v16687_v44  ;;  %5428 = vmatprep.subr.bf16.mxu1 %v16692_v49  ;;  %v16762_v44 = vld [vmem:[#allocation7 + $0x628] ss:$52 sps:$4 sm:$0xff]   ;;  %v16767_v49 = vld [vmem:[#allocation7 + $0xcac] ss:$52 sps:$4 sm:$0xff]  }
 0x210   :  { %5469 = vmatprep.subr.bf16.mxu0 %v16695_v51  ;;  %v16765_v51 = vld [vmem:[#allocation7 + $0xca8] ss:$52 sps:$4 sm:$0xff]  }
 0x212   :  { %5429 = vmatpush2.bf16.msra.mxu1 %v16690_v52  ;;  %v16770_v52 = vld [vmem:[#allocation7 + $0x5c4] ss:$52 sps:$4 sm:$0xff]  }
 0x213   :  { %5470 = vmatpush2.bf16.msra.mxu0 %v16693_v53  ;;  %5430 = vmatprep.subr.bf16.mxu1 %v16698_v54  ;;  %v16768_v53 = vld [vmem:[#allocation7 + $0x5c0] ss:$52 sps:$4 sm:$0xff]   ;;  %v16773_v54 = vld [vmem:[#allocation7 + $0xc44] ss:$52 sps:$4 sm:$0xff]  }
 0x214   :  { %5471 = vmatprep.subr.bf16.mxu0 %v16701_v46 }
 0x216   :  { %5431 = vmatpush2.bf16.msra.mxu1 %v16696_v56 }
 0x217   :  { %5472 = vmatpush2.bf16.msra.mxu0 %v16699_v58  ;;  %5432 = vmatprep.subr.bf16.mxu1 %v16704_v59  ;;  %v16771_v58 = vld [vmem:[#allocation7 + $0xc40] ss:$52 sps:$4 sm:$0xff]   ;;  %v16776_v59 = vld [vmem:[#allocation7 + $0x55c] ss:$52 sps:$4 sm:$0xff]  }
 0x218   :  { %5473 = vmatprep.subr.bf16.mxu0 %v16707_v60  ;;  %v16774_v60 = vld [vmem:[#allocation7 + $0x558] ss:$52 sps:$4 sm:$0xff]  }
 0x21a   :  { %5433 = vmatpush2.bf16.msra.mxu1 %v16702_v61  ;;  %v16779_v61 = vld [vmem:[#allocation7 + $0xbdc] ss:$52 sps:$4 sm:$0xff]  }
 0x21b   :  { %5474 = vmatpush2.bf16.msra.mxu0 %v16705_v63  ;;  %5434 = vmatprep.subr.bf16.mxu1 %v16710_v2 }
 0x21c   :  { %5475 = vmatprep.subr.bf16.mxu0 %v16713_v3  ;;  %v16777_v3 = vld [vmem:[#allocation7 + $0xbd8] ss:$52 sps:$4 sm:$0xff]  }
 0x21e   :  { %5435 = vmatpush2.bf16.msra.mxu1 %v16708_v4  ;;  %v16782_v4 = vld [vmem:[#allocation7 + $0x4f4] ss:$52 sps:$4 sm:$0xff]  }
 0x21f   :  { %5476 = vmatpush2.bf16.msra.mxu0 %v16711_v5  ;;  %5486 = vmatprep.subr.bf16.mxu1 %v16716_v6  ;;  %v16780_v5 = vld [vmem:[#allocation7 + $0x4f0] ss:$52 sps:$4 sm:$0xff]   ;;  %v16785_v6 = vld [vmem:[#allocation7 + $0xb74] ss:$52 sps:$4 sm:$0xff]  }
 0x220   :  { %5527 = vmatprep.subr.bf16.mxu0 %v16719_v7  ;;  %v16783_v7 = vld [vmem:[#allocation7 + $0xb70] ss:$52 sps:$4 sm:$0xff]  }
 0x221   :  { %5437 = vmatmul.mubr.bf16.vlgmr.msra.gmra.mxu1 %v18086_v38 }
 0x222   :  { %5478 = vmatmul.mubr.bf16.vlgmr.msra.gmra.mxu0 %v18103_v57  ;;  %5487 = vmatpush1.bf16.msra.mxu1 %v16714_v18  ;;  %v16788_v18 = vld [vmem:[#allocation7 + $0x48c] ss:$52 sps:$4 sm:$0xff]  }
 0x223   :  { %5518 = vmatprep.mubr.bf16.mxu1 %v18068_v62  ;;  %5528 = vmatpush1.bf16.msra.mxu0 %v16717_v8  ;;  %v16786_v8 = vld [vmem:[#allocation7 + $0x488] ss:$52 sps:$4 sm:$0xff]  }
 0x224   :  { %5559 = vmatprep.mubr.bf16.mxu0 %v18084_v50  ;;  %5488 = vmatprep.subr.bf16.mxu1 %v16722_v9  ;;  %v16791_v9 = vld [vmem:[#allocation7 + $0xb0c] ss:$52 sps:$4 sm:$0xff]  }
 0x225   :  { %5529 = vmatprep.subr.bf16.mxu0 %v16725_v11  ;;  %v16789_v11 = vld [vmem:[#allocation7 + $0xb08] ss:$52 sps:$4 sm:$0xff]  }
 0x226   :  { %5489 = vmatpush1.bf16.msra.mxu1 %v16720_v12  ;;  %v16794_v12 = vld [vmem:[#allocation7 + $0x424] ss:$52 sps:$4 sm:$0xff]  }
 0x227   :  { %5530 = vmatpush1.bf16.msra.mxu0 %v16723_v13  ;;  %5490 = vmatprep.subr.bf16.mxu1 %v16728_v14  ;;  %v16792_v13 = vld [vmem:[#allocation7 + $0x420] ss:$52 sps:$4 sm:$0xff]   ;;  %v16797_v14 = vld [vmem:[#allocation7 + $0xaa4] ss:$52 sps:$4 sm:$0xff]  }
 0x228   :  { %5531 = vmatprep.subr.bf16.mxu0 %v16731_v15  ;;  %v16795_v15 = vld [vmem:[#allocation7 + $0xaa0] ss:$52 sps:$4 sm:$0xff]  }
 0x22a   :  { %5491 = vmatpush1.bf16.msra.mxu1 %v16726_v16  ;;  %v16800_v16 = vld [vmem:[#allocation7 + $0x3bc] ss:$52 sps:$4 sm:$0xff]  }
 0x22b   :  { %5532 = vmatpush1.bf16.msra.mxu0 %v16729_v17  ;;  %5492 = vmatprep.subr.bf16.mxu1 %v16734_v19  ;;  %v16798_v17 = vld [vmem:[#allocation7 + $0x3b8] ss:$52 sps:$4 sm:$0xff]   ;;  %v16803_v19 = vld [vmem:[#allocation7 + $0xa3c] ss:$52 sps:$4 sm:$0xff]  }
 0x22c   :  { %5533 = vmatprep.subr.bf16.mxu0 %v16737_v20  ;;  %v18118_v20 = vld [vmem:[#allocation8] sm:$0xff] }
 0x22e   :  { %5493 = vmatpush1.bf16.msra.mxu1 %v16732_v21  ;;  %v16801_v21 = vld [vmem:[#allocation7 + $0xa38] ss:$52 sps:$4 sm:$0xff]  }
 0x22f   :  { %5534 = vmatpush1.bf16.msra.mxu0 %v16735_v22  ;;  %5494 = vmatprep.subr.bf16.mxu1 %v16740_v23  ;;  %v16806_v22 = vld [vmem:[#allocation7 + $0x354] ss:$52 sps:$4 sm:$0xff]   ;;  %v16804_v23 = vld [vmem:[#allocation7 + $0x350] ss:$52 sps:$4 sm:$0xff]  }
 0x230   :  { %5535 = vmatprep.subr.bf16.mxu0 %v16743_v25  ;;  %v16807_v25 = vld [vmem:[#allocation7 + $0x9d0] ss:$52 sps:$4 sm:$0xff]  }
 0x232   :  { %5495 = vmatpush1.bf16.msra.mxu1 %v16738_v24  ;;  %v16809_v24 = vld [vmem:[#allocation7 + $0x9d4] ss:$52 sps:$4 sm:$0xff]  }
 0x233   :  { %5536 = vmatpush1.bf16.msra.mxu0 %v16741_v27  ;;  %5496 = vmatprep.subr.bf16.mxu1 %v16746_v28  ;;  %v16812_v27 = vld [vmem:[#allocation7 + $0xfec] ss:$52 sps:$4 sm:$0xff]   ;;  %v16815_v28 = vld [vmem:[#allocation7 + $0x2f4] ss:$52 sps:$4 sm:$0xff]  }
 0x234   :  { %5537 = vmatprep.subr.bf16.mxu0 %v16749_v32  ;;  %v16810_v32 = vld [vmem:[#allocation7 + $0xfe8] ss:$52 sps:$4 sm:$0xff]  }
 0x236   :  { %5497 = vmatpush1.bf16.msra.mxu1 %v16744_v31  ;;  %v2010_v31 = vrot.slane %v18118_v20, %v18057_v45 }
 0x237   :  { %5538 = vmatpush1.bf16.msra.mxu0 %v16747_v33  ;;  %5498 = vmatprep.subr.bf16.mxu1 %v16752_v34  ;;  %v16813_v33 = vld [vmem:[#allocation7 + $0x2f0] ss:$52 sps:$4 sm:$0xff]   ;;  %v2014_v34 = vrot.slane %v18118_v20, %v18062_v48 }
 0x238   :  { %5539 = vmatprep.subr.bf16.mxu0 %v16755_v36 }
 0x23a   :  { %5499 = vmatpush1.bf16.msra.mxu1 %v16750_v35  ;;  %v16818_v35 = vld [vmem:[#allocation7 + $0xf84] ss:$52 sps:$4 sm:$0xff]  }
 0x23b   :  { %5540 = vmatpush1.bf16.msra.mxu0 %v16753_v37  ;;  %5500 = vmatprep.subr.bf16.mxu1 %v16758_v39  ;;  %v16816_v37 = vld [vmem:[#allocation7 + $0xf80] ss:$52 sps:$4 sm:$0xff]  }
 0x23c   :  { %5541 = vmatprep.subr.bf16.mxu0 %v16761_v41  ;;  %v16821_v41 = vld [vmem:[#allocation7 + $0x28c] ss:$52 sps:$4 sm:$0xff]  }
 0x23e   :  { %5501 = vmatpush1.bf16.msra.mxu1 %v16756_v40  ;;  %v16819_v40 = vld [vmem:[#allocation7 + $0x288] ss:$52 sps:$4 sm:$0xff]  }
 0x23f   :  { %5542 = vmatpush1.bf16.msra.mxu0 %v16759_v42  ;;  %5502 = vmatprep.subr.bf16.mxu1 %v16764_v43 }
 0x240   :  { %5543 = vmatprep.subr.bf16.mxu0 %v16767_v49  ;;  %v16827_v49 = vld [vmem:[#allocation7 + $0x224] ss:$52 sps:$4 sm:$0xff]  }
 0x241   :  { %v18114_v46 = vpop.f32.mrf.mxu1 }
 0x242   :  { %5503 = vmatpush2.bf16.msra.mxu1 %v16762_v44  ;;  %v5275_v36 = vadd.f32 %v18114_v46, %v2010_v31  ;;  %v16824_v44 = vld [vmem:[#allocation7 + $0xf1c] ss:$52 sps:$4 sm:$0xff]   ;;  %v16825_v46 = vld [vmem:[#allocation7 + $0x220] ss:$52 sps:$4 sm:$0xff]   ;;  %v16870_v31 = vld [vmem:[#allocation7 + $0x1258] ss:$52 sps:$4 sm:$0xff]  }
 0x243   :  { %5544 = vmatpush2.bf16.msra.mxu0 %v16765_v51  ;;  %v18116_v56 = vpop.f32.mrf.mxu1  ;;  %5504 = vmatprep.subr.bf16.mxu1 %v16770_v52 }
 0x244   :  { %5545 = vmatprep.subr.bf16.mxu0 %v16773_v54  ;;  %v5277_v42 = vadd.f32 %v18116_v56, %v2014_v34  ;;  %v16822_v54 = vld [vmem:[#allocation7 + $0xf18] ss:$52 sps:$4 sm:$0xff]   ;;  %v16830_v56 = vld [vmem:[#allocation7 + $0xeb4] ss:$52 sps:$4 sm:$0xff]  }
 0x245   :  { %v5278_v63 = vpop.f32.mrf.mxu1  ;;  %v16878_v34 = vld [vmem:[#allocation7 + $0x11f4] ss:$52 sps:$4 sm:$0xff]  }
 0x246   :  { %5505 = vmatpush2.bf16.msra.mxu1 %v16768_v53  ;;  %v16836_v63 = vld [vmem:[#allocation7 + $0xe4c] ss:$52 sps:$4 sm:$0xff]  }
 0x247   :  { %5546 = vmatpush2.bf16.msra.mxu0 %v16771_v58  ;;  %v5279_v2 = vpop.f32.mrf.mxu1  ;;  %5506 = vmatprep.subr.bf16.mxu1 %v16776_v59  ;;  %v16833_v58 = vld [vmem:[#allocation7 + $0x1bc] ss:$52 sps:$4 sm:$0xff]  }
 0x248   :  { %5547 = vmatprep.subr.bf16.mxu0 %v16779_v61  ;;  %v16831_v61 = vld [vmem:[#allocation7 + $0x1b8] ss:$52 sps:$4 sm:$0xff]   ;;  %v16834_v2 = vld [vmem:[#allocation7 + $0xe48] ss:$52 sps:$4 sm:$0xff]  }
 0x24a   :  { %5507 = vmatpush2.bf16.msra.mxu1 %v16774_v60  ;;  %v16828_v60 = vld [vmem:[#allocation7 + $0xeb0] ss:$52 sps:$4 sm:$0xff]  }
 0x24b   :  { %5548 = vmatpush2.bf16.msra.mxu0 %v16777_v3  ;;  %5508 = vmatprep.subr.bf16.mxu1 %v16782_v4  ;;  %v16839_v3 = vld [vmem:[#allocation7 + $0x154] ss:$52 sps:$4 sm:$0xff]   ;;  %v16837_v4 = vld [vmem:[#allocation7 + $0x150] ss:$52 sps:$4 sm:$0xff]  }
 0x24c   :  { %5549 = vmatprep.subr.bf16.mxu0 %v16785_v6  ;;  %v16840_v6 = vld [vmem:[#allocation7 + $0xde0] ss:$52 sps:$4 sm:$0xff]  }
 0x24e   :  { %5509 = vmatpush2.bf16.msra.mxu1 %v16780_v5  ;;  %v16842_v5 = vld [vmem:[#allocation7 + $0xde4] ss:$52 sps:$4 sm:$0xff]  }
 0x24f   :  { %5550 = vmatpush2.bf16.msra.mxu0 %v16783_v7  ;;  %5510 = vmatprep.subr.bf16.mxu1 %v16788_v18  ;;  %v16845_v7 = vld [vmem:[#allocation7 + $0xec] ss:$52 sps:$4 sm:$0xff]   ;;  %v16843_v18 = vld [vmem:[#allocation7 + $0xe8] ss:$52 sps:$4 sm:$0xff]  }
 0x250   :  { %5551 = vmatprep.subr.bf16.mxu0 %v16791_v9  ;;  %v16846_v9 = vld [vmem:[#allocation7 + $0xd78] ss:$52 sps:$4 sm:$0xff]  }
 0x252   :  { %5511 = vmatpush2.bf16.msra.mxu1 %v16786_v8  ;;  %v16848_v8 = vld [vmem:[#allocation7 + $0xd7c] ss:$52 sps:$4 sm:$0xff]  }
 0x253   :  { %5552 = vmatpush2.bf16.msra.mxu0 %v16789_v11  ;;  %5512 = vmatprep.subr.bf16.mxu1 %v16794_v12  ;;  %v16851_v11 = vld [vmem:[#allocation7 + $0x84] ss:$52 sps:$4 sm:$0xff]   ;;  %v16849_v12 = vld [vmem:[#allocation7 + $0x80] ss:$52 sps:$4 sm:$0xff]  }
 0x254   :  { %5553 = vmatprep.subr.bf16.mxu0 %v16797_v14  ;;  %v16852_v14 = vld [vmem:[#allocation7 + $0xd10] ss:$52 sps:$4 sm:$0xff]  }
 0x256   :  { %5513 = vmatpush2.bf16.msra.mxu1 %v16792_v13  ;;  %v16854_v13 = vld [vmem:[#allocation7 + $0xd14] ss:$52 sps:$4 sm:$0xff]  }
 0x257   :  { %5554 = vmatpush2.bf16.msra.mxu0 %v16795_v15  ;;  %5514 = vmatprep.subr.bf16.mxu1 %v16800_v16  ;;  %v16857_v15 = vld [vmem:[#allocation7 + $0x1c] ss:$52 sps:$4 sm:$0xff]   ;;  %v16855_v16 = vld [vmem:[#allocation7 + $0x18] ss:$52 sps:$4 sm:$0xff]  }
 0x258   :  { %5555 = vmatprep.subr.bf16.mxu0 %v16803_v19  ;;  %v16858_v19 = vld [vmem:[#allocation7 + $0x1328] ss:$52 sps:$4 sm:$0xff]  }
 0x25a   :  { %5515 = vmatpush2.bf16.msra.mxu1 %v16798_v17  ;;  %v16860_v17 = vld [vmem:[#allocation7 + $0x132c] ss:$52 sps:$4 sm:$0xff]  }
 0x25b   :  { %5556 = vmatpush2.bf16.msra.mxu0 %v16801_v21  ;;  %5516 = vmatprep.subr.bf16.mxu1 %v16806_v22  ;;  %v16863_v21 = vld [vmem:[#allocation7 + $0x634] ss:$52 sps:$4 sm:$0xff]   ;;  %v16861_v22 = vld [vmem:[#allocation7 + $0x630] ss:$52 sps:$4 sm:$0xff]  }
 0x25c   :  { %5557 = vmatprep.subr.bf16.mxu0 %v16809_v24  ;;  %v16864_v24 = vld [vmem:[#allocation7 + $0x12c0] ss:$52 sps:$4 sm:$0xff]  }
 0x25e   :  { %5517 = vmatpush2.bf16.msra.mxu1 %v16804_v23  ;;  %v16866_v23 = vld [vmem:[#allocation7 + $0x12c4] ss:$52 sps:$4 sm:$0xff]  }
 0x25f   :  { %5558 = vmatpush2.bf16.msra.mxu0 %v16807_v25  ;;  %5568 = vmatprep.subr.bf16.mxu1 %v16812_v27  ;;  %v16869_v25 = vld [vmem:[#allocation7 + $0x5cc] ss:$52 sps:$4 sm:$0xff]   ;;  %v16867_v27 = vld [vmem:[#allocation7 + $0x5c8] ss:$52 sps:$4 sm:$0xff]  }
 0x260   :  { %5609 = vmatprep.subr.bf16.mxu0 %v16815_v28  ;;  %v16872_v28 = vld [vmem:[#allocation7 + $0x125c] ss:$52 sps:$4 sm:$0xff]  }
 0x261   :  { %5519 = vmatmul.mubr.bf16.vlgmr.msra.gmra.mxu1 %v18070_v0 }
 0x262   :  { %v5315_v39 = vpop.f32.mrf.mxu0  ;;  %5560 = vmatmul.mubr.bf16.vlgmr.msra.gmra.mxu0 %v18086_v38  ;;  %5569 = vmatpush1.bf16.msra.mxu1 %v16810_v32  ;;  %v16875_v32 = vld [vmem:[#allocation7 + $0x564] ss:$52 sps:$4 sm:$0xff]  }
 0x263   :  { %v18128_v43 = vadd.f32 %v5315_v39, %v5275_v36  ;;  %5600 = vmatprep.mubr.bf16.mxu1 %v18101_v55  ;;  %5610 = vmatpush1.bf16.msra.mxu0 %v16813_v33  ;;  %v16873_v33 = vld [vmem:[#allocation7 + $0x560] ss:$52 sps:$4 sm:$0xff]   ;;  %v16881_v36 = vld [vmem:[#allocation7 + $0x4fc] ss:$52 sps:$4 sm:$0xff]  }
 0x264   :  { %v5317_v51 = vpop.f32.mrf.mxu0  ;;  %5641 = vmatprep.mubr.bf16.mxu0 %v18068_v62  ;;  %5570 = vmatprep.subr.bf16.mxu1 %v16818_v35  ;;  %v16876_v35 = vld [vmem:[#allocation7 + $0x11f0] ss:$52 sps:$4 sm:$0xff]   ;;  %v16884_v39 = vld [vmem:[#allocation7 + $0x118c] ss:$52 sps:$4 sm:$0xff]  }
 0x265   :  { %v18132_v52 = vadd.f32 %v5317_v51, %v5277_v42  ;;  %5611 = vmatprep.subr.bf16.mxu0 %v16821_v41  ;;  %v16887_v41 = vld [vmem:[#allocation7 + $0x494] ss:$52 sps:$4 sm:$0xff]   ;;  %v16885_v42 = vld [vmem:[#allocation7 + $0x490] ss:$52 sps:$4 sm:$0xff]   ;;  %v16893_v51 = vld [vmem:[#allocation7 + $0x42c] ss:$52 sps:$4 sm:$0xff]  }
 0x266   :  { %v5319_v53 = vpop.f32.mrf.mxu0  ;;  %5571 = vmatpush1.bf16.msra.mxu1 %v16816_v37  ;;  %v16879_v37 = vld [vmem:[#allocation7 + $0x4f8] ss:$52 sps:$4 sm:$0xff]  }
 0x267   :  { %5612 = vmatpush1.bf16.msra.mxu0 %v16819_v40  ;;  %5572 = vmatprep.subr.bf16.mxu1 %v16824_v44  ;;  %v16882_v40 = vld [vmem:[#allocation7 + $0x1188] ss:$52 sps:$4 sm:$0xff]   ;;  %v16890_v44 = vld [vmem:[#allocation7 + $0x1124] ss:$52 sps:$4 sm:$0xff]  }
 0x268   :  { %v5320_v59 = vpop.f32.mrf.mxu0  ;;  %5613 = vmatprep.subr.bf16.mxu0 %v16827_v49  ;;  %v16888_v49 = vld [vmem:[#allocation7 + $0x1120] ss:$52 sps:$4 sm:$0xff]   ;;  %v16891_v53 = vld [vmem:[#allocation7 + $0x428] ss:$52 sps:$4 sm:$0xff]  }
 0x269   :  { %v16902_v59 = vld [vmem:[#allocation7 + $0x1054] ss:$52 sps:$4 sm:$0xff]  }
 0x26a   :  { %5573 = vmatpush1.bf16.msra.mxu1 %v16822_v54  ;;  %v16896_v54 = vld [vmem:[#allocation7 + $0x10bc] ss:$52 sps:$4 sm:$0xff]  }
 0x26b   :  { %5614 = vmatpush1.bf16.msra.mxu0 %v16825_v46  ;;  %5574 = vmatprep.subr.bf16.mxu1 %v16830_v56  ;;  %v16894_v46 = vld [vmem:[#allocation7 + $0x10b8] ss:$52 sps:$4 sm:$0xff]  }
 0x26c   :  { %5615 = vmatprep.subr.bf16.mxu0 %v16833_v58  ;;  %v16899_v56 = vld [vmem:[#allocation7 + $0x3c4] ss:$52 sps:$4 sm:$0xff]   ;;  %v16897_v58 = vld [vmem:[#allocation7 + $0x3c0] ss:$52 sps:$4 sm:$0xff]  }
 0x26e   :  { %5575 = vmatpush1.bf16.msra.mxu1 %v16828_v60  ;;  %v16900_v60 = vld [vmem:[#allocation7 + $0x1050] ss:$52 sps:$4 sm:$0xff]  }
 0x26f   :  { %5616 = vmatpush1.bf16.msra.mxu0 %v16831_v61  ;;  %5576 = vmatprep.subr.bf16.mxu1 %v16836_v63  ;;  %v16905_v61 = vld [vmem:[#allocation7 + $0x35c] ss:$52 sps:$4 sm:$0xff]   ;;  %v16903_v63 = vld [vmem:[#allocation7 + $0x358] ss:$52 sps:$4 sm:$0xff]  }
 0x270   :  { %5617 = vmatprep.subr.bf16.mxu0 %v16839_v3  ;;  %v16911_v3 = vld [vmem:[#allocation7 + $0xff4] ss:$52 sps:$4 sm:$0xff]  }
 0x272   :  { %5577 = vmatpush1.bf16.msra.mxu1 %v16834_v2  ;;  %v16908_v2 = vld [vmem:[#allocation7 + $0x974] ss:$52 sps:$4 sm:$0xff]  }
 0x273   :  { %5618 = vmatpush1.bf16.msra.mxu0 %v16837_v4  ;;  %5578 = vmatprep.subr.bf16.mxu1 %v16842_v5  ;;  %v16906_v4 = vld [vmem:[#allocation7 + $0x970] ss:$52 sps:$4 sm:$0xff]  }
 0x274   :  { %5619 = vmatprep.subr.bf16.mxu0 %v16845_v7  ;;  %v16909_v5 = vld [vmem:[#allocation7 + $0xff0] ss:$52 sps:$4 sm:$0xff]  }
 0x276   :  { %5579 = vmatpush1.bf16.msra.mxu1 %v16840_v6  ;;  %v16914_v6 = vld [vmem:[#allocation7 + $0x90c] ss:$52 sps:$4 sm:$0xff]  }
 0x277   :  { %5620 = vmatpush1.bf16.msra.mxu0 %v16843_v18  ;;  %5580 = vmatprep.subr.bf16.mxu1 %v16848_v8  ;;  %v16917_v8 = vld [vmem:[#allocation7 + $0xf8c] ss:$52 sps:$4 sm:$0xff]  }
 0x278   :  { %5621 = vmatprep.subr.bf16.mxu0 %v16851_v11  ;;  %v16912_v11 = vld [vmem:[#allocation7 + $0x908] ss:$52 sps:$4 sm:$0xff]  }
 0x27a   :  { %5581 = vmatpush1.bf16.msra.mxu1 %v16846_v9 }
 0x27b   :  { %5622 = vmatpush1.bf16.msra.mxu0 %v16849_v12  ;;  %5582 = vmatprep.subr.bf16.mxu1 %v16854_v13 }
 0x27c   :  { %5623 = vmatprep.subr.bf16.mxu0 %v16857_v15  ;;  %v16920_v15 = vld [vmem:[#allocation7 + $0x8a4] ss:$52 sps:$4 sm:$0xff]  }
 0x27e   :  { %5583 = vmatpush1.bf16.msra.mxu1 %v16852_v14  ;;  %v16915_v14 = vld [vmem:[#allocation7 + $0xf88] ss:$52 sps:$4 sm:$0xff]  }
 0x27f   :  { %5624 = vmatpush1.bf16.msra.mxu0 %v16855_v16  ;;  %5584 = vmatprep.subr.bf16.mxu1 %v16860_v17  ;;  %v16923_v17 = vld [vmem:[#allocation7 + $0xf24] ss:$52 sps:$4 sm:$0xff]  }
 0x280   :  { %5625 = vmatprep.subr.bf16.mxu0 %v16863_v21  ;;  %v16918_v21 = vld [vmem:[#allocation7 + $0x8a0] ss:$52 sps:$4 sm:$0xff]  }
 0x282   :  { %5585 = vmatpush2.bf16.msra.mxu1 %v16858_v19 }
 0x283   :  { %5626 = vmatpush2.bf16.msra.mxu0 %v16861_v22  ;;  %5586 = vmatprep.subr.bf16.mxu1 %v16866_v23 }
 0x284   :  { %5627 = vmatprep.subr.bf16.mxu0 %v16869_v25  ;;  %v16926_v25 = vld [vmem:[#allocation7 + $0x83c] ss:$52 sps:$4 sm:$0xff]  }
 0x286   :  { %5587 = vmatpush2.bf16.msra.mxu1 %v16864_v24  ;;  %v16921_v24 = vld [vmem:[#allocation7 + $0xf20] ss:$52 sps:$4 sm:$0xff]  }
 0x287   :  { %5628 = vmatpush2.bf16.msra.mxu0 %v16867_v27  ;;  %5588 = vmatprep.subr.bf16.mxu1 %v16872_v28  ;;  %v16929_v27 = vld [vmem:[#allocation7 + $0xebc] ss:$52 sps:$4 sm:$0xff]   ;;  %v16924_v28 = vld [vmem:[#allocation7 + $0x838] ss:$52 sps:$4 sm:$0xff]  }
 0x288   :  { %5629 = vmatprep.subr.bf16.mxu0 %v16875_v32  ;;  %v16935_v32 = vld [vmem:[#allocation7 + $0xe54] ss:$52 sps:$4 sm:$0xff]  }
 0x28a   :  { %5589 = vmatpush2.bf16.msra.mxu1 %v16870_v31  ;;  %v16932_v31 = vld [vmem:[#allocation7 + $0x7d4] ss:$52 sps:$4 sm:$0xff]  }
 0x28b   :  { %5630 = vmatpush2.bf16.msra.mxu0 %v16873_v33  ;;  %5590 = vmatprep.subr.bf16.mxu1 %v16878_v34  ;;  %v16930_v33 = vld [vmem:[#allocation7 + $0x7d0] ss:$52 sps:$4 sm:$0xff]  }
 0x28c   :  { %5631 = vmatprep.subr.bf16.mxu0 %v16881_v36  ;;  %v16933_v34 = vld [vmem:[#allocation7 + $0xe50] ss:$52 sps:$4 sm:$0xff]   ;;  %v16941_v36 = vld [vmem:[#allocation7 + $0xdec] ss:$52 sps:$4 sm:$0xff]  }
 0x28e   :  { %5591 = vmatpush2.bf16.msra.mxu1 %v16876_v35  ;;  %v16938_v35 = vld [vmem:[#allocation7 + $0x76c] ss:$52 sps:$4 sm:$0xff]  }
 0x28f   :  { %5632 = vmatpush2.bf16.msra.mxu0 %v16879_v37  ;;  %5592 = vmatprep.subr.bf16.mxu1 %v16884_v39  ;;  %v16936_v37 = vld [vmem:[#allocation7 + $0x768] ss:$52 sps:$4 sm:$0xff]  }
 0x290   :  { %5633 = vmatprep.subr.bf16.mxu0 %v16887_v41  ;;  %v16939_v39 = vld [vmem:[#allocation7 + $0xde8] ss:$52 sps:$4 sm:$0xff]   ;;  %v16947_v41 = vld [vmem:[#allocation7 + $0xd84] ss:$52 sps:$4 sm:$0xff]  }
 0x292   :  { %5593 = vmatpush2.bf16.msra.mxu1 %v16882_v40  ;;  %v16944_v40 = vld [vmem:[#allocation7 + $0x704] ss:$52 sps:$4 sm:$0xff]  }
 0x293   :  { %5634 = vmatpush2.bf16.msra.mxu0 %v16885_v42  ;;  %5594 = vmatprep.subr.bf16.mxu1 %v16890_v44  ;;  %v16942_v42 = vld [vmem:[#allocation7 + $0x700] ss:$52 sps:$4 sm:$0xff]  }
 0x294   :  { %5635 = vmatprep.subr.bf16.mxu0 %v16893_v51  ;;  %v16945_v44 = vld [vmem:[#allocation7 + $0xd80] ss:$52 sps:$4 sm:$0xff]   ;;  %v16953_v51 = vld [vmem:[#allocation7 + $0xd1c] ss:$52 sps:$4 sm:$0xff]  }
 0x296   :  { %5595 = vmatpush2.bf16.msra.mxu1 %v16888_v49  ;;  %v16950_v49 = vld [vmem:[#allocation7 + $0x69c] ss:$52 sps:$4 sm:$0xff]  }
 0x297   :  { %5636 = vmatpush2.bf16.msra.mxu0 %v16891_v53  ;;  %5596 = vmatprep.subr.bf16.mxu1 %v16896_v54  ;;  %v16948_v53 = vld [vmem:[#allocation7 + $0x698] ss:$52 sps:$4 sm:$0xff]  }
 0x298   :  { %5637 = vmatprep.subr.bf16.mxu0 %v16899_v56  ;;  %v16951_v54 = vld [vmem:[#allocation7 + $0xd18] ss:$52 sps:$4 sm:$0xff]   ;;  %v16959_v56 = vld [vmem:[#allocation7 + $0x1334] ss:$52 sps:$4 sm:$0xff]  }
 0x29a   :  { %5597 = vmatpush2.bf16.msra.mxu1 %v16894_v46  ;;  %v16956_v46 = vld [vmem:[#allocation7 + $0xcb4] ss:$52 sps:$4 sm:$0xff]  }
 0x29b   :  { %5638 = vmatpush2.bf16.msra.mxu0 %v16897_v58  ;;  %5598 = vmatprep.subr.bf16.mxu1 %v16902_v59  ;;  %v16954_v58 = vld [vmem:[#allocation7 + $0xcb0] ss:$52 sps:$4 sm:$0xff]  }
 0x29c   :  { %5639 = vmatprep.subr.bf16.mxu0 %v16905_v61  ;;  %v16957_v59 = vld [vmem:[#allocation7 + $0x1330] ss:$52 sps:$4 sm:$0xff]   ;;  %v16965_v61 = vld [vmem:[#allocation7 + $0x12cc] ss:$52 sps:$4 sm:$0xff]  }
 0x29e   :  { %5599 = vmatpush2.bf16.msra.mxu1 %v16900_v60  ;;  %v16962_v60 = vld [vmem:[#allocation7 + $0xc4c] ss:$52 sps:$4 sm:$0xff]  }
 0x29f   :  { %5640 = vmatpush2.bf16.msra.mxu0 %v16903_v63  ;;  %5650 = vmatprep.subr.bf16.mxu1 %v16908_v2  ;;  %v16960_v63 = vld [vmem:[#allocation7 + $0xc48] ss:$52 sps:$4 sm:$0xff]  }
 0x2a0   :  { %5691 = vmatprep.subr.bf16.mxu0 %v16911_v3  ;;  %v16963_v2 = vld [vmem:[#allocation7 + $0x12c8] ss:$52 sps:$4 sm:$0xff]   ;;  %v16968_v3 = vld [vmem:[#allocation7 + $0xbe4] ss:$52 sps:$4 sm:$0xff]  }
 0x2a1   :  { %5601 = vmatmul.mubr.bf16.vlgmr.msra.gmra.mxu1 %v18103_v57  ;;  %v5356_v18 = vpop.f32.mrf.mxu1 }
 0x2a2   :  { %v18134_v7 = vpop.f32.mrf.mxu0  ;;  %5642 = vmatmul.mubr.bf16.vlgmr.msra.gmra.mxu0 %v18070_v0  ;;  %v18139_v9 = vadd.f32 %v5356_v18, %v18128_v43  ;;  %5651 = vmatpush1.bf16.msra.mxu1 %v16906_v4  ;;  %v16971_v4 = vld [vmem:[#allocation7 + $0x1264] ss:$52 sps:$4 sm:$0xff]   ;;  %v16974_v18 = vld [vmem:[#allocation7 + $0xb7c] ss:$52 sps:$4 sm:$0xff]  }
 0x2a3   :  { %5682 = vmatprep.mubr.bf16.mxu1 %v18084_v50  ;;  %5692 = vmatpush1.bf16.msra.mxu0 %v16909_v5  ;;  %v5358_v13 = vpop.f32.mrf.mxu1  ;;  %v16966_v5 = vld [vmem:[#allocation7 + $0xbe0] ss:$52 sps:$4 sm:$0xff]  }
 0x2a4   :  { %v18142_v12 = vpop.f32.mrf.mxu0  ;;  %5723 = vmatprep.mubr.bf16.mxu0 %v18101_v55  ;;  %v18146_v16 = vadd.f32 %v5358_v13, %v18132_v52  ;;  %5652 = vmatprep.subr.bf16.mxu1 %v16914_v6  ;;  %v16927_v52 = vld [vmem:[#allocation7 + $0xeb8] ss:$52 sps:$4 sm:$0xff]   ;;  %v16969_v6 = vld [vmem:[#allocation7 + $0x1260] ss:$52 sps:$4 sm:$0xff]  }
 0x2a5   :  { %5693 = vmatprep.subr.bf16.mxu0 %v16917_v8  ;;  %v5360_v43 = vpop.f32.mrf.mxu1  ;;  %v16977_v8 = vld [vmem:[#allocation7 + $0x11fc] ss:$52 sps:$4 sm:$0xff]   ;;  %v16975_v13 = vld [vmem:[#allocation7 + $0x11f8] ss:$52 sps:$4 sm:$0xff]  }
 0x2a6   :  { %v5401_v19 = vpop.f32.mrf.mxu0  ;;  %5653 = vmatpush1.bf16.msra.mxu1 %v16912_v11  ;;  %v16972_v11 = vld [vmem:[#allocation7 + $0xb78] ss:$52 sps:$4 sm:$0xff]  }
 0x2a7   :  { %5694 = vmatpush1.bf16.msra.mxu0 %v16915_v14  ;;  %v5361_v23 = vpop.f32.mrf.mxu1  ;;  %5654 = vmatprep.subr.bf16.mxu1 %v16920_v15  ;;  %v16980_v14 = vld [vmem:[#allocation7 + $0xb14] ss:$52 sps:$4 sm:$0xff]   ;;  %v16981_v19 = vld [vmem:[#allocation7 + $0x1190] ss:$52 sps:$4 sm:$0xff]   ;;  %v16986_v43 = vld [vmem:[#allocation7 + $0xaac] ss:$52 sps:$4 sm:$0xff]  }
 0x2a8   :  { %v5402_v22 = vpop.f32.mrf.mxu0  ;;  %5695 = vmatprep.subr.bf16.mxu0 %v16923_v17  ;;  %v16983_v15 = vld [vmem:[#allocation7 + $0x1194] ss:$52 sps:$4 sm:$0xff]   ;;  %v16978_v17 = vld [vmem:[#allocation7 + $0xb10] ss:$52 sps:$4 sm:$0xff]  }
 0x2a9   :  { %v16984_v22 = vld [vmem:[#allocation7 + $0xaa8] ss:$52 sps:$4 sm:$0xff]  }
 0x2aa   :  { %5655 = vmatpush1.bf16.msra.mxu1 %v16918_v21  ;;  %v16989_v21 = vld [vmem:[#allocation7 + $0x112c] ss:$52 sps:$4 sm:$0xff]   ;;  %v16987_v23 = vld [vmem:[#allocation7 + $0x1128] ss:$52 sps:$4 sm:$0xff]  }
 0x2ab   :  { %5696 = vmatpush1.bf16.msra.mxu0 %v16921_v24  ;;  %5656 = vmatprep.subr.bf16.mxu1 %v16926_v25  ;;  %v16992_v24 = vld [vmem:[#allocation7 + $0xa44] ss:$52 sps:$4 sm:$0xff]  }
 0x2ac   :  { %5697 = vmatprep.subr.bf16.mxu0 %v16929_v27  ;;  %v16995_v25 = vld [vmem:[#allocation7 + $0x10c4] ss:$52 sps:$4 sm:$0xff]   ;;  %v16990_v27 = vld [vmem:[#allocation7 + $0xa40] ss:$52 sps:$4 sm:$0xff]  }
 0x2ae   :  { %5657 = vmatpush1.bf16.msra.mxu1 %v16924_v28  ;;  %v16993_v28 = vld [vmem:[#allocation7 + $0x10c0] ss:$52 sps:$4 sm:$0xff]  }
 0x2af   :  { %5698 = vmatpush1.bf16.msra.mxu0 %v16927_v52  ;;  %5658 = vmatprep.subr.bf16.mxu1 %v16932_v31  ;;  %v16998_v52 = vld [vmem:[#allocation7 + $0x9dc] ss:$52 sps:$4 sm:$0xff]  }
 0x2b0   :  { %5699 = vmatprep.subr.bf16.mxu0 %v16935_v32  ;;  %v17001_v31 = vld [vmem:[#allocation7 + $0x105c] ss:$52 sps:$4 sm:$0xff]   ;;  %v16996_v32 = vld [vmem:[#allocation7 + $0x9d8] ss:$52 sps:$4 sm:$0xff]  }
 0x2b2   :  { %5659 = vmatpush1.bf16.msra.mxu1 %v16930_v33  ;;  %v16999_v33 = vld [vmem:[#allocation7 + $0x1058] ss:$52 sps:$4 sm:$0xff]  }
 0x2b3   :  { %5700 = vmatpush1.bf16.msra.mxu0 %v16933_v34  ;;  %5660 = vmatprep.subr.bf16.mxu1 %v16938_v35  ;;  %v17004_v34 = vld [vmem:[#allocation7 + $0x2fc] ss:$52 sps:$4 sm:$0xff]   ;;  %v2018_v35 = vrot.slane %v18118_v20, %v18075_v47 }
 0x2b4   :  { %5701 = vmatprep.subr.bf16.mxu0 %v16941_v36  ;;  %v17007_v36 = vld [vmem:[#allocation7 + $0x97c] ss:$52 sps:$4 sm:$0xff]  }
 0x2b6   :  { %5661 = vmatpush1.bf16.msra.mxu1 %v16936_v37  ;;  %v2022_v37 = vrot.slane %v18118_v20, %v18078_v10  ;;  %v17008_v20 = vld [vmem:[#allocation7 + $0x290] ss:$52 sps:$4 sm:$0xff]  }
 0x2b7   :  { %5702 = vmatpush1.bf16.msra.mxu0 %v16939_v39  ;;  %5662 = vmatprep.subr.bf16.mxu1 %v16944_v40  ;;  %v17002_v39 = vld [vmem:[#allocation7 + $0x2f8] ss:$52 sps:$4 sm:$0xff]  }
 0x2b8   :  { %5703 = vmatprep.subr.bf16.mxu0 %v16947_v41  ;;  %v17005_v40 = vld [vmem:[#allocation7 + $0x978] ss:$52 sps:$4 sm:$0xff]   ;;  %v5398_v41 = vadd.f32 %v18134_v7, %v2018_v35  ;;  %v17011_v7 = vld [vmem:[#allocation7 + $0x910] ss:$52 sps:$4 sm:$0xff]  }
 0x2b9   :  { %v17055_v35 = vld [vmem:[#allocation7 + $0xcbc] ss:$52 sps:$4 sm:$0xff]  }
 0x2ba   :  { %5663 = vmatpush1.bf16.msra.mxu1 %v16942_v42  ;;  %v17010_v42 = vld [vmem:[#allocation7 + $0x294] ss:$52 sps:$4 sm:$0xff]  }
 0x2bb   :  { %5704 = vmatpush1.bf16.msra.mxu0 %v16945_v44  ;;  %5664 = vmatprep.subr.bf16.mxu1 %v16950_v49 }
 0x2bc   :  { %5705 = vmatprep.subr.bf16.mxu0 %v16953_v51  ;;  %v17013_v51 = vld [vmem:[#allocation7 + $0x914] ss:$52 sps:$4 sm:$0xff]  }
 0x2be   :  { %5665 = vmatpush1.bf16.msra.mxu1 %v16948_v53  ;;  %v5400_v53 = vadd.f32 %v18142_v12, %v2022_v37  ;;  %v17053_v37 = vld [vmem:[#allocation7 + $0xcb8] ss:$52 sps:$4 sm:$0xff]  }
 0x2bf   :  { %5706 = vmatpush1.bf16.msra.mxu0 %v16951_v54  ;;  %5666 = vmatprep.subr.bf16.mxu1 %v16956_v46 }
 0x2c0   :  { %5707 = vmatprep.subr.bf16.mxu0 %v16959_v56 }
 0x2c2   :  { %5667 = vmatpush2.bf16.msra.mxu1 %v16954_v58  ;;  %v17016_v58 = vld [vmem:[#allocation7 + $0x22c] ss:$52 sps:$4 sm:$0xff]  }
 0x2c3   :  { %5708 = vmatpush2.bf16.msra.mxu0 %v16957_v59  ;;  %5668 = vmatprep.subr.bf16.mxu1 %v16962_v60 }
 0x2c4   :  { %5709 = vmatprep.subr.bf16.mxu0 %v16965_v61  ;;  %v17019_v61 = vld [vmem:[#allocation7 + $0x8ac] ss:$52 sps:$4 sm:$0xff]  }
 0x2c6   :  { %5669 = vmatpush2.bf16.msra.mxu1 %v16960_v63 }
 0x2c7   :  { %5710 = vmatpush2.bf16.msra.mxu0 %v16963_v2  ;;  %5670 = vmatprep.subr.bf16.mxu1 %v16968_v3  ;;  %v17014_v3 = vld [vmem:[#allocation7 + $0x228] ss:$52 sps:$4 sm:$0xff]  }
 0x2c8   :  { %5711 = vmatprep.subr.bf16.mxu0 %v16971_v4 }
 0x2ca   :  { %5671 = vmatpush2.bf16.msra.mxu1 %v16966_v5 }
 0x2cb   :  { %5712 = vmatpush2.bf16.msra.mxu0 %v16969_v6  ;;  %5672 = vmatprep.subr.bf16.mxu1 %v16974_v18  ;;  %v17017_v6 = vld [vmem:[#allocation7 + $0x8a8] ss:$52 sps:$4 sm:$0xff]   ;;  %v17022_v18 = vld [vmem:[#allocation7 + $0x1c4] ss:$52 sps:$4 sm:$0xff]  }
 0x2cc   :  { %5713 = vmatprep.subr.bf16.mxu0 %v16977_v8  ;;  %v17025_v8 = vld [vmem:[#allocation7 + $0x844] ss:$52 sps:$4 sm:$0xff]  }
 0x2ce   :  { %5673 = vmatpush2.bf16.msra.mxu1 %v16972_v11  ;;  %v17020_v11 = vld [vmem:[#allocation7 + $0x1c0] ss:$52 sps:$4 sm:$0xff]  }
 0x2cf   :  { %5714 = vmatpush2.bf16.msra.mxu0 %v16975_v13  ;;  %5674 = vmatprep.subr.bf16.mxu1 %v16980_v14  ;;  %v17023_v13 = vld [vmem:[#allocation7 + $0x840] ss:$52 sps:$4 sm:$0xff]   ;;  %v17028_v14 = vld [vmem:[#allocation7 + $0x15c] ss:$52 sps:$4 sm:$0xff]  }
 0x2d0   :  { %5715 = vmatprep.subr.bf16.mxu0 %v16983_v15  ;;  %v17031_v15 = vld [vmem:[#allocation7 + $0x7dc] ss:$52 sps:$4 sm:$0xff]  }
 0x2d2   :  { %5675 = vmatpush2.bf16.msra.mxu1 %v16978_v17  ;;  %v17026_v17 = vld [vmem:[#allocation7 + $0x158] ss:$52 sps:$4 sm:$0xff]  }
 0x2d3   :  { %5716 = vmatpush2.bf16.msra.mxu0 %v16981_v19  ;;  %5676 = vmatprep.subr.bf16.mxu1 %v16986_v43  ;;  %v17029_v19 = vld [vmem:[#allocation7 + $0x7d8] ss:$52 sps:$4 sm:$0xff]   ;;  %v17034_v43 = vld [vmem:[#allocation7 + $0xf4] ss:$52 sps:$4 sm:$0xff]  }
 0x2d4   :  { %5717 = vmatprep.subr.bf16.mxu0 %v16989_v21  ;;  %v17037_v21 = vld [vmem:[#allocation7 + $0x774] ss:$52 sps:$4 sm:$0xff]  }
 0x2d6   :  { %5677 = vmatpush2.bf16.msra.mxu1 %v16984_v22  ;;  %v17032_v22 = vld [vmem:[#allocation7 + $0xf0] ss:$52 sps:$4 sm:$0xff]  }
 0x2d7   :  { %5718 = vmatpush2.bf16.msra.mxu0 %v16987_v23  ;;  %5678 = vmatprep.subr.bf16.mxu1 %v16992_v24  ;;  %v17035_v23 = vld [vmem:[#allocation7 + $0x770] ss:$52 sps:$4 sm:$0xff]   ;;  %v17040_v24 = vld [vmem:[#allocation7 + $0x8c] ss:$52 sps:$4 sm:$0xff]  }
 0x2d8   :  { %5719 = vmatprep.subr.bf16.mxu0 %v16995_v25  ;;  %v17043_v25 = vld [vmem:[#allocation7 + $0x70c] ss:$52 sps:$4 sm:$0xff]  }
 0x2da   :  { %5679 = vmatpush2.bf16.msra.mxu1 %v16990_v27  ;;  %v17038_v27 = vld [vmem:[#allocation7 + $0x88] ss:$52 sps:$4 sm:$0xff]  }
 0x2db   :  { %5720 = vmatpush2.bf16.msra.mxu0 %v16993_v28  ;;  %5680 = vmatprep.subr.bf16.mxu1 %v16998_v52  ;;  %v17041_v28 = vld [vmem:[#allocation7 + $0x708] ss:$52 sps:$4 sm:$0xff]   ;;  %v17046_v52 = vld [vmem:[#allocation7 + $0x24] ss:$52 sps:$4 sm:$0xff]  }
 0x2dc   :  { %5721 = vmatprep.subr.bf16.mxu0 %v17001_v31  ;;  %v17049_v31 = vld [vmem:[#allocation7 + $0x6a4] ss:$52 sps:$4 sm:$0xff]  }
 0x2de   :  { %5681 = vmatpush2.bf16.msra.mxu1 %v16996_v32  ;;  %v17044_v32 = vld [vmem:[#allocation7 + $0x20] ss:$52 sps:$4 sm:$0xff]  }
 0x2df   :  { %5722 = vmatpush2.bf16.msra.mxu0 %v16999_v33  ;;  %5732 = vmatprep.subr.bf16.mxu1 %v17004_v34  ;;  %v17047_v33 = vld [vmem:[#allocation7 + $0x6a0] ss:$52 sps:$4 sm:$0xff]   ;;  %v17052_v34 = vld [vmem:[#allocation7 + $0x63c] ss:$52 sps:$4 sm:$0xff]  }
 0x2e0   :  { %5773 = vmatprep.subr.bf16.mxu0 %v17007_v36  ;;  %v17050_v36 = vld [vmem:[#allocation7 + $0x638] ss:$52 sps:$4 sm:$0xff]  }
 0x2e1   :  { %v5438_v44 = vpop.f32.mrf.mxu1  ;;  %5683 = vmatmul.mubr.bf16.vlgmr.msra.gmra.mxu1 %v18086_v38 }
 0x2e2   :  { %v5479_v49 = vpop.f32.mrf.mxu0  ;;  %v5439_v54 = vadd.f32 %v5438_v44, %v5398_v41  ;;  %5724 = vmatmul.mubr.bf16.vlgmr.msra.gmra.mxu0 %v18103_v57  ;;  %5733 = vmatpush1.bf16.msra.mxu1 %v17002_v39  ;;  %v17058_v39 = vld [vmem:[#allocation7 + $0x5d4] ss:$52 sps:$4 sm:$0xff]   ;;  %v17056_v41 = vld [vmem:[#allocation7 + $0x5d0] ss:$52 sps:$4 sm:$0xff]   ;;  %v17064_v44 = vld [vmem:[#allocation7 + $0x56c] ss:$52 sps:$4 sm:$0xff]  }
 0x2e3   :  { %5764 = vmatprep.mubr.bf16.mxu1 %v18068_v62  ;;  %5774 = vmatpush1.bf16.msra.mxu0 %v17005_v40  ;;  %v5440_v46 = vpop.f32.mrf.mxu1  ;;  %v17061_v40 = vld [vmem:[#allocation7 + $0xc54] ss:$52 sps:$4 sm:$0xff]  }
 0x2e4   :  { %v5481_v56 = vpop.f32.mrf.mxu0  ;;  %v18157_v59 = vadd.f32 %v5479_v49, %v5439_v54  ;;  %5805 = vmatprep.mubr.bf16.mxu0 %v18084_v50  ;;  %v5441_v60 = vadd.f32 %v5440_v46, %v5400_v53  ;;  %5734 = vmatprep.subr.bf16.mxu1 %v17010_v42  ;;  %v17059_v42 = vld [vmem:[#allocation7 + $0xc50] ss:$52 sps:$4 sm:$0xff]   ;;  %v17067_v49 = vld [vmem:[#allocation7 + $0xbec] ss:$52 sps:$4 sm:$0xff]   ;;  %v17065_v53 = vld [vmem:[#allocation7 + $0xbe8] ss:$52 sps:$4 sm:$0xff]  }
 0x2e5   :  { %v5442_v12 = vpop.f32.mrf.mxu1  ;;  %5775 = vmatprep.subr.bf16.mxu0 %v17013_v51  ;;  %v17062_v51 = vld [vmem:[#allocation7 + $0x568] ss:$52 sps:$4 sm:$0xff]   ;;  %v17070_v54 = vld [vmem:[#allocation7 + $0x504] ss:$52 sps:$4 sm:$0xff]   ;;  %v17068_v46 = vld [vmem:[#allocation7 + $0x500] ss:$52 sps:$4 sm:$0xff]  }
 0x2e6   :  { %v5483_v63 = vpop.f32.mrf.mxu0  ;;  %v18160_v2 = vadd.f32 %v5481_v56, %v5441_v60  ;;  %5735 = vmatpush1.bf16.msra.mxu1 %v17008_v20  ;;  %v17073_v20 = vld [vmem:[#allocation7 + $0xb84] ss:$52 sps:$4 sm:$0xff]   ;;  %v17071_v56 = vld [vmem:[#allocation7 + $0xb80] ss:$52 sps:$4 sm:$0xff]  }
 0x2e7   :  { %5776 = vmatpush1.bf16.msra.mxu0 %v17011_v7  ;;  %v5443_v4 = vpop.f32.mrf.mxu1  ;;  %5736 = vmatprep.subr.bf16.mxu1 %v17016_v58  ;;  %v17076_v7 = vld [vmem:[#allocation7 + $0x49c] ss:$52 sps:$4 sm:$0xff]   ;;  %v17074_v60 = vld [vmem:[#allocation7 + $0x498] ss:$52 sps:$4 sm:$0xff]   ;;  %v17082_v12 = vld [vmem:[#allocation7 + $0x434] ss:$52 sps:$4 sm:$0xff]  }
 0x2e8   :  { %v5484_v5 = vpop.f32.mrf.mxu0  ;;  %5777 = vmatprep.subr.bf16.mxu0 %v17019_v61  ;;  %v17079_v58 = vld [vmem:[#allocation7 + $0xb1c] ss:$52 sps:$4 sm:$0xff]   ;;  %v17077_v61 = vld [vmem:[#allocation7 + $0xb18] ss:$52 sps:$4 sm:$0xff]   ;;  %v17085_v63 = vld [vmem:[#allocation7 + $0xab4] ss:$52 sps:$4 sm:$0xff]  }
 0x2e9   :  { %v17083_v4 = vld [vmem:[#allocation7 + $0xab0] ss:$52 sps:$4 sm:$0xff]   ;;  %v17088_v5 = vld [vmem:[#allocation7 + $0x3cc] ss:$52 sps:$4 sm:$0xff]  }
 0x2ea   :  { %5737 = vmatpush1.bf16.msra.mxu1 %v17014_v3  ;;  %v17080_v3 = vld [vmem:[#allocation7 + $0x430] ss:$52 sps:$4 sm:$0xff]  }
 0x2eb   :  { %5778 = vmatpush1.bf16.msra.mxu0 %v17017_v6  ;;  %5738 = vmatprep.subr.bf16.mxu1 %v17022_v18  ;;  %v17091_v6 = vld [vmem:[#allocation7 + $0xa4c] ss:$52 sps:$4 sm:$0xff]   ;;  %v17086_v18 = vld [vmem:[#allocation7 + $0x3c8] ss:$52 sps:$4 sm:$0xff]  }
 0x2ec   :  { %5779 = vmatprep.subr.bf16.mxu0 %v17025_v8  ;;  %v17089_v8 = vld [vmem:[#allocation7 + $0xa48] ss:$52 sps:$4 sm:$0xff]  }
 0x2ee   :  { %5739 = vmatpush1.bf16.msra.mxu1 %v17020_v11  ;;  %v17094_v11 = vld [vmem:[#allocation7 + $0x364] ss:$52 sps:$4 sm:$0xff]  }
 0x2ef   :  { %5780 = vmatpush1.bf16.msra.mxu0 %v17023_v13  ;;  %5740 = vmatprep.subr.bf16.mxu1 %v17028_v14  ;;  %v17097_v13 = vld [vmem:[#allocation7 + $0x9e4] ss:$52 sps:$4 sm:$0xff]   ;;  %v17092_v14 = vld [vmem:[#allocation7 + $0x360] ss:$52 sps:$4 sm:$0xff]  }
 0x2f0   :  { %5781 = vmatprep.subr.bf16.mxu0 %v17031_v15  ;;  %v17095_v15 = vld [vmem:[#allocation7 + $0x9e0] ss:$52 sps:$4 sm:$0xff]  }
 0x2f2   :  { %5741 = vmatpush1.bf16.msra.mxu1 %v17026_v17  ;;  %v17100_v17 = vld [vmem:[#allocation7 + $0xffc] ss:$52 sps:$4 sm:$0xff]  }
 0x2f3   :  { %5782 = vmatpush1.bf16.msra.mxu0 %v17029_v19  ;;  %5742 = vmatprep.subr.bf16.mxu1 %v17034_v43  ;;  %v17103_v19 = vld [vmem:[#allocation7 + $0x304] ss:$52 sps:$4 sm:$0xff]  }
 0x2f4   :  { %5783 = vmatprep.subr.bf16.mxu0 %v17037_v21  ;;  %v18162_v43 = vld [vmem:[#allocation8] sm:$0xff] }
 0x2f5   :  { %v2026_v21 = vrot.slane %v18162_v43, %v18092_v26 }
 0x2f6   :  { %5743 = vmatpush1.bf16.msra.mxu1 %v17032_v22  ;;  %v17098_v22 = vld [vmem:[#allocation7 + $0xff8] ss:$52 sps:$4 sm:$0xff]  }
 0x2f7   :  { %5784 = vmatpush1.bf16.msra.mxu0 %v17035_v23  ;;  %5744 = vmatprep.subr.bf16.mxu1 %v17040_v24  ;;  %v17101_v23 = vld [vmem:[#allocation7 + $0x300] ss:$52 sps:$4 sm:$0xff]   ;;  %v2030_v24 = vrot.slane %v18162_v43, %v18095_v30 }
 0x2f8   :  { %5785 = vmatprep.subr.bf16.mxu0 %v17043_v25  ;;  %v17106_v25 = vld [vmem:[#allocation7 + $0xf94] ss:$52 sps:$4 sm:$0xff]  }
 0x2fa   :  { %5745 = vmatpush1.bf16.msra.mxu1 %v17038_v27 }
 0x2fb   :  { %5786 = vmatpush1.bf16.msra.mxu0 %v17041_v28  ;;  %5746 = vmatprep.subr.bf16.mxu1 %v17046_v52  ;;  %v17109_v28 = vld [vmem:[#allocation7 + $0x29c] ss:$52 sps:$4 sm:$0xff]  }
 0x2fc   :  { %5787 = vmatprep.subr.bf16.mxu0 %v17049_v31 }
 0x2fe   :  { %5747 = vmatpush1.bf16.msra.mxu1 %v17044_v32  ;;  %v17104_v32 = vld [vmem:[#allocation7 + $0xf90] ss:$52 sps:$4 sm:$0xff]  }
 0x2ff   :  { %5788 = vmatpush1.bf16.msra.mxu0 %v17047_v33  ;;  %5748 = vmatprep.subr.bf16.mxu1 %v17052_v34  ;;  %v17107_v34 = vld [vmem:[#allocation7 + $0x298] ss:$52 sps:$4 sm:$0xff]  }
 0x300   :  { %5789 = vmatprep.subr.bf16.mxu0 %v17055_v35  ;;  %v17112_v35 = vld [vmem:[#allocation7 + $0xf2c] ss:$52 sps:$4 sm:$0xff]  }
 0x302   :  { %5749 = vmatpush2.bf16.msra.mxu1 %v17050_v36 }
 0x303   :  { %5790 = vmatpush2.bf16.msra.mxu0 %v17053_v37  ;;  %5750 = vmatprep.subr.bf16.mxu1 %v17058_v39 }
 0x304   :  { %5791 = vmatprep.subr.bf16.mxu0 %v17061_v40  ;;  %v17115_v40 = vld [vmem:[#allocation7 + $0x234] ss:$52 sps:$4 sm:$0xff]  }
 0x306   :  { %5751 = vmatpush2.bf16.msra.mxu1 %v17056_v41 }
 0x307   :  { %5792 = vmatpush2.bf16.msra.mxu0 %v17059_v42  ;;  %5752 = vmatprep.subr.bf16.mxu1 %v17064_v44 }
 0x308   :  { %5793 = vmatprep.subr.bf16.mxu0 %v17067_v49  ;;  %v17110_v49 = vld [vmem:[#allocation7 + $0xf28] ss:$52 sps:$4 sm:$0xff]  }
 0x30a   :  { %5753 = vmatpush2.bf16.msra.mxu1 %v17062_v51 }
 0x30b   :  { %5794 = vmatpush2.bf16.msra.mxu0 %v17065_v53  ;;  %5754 = vmatprep.subr.bf16.mxu1 %v17070_v54  ;;  %v17113_v53 = vld [vmem:[#allocation7 + $0x230] ss:$52 sps:$4 sm:$0xff]  }
 0x30c   :  { %5795 = vmatprep.subr.bf16.mxu0 %v17073_v20  ;;  %v17118_v54 = vld [vmem:[#allocation7 + $0xec4] ss:$52 sps:$4 sm:$0xff]  }
 0x30e   :  { %5755 = vmatpush2.bf16.msra.mxu1 %v17068_v46  ;;  %v17121_v46 = vld [vmem:[#allocation7 + $0x1cc] ss:$52 sps:$4 sm:$0xff]  }
 0x30f   :  { %5796 = vmatpush2.bf16.msra.mxu0 %v17071_v56  ;;  %5756 = vmatprep.subr.bf16.mxu1 %v17076_v7  ;;  %v17116_v56 = vld [vmem:[#allocation7 + $0xec0] ss:$52 sps:$4 sm:$0xff]   ;;  %v17119_v7 = vld [vmem:[#allocation7 + $0x1c8] ss:$52 sps:$4 sm:$0xff]  }
 0x310   :  { %5797 = vmatprep.subr.bf16.mxu0 %v17079_v58  ;;  %v17124_v58 = vld [vmem:[#allocation7 + $0xe5c] ss:$52 sps:$4 sm:$0xff]  }
 0x312   :  { %5757 = vmatpush2.bf16.msra.mxu1 %v17074_v60  ;;  %v17127_v60 = vld [vmem:[#allocation7 + $0x164] ss:$52 sps:$4 sm:$0xff]  }
 0x313   :  { %5798 = vmatpush2.bf16.msra.mxu0 %v17077_v61  ;;  %5758 = vmatprep.subr.bf16.mxu1 %v17082_v12  ;;  %v17122_v61 = vld [vmem:[#allocation7 + $0xe58] ss:$52 sps:$4 sm:$0xff]   ;;  %v17125_v12 = vld [vmem:[#allocation7 + $0x160] ss:$52 sps:$4 sm:$0xff]  }
 0x314   :  { %5799 = vmatprep.subr.bf16.mxu0 %v17085_v63  ;;  %v17130_v63 = vld [vmem:[#allocation7 + $0xdf4] ss:$52 sps:$4 sm:$0xff]  }
 0x316   :  { %5759 = vmatpush2.bf16.msra.mxu1 %v17080_v3  ;;  %v17133_v3 = vld [vmem:[#allocation7 + $0xfc] ss:$52 sps:$4 sm:$0xff]  }
 0x317   :  { %5800 = vmatpush2.bf16.msra.mxu0 %v17083_v4  ;;  %5760 = vmatprep.subr.bf16.mxu1 %v17088_v5  ;;  %v17128_v4 = vld [vmem:[#allocation7 + $0xdf0] ss:$52 sps:$4 sm:$0xff]   ;;  %v17131_v5 = vld [vmem:[#allocation7 + $0xf8] ss:$52 sps:$4 sm:$0xff]  }
 0x318   :  { %5801 = vmatprep.subr.bf16.mxu0 %v17091_v6  ;;  %v17136_v6 = vld [vmem:[#allocation7 + $0xd8c] ss:$52 sps:$4 sm:$0xff]  }
 0x31a   :  { %5761 = vmatpush2.bf16.msra.mxu1 %v17086_v18  ;;  %v17139_v18 = vld [vmem:[#allocation7 + $0x94] ss:$52 sps:$4 sm:$0xff]  }
 0x31b   :  { %5802 = vmatpush2.bf16.msra.mxu0 %v17089_v8  ;;  %5762 = vmatprep.subr.bf16.mxu1 %v17094_v11  ;;  %v17134_v8 = vld [vmem:[#allocation7 + $0xd88] ss:$52 sps:$4 sm:$0xff]   ;;  %v17137_v11 = vld [vmem:[#allocation7 + $0x90] ss:$52 sps:$4 sm:$0xff]  }
 0x31c   :  { %5803 = vmatprep.subr.bf16.mxu0 %v17097_v13  ;;  %v17142_v13 = vld [vmem:[#allocation7 + $0xd24] ss:$52 sps:$4 sm:$0xff]  }
 0x31e   :  { %5763 = vmatpush2.bf16.msra.mxu1 %v17092_v14  ;;  %v17145_v14 = vld [vmem:[#allocation7 + $0x2c] ss:$52 sps:$4 sm:$0xff]  }
 0x31f   :  { %5804 = vmatpush2.bf16.msra.mxu0 %v17095_v15  ;;  %5814 = vmatprep.subr.bf16.mxu1 %v17100_v17  ;;  %v17140_v15 = vld [vmem:[#allocation7 + $0xd20] ss:$52 sps:$4 sm:$0xff]   ;;  %v17143_v17 = vld [vmem:[#allocation7 + $0x28] ss:$52 sps:$4 sm:$0xff]  }
 0x320   :  { %5855 = vmatprep.subr.bf16.mxu0 %v17103_v19  ;;  %v17148_v19 = vld [vmem:[#allocation7 + $0x133c] ss:$52 sps:$4 sm:$0xff]  }
 0x321   :  { %v5520_v27 = vpop.f32.mrf.mxu1  ;;  %5765 = vmatmul.mubr.bf16.vlgmr.msra.gmra.mxu1 %v18070_v0 }
 0x322   :  { %v5521_v52 = vadd.f32 %v5520_v27, %v2026_v21  ;;  %v5561_v31 = vpop.f32.mrf.mxu0  ;;  %5806 = vmatmul.mubr.bf16.vlgmr.msra.gmra.mxu0 %v18086_v38  ;;  %5815 = vmatpush1.bf16.msra.mxu1 %v17098_v22  ;;  %v17151_v21 = vld [vmem:[#allocation7 + $0x644] ss:$52 sps:$4 sm:$0xff]  }
 0x323   :  { %5846 = vmatprep.mubr.bf16.mxu1 %v18101_v55  ;;  %5856 = vmatpush1.bf16.msra.mxu0 %v17101_v23  ;;  %v5522_v33 = vpop.f32.mrf.mxu1  ;;  %v17146_v22 = vld [vmem:[#allocation7 + $0x1338] ss:$52 sps:$4 sm:$0xff]   ;;  %v17149_v23 = vld [vmem:[#allocation7 + $0x640] ss:$52 sps:$4 sm:$0xff]   ;;  %v17152_v27 = vld [vmem:[#allocation7 + $0x12d0] ss:$52 sps:$4 sm:$0xff]  }
 0x324   :  { %v18171_v36 = vadd.f32 %v5561_v31, %v5521_v52  ;;  %5887 = vmatprep.mubr.bf16.mxu0 %v18068_v62  ;;  %v5523_v37 = vadd.f32 %v5522_v33, %v2030_v24  ;;  %v5563_v39 = vpop.f32.mrf.mxu0  ;;  %5816 = vmatprep.subr.bf16.mxu1 %v17106_v25  ;;  %v17154_v24 = vld [vmem:[#allocation7 + $0x12d4] ss:$52 sps:$4 sm:$0xff]   ;;  %v17157_v25 = vld [vmem:[#allocation7 + $0x5dc] ss:$52 sps:$4 sm:$0xff]   ;;  %v17160_v52 = vld [vmem:[#allocation7 + $0x126c] ss:$52 sps:$4 sm:$0xff]  }
 0x325   :  { %v5524_v41 = vpop.f32.mrf.mxu1  ;;  %5857 = vmatprep.subr.bf16.mxu0 %v17109_v28  ;;  %v17155_v28 = vld [vmem:[#allocation7 + $0x5d8] ss:$52 sps:$4 sm:$0xff]   ;;  %v17163_v31 = vld [vmem:[#allocation7 + $0x574] ss:$52 sps:$4 sm:$0xff]   ;;  %v17161_v33 = vld [vmem:[#allocation7 + $0x570] ss:$52 sps:$4 sm:$0xff]  }
 0x326   :  { %v18174_v42 = vadd.f32 %v5563_v39, %v5523_v37  ;;  %v5565_v44 = vpop.f32.mrf.mxu0  ;;  %5817 = vmatpush1.bf16.msra.mxu1 %v17104_v32  ;;  %v17158_v32 = vld [vmem:[#allocation7 + $0x1268] ss:$52 sps:$4 sm:$0xff]   ;;  %v17164_v37 = vld [vmem:[#allocation7 + $0x1200] ss:$52 sps:$4 sm:$0xff]   ;;  %v17175_v41 = vld [vmem:[#allocation7 + $0x4a4] ss:$52 sps:$4 sm:$0xff]  }
 0x327   :  { %5858 = vmatpush1.bf16.msra.mxu0 %v17107_v34  ;;  %v5525_v51 = vpop.f32.mrf.mxu1  ;;  %5818 = vmatprep.subr.bf16.mxu1 %v17112_v35  ;;  %v17166_v34 = vld [vmem:[#allocation7 + $0x1204] ss:$52 sps:$4 sm:$0xff]   ;;  %v17169_v35 = vld [vmem:[#allocation7 + $0x50c] ss:$52 sps:$4 sm:$0xff]   ;;  %v17167_v39 = vld [vmem:[#allocation7 + $0x508] ss:$52 sps:$4 sm:$0xff]  }
 0x328   :  { %v5566_v20 = vpop.f32.mrf.mxu0  ;;  %5859 = vmatprep.subr.bf16.mxu0 %v17115_v40  ;;  %v17172_v40 = vld [vmem:[#allocation7 + $0x119c] ss:$52 sps:$4 sm:$0xff]   ;;  %v17170_v44 = vld [vmem:[#allocation7 + $0x1198] ss:$52 sps:$4 sm:$0xff]   ;;  %v17178_v51 = vld [vmem:[#allocation7 + $0x1134] ss:$52 sps:$4 sm:$0xff]  }
 0x329   :  { %v17179_v20 = vld [vmem:[#allocation7 + $0x438] ss:$52 sps:$4 sm:$0xff]  }
 0x32a   :  { %5819 = vmatpush1.bf16.msra.mxu1 %v17110_v49  ;;  %v17173_v49 = vld [vmem:[#allocation7 + $0x4a0] ss:$52 sps:$4 sm:$0xff]  }
 0x32b   :  { %5860 = vmatpush1.bf16.msra.mxu0 %v17113_v53  ;;  %5820 = vmatprep.subr.bf16.mxu1 %v17118_v54  ;;  %v17181_v53 = vld [vmem:[#allocation7 + $0x43c] ss:$52 sps:$4 sm:$0xff]  }
 0x32c   :  { %5861 = vmatprep.subr.bf16.mxu0 %v17121_v46  ;;  %v17176_v54 = vld [vmem:[#allocation7 + $0x1130] ss:$52 sps:$4 sm:$0xff]   ;;  %v17184_v46 = vld [vmem:[#allocation7 + $0x10cc] ss:$52 sps:$4 sm:$0xff]  }
 0x32e   :  { %5821 = vmatpush1.bf16.msra.mxu1 %v17116_v56  ;;  %v17187_v56 = vld [vmem:[#allocation7 + $0x3d4] ss:$52 sps:$4 sm:$0xff]  }
 0x32f   :  { %5862 = vmatpush1.bf16.msra.mxu0 %v17119_v7  ;;  %5822 = vmatprep.subr.bf16.mxu1 %v17124_v58  ;;  %v17182_v7 = vld [vmem:[#allocation7 + $0x10c8] ss:$52 sps:$4 sm:$0xff]   ;;  %v17185_v58 = vld [vmem:[#allocation7 + $0x3d0] ss:$52 sps:$4 sm:$0xff]  }
 0x330   :  { %5863 = vmatprep.subr.bf16.mxu0 %v17127_v60  ;;  %v17190_v60 = vld [vmem:[#allocation7 + $0x1064] ss:$52 sps:$4 sm:$0xff]  }
 0x332   :  { %5823 = vmatpush1.bf16.msra.mxu1 %v17122_v61  ;;  %v17193_v61 = vld [vmem:[#allocation7 + $0x36c] ss:$52 sps:$4 sm:$0xff]  }
 0x333   :  { %5864 = vmatpush1.bf16.msra.mxu0 %v17125_v12  ;;  %5824 = vmatprep.subr.bf16.mxu1 %v17130_v63  ;;  %v17188_v12 = vld [vmem:[#allocation7 + $0x1060] ss:$52 sps:$4 sm:$0xff]   ;;  %v17191_v63 = vld [vmem:[#allocation7 + $0x368] ss:$52 sps:$4 sm:$0xff]  }
 0x334   :  { %5865 = vmatprep.subr.bf16.mxu0 %v17133_v3  ;;  %v17196_v3 = vld [vmem:[#allocation7 + $0x984] ss:$52 sps:$4 sm:$0xff]  }
 0x336   :  { %5825 = vmatpush1.bf16.msra.mxu1 %v17128_v4  ;;  %v17199_v4 = vld [vmem:[#allocation7 + $0x1004] ss:$52 sps:$4 sm:$0xff]  }
 0x337   :  { %5866 = vmatpush1.bf16.msra.mxu0 %v17131_v5  ;;  %5826 = vmatprep.subr.bf16.mxu1 %v17136_v6  ;;  %v17194_v5 = vld [vmem:[#allocation7 + $0x980] ss:$52 sps:$4 sm:$0xff]  }
 0x338   :  { %5867 = vmatprep.subr.bf16.mxu0 %v17139_v18  ;;  %v17197_v6 = vld [vmem:[#allocation7 + $0x1000] ss:$52 sps:$4 sm:$0xff]   ;;  %v17202_v18 = vld [vmem:[#allocation7 + $0x91c] ss:$52 sps:$4 sm:$0xff]  }
 0x33a   :  { %5827 = vmatpush1.bf16.msra.mxu1 %v17134_v8 }
 0x33b   :  { %5868 = vmatpush1.bf16.msra.mxu0 %v17137_v11  ;;  %5828 = vmatprep.subr.bf16.mxu1 %v17142_v13  ;;  %v17205_v11 = vld [vmem:[#allocation7 + $0xf9c] ss:$52 sps:$4 sm:$0xff]  }
 0x33c   :  { %5869 = vmatprep.subr.bf16.mxu0 %v17145_v14 }
 0x33e   :  { %5829 = vmatpush1.bf16.msra.mxu1 %v17140_v15  ;;  %v17200_v15 = vld [vmem:[#allocation7 + $0x918] ss:$52 sps:$4 sm:$0xff]  }
 0x33f   :  { %5870 = vmatpush1.bf16.msra.mxu0 %v17143_v17  ;;  %5830 = vmatprep.subr.bf16.mxu1 %v17148_v19  ;;  %v17203_v19 = vld [vmem:[#allocation7 + $0xf98] ss:$52 sps:$4 sm:$0xff]  }
 0x340   :  { %5871 = vmatprep.subr.bf16.mxu0 %v17151_v21  ;;  %v17208_v21 = vld [vmem:[#allocation7 + $0x8b4] ss:$52 sps:$4 sm:$0xff]  }
 0x342   :  { %5831 = vmatpush2.bf16.msra.mxu1 %v17146_v22 }
 0x343   :  { %5872 = vmatpush2.bf16.msra.mxu0 %v17149_v23  ;;  %5832 = vmatprep.subr.bf16.mxu1 %v17154_v24 }
 0x344   :  { %5873 = vmatprep.subr.bf16.mxu0 %v17157_v25 }
 0x346   :  { %5833 = vmatpush2.bf16.msra.mxu1 %v17152_v27  ;;  %v17206_v27 = vld [vmem:[#allocation7 + $0x8b0] ss:$52 sps:$4 sm:$0xff]  }
 0x347   :  { %5874 = vmatpush2.bf16.msra.mxu0 %v17155_v28  ;;  %5834 = vmatprep.subr.bf16.mxu1 %v17160_v52  ;;  %v17209_v52 = vld [vmem:[#allocation7 + $0xf30] ss:$52 sps:$4 sm:$0xff]  }
 0x348   :  { %5875 = vmatprep.subr.bf16.mxu0 %v17163_v31  ;;  %v17214_v31 = vld [vmem:[#allocation7 + $0x84c] ss:$52 sps:$4 sm:$0xff]  }
 0x34a   :  { %5835 = vmatpush2.bf16.msra.mxu1 %v17158_v32 }
 0x34b   :  { %5876 = vmatpush2.bf16.msra.mxu0 %v17161_v33  ;;  %5836 = vmatprep.subr.bf16.mxu1 %v17166_v34  ;;  %v17217_v33 = vld [vmem:[#allocation7 + $0xecc] ss:$52 sps:$4 sm:$0xff]   ;;  %v17215_v34 = vld [vmem:[#allocation7 + $0xec8] ss:$52 sps:$4 sm:$0xff]  }
 0x34c   :  { %5877 = vmatprep.subr.bf16.mxu0 %v17169_v35  ;;  %v17220_v35 = vld [vmem:[#allocation7 + $0x7e4] ss:$52 sps:$4 sm:$0xff]  }
 0x34e   :  { %5837 = vmatpush2.bf16.msra.mxu1 %v17164_v37  ;;  %v17223_v37 = vld [vmem:[#allocation7 + $0xe64] ss:$52 sps:$4 sm:$0xff]  }
 0x34f   :  { %5878 = vmatpush2.bf16.msra.mxu0 %v17167_v39  ;;  %5838 = vmatprep.subr.bf16.mxu1 %v17172_v40  ;;  %v17218_v39 = vld [vmem:[#allocation7 + $0x7e0] ss:$52 sps:$4 sm:$0xff]  }
 0x350   :  { %5879 = vmatprep.subr.bf16.mxu0 %v17175_v41  ;;  %v17221_v40 = vld [vmem:[#allocation7 + $0xe60] ss:$52 sps:$4 sm:$0xff]   ;;  %v17226_v41 = vld [vmem:[#allocation7 + $0x77c] ss:$52 sps:$4 sm:$0xff]  }
 0x352   :  { %5839 = vmatpush2.bf16.msra.mxu1 %v17170_v44  ;;  %v17229_v44 = vld [vmem:[#allocation7 + $0xdfc] ss:$52 sps:$4 sm:$0xff]  }
 0x353   :  { %5880 = vmatpush2.bf16.msra.mxu0 %v17173_v49  ;;  %5840 = vmatprep.subr.bf16.mxu1 %v17178_v51  ;;  %v17224_v49 = vld [vmem:[#allocation7 + $0x778] ss:$52 sps:$4 sm:$0xff]  }
 0x354   :  { %5881 = vmatprep.subr.bf16.mxu0 %v17181_v53  ;;  %v17227_v51 = vld [vmem:[#allocation7 + $0xdf8] ss:$52 sps:$4 sm:$0xff]   ;;  %v17232_v53 = vld [vmem:[#allocation7 + $0x714] ss:$52 sps:$4 sm:$0xff]  }
 0x356   :  { %5841 = vmatpush2.bf16.msra.mxu1 %v17176_v54  ;;  %v17235_v54 = vld [vmem:[#allocation7 + $0xd94] ss:$52 sps:$4 sm:$0xff]  }
 0x357   :  { %5882 = vmatpush2.bf16.msra.mxu0 %v17179_v20  ;;  %5842 = vmatprep.subr.bf16.mxu1 %v17184_v46  ;;  %v17230_v20 = vld [vmem:[#allocation7 + $0x710] ss:$52 sps:$4 sm:$0xff]  }
 0x358   :  { %5883 = vmatprep.subr.bf16.mxu0 %v17187_v56  ;;  %v17233_v46 = vld [vmem:[#allocation7 + $0xd90] ss:$52 sps:$4 sm:$0xff]   ;;  %v17238_v56 = vld [vmem:[#allocation7 + $0x6ac] ss:$52 sps:$4 sm:$0xff]  }
 0x35a   :  { %5843 = vmatpush2.bf16.msra.mxu1 %v17182_v7  ;;  %v17241_v7 = vld [vmem:[#allocation7 + $0xd2c] ss:$52 sps:$4 sm:$0xff]  }
 0x35b   :  { %5884 = vmatpush2.bf16.msra.mxu0 %v17185_v58  ;;  %5844 = vmatprep.subr.bf16.mxu1 %v17190_v60  ;;  %v17236_v58 = vld [vmem:[#allocation7 + $0x6a8] ss:$52 sps:$4 sm:$0xff]  }
 0x35c   :  { %5885 = vmatprep.subr.bf16.mxu0 %v17193_v61  ;;  %v17239_v60 = vld [vmem:[#allocation7 + $0xd28] ss:$52 sps:$4 sm:$0xff]   ;;  %v17244_v61 = vld [vmem:[#allocation7 + $0xcc4] ss:$52 sps:$4 sm:$0xff]  }
 0x35e   :  { %5845 = vmatpush2.bf16.msra.mxu1 %v17188_v12  ;;  %v17247_v12 = vld [vmem:[#allocation7 + $0x1344] ss:$52 sps:$4 sm:$0xff]  }
 0x35f   :  { %5886 = vmatpush2.bf16.msra.mxu0 %v17191_v63  ;;  %5896 = vmatprep.subr.bf16.mxu1 %v17196_v3  ;;  %v17242_v63 = vld [vmem:[#allocation7 + $0xcc0] ss:$52 sps:$4 sm:$0xff]  }
 0x360   :  { %5937 = vmatprep.subr.bf16.mxu0 %v17199_v4  ;;  %v17245_v3 = vld [vmem:[#allocation7 + $0x1340] ss:$52 sps:$4 sm:$0xff]   ;;  %v17250_v4 = vld [vmem:[#allocation7 + $0xc5c] ss:$52 sps:$4 sm:$0xff]  }
 0x361   :  { %v5602_v8 = vpop.f32.mrf.mxu1  ;;  %5847 = vmatmul.mubr.bf16.vlgmr.msra.gmra.mxu1 %v18103_v57 }
 0x362   :  { %v18178_v13 = vadd.f32 %v5602_v8, %v18171_v36  ;;  %v18180_v14 = vpop.f32.mrf.mxu0  ;;  %5888 = vmatmul.mubr.bf16.vlgmr.msra.gmra.mxu0 %v18070_v0  ;;  %5897 = vmatpush1.bf16.msra.mxu1 %v17194_v5  ;;  %v17211_v36 = vld [vmem:[#allocation7 + $0xf34] ss:$52 sps:$4 sm:$0xff]   ;;  %v17253_v5 = vld [vmem:[#allocation7 + $0x12dc] ss:$52 sps:$4 sm:$0xff]  }
 0x363   :  { %5928 = vmatprep.mubr.bf16.mxu1 %v18084_v50  ;;  %5938 = vmatpush1.bf16.msra.mxu0 %v17197_v6  ;;  %v5604_v17 = vpop.f32.mrf.mxu1  ;;  %v17248_v6 = vld [vmem:[#allocation7 + $0xc58] ss:$52 sps:$4 sm:$0xff]   ;;  %v17256_v8 = vld [vmem:[#allocation7 + $0xbf4] ss:$52 sps:$4 sm:$0xff]  }
 0x364   :  { %5969 = vmatprep.mubr.bf16.mxu0 %v18101_v55  ;;  %v18186_v22 = vadd.f32 %v5604_v17, %v18174_v42  ;;  %v18188_v23 = vpop.f32.mrf.mxu0  ;;  %5898 = vmatprep.subr.bf16.mxu1 %v17202_v18  ;;  %v17212_v42 = vld [vmem:[#allocation7 + $0x848] ss:$52 sps:$4 sm:$0xff]   ;;  %v17251_v18 = vld [vmem:[#allocation7 + $0x12d8] ss:$52 sps:$4 sm:$0xff]   ;;  %v17257_v17 = vld [vmem:[#allocation7 + $0x1270] ss:$52 sps:$4 sm:$0xff]  }
 0x365   :  { %v5606_v24 = vpop.f32.mrf.mxu1  ;;  %5939 = vmatprep.subr.bf16.mxu0 %v17205_v11  ;;  %v17259_v11 = vld [vmem:[#allocation7 + $0x1274] ss:$52 sps:$4 sm:$0xff]  }
 0x366   :  { %v5647_v25 = vpop.f32.mrf.mxu0  ;;  %5899 = vmatpush1.bf16.msra.mxu1 %v17200_v15  ;;  %v17254_v15 = vld [vmem:[#allocation7 + $0xbf0] ss:$52 sps:$4 sm:$0xff]   ;;  %v17263_v24 = vld [vmem:[#allocation7 + $0x1208] ss:$52 sps:$4 sm:$0xff]  }
 0x367   :  { %5940 = vmatpush1.bf16.msra.mxu0 %v17203_v19  ;;  %v5607_v28 = vpop.f32.mrf.mxu1  ;;  %5900 = vmatprep.subr.bf16.mxu1 %v17208_v21  ;;  %v17262_v19 = vld [vmem:[#allocation7 + $0xb8c] ss:$52 sps:$4 sm:$0xff]   ;;  %v17268_v25 = vld [vmem:[#allocation7 + $0xb24] ss:$52 sps:$4 sm:$0xff]  }
 0x368   :  { %v5648_v32 = vpop.f32.mrf.mxu0  ;;  %5941 = vmatprep.subr.bf16.mxu0 %v17211_v36  ;;  %v17265_v21 = vld [vmem:[#allocation7 + $0x120c] ss:$52 sps:$4 sm:$0xff]   ;;  %v17260_v36 = vld [vmem:[#allocation7 + $0xb88] ss:$52 sps:$4 sm:$0xff]  }
 0x369   :  { %v17266_v28 = vld [vmem:[#allocation7 + $0xb20] ss:$52 sps:$4 sm:$0xff]   ;;  %v17277_v32 = vld [vmem:[#allocation7 + $0x113c] ss:$52 sps:$4 sm:$0xff]  }
 0x36a   :  { %5901 = vmatpush1.bf16.msra.mxu1 %v17206_v27  ;;  %v17271_v27 = vld [vmem:[#allocation7 + $0x11a4] ss:$52 sps:$4 sm:$0xff]  }
 0x36b   :  { %5942 = vmatpush1.bf16.msra.mxu0 %v17209_v52  ;;  %5902 = vmatprep.subr.bf16.mxu1 %v17214_v31  ;;  %v17269_v52 = vld [vmem:[#allocation7 + $0x11a0] ss:$52 sps:$4 sm:$0xff]   ;;  %v17274_v31 = vld [vmem:[#allocation7 + $0xabc] ss:$52 sps:$4 sm:$0xff]  }
 0x36c   :  { %5943 = vmatprep.subr.bf16.mxu0 %v17217_v33  ;;  %v17272_v33 = vld [vmem:[#allocation7 + $0xab8] ss:$52 sps:$4 sm:$0xff]  }
 0x36e   :  { %5903 = vmatpush1.bf16.msra.mxu1 %v17212_v42  ;;  %v17275_v42 = vld [vmem:[#allocation7 + $0x1138] ss:$52 sps:$4 sm:$0xff]  }
 0x36f   :  { %5944 = vmatpush1.bf16.msra.mxu0 %v17215_v34  ;;  %5904 = vmatprep.subr.bf16.mxu1 %v17220_v35  ;;  %v17280_v34 = vld [vmem:[#allocation7 + $0xa54] ss:$52 sps:$4 sm:$0xff]  }
 0x370   :  { %5945 = vmatprep.subr.bf16.mxu0 %v17223_v37  ;;  %v17283_v35 = vld [vmem:[#allocation7 + $0x10d4] ss:$52 sps:$4 sm:$0xff]   ;;  %v17278_v37 = vld [vmem:[#allocation7 + $0xa50] ss:$52 sps:$4 sm:$0xff]  }
 0x372   :  { %5905 = vmatpush1.bf16.msra.mxu1 %v17218_v39  ;;  %v17281_v39 = vld [vmem:[#allocation7 + $0x10d0] ss:$52 sps:$4 sm:$0xff]  }
 0x373   :  { %5946 = vmatpush1.bf16.msra.mxu0 %v17221_v40  ;;  %5906 = vmatprep.subr.bf16.mxu1 %v17226_v41  ;;  %v17286_v40 = vld [vmem:[#allocation7 + $0x9ec] ss:$52 sps:$4 sm:$0xff]   ;;  %v2033_v41 = vsub.s32 6, %v18027_v29 }
 0x374   :  { %5947 = vmatprep.subr.bf16.mxu0 %v17229_v44  ;;  %v17289_v44 = vld [vmem:[#allocation7 + $0x106c] ss:$52 sps:$4 sm:$0xff]  }
 0x376   :  { %5907 = vmatpush1.bf16.msra.mxu1 %v17224_v49  ;;  %v2037_v49 = vsub.s32 7, %v18027_v29  ;;  %v17425_v29 = vld [vmem:[#allocation13 + $0x4c0] ss:$16 sps:$4 sm:$0xff]  }
 0x377   :  { %5948 = vmatpush1.bf16.msra.mxu0 %v17227_v51  ;;  %5908 = vmatprep.subr.bf16.mxu1 %v17232_v53  ;;  %v17284_v51 = vld [vmem:[#allocation7 + $0x9e8] ss:$52 sps:$4 sm:$0xff]  }
 0x378   :  { %5949 = vmatprep.subr.bf16.mxu0 %v17235_v54  ;;  %v17287_v53 = vld [vmem:[#allocation7 + $0x1068] ss:$52 sps:$4 sm:$0xff]  }
 0x379   :  { %v17290_v54 = vld [vmem:[#allocation7 + $0x648] ss:$52 sps:$4 sm:$0xff]  }
 0x37a   :  { %5909 = vmatpush1.bf16.msra.mxu1 %v17230_v20  ;;  %v2034_v20 = vrot.slane %v18162_v43, %v2033_v41 }
 0x37b   :  { %5950 = vmatpush1.bf16.msra.mxu0 %v17233_v46  ;;  %5910 = vmatprep.subr.bf16.mxu1 %v17238_v56  ;;  %v17291_v46 = vld [vmem:[#allocation7 + $0xcc8] ss:$52 sps:$4 sm:$0xff]   ;;  %v2038_v56 = vrot.slane %v18162_v43, %v2037_v49  ;;  %v17296_v43 = vld [vmem:[#allocation7 + $0x2a0] ss:$52 sps:$4 sm:$0xff]  }
 0x37c   :  { %5951 = vmatprep.subr.bf16.mxu0 %v17241_v7  ;;  %v17292_v7 = vld [vmem:[#allocation7 + $0x308] ss:$52 sps:$4 sm:$0xff]  }
 0x37e   :  { %5911 = vmatpush1.bf16.msra.mxu1 %v17236_v58  ;;  %v17293_v58 = vld [vmem:[#allocation7 + $0x988] ss:$52 sps:$4 sm:$0xff]  }
 0x37f   :  { %5952 = vmatpush1.bf16.msra.mxu0 %v17239_v60  ;;  %5912 = vmatprep.subr.bf16.mxu1 %v17244_v61  ;;  %v5644_v60 = vadd.f32 %v18180_v14, %v2034_v20  ;;  %v17294_v61 = vld [vmem:[#allocation7 + $0x5e0] ss:$52 sps:$4 sm:$0xff]   ;;  %v17298_v14 = vld [vmem:[#allocation7 + $0x578] ss:$52 sps:$4 sm:$0xff]   ;;  %v17319_v20 = vld [vmem:[#allocation7 + $0x9f0] ss:$52 sps:$4 sm:$0xff]  }
 0x380   :  { %5953 = vmatprep.subr.bf16.mxu0 %v17247_v12 }
 0x382   :  { %5913 = vmatpush2.bf16.msra.mxu1 %v17242_v63  ;;  %v17295_v63 = vld [vmem:[#allocation7 + $0xc60] ss:$52 sps:$4 sm:$0xff]  }
 0x383   :  { %5954 = vmatpush2.bf16.msra.mxu0 %v17245_v3  ;;  %5914 = vmatprep.subr.bf16.mxu1 %v17250_v4  ;;  %v5646_v3 = vadd.f32 %v18188_v23, %v2038_v56  ;;  %v17299_v23 = vld [vmem:[#allocation7 + $0xbf8] ss:$52 sps:$4 sm:$0xff]  }
 0x384   :  { %5955 = vmatprep.subr.bf16.mxu0 %v17253_v5  ;;  %v6184_v56 = vld [vmem:[#allocation10 + $0x1e0] sm:$0xff] }
 0x386   :  { %5915 = vmatpush2.bf16.msra.mxu1 %v17248_v6 }
 0x387   :  { %5956 = vmatpush2.bf16.msra.mxu0 %v17251_v18  ;;  %5916 = vmatprep.subr.bf16.mxu1 %v17256_v8  ;;  %v17297_v18 = vld [vmem:[#allocation7 + $0x920] ss:$52 sps:$4 sm:$0xff]  }
 0x388   :  { %5957 = vmatprep.subr.bf16.mxu0 %v17259_v11 }
 0x38a   :  { %5917 = vmatpush2.bf16.msra.mxu1 %v17254_v15 }
 0x38b   :  { %5958 = vmatpush2.bf16.msra.mxu0 %v17257_v17  ;;  %5918 = vmatprep.subr.bf16.mxu1 %v17262_v19 }
 0x38c   :  { %5959 = vmatprep.subr.bf16.mxu0 %v17265_v21 }
 0x38e   :  { %5919 = vmatpush2.bf16.msra.mxu1 %v17260_v36  ;;  %v17300_v36 = vld [vmem:[#allocation7 + $0x238] ss:$52 sps:$4 sm:$0xff]  }
 0x38f   :  { %5960 = vmatpush2.bf16.msra.mxu0 %v17263_v24  ;;  %5920 = vmatprep.subr.bf16.mxu1 %v17268_v25  ;;  %v17301_v24 = vld [vmem:[#allocation7 + $0x8b8] ss:$52 sps:$4 sm:$0xff]   ;;  %v17302_v25 = vld [vmem:[#allocation7 + $0x510] ss:$52 sps:$4 sm:$0xff]  }
 0x390   :  { %5961 = vmatprep.subr.bf16.mxu0 %v17271_v27 }
 0x392   :  { %5921 = vmatpush2.bf16.msra.mxu1 %v17266_v28  ;;  %v17303_v28 = vld [vmem:[#allocation7 + $0xb90] ss:$52 sps:$4 sm:$0xff]  }
 0x393   :  { %5962 = vmatpush2.bf16.msra.mxu0 %v17269_v52  ;;  %5922 = vmatprep.subr.bf16.mxu1 %v17274_v31  ;;  %v17305_v52 = vld [vmem:[#allocation7 + $0x850] ss:$52 sps:$4 sm:$0xff]   ;;  %v17306_v31 = vld [vmem:[#allocation7 + $0x4a8] ss:$52 sps:$4 sm:$0xff]  }
 0x394   :  { %5963 = vmatprep.subr.bf16.mxu0 %v17277_v32  ;;  %v17307_v32 = vld [vmem:[#allocation7 + $0xb28] ss:$52 sps:$4 sm:$0xff]  }
 0x396   :  { %5923 = vmatpush2.bf16.msra.mxu1 %v17272_v33  ;;  %v17308_v33 = vld [vmem:[#allocation7 + $0x168] ss:$52 sps:$4 sm:$0xff]  }
 0x397   :  { %5964 = vmatpush2.bf16.msra.mxu0 %v17275_v42  ;;  %5924 = vmatprep.subr.bf16.mxu1 %v17280_v34  ;;  %v17309_v42 = vld [vmem:[#allocation7 + $0x7e8] ss:$52 sps:$4 sm:$0xff]   ;;  %v17310_v34 = vld [vmem:[#allocation7 + $0x440] ss:$52 sps:$4 sm:$0xff]  }
 0x398   :  { %5965 = vmatprep.subr.bf16.mxu0 %v17283_v35  ;;  %v17311_v35 = vld [vmem:[#allocation7 + $0xac0] ss:$52 sps:$4 sm:$0xff]  }
 0x39a   :  { %5925 = vmatpush2.bf16.msra.mxu1 %v17278_v37  ;;  %v17312_v37 = vld [vmem:[#allocation7 + $0x100] ss:$52 sps:$4 sm:$0xff]  }
 0x39b   :  { %5966 = vmatpush2.bf16.msra.mxu0 %v17281_v39  ;;  %5926 = vmatprep.subr.bf16.mxu1 %v17286_v40  ;;  %v17313_v39 = vld [vmem:[#allocation7 + $0x780] ss:$52 sps:$4 sm:$0xff]   ;;  %v17314_v40 = vld [vmem:[#allocation7 + $0x3d8] ss:$52 sps:$4 sm:$0xff]  }
 0x39c   :  { %5967 = vmatprep.subr.bf16.mxu0 %v17289_v44  ;;  %v17315_v44 = vld [vmem:[#allocation7 + $0xa58] ss:$52 sps:$4 sm:$0xff]  }
 0x39e   :  { %5927 = vmatpush2.bf16.msra.mxu1 %v17284_v51  ;;  %v17316_v51 = vld [vmem:[#allocation7 + $0x98] ss:$52 sps:$4 sm:$0xff]  }
 0x39f   :  { %5968 = vmatpush2.bf16.msra.mxu0 %v17287_v53  ;;  %16124 = vmatprep.subr.bf16.mxu1 %v17290_v54  ;;  %v17317_v53 = vld [vmem:[#allocation7 + $0x718] ss:$52 sps:$4 sm:$0xff]   ;;  %v17318_v54 = vld [vmem:[#allocation7 + $0x370] ss:$52 sps:$4 sm:$0xff]  }
 0x3a0   :  { %16146 = vmatprep.subr.bf16.mxu0 %v17291_v46  ;;  %v6180_v46 = vld [vmem:[#allocation10 + $0x1c0] sm:$0xff] }
 0x3a1   :  { %v5684_v12 = vpop.f32.mrf.mxu1  ;;  %5929 = vmatmul.mubr.bf16.vlgmr.msra.gmra.mxu1 %v18086_v38 }
 0x3a2   :  { %v5685_v4 = vadd.f32 %v5684_v12, %v5644_v60  ;;  %v5725_v5 = vpop.f32.mrf.mxu0  ;;  %5970 = vmatmul.mubr.bf16.vlgmr.msra.gmra.mxu0 %v18103_v57  ;;  %16125 = vmatpush3.bf16.msra.mxu1 %v17292_v7  ;;  %v17320_v7 = vld [vmem:[#allocation7 + $0x30] ss:$52 sps:$4 sm:$0xff]   ;;  %v17322_v60 = vld [vmem:[#allocation7 + $0x1348] ss:$52 sps:$4 sm:$0xff]   ;;  %v6099_v12 = vmax.f32 %v18146_v16, 0.0 }
 0x3a3   :  { %6010 = vmatprep.mubr.bf16.mxu1 %v18068_v62  ;;  %16147 = vmatpush3.bf16.msra.mxu0 %v17293_v58  ;;  %v5686_v6 = vpop.f32.mrf.mxu1  ;;  %v17321_v58 = vld [vmem:[#allocation7 + $0x6b0] ss:$52 sps:$4 sm:$0xff]   ;;  %v17325_v16 = vld [vmem:[#allocation7 + $0xfa0] ss:$52 sps:$4 sm:$0xff]  }
 0x3a4   :  { %v18203_v8 = vadd.f32 %v5725_v5, %v5685_v4  ;;  %6050 = vmatprep.mubr.bf16.mxu0 %v18084_v50  ;;  %v5687_v11 = vadd.f32 %v5686_v6, %v5646_v3  ;;  %v5727_v15 = vpop.f32.mrf.mxu0  ;;  %16126 = vmatprep.subr.bf16.mxu1 %v17294_v61  ;;  %v17304_v50 = vld [vmem:[#allocation7 + $0x1d0] ss:$52 sps:$4 sm:$0xff]   ;;  %v15092_v61 = vcombine.high %v6180_v46, %v6184_v56 }
 0x3a5   :  { %v5688_v17 = vpop.f32.mrf.mxu1  ;;  %16148 = vmatprep.subr.bf16.mxu0 %v17295_v63  ;;  %v17323_v63 = vld [vmem:[#allocation7 + $0x1008] ss:$52 sps:$4 sm:$0xff]   ;;  %v6172_v3 = vld [vmem:[#allocation10 + $0x180] sm:$0xff]  ;;  %v15091_v5 = vcombine.low %v6180_v46, %v6184_v56 }
 0x3a6   :  { %v18206_v19 = vadd.f32 %v5727_v15, %v5687_v11  ;;  %v5729_v21 = vpop.f32.mrf.mxu0  ;;  %16127 = vmatpush3.bf16.msra.mxu1 %v17296_v43  ;;  %v6176_v4 = vld [vmem:[#allocation10 + $0x1a0] sm:$0xff]  ;;  %v18210_v11 = vpack.c.bf16 %v6099_v12, %v6099_v12 }
 0x3a7   :  { %16149 = vmatpush3.bf16.msra.mxu0 %v17297_v18  ;;  %v5689_v62 = vpop.f32.mrf.mxu1  ;;  %16128 = vmatprep.subr.bf16.mxu1 %v17298_v14  ;;  %v17324_v43 = vld [vmem:[#allocation7 + $0x12e0] ss:$52 sps:$4 sm:$0xff]   ;;  %v15084_v6 = vcombine.high %v6172_v3, %v6176_v4  ;;  %v15083_v15 = vcombine.low %v6172_v3, %v6176_v4  ;;  %v17335_v46 = vld [vmem:[#allocation7 + $0xd98] ss:$52 sps:$4 sm:$0xff]   ;;  %v17337_v3 = vld [vmem:[#allocation7 + $0xd30] ss:$52 sps:$4 sm:$0xff]  }
 0x3a8   :  { %v5730_v27 = vpop.f32.mrf.mxu0  ;;  %16150 = vmatprep.subr.bf16.mxu0 %v17299_v23  ;;  %v6164_v18 = vld [vmem:[#allocation10 + $0x140] sm:$0xff] }
 0x3a9   :  { %v6168_v14 = vld [vmem:[#allocation10 + $0x160] sm:$0xff] }
 0x3aa   :  { %16129 = vmatpush3.bf16.msra.mxu1 %v17300_v36  ;;  %v17326_v23 = vld [vmem:[#allocation7 + $0x1278] ss:$52 sps:$4 sm:$0xff]   ;;  %v15076_v17 = vcombine.high %v6164_v18, %v6168_v14  ;;  %v15075_v62 = vcombine.low %v6164_v18, %v6168_v14  ;;  %v17329_v27 = vld [vmem:[#allocation7 + $0xed0] ss:$52 sps:$4 sm:$0xff]  }
 0x3ab   :  { %16151 = vmatpush3.bf16.msra.mxu0 %v17301_v24  ;;  %16130 = vmatprep.subr.bf16.mxu1 %v17302_v25  ;;  %v6160_v21 = vld [vmem:[#allocation10 + $0x120] sm:$0xff] }
 0x3ac   :  { %16152 = vmatprep.subr.bf16.mxu0 %v17303_v28  ;;  %v17327_v36 = vld [vmem:[#allocation7 + $0xf38] ss:$52 sps:$4 sm:$0xff]  }
 0x3ad   :  { %v6148_v25 = vld [vmem:[#allocation10 + $0xc0] sm:$0xff] }
 0x3ae   :  { %16131 = vmatpush3.bf16.msra.mxu1 %v17304_v50  ;;  %v17330_v50 = vld [vmem:[#allocation7 + $0x11a8] ss:$52 sps:$4 sm:$0xff]   ;;  %v6244_v12 = vld [vmem:[#allocation10 + $0x3c0] sm:$0xff] }
 0x3af   :  { %16153 = vmatpush3.bf16.msra.mxu0 %v17305_v52  ;;  %16132 = vmatprep.subr.bf16.mxu1 %v17306_v31  ;;  %v6140_v31 = vld [vmem:[#allocation10 + $0x80] sm:$0xff] }
 0x3b0   :  { %16154 = vmatprep.subr.bf16.mxu0 %v17307_v32  ;;  %v6144_v32 = vld [vmem:[#allocation10 + $0xa0] sm:$0xff] }
 0x3b1   :  { %v6300_v14 = vld [vmem:[#allocation10 + $0x580] sm:$0xff] }
 0x3b2   :  { %16133 = vmatpush3.bf16.msra.mxu1 %v17308_v33  ;;  %v17331_v33 = vld [vmem:[#allocation7 + $0xe68] ss:$52 sps:$4 sm:$0xff]  }
 0x3b3   :  { %16155 = vmatpush3.bf16.msra.mxu0 %v17309_v42  ;;  %16134 = vmatprep.subr.bf16.mxu1 %v17310_v34  ;;  %v17332_v34 = vld [vmem:[#allocation7 + $0x1140] ss:$52 sps:$4 sm:$0xff]  }
 0x3b4   :  { %16156 = vmatprep.subr.bf16.mxu0 %v17311_v35  ;;  %v15052_v35 = vcombine.high %v6140_v31, %v6144_v32 }
 0x3b6   :  { %16135 = vmatpush3.bf16.msra.mxu1 %v17312_v37  ;;  %v6132_v37 = vld [vmem:[#allocation10 + $0x40] sm:$0xff] }
 0x3b7   :  { %16157 = vmatpush3.bf16.msra.mxu0 %v17313_v39  ;;  %16136 = vmatprep.subr.bf16.mxu1 %v17314_v40  ;;  %v6136_v39 = vld [vmem:[#allocation10 + $0x60] sm:$0xff] }
 0x3b8   :  { %16158 = vmatprep.subr.bf16.mxu0 %v17315_v44  ;;  %v17333_v40 = vld [vmem:[#allocation7 + $0xe00] ss:$52 sps:$4 sm:$0xff]   ;;  %v15051_v44 = vcombine.low %v6140_v31, %v6144_v32  ;;  %v15043_v56 = vcombine.low %v6132_v37, %v6136_v39 }
 0x3ba   :  { %16137 = vmatpush3.bf16.msra.mxu1 %v17316_v51  ;;  %v17334_v51 = vld [vmem:[#allocation7 + $0x10d8] ss:$52 sps:$4 sm:$0xff]  }
 0x3bb   :  { %16159 = vmatpush3.bf16.msra.mxu0 %v17317_v53  ;;  %16138 = vmatprep.subr.bf16.mxu1 %v17318_v54  ;;  %v15044_v53 = vcombine.high %v6132_v37, %v6136_v39  ;;  %v6124_v54 = vld [vmem:[#allocation10] sm:$0xff] }
 0x3bc   :  { %16160 = vmatprep.subr.bf16.mxu0 %v17319_v20  ;;  %v6128_v20 = vld [vmem:[#allocation10 + $0x20] sm:$0xff] }
 0x3bd   :  { %v15035_v4 = vcombine.low %v6124_v54, %v6128_v20 }
 0x3be   :  { %16139 = vmatpush3.bf16.msra.mxu1 %v17320_v7  ;;  %v17336_v7 = vld [vmem:[#allocation7 + $0x1070] ss:$52 sps:$4 sm:$0xff]  }
 0x3bf   :  { %16161 = vmatpush3.bf16.msra.mxu0 %v17321_v58  ;;  %16168 = vmatprep.subr.bf16.mxu1 %v17322_v60  ;;  %v15036_v58 = vcombine.high %v6124_v54, %v6128_v20  ;;  %v6308_v60 = vld [vmem:[#allocation10 + $0x5c0] sm:$0xff] }
 0x3c0   :  { %11158 = vmatprep.subr.bf16.mxu0 %v15092_v61  ;;  %v6312_v61 = vld [vmem:[#allocation10 + $0x5e0] sm:$0xff] }
 0x3c1   :  { %6011 = vmatmul.mubr.bf16.vlgmr.msra.gmra.mxu1 %v18070_v0  ;;  %v6156_v0 = vld [vmem:[#allocation10 + $0x100] sm:$0xff] }
 0x3c2   :  { %6051 = vmatmul.mubr.bf16.vlgmr.msra.gmra.mxu0 %v18086_v38  ;;  %16169 = vmatpush3.bf16.msra.mxu1 %v17323_v63  ;;  %v17328_v38 = vld [vmem:[#allocation7 + $0x1210] ss:$52 sps:$4 sm:$0xff]   ;;  %v15068_v24 = vcombine.high %v6156_v0, %v6160_v21  ;;  %v15067_v28 = vcombine.low %v6156_v0, %v6160_v21  ;;  %v15219_v0 = vcombine.low %v6308_v60, %v6312_v61 }
 0x3c3   :  { %6090 = vmatprep.mubr.bf16.mxu1 %v18101_v55  ;;  %11159 = vmatpush1.bf16.msra.mxu0 %v15091_v5  ;;  %v6152_v55 = vld [vmem:[#allocation10 + $0xe0] sm:$0xff]  ;;  %v18215_v5 = vld [vmem:[#allocation8 + $0x8] sm:$0x1f] }
 0x3c4   :  { %11190 = vmatprep.mubr.bf16.mxu0 %v18210_v11  ;;  %16170 = vmatprep.subr.bf16.mxu1 %v17324_v43  ;;  %v15060_v52 = vcombine.high %v6148_v25, %v6152_v55  ;;  %v15059_v42 = vcombine.low %v6148_v25, %v6152_v55  ;;  %v6248_v63 = vld [vmem:[#allocation10 + $0x3e0] sm:$0xff]  ;;  %v15220_v43 = vcombine.high %v6308_v60, %v6312_v61 }
 0x3c5   :  { %11160 = vmatprep.subr.bf16.mxu0 %v15084_v6  ;;  %v6101_v6 = vmax.f32 %v18160_v2, 0.0  ;;  %v15156_v18 = vcombine.high %v6244_v12, %v6248_v63  ;;  %v15155_v21 = vcombine.low %v6244_v12, %v6248_v63  ;;  %v2046_v2 = vrot.slane %v18215_v5, %v18062_v48  ;;  %v6296_v25 = vld [vmem:[#allocation10 + $0x560] sm:$0xff] }
 0x3c6   :  { %16171 = vmatpush3.bf16.msra.mxu1 %v17325_v16  ;;  %v6304_v16 = vld [vmem:[#allocation10 + $0x5a0] sm:$0xff] }
 0x3c7   :  { %11161 = vmatpush1.bf16.msra.mxu0 %v15083_v15  ;;  %16172 = vmatprep.subr.bf16.mxu1 %v17326_v23  ;;  %v6236_v15 = vld [vmem:[#allocation10 + $0x380] sm:$0xff]  ;;  %v15211_v31 = vcombine.low %v6300_v14, %v6304_v16 }
 0x3c8   :  { %11162 = vmatprep.subr.bf16.mxu0 %v15076_v17  ;;  %v6240_v23 = vld [vmem:[#allocation10 + $0x3a0] sm:$0xff]  ;;  %v2042_v17 = vrot.slane %v18215_v5, %v18057_v45 }
 0x3c9   :  { %v6276_v12 = vld [vmem:[#allocation10 + $0x4c0] sm:$0xff] }
 0x3ca   :  { %16173 = vmatpush3.bf16.msra.mxu1 %v17327_v36  ;;  %v15212_v36 = vcombine.high %v6300_v14, %v6304_v16  ;;  %v6280_v63 = vld [vmem:[#allocation10 + $0x4e0] sm:$0xff] }
 0x3cb   :  { %11163 = vmatpush1.bf16.msra.mxu0 %v15075_v62  ;;  %16174 = vmatprep.subr.bf16.mxu1 %v17328_v38  ;;  %v18220_v62 = vpack.c.bf16 %v6101_v6, %v6101_v6  ;;  %v15148_v38 = vcombine.high %v6236_v15, %v6240_v23  ;;  %v6268_v16 = vld [vmem:[#allocation10 + $0x480] sm:$0xff] }
 0x3cc   :  { %11164 = vmatprep.subr.bf16.mxu0 %v15068_v24  ;;  %v6292_v24 = vld [vmem:[#allocation10 + $0x540] sm:$0xff] }
 0x3ce   :  { %16175 = vmatpush3.bf16.msra.mxu1 %v17329_v27  ;;  %v6228_v27 = vld [vmem:[#allocation10 + $0x340] sm:$0xff] }
 0x3cf   :  { %11165 = vmatpush1.bf16.msra.mxu0 %v15067_v28  ;;  %16176 = vmatprep.subr.bf16.mxu1 %v17330_v50  ;;  %v6232_v28 = vld [vmem:[#allocation10 + $0x360] sm:$0xff] }
 0x3d0   :  { %11166 = vmatprep.subr.bf16.mxu0 %v15060_v52  ;;  %v15140_v39 = vcombine.high %v6228_v27, %v6232_v28 }
 0x3d2   :  { %16177 = vmatpush3.bf16.msra.mxu1 %v17331_v33  ;;  %v15147_v33 = vcombine.low %v6236_v15, %v6240_v23  ;;  %v6272_v15 = vld [vmem:[#allocation10 + $0x4a0] sm:$0xff] }
 0x3d3   :  { %11167 = vmatpush1.bf16.msra.mxu0 %v15059_v42  ;;  %16178 = vmatprep.subr.bf16.mxu1 %v17332_v34  ;;  %v15204_v42 = vcombine.high %v6292_v24, %v6296_v25  ;;  %v6204_v23 = vld [vmem:[#allocation10 + $0x280] sm:$0xff] }
 0x3d4   :  { %11168 = vmatprep.subr.bf16.mxu0 %v15052_v35 }
 0x3d6   :  { %16179 = vmatpush3.bf16.msra.mxu1 %v17333_v40  ;;  %v6288_v40 = vld [vmem:[#allocation10 + $0x520] sm:$0xff] }
 0x3d7   :  { %11169 = vmatpush1.bf16.msra.mxu0 %v15051_v44  ;;  %16180 = vmatprep.subr.bf16.mxu1 %v17334_v51  ;;  %v6220_v51 = vld [vmem:[#allocation10 + $0x300] sm:$0xff] }
 0x3d8   :  { %11170 = vmatprep.subr.bf16.mxu0 %v15044_v53  ;;  %v6224_v53 = vld [vmem:[#allocation10 + $0x320] sm:$0xff] }
 0x3d9   :  { %v15132_v61 = vcombine.high %v6220_v51, %v6224_v53  ;;  %v15131_v6 = vcombine.low %v6220_v51, %v6224_v53  ;;  %v6436_v51 = vld [vmem:[#allocation10 + $0x9c0] sm:$0xff] }
 0x3da   :  { %16181 = vmatpush3.bf16.msra.mxu1 %v17335_v46  ;;  %v15203_v46 = vcombine.low %v6292_v24, %v6296_v25  ;;  %v6264_v24 = vld [vmem:[#allocation10 + $0x460] sm:$0xff] }
 0x3db   :  { %11171 = vmatpush1.bf16.msra.mxu0 %v15043_v56  ;;  %16182 = vmatprep.subr.bf16.mxu1 %v17336_v7  ;;  %v15139_v7 = vcombine.low %v6228_v27, %v6232_v28  ;;  %v6196_v25 = vld [vmem:[#allocation10 + $0x240] sm:$0xff]  ;;  %v15179_v27 = vcombine.low %v6268_v16, %v6272_v15 }
 0x3dc   :  { %11172 = vmatprep.subr.bf16.mxu0 %v15036_v58  ;;  %v6440_v53 = vld [vmem:[#allocation10 + $0x9e0] sm:$0xff] }
 0x3de   :  { %16183 = vmatpush3.bf16.msra.mxu1 %v17337_v3  ;;  %v6212_v3 = vld [vmem:[#allocation10 + $0x2c0] sm:$0xff] }
 0x3df   :  { %11173 = vmatpush1.bf16.msra.mxu0 %v15035_v4  ;;  %11199 = vmatprep.subr.bf16.mxu1 %v15220_v43  ;;  %v6216_v4 = vld [vmem:[#allocation10 + $0x2e0] sm:$0xff] }
 0x3e0   :  { %11174 = vmatprep.subr.bf16.mxu0 %v15156_v18  ;;  %v15188_v18 = vcombine.high %v6276_v12, %v6280_v63  ;;  %v15124_v14 = vcombine.high %v6212_v3, %v6216_v4 }
 0x3e1   :  { %v5766_v55 = vpop.f32.mrf.mxu1  ;;  %6091 = vmatmul.mubr.bf16.vlgmr.msra.gmra.mxu1 %v18103_v57  ;;  %v6284_v57 = vld [vmem:[#allocation10 + $0x500] sm:$0xff] }
 0x3e2   :  { %v5767_v50 = vadd.f32 %v5766_v55, %v2042_v17  ;;  %v5807_v52 = vpop.f32.mrf.mxu0  ;;  %11200 = vmatpush1.bf16.msra.mxu1 %v15219_v0  ;;  %11231 = vmatprep.mubr.bf16.mxu1 %v18220_v62  ;;  %v15196_v58 = vcombine.high %v6284_v57, %v6288_v40  ;;  %v15195_v43 = vcombine.low %v6284_v57, %v6288_v40  ;;  %v6208_v17 = vld [vmem:[#allocation10 + $0x2a0] sm:$0xff] }
 0x3e3   :  { %11175 = vmatpush2.bf16.msra.mxu0 %v15155_v21  ;;  %v5768_v32 = vpop.f32.mrf.mxu1  ;;  %11201 = vmatprep.subr.bf16.mxu1 %v15212_v36  ;;  %v15187_v0 = vcombine.low %v6276_v12, %v6280_v63  ;;  %v15123_v21 = vcombine.low %v6212_v3, %v6216_v4  ;;  %v15180_v36 = vcombine.high %v6268_v16, %v6272_v15  ;;  %v6200_v55 = vld [vmem:[#allocation10 + $0x260] sm:$0xff] }
 0x3e4   :  { %v18226_v34 = vadd.f32 %v5807_v52, %v5767_v50  ;;  %v5769_v35 = vadd.f32 %v5768_v32, %v2046_v2  ;;  %v5809_v37 = vpop.f32.mrf.mxu0  ;;  %11176 = vmatprep.subr.bf16.mxu0 %v15148_v38  ;;  %v15116_v2 = vcombine.high %v6204_v23, %v6208_v17  ;;  %v6260_v38 = vld [vmem:[#allocation10 + $0x440] sm:$0xff]  ;;  %v15115_v28 = vcombine.low %v6204_v23, %v6208_v17 }
 0x3e5   :  { %v5770_v44 = vpop.f32.mrf.mxu1  ;;  %v15172_v50 = vcombine.high %v6260_v38, %v6264_v24  ;;  %v15108_v52 = vcombine.high %v6196_v25, %v6200_v55  ;;  %v6256_v32 = vld [vmem:[#allocation10 + $0x420] sm:$0xff] }
 0x3e6   :  { %v18228_v54 = vadd.f32 %v5809_v37, %v5769_v35  ;;  %v5811_v20 = vpop.f32.mrf.mxu0  ;;  %11202 = vmatpush1.bf16.msra.mxu1 %v15211_v31  ;;  %v6252_v31 = vld [vmem:[#allocation10 + $0x400] sm:$0xff]  ;;  %v15171_v35 = vcombine.low %v6260_v38, %v6264_v24  ;;  %v15107_v37 = vcombine.low %v6196_v25, %v6200_v55 }
 0x3e7   :  { %11177 = vmatpush2.bf16.msra.mxu0 %v15147_v33  ;;  %v5771_v56 = vpop.f32.mrf.mxu1  ;;  %11203 = vmatprep.subr.bf16.mxu1 %v15204_v42  ;;  %v6188_v33 = vld [vmem:[#allocation10 + $0x200] sm:$0xff]  ;;  %v15163_v20 = vcombine.low %v6252_v31, %v6256_v32 }
 0x3e8   :  { %v5812_v60 = vpop.f32.mrf.mxu0  ;;  %11178 = vmatprep.subr.bf16.mxu0 %v15140_v39  ;;  %v6192_v42 = vld [vmem:[#allocation10 + $0x220] sm:$0xff]  ;;  %v15164_v39 = vcombine.high %v6252_v31, %v6256_v32 }
 0x3e9   :  { %v15100_v57 = vcombine.high %v6188_v33, %v6192_v42  ;;  %v6372_v40 = vld [vmem:[#allocation10 + $0x7c0] sm:$0xff] }
 0x3ea   :  { %11204 = vmatpush1.bf16.msra.mxu1 %v15203_v46  ;;  %v6376_v44 = vld [vmem:[#allocation10 + $0x7e0] sm:$0xff]  ;;  %v15099_v46 = vcombine.low %v6188_v33, %v6192_v42 }
 0x3eb   :  { %11179 = vmatpush2.bf16.msra.mxu0 %v15139_v7  ;;  %11205 = vmatprep.subr.bf16.mxu1 %v15196_v58  ;;  %v15284_v56 = vcombine.high %v6372_v40, %v6376_v44  ;;  %v6098_v7 = vmax.f32 %v18139_v9, 0.0  ;;  %v15348_v58 = vcombine.high %v6436_v51, %v6440_v53  ;;  %v6364_v60 = vld [vmem:[#allocation10 + $0x780] sm:$0xff]  ;;  %v15283_v4 = vcombine.low %v6372_v40, %v6376_v44 }
 0x3ec   :  { %11180 = vmatprep.subr.bf16.mxu0 %v15132_v61  ;;  %v6103_v61 = vmax.f32 %v18186_v22, 0.0  ;;  %v6368_v12 = vld [vmem:[#allocation10 + $0x7a0] sm:$0xff] }
 0x3ed   :  { %v6428_v63 = vld [vmem:[#allocation10 + $0x980] sm:$0xff]  ;;  %v15275_v22 = vcombine.low %v6364_v60, %v6368_v12 }
 0x3ee   :  { %11206 = vmatpush1.bf16.msra.mxu1 %v15195_v43  ;;  %v6432_v3 = vld [vmem:[#allocation10 + $0x9a0] sm:$0xff]  ;;  %v15347_v43 = vcombine.low %v6436_v51, %v6440_v53  ;;  %v18234_v15 = vpack.c.bf16 %v6103_v61, %v6103_v61 }
 0x3ef   :  { %11181 = vmatpush2.bf16.msra.mxu0 %v15131_v6  ;;  %11207 = vmatprep.subr.bf16.mxu1 %v15188_v18  ;;  %v18232_v6 = vpack.c.bf16 %v6098_v7, %v6098_v7  ;;  %v15276_v18 = vcombine.high %v6364_v60, %v6368_v12  ;;  %v6356_v16 = vld [vmem:[#allocation10 + $0x740] sm:$0xff] }
 0x3f0   :  { %11182 = vmatprep.subr.bf16.mxu0 %v15124_v14  ;;  %v15340_v14 = vcombine.high %v6428_v63, %v6432_v3  ;;  %v6360_v9 = vld [vmem:[#allocation10 + $0x760] sm:$0xff] }
 0x3f1   :  { %v6420_v23 = vld [vmem:[#allocation10 + $0x940] sm:$0xff]  ;;  %v15267_v55 = vcombine.low %v6356_v16, %v6360_v9 }
 0x3f2   :  { %11208 = vmatpush1.bf16.msra.mxu1 %v15187_v0  ;;  %v6424_v17 = vld [vmem:[#allocation10 + $0x960] sm:$0xff]  ;;  %v15339_v0 = vcombine.low %v6428_v63, %v6432_v3 }
 0x3f3   :  { %11183 = vmatpush2.bf16.msra.mxu0 %v15123_v21  ;;  %11209 = vmatprep.subr.bf16.mxu1 %v15180_v36  ;;  %v15268_v21 = vcombine.high %v6356_v16, %v6360_v9  ;;  %v15332_v36 = vcombine.high %v6420_v23, %v6424_v17  ;;  %v6352_v38 = vld [vmem:[#allocation10 + $0x720] sm:$0xff] }
 0x3f4   :  { %11184 = vmatprep.subr.bf16.mxu0 %v15116_v2  ;;  %v6348_v2 = vld [vmem:[#allocation10 + $0x700] sm:$0xff] }
 0x3f5   :  { %v6412_v24 = vld [vmem:[#allocation10 + $0x900] sm:$0xff]  ;;  %v15259_v42 = vcombine.low %v6348_v2, %v6352_v38 }
 0x3f6   :  { %11210 = vmatpush1.bf16.msra.mxu1 %v15179_v27  ;;  %v6416_v25 = vld [vmem:[#allocation10 + $0x920] sm:$0xff]  ;;  %v15331_v27 = vcombine.low %v6420_v23, %v6424_v17 }
 0x3f7   :  { %11185 = vmatpush2.bf16.msra.mxu0 %v15115_v28  ;;  %11211 = vmatprep.subr.bf16.mxu1 %v15172_v50  ;;  %v15260_v28 = vcombine.high %v6348_v2, %v6352_v38  ;;  %v15324_v50 = vcombine.high %v6412_v24, %v6416_v25  ;;  %v6344_v31 = vld [vmem:[#allocation10 + $0x6e0] sm:$0xff] }
 0x3f8   :  { %11186 = vmatprep.subr.bf16.mxu0 %v15108_v52  ;;  %v6340_v52 = vld [vmem:[#allocation10 + $0x6c0] sm:$0xff] }
 0x3f9   :  { %v6404_v32 = vld [vmem:[#allocation10 + $0x8c0] sm:$0xff]  ;;  %v15251_v53 = vcombine.low %v6340_v52, %v6344_v31 }
 0x3fa   :  { %11212 = vmatpush1.bf16.msra.mxu1 %v15171_v35  ;;  %v6408_v33 = vld [vmem:[#allocation10 + $0x8e0] sm:$0xff]  ;;  %v15323_v35 = vcombine.low %v6412_v24, %v6416_v25  ;;  %v6100_v24 = vmax.f32 %v18157_v59, 0.0 }
 0x3fb   :  { %11187 = vmatpush2.bf16.msra.mxu0 %v15107_v37  ;;  %11213 = vmatprep.subr.bf16.mxu1 %v15164_v39  ;;  %v15252_v37 = vcombine.high %v6340_v52, %v6344_v31  ;;  %v15316_v39 = vcombine.high %v6404_v32, %v6408_v33  ;;  %v6336_v40 = vld [vmem:[#allocation10 + $0x6a0] sm:$0xff] }
 0x3fc   :  { %11188 = vmatprep.subr.bf16.mxu0 %v15100_v57  ;;  %v6332_v57 = vld [vmem:[#allocation10 + $0x680] sm:$0xff] }
 0x3fd   :  { %v6396_v44 = vld [vmem:[#allocation10 + $0x880] sm:$0xff]  ;;  %v15243_v12 = vcombine.low %v6332_v57, %v6336_v40 }
 0x3fe   :  { %11214 = vmatpush1.bf16.msra.mxu1 %v15163_v20  ;;  %v6400_v51 = vld [vmem:[#allocation10 + $0x8a0] sm:$0xff]  ;;  %v15315_v20 = vcombine.low %v6404_v32, %v6408_v33 }
 0x3ff   :  { %11189 = vmatpush2.bf16.msra.mxu0 %v15099_v46  ;;  %11215 = vmatprep.subr.bf16.mxu1 %v15284_v56  ;;  %v15244_v46 = vcombine.high %v6332_v57, %v6336_v40  ;;  %v15308_v56 = vcombine.high %v6396_v44, %v6400_v51  ;;  %v6324_v7 = vld [vmem:[#allocation10 + $0x640] sm:$0xff]  ;;  %v15307_v63 = vcombine.low %v6396_v44, %v6400_v51 }
 0x400   :  { %11240 = vmatprep.subr.bf16.mxu0 %v15348_v58  ;;  %v6328_v58 = vld [vmem:[#allocation10 + $0x660] sm:$0xff] }
 0x401   :  { %v6388_v60 = vld [vmem:[#allocation10 + $0x840] sm:$0xff]  ;;  %v15236_v3 = vcombine.high %v6324_v7, %v6328_v58  ;;  %v15235_v9 = vcombine.low %v6324_v7, %v6328_v58 }
 0x402   :  { %11191 = vmatmul.mubr.bf16.vlgmr.msra.gmra.mxu0 %v18232_v6  ;;  %11216 = vmatpush2.bf16.msra.mxu1 %v15283_v4  ;;  %v6392_v61 = vld [vmem:[#allocation10 + $0x860] sm:$0xff] }
 0x403   :  { %11241 = vmatpush1.bf16.msra.mxu0 %v15347_v43  ;;  %11272 = vmatprep.mubr.bf16.mxu0 %v18234_v15  ;;  %v15300_v4 = vcombine.high %v6388_v60, %v6392_v61  ;;  %v6316_v43 = vld [vmem:[#allocation10 + $0x600] sm:$0xff]  ;;  %v15299_v23 = vcombine.low %v6388_v60, %v6392_v61 }
 0x404   :  { %11217 = vmatprep.subr.bf16.mxu1 %v15276_v18  ;;  %11242 = vmatprep.subr.bf16.mxu0 %v15340_v14  ;;  %v6320_v18 = vld [vmem:[#allocation10 + $0x620] sm:$0xff] }
 0x405   :  { %v6380_v14 = vld [vmem:[#allocation10 + $0x800] sm:$0xff]  ;;  %v15228_v17 = vcombine.high %v6316_v43, %v6320_v18  ;;  %v15227_v38 = vcombine.low %v6316_v43, %v6320_v18 }
 0x406   :  { %11218 = vmatpush2.bf16.msra.mxu1 %v15275_v22  ;;  %v6384_v16 = vld [vmem:[#allocation10 + $0x820] sm:$0xff] }
 0x407   :  { %11243 = vmatpush1.bf16.msra.mxu0 %v15339_v0  ;;  %11219 = vmatprep.subr.bf16.mxu1 %v15268_v21  ;;  %v15292_v22 = vcombine.high %v6380_v14, %v6384_v16  ;;  %v6564_v0 = vld [vmem:[#allocation10 + $0xdc0] sm:$0xff]  ;;  %v15291_v25 = vcombine.low %v6380_v14, %v6384_v16 }
 0x408   :  { %11244 = vmatprep.subr.bf16.mxu0 %v15332_v36  ;;  %v6568_v21 = vld [vmem:[#allocation10 + $0xde0] sm:$0xff] }
 0x409   :  { %v6500_v36 = vld [vmem:[#allocation10 + $0xbc0] sm:$0xff]  ;;  %v15475_v33 = vcombine.low %v6564_v0, %v6568_v21 }
 0x40a   :  { %11220 = vmatpush2.bf16.msra.mxu1 %v15267_v55  ;;  %v6504_v2 = vld [vmem:[#allocation10 + $0xbe0] sm:$0xff]  ;;  %v15476_v55 = vcombine.high %v6564_v0, %v6568_v21 }
 0x40b   :  { %11245 = vmatpush1.bf16.msra.mxu0 %v15331_v27  ;;  %11221 = vmatprep.subr.bf16.mxu1 %v15260_v28  ;;  %v6105_v27 = vmax.f32 %v18206_v19, 0.0  ;;  %v15412_v28 = vcombine.high %v6500_v36, %v6504_v2  ;;  %v6560_v52 = vld [vmem:[#allocation10 + $0xda0] sm:$0xff] }
 0x40c   :  { %11246 = vmatprep.subr.bf16.mxu0 %v15324_v50  ;;  %v6556_v50 = vld [vmem:[#allocation10 + $0xd80] sm:$0xff] }
 0x40d   :  { %v6492_v31 = vld [vmem:[#allocation10 + $0xb80] sm:$0xff]  ;;  %v15468_v59 = vcombine.high %v6556_v50, %v6560_v52 }
 0x40e   :  { %11222 = vmatpush2.bf16.msra.mxu1 %v15259_v42  ;;  %v6496_v32 = vld [vmem:[#allocation10 + $0xba0] sm:$0xff]  ;;  %v18240_v42 = vpack.c.bf16 %v6100_v24, %v6100_v24 }
 0x40f   :  { %11247 = vmatpush1.bf16.msra.mxu0 %v15323_v35  ;;  %11223 = vmatprep.subr.bf16.mxu1 %v15252_v37  ;;  %v15411_v35 = vcombine.low %v6500_v36, %v6504_v2  ;;  %v18242_v37 = vpack.c.bf16 %v6105_v27, %v6105_v27  ;;  %v6548_v57 = vld [vmem:[#allocation10 + $0xd40] sm:$0xff]  ;;  %v15403_v7 = vcombine.low %v6492_v31, %v6496_v32 }
 0x410   :  { %11248 = vmatprep.subr.bf16.mxu0 %v15316_v39  ;;  %v15404_v39 = vcombine.high %v6492_v31, %v6496_v32  ;;  %v6552_v19 = vld [vmem:[#allocation10 + $0xd60] sm:$0xff] }
 0x411   :  { %v6484_v44 = vld [vmem:[#allocation10 + $0xb40] sm:$0xff]  ;;  %v15460_v58 = vcombine.high %v6548_v57, %v6552_v19  ;;  %v15459_v18 = vcombine.low %v6548_v57, %v6552_v19 }
 0x412   :  { %11224 = vmatpush2.bf16.msra.mxu1 %v15251_v53  ;;  %v6488_v51 = vld [vmem:[#allocation10 + $0xb60] sm:$0xff] }
 0x413   :  { %11249 = vmatpush1.bf16.msra.mxu0 %v15315_v20  ;;  %11225 = vmatprep.subr.bf16.mxu1 %v15244_v46  ;;  %v15467_v46 = vcombine.low %v6556_v50, %v6560_v52  ;;  %v15396_v61 = vcombine.high %v6484_v44, %v6488_v51  ;;  %v15395_v16 = vcombine.low %v6484_v44, %v6488_v51  ;;  %v6536_v0 = vld [vmem:[#allocation10 + $0xce0] sm:$0xff] }
 0x414   :  { %11250 = vmatprep.subr.bf16.mxu0 %v15308_v56  ;;  %v6468_v21 = vld [vmem:[#allocation10 + $0xac0] sm:$0xff] }
 0x415   :  { %v6472_v36 = vld [vmem:[#allocation10 + $0xae0] sm:$0xff] }
 0x416   :  { %11226 = vmatpush2.bf16.msra.mxu1 %v15243_v12  ;;  %v6540_v12 = vld [vmem:[#allocation10 + $0xd00] sm:$0xff]  ;;  %v15379_v31 = vcombine.low %v6468_v21, %v6472_v36 }
 0x417   :  { %11251 = vmatpush1.bf16.msra.mxu0 %v15307_v63  ;;  %11227 = vmatprep.subr.bf16.mxu1 %v15236_v3  ;;  %v6544_v63 = vld [vmem:[#allocation10 + $0xd20] sm:$0xff] }
 0x418   :  { %11252 = vmatprep.subr.bf16.mxu0 %v15300_v4  ;;  %v6476_v3 = vld [vmem:[#allocation10 + $0xb00] sm:$0xff]  ;;  %v15451_v2 = vcombine.low %v6540_v12, %v6544_v63 }
 0x419   :  { %v6480_v4 = vld [vmem:[#allocation10 + $0xb20] sm:$0xff] }
 0x41a   :  { %11228 = vmatpush2.bf16.msra.mxu1 %v15235_v9  ;;  %v15452_v9 = vcombine.high %v6540_v12, %v6544_v63  ;;  %v6528_v27 = vld [vmem:[#allocation10 + $0xca0] sm:$0xff] }
 0x41b   :  { %11253 = vmatpush1.bf16.msra.mxu0 %v15299_v23  ;;  %11229 = vmatprep.subr.bf16.mxu1 %v15228_v17  ;;  %v15388_v17 = vcombine.high %v6476_v3, %v6480_v4  ;;  %v6464_v50 = vld [vmem:[#allocation10 + $0xaa0] sm:$0xff] }
 0x41c   :  { %11254 = vmatprep.subr.bf16.mxu0 %v15292_v22  ;;  %v6532_v22 = vld [vmem:[#allocation10 + $0xcc0] sm:$0xff] }
 0x41d   :  { %v15444_v24 = vcombine.high %v6532_v22, %v6536_v0  ;;  %v15443_v52 = vcombine.low %v6532_v22, %v6536_v0  ;;  %v6456_v57 = vld [vmem:[#allocation10 + $0xa60] sm:$0xff]  ;;  %v6102_v22 = vmax.f32 %v18178_v13, 0.0 }
 0x41e   :  { %11230 = vmatpush2.bf16.msra.mxu1 %v15227_v38  ;;  %v15387_v38 = vcombine.low %v6476_v3, %v6480_v4  ;;  %v6628_v4 = vld [vmem:[#allocation10 + $0xfc0] sm:$0xff] }
 0x41f   :  { %11255 = vmatpush1.bf16.msra.mxu0 %v15291_v25  ;;  %11281 = vmatprep.subr.bf16.mxu1 %v15476_v55  ;;  %v15380_v25 = vcombine.high %v6468_v21, %v6472_v36  ;;  %v6524_v55 = vld [vmem:[#allocation10 + $0xc80] sm:$0xff] }
 0x420   :  { %11256 = vmatprep.subr.bf16.mxu0 %v15412_v28  ;;  %v6460_v28 = vld [vmem:[#allocation10 + $0xa80] sm:$0xff]  ;;  %v15436_v32 = vcombine.high %v6524_v55, %v6528_v27  ;;  %v15435_v19 = vcombine.low %v6524_v55, %v6528_v27 }
 0x421   :  { %v5848_v40 = vpop.f32.mrf.mxu1  ;;  %11232 = vmatmul.mubr.bf16.vlgmr.msra.gmra.mxu1 %v18240_v42  ;;  %v6620_v21 = vld [vmem:[#allocation10 + $0xf80] sm:$0xff] }
 0x422   :  { %v18246_v53 = vadd.f32 %v5848_v40, %v18226_v34  ;;  %v18248_v20 = vpop.f32.mrf.mxu0  ;;  %11282 = vmatpush1.bf16.msra.mxu1 %v15475_v33  ;;  %11313 = vmatprep.mubr.bf16.mxu1 %v18242_v37  ;;  %v15372_v33 = vcombine.high %v6460_v28, %v6464_v50  ;;  %v15371_v40 = vcombine.low %v6460_v28, %v6464_v50  ;;  %v6612_v28 = vld [vmem:[#allocation10 + $0xf40] sm:$0xff] }
 0x423   :  { %11257 = vmatpush2.bf16.msra.mxu0 %v15411_v35  ;;  %v18251_v56 = vpop.f32.mrf.mxu1  ;;  %11283 = vmatprep.subr.bf16.mxu1 %v15468_v59  ;;  %v6516_v35 = vld [vmem:[#allocation10 + $0xc40] sm:$0xff] }
 0x424   :  { %v18253_v60 = vpop.f32.mrf.mxu0  ;;  %11258 = vmatprep.subr.bf16.mxu0 %v15404_v39  ;;  %v6520_v59 = vld [vmem:[#allocation10 + $0xc60] sm:$0xff] }
 0x425   :  { %v5852_v34 = vpop.f32.mrf.mxu1  ;;  %v6452_v39 = vld [vmem:[#allocation10 + $0xa40] sm:$0xff]  ;;  %v15428_v44 = vcombine.high %v6516_v35, %v6520_v59  ;;  %v15427_v12 = vcombine.low %v6516_v35, %v6520_v59 }
 0x426   :  { %v5893_v43 = vpop.f32.mrf.mxu0  ;;  %11284 = vmatpush1.bf16.msra.mxu1 %v15467_v46  ;;  %v15364_v51 = vcombine.high %v6452_v39, %v6456_v57  ;;  %v6508_v46 = vld [vmem:[#allocation10 + $0xc00] sm:$0xff]  ;;  %v15363_v63 = vcombine.low %v6452_v39, %v6456_v57 }
 0x427   :  { %11259 = vmatpush2.bf16.msra.mxu0 %v15403_v7  ;;  %v5853_v14 = vpop.f32.mrf.mxu1  ;;  %11285 = vmatprep.subr.bf16.mxu1 %v15460_v58  ;;  %v6512_v7 = vld [vmem:[#allocation10 + $0xc20] sm:$0xff] }
 0x428   :  { %v5894_v23 = vpop.f32.mrf.mxu0  ;;  %11260 = vmatprep.subr.bf16.mxu0 %v15396_v61  ;;  %v6444_v58 = vld [vmem:[#allocation10 + $0xa00] sm:$0xff]  ;;  %v15420_v34 = vcombine.high %v6508_v46, %v6512_v7 }
 0x429   :  { %v6448_v61 = vld [vmem:[#allocation10 + $0xa20] sm:$0xff] }
 0x42a   :  { %11286 = vmatpush1.bf16.msra.mxu1 %v15459_v18  ;;  %v15356_v3 = vcombine.high %v6444_v58, %v6448_v61  ;;  %v6632_v43 = vld [vmem:[#allocation10 + $0xfe0] sm:$0xff]  ;;  %v5851_v18 = vadd.f32 %v18251_v56, %v18228_v54  ;;  %v15355_v23 = vcombine.low %v6444_v58, %v6448_v61  ;;  %v18258_v56 = vpack.c.bf16 %v6102_v22, %v6102_v22 }
 0x42b   :  { %11261 = vmatpush2.bf16.msra.mxu0 %v15395_v16  ;;  %11287 = vmatprep.subr.bf16.mxu1 %v15452_v9  ;;  %v6692_v14 = vld [vmem:[#allocation10 + $0x11c0] sm:$0xff]  ;;  %v15419_v9 = vcombine.low %v6508_v46, %v6512_v7 }
 0x42c   :  { %11262 = vmatprep.subr.bf16.mxu0 %v15388_v17  ;;  %v6696_v16 = vld [vmem:[#allocation10 + $0x11e0] sm:$0xff]  ;;  %v15540_v17 = vcombine.high %v6628_v4, %v6632_v43  ;;  %v6107_v36 = vmax.f32 %v5851_v18, 0.0 }
 0x42d   :  { %v15604_v0 = vcombine.high %v6692_v14, %v6696_v16  ;;  %v15603_v54 = vcombine.low %v6692_v14, %v6696_v16  ;;  %v6616_v50 = vld [vmem:[#allocation10 + $0xf60] sm:$0xff] }
 0x42e   :  { %11288 = vmatpush1.bf16.msra.mxu1 %v15451_v2  ;;  %v6624_v2 = vld [vmem:[#allocation10 + $0xfa0] sm:$0xff]  ;;  %v18260_v13 = vpack.c.bf16 %v6107_v36, %v6107_v36  ;;  %v15524_v35 = vcombine.high %v6612_v28, %v6616_v50 }
 0x42f   :  { %11263 = vmatpush2.bf16.msra.mxu0 %v15387_v38  ;;  %11289 = vmatprep.subr.bf16.mxu1 %v15444_v24  ;;  %v6684_v38 = vld [vmem:[#allocation10 + $0x1180] sm:$0xff]  ;;  %v15532_v55 = vcombine.high %v6620_v21, %v6624_v2 }
 0x430   :  { %11264 = vmatprep.subr.bf16.mxu0 %v15380_v25  ;;  %v6688_v24 = vld [vmem:[#allocation10 + $0x11a0] sm:$0xff]  ;;  %v15539_v25 = vcombine.low %v6628_v4, %v6632_v43 }
 0x431   :  { %v15596_v27 = vcombine.high %v6684_v38, %v6688_v24  ;;  %v6604_v39 = vld [vmem:[#allocation10 + $0xf00] sm:$0xff] }
 0x432   :  { %11290 = vmatpush1.bf16.msra.mxu1 %v15443_v52  ;;  %v6676_v52 = vld [vmem:[#allocation10 + $0x1140] sm:$0xff] }
 0x433   :  { %11265 = vmatpush2.bf16.msra.mxu0 %v15379_v31  ;;  %11291 = vmatprep.subr.bf16.mxu1 %v15436_v32  ;;  %v6680_v31 = vld [vmem:[#allocation10 + $0x1160] sm:$0xff]  ;;  %v15531_v32 = vcombine.low %v6620_v21, %v6624_v2 }
 0x434   :  { %11266 = vmatprep.subr.bf16.mxu0 %v15372_v33  ;;  %v15595_v33 = vcombine.low %v6684_v38, %v6688_v24  ;;  %v15588_v59 = vcombine.high %v6676_v52, %v6680_v31  ;;  %v6608_v57 = vld [vmem:[#allocation10 + $0xf20] sm:$0xff] }
 0x435   :  { %v15516_v46 = vcombine.high %v6604_v39, %v6608_v57  ;;  %v6596_v58 = vld [vmem:[#allocation10 + $0xec0] sm:$0xff] }
 0x436   :  { %11292 = vmatpush1.bf16.msra.mxu1 %v15435_v19  ;;  %v6668_v19 = vld [vmem:[#allocation10 + $0x1100] sm:$0xff] }
 0x437   :  { %11267 = vmatpush2.bf16.msra.mxu0 %v15371_v40  ;;  %11293 = vmatprep.subr.bf16.mxu1 %v15428_v44  ;;  %v6672_v40 = vld [vmem:[#allocation10 + $0x1120] sm:$0xff]  ;;  %v15523_v44 = vcombine.low %v6612_v28, %v6616_v50 }
 0x438   :  { %11268 = vmatprep.subr.bf16.mxu0 %v15364_v51  ;;  %v15587_v51 = vcombine.low %v6676_v52, %v6680_v31  ;;  %v15580_v7 = vcombine.high %v6668_v19, %v6672_v40  ;;  %v6600_v61 = vld [vmem:[#allocation10 + $0xee0] sm:$0xff] }
 0x439   :  { %v15508_v4 = vcombine.high %v6596_v58, %v6600_v61  ;;  %v6588_v18 = vld [vmem:[#allocation10 + $0xe80] sm:$0xff] }
 0x43a   :  { %11294 = vmatpush1.bf16.msra.mxu1 %v15427_v12  ;;  %v6660_v12 = vld [vmem:[#allocation10 + $0x10c0] sm:$0xff] }
 0x43b   :  { %11269 = vmatpush2.bf16.msra.mxu0 %v15363_v63  ;;  %11295 = vmatprep.subr.bf16.mxu1 %v15420_v34  ;;  %v6664_v63 = vld [vmem:[#allocation10 + $0x10e0] sm:$0xff]  ;;  %v15515_v34 = vcombine.low %v6604_v39, %v6608_v57 }
 0x43c   :  { %11270 = vmatprep.subr.bf16.mxu0 %v15356_v3  ;;  %v15579_v3 = vcombine.low %v6668_v19, %v6672_v40  ;;  %v15572_v43 = vcombine.high %v6660_v12, %v6664_v63  ;;  %v6592_v14 = vld [vmem:[#allocation10 + $0xea0] sm:$0xff] }
 0x43d   :  { %v6652_v16 = vld [vmem:[#allocation10 + $0x1080] sm:$0xff]  ;;  %v15500_v22 = vcombine.high %v6588_v18, %v6592_v14  ;;  %v15499_v24 = vcombine.low %v6588_v18, %v6592_v14 }
 0x43e   :  { %11296 = vmatpush1.bf16.msra.mxu1 %v15419_v9  ;;  %v6656_v9 = vld [vmem:[#allocation10 + $0x10a0] sm:$0xff] }
 0x43f   :  { %11271 = vmatpush2.bf16.msra.mxu0 %v15355_v23  ;;  %11297 = vmatprep.subr.bf16.mxu1 %v15540_v17  ;;  %v15507_v23 = vcombine.low %v6596_v58, %v6600_v61  ;;  %v15571_v17 = vcombine.low %v6660_v12, %v6664_v63  ;;  %v6580_v21 = vld [vmem:[#allocation10 + $0xe40] sm:$0xff] }
 0x440   :  { %11322 = vmatprep.subr.bf16.mxu0 %v15604_v0  ;;  %v15564_v0 = vcombine.high %v6652_v16, %v6656_v9  ;;  %v6584_v36 = vld [vmem:[#allocation10 + $0xe60] sm:$0xff] }
 0x441   :  { %v6644_v2 = vld [vmem:[#allocation10 + $0x1040] sm:$0xff]  ;;  %v15491_v31 = vcombine.low %v6580_v21, %v6584_v36 }
 0x442   :  { %11273 = vmatmul.mubr.bf16.vlgmr.msra.gmra.mxu0 %v18258_v56  ;;  %11298 = vmatpush2.bf16.msra.mxu1 %v15539_v25  ;;  %v6648_v38 = vld [vmem:[#allocation10 + $0x1060] sm:$0xff]  ;;  %v15563_v25 = vcombine.low %v6652_v16, %v6656_v9 }
 0x443   :  { %11323 = vmatpush1.bf16.msra.mxu0 %v15603_v54  ;;  %11354 = vmatprep.mubr.bf16.mxu0 %v18260_v13  ;;  %v15492_v54 = vcombine.high %v6580_v21, %v6584_v36  ;;  %v6576_v28 = vld [vmem:[#allocation10 + $0xe20] sm:$0xff] }
 0x444   :  { %11299 = vmatprep.subr.bf16.mxu1 %v15532_v55  ;;  %11324 = vmatprep.subr.bf16.mxu0 %v15596_v27  ;;  %v15556_v55 = vcombine.high %v6644_v2, %v6648_v38  ;;  %v6572_v27 = vld [vmem:[#allocation10 + $0xe00] sm:$0xff] }
 0x445   :  { %v6636_v50 = vld [vmem:[#allocation10 + $0x1000] sm:$0xff]  ;;  %v15483_v40 = vcombine.low %v6572_v27, %v6576_v28 }
 0x446   :  { %11300 = vmatpush2.bf16.msra.mxu1 %v15531_v32  ;;  %v6640_v52 = vld [vmem:[#allocation10 + $0x1020] sm:$0xff]  ;;  %v15555_v32 = vcombine.low %v6644_v2, %v6648_v38 }
 0x447   :  { %11325 = vmatpush1.bf16.msra.mxu0 %v15595_v33  ;;  %11301 = vmatprep.subr.bf16.mxu1 %v15524_v35  ;;  %v15484_v33 = vcombine.high %v6572_v27, %v6576_v28  ;;  %v15548_v35 = vcombine.high %v6636_v50, %v6640_v52  ;;  %v6824_v39 = vld [vmem:[#allocation10 + $0x15e0] sm:$0xff] }
 0x448   :  { %11326 = vmatprep.subr.bf16.mxu0 %v15588_v59  ;;  %v6820_v59 = vld [vmem:[#allocation10 + $0x15c0] sm:$0xff] }
 0x449   :  { %v6756_v57 = vld [vmem:[#allocation10 + $0x13c0] sm:$0xff] }
 0x44a   :  { %11302 = vmatpush2.bf16.msra.mxu1 %v15523_v44  ;;  %v6760_v19 = vld [vmem:[#allocation10 + $0x13e0] sm:$0xff]  ;;  %v6104_v44 = vmax.f32 %v18203_v8, 0.0 }
 0x44b   :  { %11327 = vmatpush1.bf16.msra.mxu0 %v15587_v51  ;;  %11303 = vmatprep.subr.bf16.mxu1 %v15516_v46  ;;  %v15547_v51 = vcombine.low %v6636_v50, %v6640_v52  ;;  %v15732_v46 = vcombine.high %v6820_v59, %v6824_v39  ;;  %v6812_v58 = vld [vmem:[#allocation10 + $0x1580] sm:$0xff] }
 0x44c   :  { %11328 = vmatprep.subr.bf16.mxu0 %v15580_v7  ;;  %v15668_v7 = vcombine.high %v6756_v57, %v6760_v19  ;;  %v6816_v61 = vld [vmem:[#allocation10 + $0x15a0] sm:$0xff] }
 0x44d   :  { %v6748_v12 = vld [vmem:[#allocation10 + $0x1380] sm:$0xff]  ;;  %v15724_v8 = vcombine.high %v6812_v58, %v6816_v61 }
 0x44e   :  { %11304 = vmatpush2.bf16.msra.mxu1 %v15515_v34  ;;  %v6752_v63 = vld [vmem:[#allocation10 + $0x13a0] sm:$0xff]  ;;  %v2054_v34 = vrot.slane %v18215_v5, %v18078_v10 }
 0x44f   :  { %11329 = vmatpush1.bf16.msra.mxu0 %v15579_v3  ;;  %11305 = vmatprep.subr.bf16.mxu1 %v15508_v4  ;;  %v15731_v3 = vcombine.low %v6820_v59, %v6824_v39  ;;  %v18267_v4 = vpack.c.bf16 %v6104_v44, %v6104_v44  ;;  %v15660_v18 = vcombine.high %v6748_v12, %v6752_v63  ;;  %v6804_v14 = vld [vmem:[#allocation10 + $0x1540] sm:$0xff] }
 0x450   :  { %11330 = vmatprep.subr.bf16.mxu0 %v15572_v43  ;;  %v15667_v43 = vcombine.low %v6756_v57, %v6760_v19  ;;  %v6808_v16 = vld [vmem:[#allocation10 + $0x1560] sm:$0xff]  ;;  %v5892_v5 = vadd.f32 %v18253_v60, %v2054_v34  ;;  %v15659_v36 = vcombine.low %v6748_v12, %v6752_v63 }
 0x451   :  { %v15716_v2 = vcombine.high %v6804_v14, %v6808_v16  ;;  %v6732_v28 = vld [vmem:[#allocation10 + $0x1300] sm:$0xff] }
 0x452   :  { %11306 = vmatpush2.bf16.msra.mxu1 %v15507_v23  ;;  %v6740_v23 = vld [vmem:[#allocation10 + $0x1340] sm:$0xff] }
 0x453   :  { %11331 = vmatpush1.bf16.msra.mxu0 %v15571_v17  ;;  %11307 = vmatprep.subr.bf16.mxu1 %v15500_v22  ;;  %v6744_v17 = vld [vmem:[#allocation10 + $0x1360] sm:$0xff] }
 0x454   :  { %11332 = vmatprep.subr.bf16.mxu0 %v15564_v0  ;;  %v15723_v0 = vcombine.low %v6812_v58, %v6816_v61  ;;  %v6736_v50 = vld [vmem:[#allocation10 + $0x1320] sm:$0xff] }
 0x455   :  { %v15644_v57 = vcombine.high %v6732_v28, %v6736_v50  ;;  %v6788_v19 = vld [vmem:[#allocation10 + $0x14c0] sm:$0xff]  ;;  %v15643_v58 = vcombine.low %v6732_v28, %v6736_v50 }
 0x456   :  { %11308 = vmatpush2.bf16.msra.mxu1 %v15499_v24  ;;  %v6724_v44 = vld [vmem:[#allocation10 + $0x12c0] sm:$0xff] }
 0x457   :  { %11333 = vmatpush1.bf16.msra.mxu0 %v15563_v25  ;;  %11309 = vmatprep.subr.bf16.mxu1 %v15492_v54  ;;  %v15652_v25 = vcombine.high %v6740_v23, %v6744_v17  ;;  %v6796_v54 = vld [vmem:[#allocation10 + $0x1500] sm:$0xff] }
 0x458   :  { %11334 = vmatprep.subr.bf16.mxu0 %v15556_v55  ;;  %v6800_v55 = vld [vmem:[#allocation10 + $0x1520] sm:$0xff] }
 0x459   :  { %v6780_v63 = vld [vmem:[#allocation10 + $0x1480] sm:$0xff] }
 0x45a   :  { %11310 = vmatpush2.bf16.msra.mxu1 %v15491_v31  ;;  %v15715_v31 = vcombine.low %v6804_v14, %v6808_v16  ;;  %v6784_v34 = vld [vmem:[#allocation10 + $0x14a0] sm:$0xff] }
 0x45b   :  { %11335 = vmatpush1.bf16.msra.mxu0 %v15555_v32  ;;  %11311 = vmatprep.subr.bf16.mxu1 %v15484_v33  ;;  %v15651_v33 = vcombine.low %v6740_v23, %v6744_v17  ;;  %v15692_v14 = vcombine.high %v6780_v63, %v6784_v34  ;;  %v6772_v23 = vld [vmem:[#allocation10 + $0x1440] sm:$0xff] }
 0x45c   :  { %11336 = vmatprep.subr.bf16.mxu0 %v15548_v35  ;;  %v15708_v35 = vcombine.high %v6796_v54, %v6800_v55  ;;  %v6776_v17 = vld [vmem:[#allocation10 + $0x1460] sm:$0xff] }
 0x45e   :  { %11312 = vmatpush2.bf16.msra.mxu1 %v15483_v40  ;;  %v6792_v40 = vld [vmem:[#allocation10 + $0x14e0] sm:$0xff] }
 0x45f   :  { %11337 = vmatpush1.bf16.msra.mxu0 %v15547_v51  ;;  %11363 = vmatprep.subr.bf16.mxu1 %v15732_v46  ;;  %v6728_v51 = vld [vmem:[#allocation10 + $0x12e0] sm:$0xff]  ;;  %v15700_v61 = vcombine.high %v6788_v19, %v6792_v40 }
 0x460   :  { %11338 = vmatprep.subr.bf16.mxu0 %v15668_v7  ;;  %v15707_v7 = vcombine.low %v6796_v54, %v6800_v55  ;;  %v15636_v12 = vcombine.high %v6724_v44, %v6728_v51  ;;  %v6700_v54 = vld [vmem:[#allocation10 + $0x1200] sm:$0xff] }
 0x461   :  { %v18269_v9 = vpop.f32.mrf.mxu1  ;;  %11314 = vmatmul.mubr.bf16.vlgmr.msra.gmra.mxu1 %v18267_v4  ;;  %v6704_v55 = vld [vmem:[#allocation10 + $0x1220] sm:$0xff] }
 0x462   :  { %v18273_v22 = vpop.f32.mrf.mxu0  ;;  %11364 = vmatpush1.bf16.msra.mxu1 %v15731_v3  ;;  %v6716_v3 = vld [vmem:[#allocation10 + $0x1280] sm:$0xff] }
 0x463   :  { %11339 = vmatpush2.bf16.msra.mxu0 %v15667_v43  ;;  %v5932_v21 = vpop.f32.mrf.mxu1  ;;  %11365 = vmatprep.subr.bf16.mxu1 %v15724_v8  ;;  %v6720_v43 = vld [vmem:[#allocation10 + $0x12a0] sm:$0xff]  ;;  %v15699_v8 = vcombine.low %v6788_v19, %v6792_v40 }
 0x464   :  { %v5933_v38 = vadd.f32 %v5932_v21, %v5892_v5  ;;  %v5973_v24 = vpop.f32.mrf.mxu0  ;;  %11340 = vmatprep.subr.bf16.mxu0 %v15660_v18  ;;  %v15635_v18 = vcombine.low %v6724_v44, %v6728_v51  ;;  %v15628_v16 = vcombine.high %v6716_v3, %v6720_v43  ;;  %v6708_v5 = vld [vmem:[#allocation10 + $0x1240] sm:$0xff]  ;;  %v15691_v21 = vcombine.low %v6780_v63, %v6784_v34 }
 0x465   :  { %v5934_v27 = vpop.f32.mrf.mxu1  ;;  %v6876_v19 = vld [vmem:[#allocation10 + $0x1780] sm:$0xff] }
 0x466   :  { %v5974_v52 = vadd.f32 %v5973_v24, %v5933_v38  ;;  %v5975_v60 = vpop.f32.mrf.mxu0  ;;  %11366 = vmatpush1.bf16.msra.mxu1 %v15723_v0  ;;  %v6712_v0 = vld [vmem:[#allocation10 + $0x1260] sm:$0xff]  ;;  %v15683_v27 = vcombine.low %v6772_v23, %v6776_v17 }
 0x467   :  { %11341 = vmatpush2.bf16.msra.mxu0 %v15659_v36  ;;  %v5935_v32 = vpop.f32.mrf.mxu1  ;;  %11367 = vmatprep.subr.bf16.mxu1 %v15716_v2  ;;  %v15627_v36 = vcombine.low %v6716_v3, %v6720_v43  ;;  %v15684_v2 = vcombine.high %v6772_v23, %v6776_v17  ;;  %v15620_v38 = vcombine.high %v6708_v5, %v6712_v0  ;;  %v6764_v24 = vld [vmem:[#allocation10 + $0x1400] sm:$0xff] }
 0x468   :  { %v6109_v59 = vmax.f32 %v5974_v52, 0.0  ;;  %v5976_v39 = vpop.f32.mrf.mxu0  ;;  %11342 = vmatprep.subr.bf16.mxu0 %v15652_v25  ;;  %v6768_v25 = vld [vmem:[#allocation10 + $0x1420] sm:$0xff]  ;;  %v15619_v28 = vcombine.low %v6708_v5, %v6712_v0  ;;  %v15612_v52 = vcombine.high %v6700_v54, %v6704_v55 }
 0x469   :  { %v15676_v50 = vcombine.high %v6764_v24, %v6768_v25  ;;  %v6884_v60 = vld [vmem:[#allocation10 + $0x17c0] sm:$0xff] }
 0x46a   :  { %v18275_v46 = vpack.c.bf16 %v6109_v59, %v6109_v59  ;;  %11368 = vmatpush1.bf16.msra.mxu1 %v15715_v31  ;;  %v6888_v31 = vld [vmem:[#allocation10 + $0x17e0] sm:$0xff]  ;;  %v15611_v59 = vcombine.low %v6700_v54, %v6704_v55 }
 0x46b   :  { %11343 = vmatpush2.bf16.msra.mxu0 %v15651_v33  ;;  %11369 = vmatprep.subr.bf16.mxu1 %v15708_v35  ;;  %v6948_v32 = vld [vmem:[#allocation10 + $0x19c0] sm:$0xff]  ;;  %v15675_v35 = vcombine.low %v6764_v24, %v6768_v25  ;;  %v15796_v39 = vcombine.high %v6884_v60, %v6888_v31 }
 0x46c   :  { %11395 = vmatprep.mubr.bf16.mxu1 %v18275_v46  ;;  %11344 = vmatprep.subr.bf16.mxu0 %v15644_v57  ;;  %v6952_v33 = vld [vmem:[#allocation10 + $0x19e0] sm:$0xff]  ;;  %v6106_v57 = vmax.f32 %v18246_v53, 0.0 }
 0x46d   :  { %v6880_v40 = vld [vmem:[#allocation10 + $0x17a0] sm:$0xff]  ;;  %v15860_v44 = vcombine.high %v6948_v32, %v6952_v33 }
 0x46e   :  { %11370 = vmatpush1.bf16.msra.mxu1 %v15707_v7  ;;  %v6940_v51 = vld [vmem:[#allocation10 + $0x1980] sm:$0xff]  ;;  %v18279_v63 = vpack.c.bf16 %v6106_v57, %v6106_v57 }
 0x46f   :  { %11345 = vmatpush2.bf16.msra.mxu0 %v15643_v58  ;;  %11371 = vmatprep.subr.bf16.mxu1 %v15700_v61  ;;  %v6944_v7 = vld [vmem:[#allocation10 + $0x19a0] sm:$0xff]  ;;  %v15795_v58 = vcombine.low %v6884_v60, %v6888_v31  ;;  %v15788_v61 = vcombine.high %v6876_v19, %v6880_v40 }
 0x470   :  { %11346 = vmatprep.subr.bf16.mxu0 %v15636_v12  ;;  %v15859_v12 = vcombine.low %v6948_v32, %v6952_v33  ;;  %v6868_v34 = vld [vmem:[#allocation10 + $0x1740] sm:$0xff]  ;;  %v15852_v43 = vcombine.high %v6940_v51, %v6944_v7  ;;  %v15851_v5 = vcombine.low %v6940_v51, %v6944_v7  ;;  %v18291_v51 = vld [vmem:[#allocation8 + $0x8] sm:$0x1f] }
 0x471   :  { %v6872_v3 = vld [vmem:[#allocation10 + $0x1760] sm:$0xff]  ;;  %v2050_v7 = vrot.slane %v18291_v51, %v18075_v47 }
 0x472   :  { %11372 = vmatpush1.bf16.msra.mxu1 %v15699_v8  ;;  %v6932_v53 = vld [vmem:[#allocation10 + $0x1940] sm:$0xff]  ;;  %v15780_v17 = vcombine.high %v6868_v34, %v6872_v3  ;;  %v15779_v55 = vcombine.low %v6868_v34, %v6872_v3 }
 0x473   :  { %11347 = vmatpush2.bf16.msra.mxu0 %v15635_v18  ;;  %11373 = vmatprep.subr.bf16.mxu1 %v15692_v14  ;;  %v6936_v18 = vld [vmem:[#allocation10 + $0x1960] sm:$0xff] }
 0x474   :  { %11348 = vmatprep.subr.bf16.mxu0 %v15628_v16  ;;  %v15787_v16 = vcombine.low %v6876_v19, %v6880_v40  ;;  %v6924_v24 = vld [vmem:[#allocation10 + $0x1900] sm:$0xff] }
 0x475   :  { %v6928_v25 = vld [vmem:[#allocation10 + $0x1920] sm:$0xff] }
 0x476   :  { %11374 = vmatpush1.bf16.msra.mxu1 %v15691_v21  ;;  %v6860_v21 = vld [vmem:[#allocation10 + $0x1700] sm:$0xff]  ;;  %v15836_v32 = vcombine.high %v6924_v24, %v6928_v25  ;;  %v15835_v57 = vcombine.low %v6924_v24, %v6928_v25 }
 0x477   :  { %11349 = vmatpush2.bf16.msra.mxu0 %v15627_v36  ;;  %11375 = vmatprep.subr.bf16.mxu1 %v15684_v2  ;;  %v6864_v36 = vld [vmem:[#allocation10 + $0x1720] sm:$0xff]  ;;  %v15844_v2 = vcombine.high %v6932_v53, %v6936_v18 }
 0x478   :  { %11350 = vmatprep.subr.bf16.mxu0 %v15620_v38  ;;  %v6852_v60 = vld [vmem:[#allocation10 + $0x16c0] sm:$0xff] }
 0x479   :  { %v6856_v31 = vld [vmem:[#allocation10 + $0x16e0] sm:$0xff] }
 0x47a   :  { %11376 = vmatpush1.bf16.msra.mxu1 %v15683_v27  ;;  %v6916_v33 = vld [vmem:[#allocation10 + $0x18c0] sm:$0xff] }
 0x47b   :  { %11351 = vmatpush2.bf16.msra.mxu0 %v15619_v28  ;;  %11377 = vmatprep.subr.bf16.mxu1 %v15676_v50  ;;  %v15772_v28 = vcombine.high %v6860_v21, %v6864_v36  ;;  %v15843_v50 = vcombine.low %v6932_v53, %v6936_v18  ;;  %v6844_v19 = vld [vmem:[#allocation10 + $0x1680] sm:$0xff] }
 0x47c   :  { %11352 = vmatprep.subr.bf16.mxu0 %v15612_v52  ;;  %v6848_v40 = vld [vmem:[#allocation10 + $0x16a0] sm:$0xff] }
 0x47d   :  { %v15756_v34 = vcombine.high %v6844_v19, %v6848_v40  ;;  %v6840_v53 = vld [vmem:[#allocation10 + $0x1660] sm:$0xff] }
 0x47e   :  { %11378 = vmatpush1.bf16.msra.mxu1 %v15675_v35  ;;  %v6920_v35 = vld [vmem:[#allocation10 + $0x18e0] sm:$0xff] }
 0x47f   :  { %11353 = vmatpush2.bf16.msra.mxu0 %v15611_v59  ;;  %11379 = vmatprep.subr.bf16.mxu1 %v15796_v39  ;;  %v15771_v59 = vcombine.low %v6860_v21, %v6864_v36  ;;  %v15764_v39 = vcombine.high %v6852_v60, %v6856_v31  ;;  %v15827_v3 = vcombine.low %v6916_v33, %v6920_v35  ;;  %v6828_v24 = vld [vmem:[#allocation10 + $0x1600] sm:$0xff] }
 0x480   :  { %11404 = vmatprep.subr.bf16.mxu0 %v15860_v44  ;;  %v15828_v44 = vcombine.high %v6916_v33, %v6920_v35  ;;  %v15755_v21 = vcombine.low %v6844_v19, %v6848_v40  ;;  %v6832_v25 = vld [vmem:[#allocation10 + $0x1620] sm:$0xff]  ;;  %v6313_v33 = vld [vmem:[#allocation10 + $0x5e8] sm:$0xff] }
 0x481   :  { %v18281_v8 = vpop.f32.mrf.mxu1  ;;  %v15739_v35 = vcombine.low %v6828_v24, %v6832_v25  ;;  %v6173_v40 = vld [vmem:[#allocation10 + $0x188] sm:$0xff] }
 0x482   :  { %v18283_v14 = vpop.f32.mrf.mxu0  ;;  %11355 = vmatmul.mubr.bf16.vlgmr.msra.gmra.mxu0 %v18279_v63  ;;  %11380 = vmatpush2.bf16.msra.mxu1 %v15795_v58  ;;  %v6908_v58 = vld [vmem:[#allocation10 + $0x1880] sm:$0xff] }
 0x483   :  { %v18286_v23 = vpop.f32.mrf.mxu1  ;;  %11381 = vmatprep.subr.bf16.mxu1 %v15788_v61  ;;  %11405 = vmatpush1.bf16.msra.mxu0 %v15859_v12  ;;  %v6912_v61 = vld [vmem:[#allocation10 + $0x18a0] sm:$0xff]  ;;  %v15763_v12 = vcombine.low %v6852_v60, %v6856_v31  ;;  %v6181_v60 = vld [vmem:[#allocation10 + $0x1c8] sm:$0xff] }
 0x484   :  { %v18288_v0 = vpop.f32.mrf.mxu0  ;;  %11406 = vmatprep.subr.bf16.mxu0 %v15852_v43  ;;  %11436 = vmatprep.mubr.bf16.mxu0 %v17934_v1  ;;  %v6836_v43 = vld [vmem:[#allocation10 + $0x1640] sm:$0xff]  ;;  %v15820_v18 = vcombine.high %v6908_v58, %v6912_v61  ;;  %v16142_v19 = vadd.f32 %v18286_v23, %v18281_v8 }
 0x485   :  { %v16143_v38 = vpop.f32.mrf.mxu1  ;;  %v16164_v8 = vadd.f32 %v18288_v0, %v18283_v14  ;;  %v6305_v14 = vld [vmem:[#allocation10 + $0x5a8] sm:$0xff] }
 0x486   :  { %v16165_v54 = vpop.f32.mrf.mxu0  ;;  %11382 = vmatpush2.bf16.msra.mxu1 %v15787_v16  ;;  %v5890_v16 = vadd.f32 %v18248_v20, %v2050_v7  ;;  %v15819_v38 = vcombine.low %v6908_v58, %v6912_v61 }
 0x487   :  { %v16144_v27 = vpop.f32.mrf.mxu1  ;;  %11383 = vmatprep.subr.bf16.mxu1 %v15780_v17  ;;  %11407 = vmatpush1.bf16.msra.mxu0 %v15851_v5  ;;  %v6900_v17 = vld [vmem:[#allocation10 + $0x1840] sm:$0xff] }
 0x488   :  { %v16166_v52 = vpop.f32.mrf.mxu0  ;;  %11408 = vmatprep.subr.bf16.mxu0 %v15844_v2  ;;  %v6904_v5 = vld [vmem:[#allocation10 + $0x1860] sm:$0xff]  ;;  %v5931_v36 = vadd.f32 %v18269_v9, %v5890_v16  ;;  %v15748_v2 = vcombine.high %v6836_v43, %v6840_v53  ;;  %v6185_v9 = vld [vmem:[#allocation10 + $0x1e8] sm:$0xff] }
 0x489   :  { %v15812_v54 = vcombine.high %v6900_v17, %v6904_v5  ;;  %v6896_v27 = vld [vmem:[#allocation10 + $0x1820] sm:$0xff]  ;;  %v15811_v52 = vcombine.low %v6900_v17, %v6904_v5  ;;  %v15093_v58 = vcombine.low %v6181_v60, %v6185_v9  ;;  %v6157_v5 = vld [vmem:[#allocation10 + $0x108] sm:$0xff] }
 0x48a   :  { %11384 = vmatpush2.bf16.msra.mxu1 %v15779_v55  ;;  %v6892_v55 = vld [vmem:[#allocation10 + $0x1800] sm:$0xff]  ;;  %v5972_v20 = vadd.f32 %v18273_v22, %v5931_v36  ;;  %v2058_v22 = vrot.slane %v18291_v51, %v18092_v26 }
 0x48b   :  { %11385 = vmatprep.subr.bf16.mxu1 %v15772_v28  ;;  %11409 = vmatpush1.bf16.msra.mxu0 %v15843_v50  ;;  %v15747_v28 = vcombine.low %v6836_v43, %v6840_v53  ;;  %v15740_v50 = vcombine.high %v6828_v24, %v6832_v25  ;;  %v15804_v31 = vcombine.high %v6892_v55, %v6896_v27  ;;  %v6169_v43 = vld [vmem:[#allocation10 + $0x168] sm:$0xff] }
 0x48c   :  { %11410 = vmatprep.subr.bf16.mxu0 %v15836_v32  ;;  %v6309_v32 = vld [vmem:[#allocation10 + $0x5c8] sm:$0xff] }
 0x48d   :  { %v15222_v7 = vcombine.high %v6309_v32, %v6313_v33 }
 0x48e   :  { %11386 = vmatpush2.bf16.msra.mxu1 %v15771_v59  ;;  %v6108_v59 = vmax.f32 %v5972_v20, 0.0 }
 0x48f   :  { %11387 = vmatprep.subr.bf16.mxu1 %v15764_v39  ;;  %11411 = vmatpush1.bf16.msra.mxu0 %v15835_v57  ;;  %v15094_v39 = vcombine.high %v6181_v60, %v6185_v9  ;;  %v15803_v57 = vcombine.low %v6892_v55, %v6896_v27  ;;  %v6149_v55 = vld [vmem:[#allocation10 + $0xc8] sm:$0xff] }
 0x490   :  { %11412 = vmatprep.subr.bf16.mxu0 %v15828_v44  ;;  %v6177_v44 = vld [vmem:[#allocation10 + $0x1a8] sm:$0xff]  ;;  %v18302_v61 = vpack.c.bf16 %v6108_v59, %v6108_v59 }
 0x491   :  { %v15085_v23 = vcombine.low %v6173_v40, %v6177_v44  ;;  %v6153_v27 = vld [vmem:[#allocation10 + $0xe8] sm:$0xff] }
 0x492   :  { %11388 = vmatpush2.bf16.msra.mxu1 %v15763_v12  ;;  %v15086_v12 = vcombine.high %v6173_v40, %v6177_v44  ;;  %v15062_v60 = vcombine.high %v6149_v55, %v6153_v27  ;;  %v6293_v9 = vld [vmem:[#allocation10 + $0x548] sm:$0xff] }
 0x493   :  { %11389 = vmatprep.subr.bf16.mxu1 %v15756_v34  ;;  %11413 = vmatpush1.bf16.msra.mxu0 %v15827_v3  ;;  %v6013_v34 = vadd.f32 %v16142_v19, %v2058_v22  ;;  %v6165_v3 = vld [vmem:[#allocation10 + $0x148] sm:$0xff] }
 0x494   :  { %11414 = vmatprep.subr.bf16.mxu0 %v15820_v18  ;;  %v15078_v18 = vcombine.high %v6165_v3, %v6169_v43  ;;  %v6145_v59 = vld [vmem:[#allocation10 + $0xa8] sm:$0xff] }
 0x495   :  { %v6053_v16 = vadd.f32 %v16164_v8, %v6013_v34  ;;  %v6285_v22 = vld [vmem:[#allocation10 + $0x508] sm:$0xff] }
 0x496   :  { %11390 = vmatpush2.bf16.msra.mxu1 %v15755_v21  ;;  %v6161_v21 = vld [vmem:[#allocation10 + $0x128] sm:$0xff] }
 0x497   :  { %11391 = vmatprep.subr.bf16.mxu1 %v15748_v2  ;;  %11415 = vmatpush1.bf16.msra.mxu0 %v15819_v38  ;;  %v15077_v38 = vcombine.low %v6165_v3, %v6169_v43  ;;  %v15070_v25 = vcombine.high %v6157_v5, %v6161_v21  ;;  %v6289_v19 = vld [vmem:[#allocation10 + $0x528] sm:$0xff] }
 0x498   :  { %11416 = vmatprep.subr.bf16.mxu0 %v15812_v54  ;;  %v6301_v54 = vld [vmem:[#allocation10 + $0x588] sm:$0xff] }
 0x499   :  { %v6133_v40 = vld [vmem:[#allocation10 + $0x48] sm:$0xff] }
 0x49a   :  { %11392 = vmatpush2.bf16.msra.mxu1 %v15747_v28  ;;  %v15221_v28 = vcombine.low %v6309_v32, %v6313_v33  ;;  %v15061_v32 = vcombine.low %v6149_v55, %v6153_v27  ;;  %v6137_v44 = vld [vmem:[#allocation10 + $0x68] sm:$0xff] }
 0x49b   :  { %11393 = vmatprep.subr.bf16.mxu1 %v15740_v50  ;;  %11417 = vmatpush1.bf16.msra.mxu0 %v15811_v52  ;;  %v15069_v50 = vcombine.low %v6157_v5, %v6161_v21  ;;  %v15214_v52 = vcombine.high %v6301_v54, %v6305_v14  ;;  %v15046_v34 = vcombine.high %v6133_v40, %v6137_v44  ;;  %v6277_v3 = vld [vmem:[#allocation10 + $0x4c8] sm:$0xff] }
 0x49c   :  { %11418 = vmatprep.subr.bf16.mxu0 %v15804_v31  ;;  %v6297_v31 = vld [vmem:[#allocation10 + $0x568] sm:$0xff] }
 0x49d   :  { %v15206_v33 = vcombine.high %v6293_v9, %v6297_v31  ;;  %v6281_v43 = vld [vmem:[#allocation10 + $0x4e8] sm:$0xff] }
 0x49e   :  { %11394 = vmatpush2.bf16.msra.mxu1 %v15739_v35  ;;  %v6141_v35 = vld [vmem:[#allocation10 + $0x88] sm:$0xff] }
 0x49f   :  { %11445 = vmatprep.subr.bf16.mxu1 %v15094_v39  ;;  %11419 = vmatpush1.bf16.msra.mxu0 %v15803_v57  ;;  %v15213_v39 = vcombine.low %v6301_v54, %v6305_v14  ;;  %v15054_v57 = vcombine.high %v6141_v35, %v6145_v59  ;;  %v6129_v8 = vld [vmem:[#allocation10 + $0x28] sm:$0xff] }
 0x4a0   :  { %11486 = vmatprep.subr.bf16.mxu0 %v15222_v7  ;;  %v15205_v7 = vcombine.low %v6293_v9, %v6297_v31  ;;  %v6273_v5 = vld [vmem:[#allocation10 + $0x4a8] sm:$0xff] }
 0x4a1   :  { %v16184_v53 = vpop.f32.mrf.mxu1  ;;  %11396 = vmatmul.mubr.bf16.vlgmr.msra.gmra.mxu1 %v18302_v61  ;;  %v6245_v21 = vld [vmem:[#allocation10 + $0x3c8] sm:$0xff] }
 0x4a2   :  { %11446 = vmatpush1.bf16.msra.mxu1 %v15093_v58  ;;  %11477 = vmatprep.mubr.bf16.mxu1 %v18210_v11  ;;  %v15053_v58 = vcombine.low %v6141_v35, %v6145_v59  ;;  %v6261_v54 = vld [vmem:[#allocation10 + $0x448] sm:$0xff] }
 0x4a3   :  { %v16185_v51 = vpop.f32.mrf.mxu1  ;;  %11447 = vmatprep.subr.bf16.mxu1 %v15086_v12  ;;  %v15198_v12 = vcombine.high %v6285_v22, %v6289_v19  ;;  %v6265_v14 = vld [vmem:[#allocation10 + $0x468] sm:$0xff] }
 0x4a4   :  { %v16186_v17 = vadd.f32 %v16185_v51, %v16184_v53  ;;  %v6125_v53 = vld [vmem:[#allocation10 + $0x8] sm:$0xff]  ;;  %v15045_v51 = vcombine.low %v6133_v40, %v6137_v44  ;;  %v15173_v59 = vcombine.low %v6261_v54, %v6265_v14 }
 0x4a5   :  { %v16187_v36 = vpop.f32.mrf.mxu1  ;;  %v6241_v55 = vld [vmem:[#allocation10 + $0x3a8] sm:$0xff] }
 0x4a6   :  { %v6093_v2 = vadd.f32 %v16186_v17, %v6053_v16  ;;  %11448 = vmatpush1.bf16.msra.mxu1 %v15085_v23  ;;  %v15197_v23 = vcombine.low %v6285_v22, %v6289_v19  ;;  %v15038_v16 = vcombine.high %v6125_v53, %v6129_v8  ;;  %v6269_v17 = vld [vmem:[#allocation10 + $0x488] sm:$0xff] }
 0x4a7   :  { %v16188_v24 = vpop.f32.mrf.mxu1  ;;  %11449 = vmatprep.subr.bf16.mxu1 %v15078_v18  ;;  %v15190_v18 = vcombine.high %v6277_v3, %v6281_v43  ;;  %v6249_v36 = vld [vmem:[#allocation10 + $0x3e8] sm:$0xff]  ;;  %v15181_v27 = vcombine.low %v6269_v17, %v6273_v5 }
 0x4a8   :  { %v6110_v0 = vmax.f32 %v6093_v2, 0.0  ;;  %v15189_v2 = vcombine.low %v6277_v3, %v6281_v43  ;;  %v15182_v24 = vcombine.high %v6269_v17, %v6273_v5  ;;  %v6257_v9 = vld [vmem:[#allocation10 + $0x428] sm:$0xff] }
 0x4a9   :  { %v6229_v31 = vld [vmem:[#allocation10 + $0x348] sm:$0xff] }
 0x4aa   :  { %v18308_v20 = vpack.c.bf16 %v6110_v0, %v6110_v0  ;;  %11450 = vmatpush1.bf16.msra.mxu1 %v15077_v38  ;;  %v15037_v38 = vcombine.low %v6125_v53, %v6129_v8  ;;  %v6237_v0 = vld [vmem:[#allocation10 + $0x388] sm:$0xff] }
 0x4ab   :  { %11451 = vmatprep.subr.bf16.mxu1 %v15070_v25  ;;  %v15158_v25 = vcombine.high %v6245_v21, %v6249_v36  ;;  %v6233_v35 = vld [vmem:[#allocation10 + $0x368] sm:$0xff] }
 0x4ac   :  { %11437 = vmatmul.mubr.bf16.vlgmr.msra.gmra.mxu0 %v18308_v20  ;;  %v6373_v22 = vld [vmem:[#allocation10 + $0x7c8] sm:$0xff] }
 0x4ad   :  { %11487 = vmatpush1.bf16.msra.mxu0 %v15221_v28  ;;  %11518 = vmatprep.mubr.bf16.mxu0 %v18220_v62  ;;  %v15157_v28 = vcombine.low %v6245_v21, %v6249_v36  ;;  %v6377_v19 = vld [vmem:[#allocation10 + $0x7e8] sm:$0xff] }
 0x4ae   :  { %11452 = vmatpush1.bf16.msra.mxu1 %v15069_v50  ;;  %11488 = vmatprep.subr.bf16.mxu0 %v15214_v52  ;;  %v15174_v50 = vcombine.high %v6261_v54, %v6265_v14  ;;  %v15150_v52 = vcombine.high %v6237_v0, %v6241_v55  ;;  %v6221_v44 = vld [vmem:[#allocation10 + $0x308] sm:$0xff]  ;;  %v15286_v3 = vcombine.high %v6373_v22, %v6377_v19 }
 0x4af   :  { %11453 = vmatprep.subr.bf16.mxu1 %v15062_v60  ;;  %v6253_v60 = vld [vmem:[#allocation10 + $0x408] sm:$0xff] }
 0x4b0   :  { %v6365_v53 = vld [vmem:[#allocation10 + $0x788] sm:$0xff] }
 0x4b1   :  { %11489 = vmatpush1.bf16.msra.mxu0 %v15213_v39  ;;  %v6369_v8 = vld [vmem:[#allocation10 + $0x7a8] sm:$0xff] }
 0x4b2   :  { %11454 = vmatpush1.bf16.msra.mxu1 %v15061_v32  ;;  %11490 = vmatprep.subr.bf16.mxu0 %v15206_v33  ;;  %v15149_v32 = vcombine.low %v6237_v0, %v6241_v55  ;;  %v15166_v33 = vcombine.high %v6253_v60, %v6257_v9  ;;  %v15278_v5 = vcombine.high %v6365_v53, %v6369_v8  ;;  %v6357_v36 = vld [vmem:[#allocation10 + $0x748] sm:$0xff] }
 0x4b3   :  { %11455 = vmatprep.subr.bf16.mxu1 %v15054_v57  ;;  %v15142_v57 = vcombine.high %v6229_v31, %v6233_v35  ;;  %v6349_v55 = vld [vmem:[#allocation10 + $0x708] sm:$0xff] }
 0x4b5   :  { %11491 = vmatpush1.bf16.msra.mxu0 %v15205_v7  ;;  %v6225_v7 = vld [vmem:[#allocation10 + $0x328] sm:$0xff] }
 0x4b6   :  { %11456 = vmatpush1.bf16.msra.mxu1 %v15053_v58  ;;  %11492 = vmatprep.subr.bf16.mxu0 %v15198_v12  ;;  %v15165_v58 = vcombine.low %v6253_v60, %v6257_v9  ;;  %v15134_v43 = vcombine.high %v6221_v44, %v6225_v7  ;;  %v15133_v17 = vcombine.low %v6221_v44, %v6225_v7  ;;  %v6333_v7 = vld [vmem:[#allocation10 + $0x688] sm:$0xff] }
 0x4b7   :  { %11457 = vmatprep.subr.bf16.mxu1 %v15046_v34  ;;  %v15141_v34 = vcombine.low %v6229_v31, %v6233_v35  ;;  %v6341_v35 = vld [vmem:[#allocation10 + $0x6c8] sm:$0xff] }
 0x4b9   :  { %11493 = vmatpush1.bf16.msra.mxu0 %v15197_v23 }
 0x4ba   :  { %11458 = vmatpush1.bf16.msra.mxu1 %v15045_v51  ;;  %11494 = vmatprep.subr.bf16.mxu0 %v15190_v18  ;;  %v6213_v51 = vld [vmem:[#allocation10 + $0x2c8] sm:$0xff] }
 0x4bb   :  { %11459 = vmatprep.subr.bf16.mxu1 %v15038_v16  ;;  %v6217_v18 = vld [vmem:[#allocation10 + $0x2e8] sm:$0xff]  ;;  %v15285_v16 = vcombine.low %v6373_v22, %v6377_v19 }
 0x4bc   :  { %v15126_v21 = vcombine.high %v6213_v51, %v6217_v18  ;;  %v15125_v54 = vcombine.low %v6213_v51, %v6217_v18  ;;  %v6325_v51 = vld [vmem:[#allocation10 + $0x648] sm:$0xff] }
 0x4bd   :  { %11495 = vmatpush1.bf16.msra.mxu0 %v15189_v2  ;;  %v6361_v2 = vld [vmem:[#allocation10 + $0x768] sm:$0xff] }
 0x4be   :  { %11460 = vmatpush1.bf16.msra.mxu1 %v15037_v38  ;;  %11496 = vmatprep.subr.bf16.mxu0 %v15182_v24  ;;  %v6205_v38 = vld [vmem:[#allocation10 + $0x288] sm:$0xff]  ;;  %v15270_v14 = vcombine.high %v6357_v36, %v6361_v2 }
 0x4bf   :  { %11461 = vmatprep.subr.bf16.mxu1 %v15158_v25  ;;  %v6209_v24 = vld [vmem:[#allocation10 + $0x2a8] sm:$0xff]  ;;  %v15277_v25 = vcombine.low %v6365_v53, %v6369_v8 }
 0x4c0   :  { %v15118_v0 = vcombine.high %v6205_v38, %v6209_v24  ;;  %v15117_v60 = vcombine.low %v6205_v38, %v6209_v24 }
 0x4c1   :  { %11497 = vmatpush1.bf16.msra.mxu0 %v15181_v27  ;;  %v6353_v27 = vld [vmem:[#allocation10 + $0x728] sm:$0xff] }
 0x4c2   :  { %v18312_v39 = vpop.f32.mrf.mxu0  ;;  %11462 = vmatpush2.bf16.msra.mxu1 %v15157_v28  ;;  %11498 = vmatprep.subr.bf16.mxu0 %v15174_v50  ;;  %v6197_v28 = vld [vmem:[#allocation10 + $0x248] sm:$0xff]  ;;  %v15262_v9 = vcombine.high %v6349_v55, %v6353_v27 }
 0x4c3   :  { %11463 = vmatprep.subr.bf16.mxu1 %v15150_v52  ;;  %v6201_v50 = vld [vmem:[#allocation10 + $0x268] sm:$0xff]  ;;  %v15269_v52 = vcombine.low %v6357_v36, %v6361_v2 }
 0x4c4   :  { %v18314_v40 = vpop.f32.mrf.mxu0  ;;  %v15110_v31 = vcombine.high %v6197_v28, %v6201_v50  ;;  %v15109_v22 = vcombine.low %v6197_v28, %v6201_v50 }
 0x4c5   :  { %11499 = vmatpush1.bf16.msra.mxu0 %v15173_v59  ;;  %v6345_v59 = vld [vmem:[#allocation10 + $0x6e8] sm:$0xff] }
 0x4c6   :  { %v11196_v12 = vpop.f32.mrf.mxu0  ;;  %11464 = vmatpush2.bf16.msra.mxu1 %v15149_v32  ;;  %11500 = vmatprep.subr.bf16.mxu0 %v15166_v33  ;;  %v6189_v32 = vld [vmem:[#allocation10 + $0x208] sm:$0xff]  ;;  %v15254_v19 = vcombine.high %v6341_v35, %v6345_v59 }
 0x4c7   :  { %11465 = vmatprep.subr.bf16.mxu1 %v15142_v57  ;;  %v6193_v33 = vld [vmem:[#allocation10 + $0x228] sm:$0xff]  ;;  %v15261_v57 = vcombine.low %v6349_v55, %v6353_v27 }
 0x4c8   :  { %v11197_v23 = vpop.f32.mrf.mxu0  ;;  %v15102_v44 = vcombine.high %v6189_v32, %v6193_v33  ;;  %v6437_v12 = vld [vmem:[#allocation10 + $0x9c8] sm:$0xff]  ;;  %v15101_v53 = vcombine.low %v6189_v32, %v6193_v33 }
 0x4c9   :  { %11501 = vmatpush1.bf16.msra.mxu0 %v15165_v58  ;;  %v6337_v58 = vld [vmem:[#allocation10 + $0x6a8] sm:$0xff] }
 0x4ca   :  { %11466 = vmatpush2.bf16.msra.mxu1 %v15141_v34  ;;  %11502 = vmatprep.subr.bf16.mxu0 %v15286_v3  ;;  %v6441_v34 = vld [vmem:[#allocation10 + $0x9e8] sm:$0xff]  ;;  %v6956_v3 = vld [vmem:[#allocation11] sm:$0xff]  ;;  %v15246_v8 = vcombine.high %v6333_v7, %v6337_v58 }
 0x4cb   :  { %11467 = vmatprep.subr.bf16.mxu1 %v15134_v43  ;;  %v15253_v43 = vcombine.low %v6341_v35, %v6345_v59  ;;  %v15350_v23 = vcombine.high %v6437_v12, %v6441_v34  ;;  %v6961_v18 = vrot.slane %v6956_v3, %v18057_v45  ;;  %v6965_v36 = vrot.slane %v6956_v3, %v18062_v48  ;;  %v6425_v55 = vld [vmem:[#allocation10 + $0x968] sm:$0xff] }
 0x4cc   :  { %v15349_v2 = vcombine.low %v6437_v12, %v6441_v34  ;;  %v6565_v35 = vld [vmem:[#allocation10 + $0xdc8] sm:$0xff] }
 0x4cd   :  { %11503 = vmatpush2.bf16.msra.mxu0 %v15285_v16  ;;  %v6329_v16 = vld [vmem:[#allocation10 + $0x668] sm:$0xff] }
 0x4ce   :  { %11468 = vmatpush2.bf16.msra.mxu1 %v15133_v17  ;;  %11504 = vmatprep.subr.bf16.mxu0 %v15278_v5  ;;  %v6429_v17 = vld [vmem:[#allocation10 + $0x988] sm:$0xff]  ;;  %v15238_v38 = vcombine.high %v6325_v51, %v6329_v16  ;;  %v15237_v28 = vcombine.low %v6325_v51, %v6329_v16 }
 0x4cf   :  { %11469 = vmatprep.subr.bf16.mxu1 %v15126_v21  ;;  %v6433_v5 = vld [vmem:[#allocation10 + $0x9a8] sm:$0xff]  ;;  %v15245_v21 = vcombine.low %v6333_v7, %v6337_v58 }
 0x4d0   :  { %v15342_v24 = vcombine.high %v6429_v17, %v6433_v5  ;;  %v15341_v50 = vcombine.low %v6429_v17, %v6433_v5  ;;  %v6569_v59 = vld [vmem:[#allocation10 + $0xde8] sm:$0xff] }
 0x4d1   :  { %11505 = vmatpush2.bf16.msra.mxu0 %v15277_v25  ;;  %v6317_v25 = vld [vmem:[#allocation10 + $0x608] sm:$0xff] }
 0x4d2   :  { %11470 = vmatpush2.bf16.msra.mxu1 %v15125_v54  ;;  %11506 = vmatprep.subr.bf16.mxu0 %v15270_v14  ;;  %v6321_v54 = vld [vmem:[#allocation10 + $0x628] sm:$0xff]  ;;  %v11193_v14 = vadd.f32 %v18312_v39, %v6961_v18 }
 0x4d3   :  { %11471 = vmatprep.subr.bf16.mxu1 %v15118_v0  ;;  %v6421_v0 = vld [vmem:[#allocation10 + $0x948] sm:$0xff] }
 0x4d4   :  { %v15334_v39 = vcombine.high %v6421_v0, %v6425_v55  ;;  %v6413_v33 = vld [vmem:[#allocation10 + $0x908] sm:$0xff] }
 0x4d5   :  { %11507 = vmatpush2.bf16.msra.mxu0 %v15269_v52  ;;  %v11195_v52 = vadd.f32 %v18314_v40, %v6965_v36  ;;  %v15333_v40 = vcombine.low %v6421_v0, %v6425_v55  ;;  %v6557_v12 = vld [vmem:[#allocation10 + $0xd88] sm:$0xff] }
 0x4d6   :  { %11472 = vmatpush2.bf16.msra.mxu1 %v15117_v60  ;;  %11508 = vmatprep.subr.bf16.mxu0 %v15262_v9  ;;  %v15230_v9 = vcombine.high %v6317_v25, %v6321_v54  ;;  %v6561_v34 = vld [vmem:[#allocation10 + $0xda8] sm:$0xff] }
 0x4d7   :  { %11473 = vmatprep.subr.bf16.mxu1 %v15110_v31  ;;  %v6405_v3 = vld [vmem:[#allocation10 + $0x8c8] sm:$0xff] }
 0x4d8   :  { %v6549_v18 = vld [vmem:[#allocation10 + $0xd48] sm:$0xff] }
 0x4d9   :  { %11509 = vmatpush2.bf16.msra.mxu0 %v15261_v57  ;;  %v6417_v57 = vld [vmem:[#allocation10 + $0x928] sm:$0xff] }
 0x4da   :  { %11474 = vmatpush2.bf16.msra.mxu1 %v15109_v22  ;;  %11510 = vmatprep.subr.bf16.mxu0 %v15254_v19  ;;  %v15229_v19 = vcombine.low %v6317_v25, %v6321_v54  ;;  %v15326_v58 = vcombine.high %v6413_v33, %v6417_v57  ;;  %v6553_v16 = vld [vmem:[#allocation10 + $0xd68] sm:$0xff] }
 0x4db   :  { %11475 = vmatprep.subr.bf16.mxu1 %v15102_v44  ;;  %v15478_v44 = vcombine.high %v6565_v35, %v6569_v59  ;;  %v6397_v17 = vld [vmem:[#allocation10 + $0x888] sm:$0xff]  ;;  %v15461_v0 = vcombine.low %v6549_v18, %v6553_v16 }
 0x4dc   :  { %v6401_v5 = vld [vmem:[#allocation10 + $0x8a8] sm:$0xff] }
 0x4dd   :  { %11511 = vmatpush2.bf16.msra.mxu0 %v15253_v43  ;;  %v6409_v43 = vld [vmem:[#allocation10 + $0x8e8] sm:$0xff]  ;;  %v15309_v55 = vcombine.low %v6397_v17, %v6401_v5 }
 0x4de   :  { %11476 = vmatpush2.bf16.msra.mxu1 %v15101_v53  ;;  %11512 = vmatprep.subr.bf16.mxu0 %v15246_v8  ;;  %v15477_v53 = vcombine.low %v6565_v35, %v6569_v59  ;;  %v15325_v8 = vcombine.low %v6413_v33, %v6417_v57  ;;  %v15318_v51 = vcombine.high %v6405_v3, %v6409_v43  ;;  %v6545_v25 = vld [vmem:[#allocation10 + $0xd28] sm:$0xff] }
 0x4df   :  { %11527 = vmatprep.subr.bf16.mxu1 %v15350_v23  ;;  %v15470_v23 = vcombine.high %v6557_v12, %v6561_v34  ;;  %v15317_v36 = vcombine.low %v6405_v3, %v6409_v43  ;;  %v6389_v54 = vld [vmem:[#allocation10 + $0x848] sm:$0xff] }
 0x4e0   :  { %v6525_v57 = vld [vmem:[#allocation10 + $0xc88] sm:$0xff] }
 0x4e1   :  { %11513 = vmatpush2.bf16.msra.mxu0 %v15245_v21  ;;  %v11233_v27 = vpop.f32.mrf.mxu1  ;;  %11478 = vmatmul.mubr.bf16.vlgmr.msra.gmra.mxu1 %v18232_v6  ;;  %v15469_v21 = vcombine.low %v6557_v12, %v6561_v34  ;;  %v6517_v34 = vld [vmem:[#allocation10 + $0xc48] sm:$0xff] }
 0x4e2   :  { %v18321_v60 = vadd.f32 %v11233_v27, %v11193_v14  ;;  %11528 = vmatpush1.bf16.msra.mxu1 %v15349_v2  ;;  %11559 = vmatprep.mubr.bf16.mxu1 %v18234_v15  ;;  %v15462_v2 = vcombine.high %v6549_v18, %v6553_v16  ;;  %v6393_v14 = vld [vmem:[#allocation10 + $0x868] sm:$0xff] }
 0x4e3   :  { %v11235_v31 = vpop.f32.mrf.mxu1  ;;  %11514 = vmatprep.subr.bf16.mxu0 %v15238_v38  ;;  %11529 = vmatprep.subr.bf16.mxu1 %v15342_v24  ;;  %v15310_v38 = vcombine.high %v6397_v17, %v6401_v5  ;;  %v6541_v24 = vld [vmem:[#allocation10 + $0xd08] sm:$0xff]  ;;  %v15301_v35 = vcombine.low %v6389_v54, %v6393_v14 }
 0x4e4   :  { %v18324_v32 = vadd.f32 %v11235_v31, %v11195_v52  ;;  %v15454_v27 = vcombine.high %v6541_v24, %v6545_v25  ;;  %v6537_v52 = vld [vmem:[#allocation10 + $0xce8] sm:$0xff] }
 0x4e5   :  { %11515 = vmatpush2.bf16.msra.mxu0 %v15237_v28  ;;  %v11237_v22 = vpop.f32.mrf.mxu1  ;;  %v15302_v28 = vcombine.high %v6389_v54, %v6393_v14  ;;  %v6385_v31 = vld [vmem:[#allocation10 + $0x828] sm:$0xff] }
 0x4e6   :  { %11530 = vmatpush1.bf16.msra.mxu1 %v15341_v50  ;;  %11516 = vmatprep.subr.bf16.mxu0 %v15230_v9  ;;  %v6533_v50 = vld [vmem:[#allocation10 + $0xcc8] sm:$0xff] }
 0x4e7   :  { %v11238_v7 = vpop.f32.mrf.mxu1  ;;  %11531 = vmatprep.subr.bf16.mxu1 %v15334_v39  ;;  %v6381_v9 = vld [vmem:[#allocation10 + $0x808] sm:$0xff]  ;;  %v15453_v39 = vcombine.low %v6541_v24, %v6545_v25  ;;  %v15446_v59 = vcombine.high %v6533_v50, %v6537_v52 }
 0x4e8   :  { %v15294_v33 = vcombine.high %v6381_v9, %v6385_v31  ;;  %v6529_v22 = vld [vmem:[#allocation10 + $0xca8] sm:$0xff]  ;;  %v15293_v7 = vcombine.low %v6381_v9, %v6385_v31 }
 0x4e9   :  { %11517 = vmatpush2.bf16.msra.mxu0 %v15229_v19  ;;  %v6501_v19 = vld [vmem:[#allocation10 + $0xbc8] sm:$0xff] }
 0x4ea   :  { %11532 = vmatpush1.bf16.msra.mxu1 %v15333_v40  ;;  %11568 = vmatprep.subr.bf16.mxu0 %v15478_v44  ;;  %v6505_v40 = vld [vmem:[#allocation10 + $0xbe8] sm:$0xff]  ;;  %v15445_v44 = vcombine.low %v6533_v50, %v6537_v52 }
 0x4eb   :  { %11533 = vmatprep.subr.bf16.mxu1 %v15326_v58  ;;  %v15438_v58 = vcombine.high %v6525_v57, %v6529_v22  ;;  %v15414_v12 = vcombine.high %v6501_v19, %v6505_v40  ;;  %v6521_v3 = vld [vmem:[#allocation10 + $0xc68] sm:$0xff] }
 0x4ec   :  { %11519 = vmatmul.mubr.bf16.vlgmr.msra.gmra.mxu0 %v18240_v42  ;;  %v6493_v43 = vld [vmem:[#allocation10 + $0xb88] sm:$0xff] }
 0x4ed   :  { %11569 = vmatpush1.bf16.msra.mxu0 %v15477_v53  ;;  %11600 = vmatprep.mubr.bf16.mxu0 %v18242_v37  ;;  %v6497_v53 = vld [vmem:[#allocation10 + $0xba8] sm:$0xff] }
 0x4ee   :  { %11534 = vmatpush1.bf16.msra.mxu1 %v15325_v8  ;;  %11570 = vmatprep.subr.bf16.mxu0 %v15470_v23  ;;  %v15437_v8 = vcombine.low %v6525_v57, %v6529_v22  ;;  %v15413_v23 = vcombine.low %v6501_v19, %v6505_v40  ;;  %v15406_v18 = vcombine.high %v6493_v43, %v6497_v53  ;;  %v6509_v16 = vld [vmem:[#allocation10 + $0xc08] sm:$0xff] }
 0x4ef   :  { %11535 = vmatprep.subr.bf16.mxu1 %v15318_v51  ;;  %v15430_v51 = vcombine.high %v6517_v34, %v6521_v3  ;;  %v6513_v17 = vld [vmem:[#allocation10 + $0xc28] sm:$0xff] }
 0x4f0   :  { %v6485_v5 = vld [vmem:[#allocation10 + $0xb48] sm:$0xff]  ;;  %v15422_v24 = vcombine.high %v6509_v16, %v6513_v17  ;;  %v15421_v52 = vcombine.low %v6509_v16, %v6513_v17 }
 0x4f1   :  { %11571 = vmatpush1.bf16.msra.mxu0 %v15469_v21  ;;  %v6489_v21 = vld [vmem:[#allocation10 + $0xb68] sm:$0xff] }
 0x4f2   :  { %11536 = vmatpush1.bf16.msra.mxu1 %v15317_v36  ;;  %11572 = vmatprep.subr.bf16.mxu0 %v15462_v2  ;;  %v15429_v36 = vcombine.low %v6517_v34, %v6521_v3  ;;  %v15398_v54 = vcombine.high %v6485_v5, %v6489_v21  ;;  %v6629_v14 = vld [vmem:[#allocation10 + $0xfc8] sm:$0xff]  ;;  %v15397_v31 = vcombine.low %v6485_v5, %v6489_v21 }
 0x4f3   :  { %11537 = vmatprep.subr.bf16.mxu1 %v15310_v38  ;;  %v15405_v38 = vcombine.low %v6493_v43, %v6497_v53  ;;  %v6469_v57 = vld [vmem:[#allocation10 + $0xac8] sm:$0xff] }
 0x4f4   :  { %v6473_v22 = vld [vmem:[#allocation10 + $0xae8] sm:$0xff] }
 0x4f5   :  { %11573 = vmatpush1.bf16.msra.mxu0 %v15461_v0  ;;  %v6633_v0 = vld [vmem:[#allocation10 + $0xfe8] sm:$0xff]  ;;  %v15381_v43 = vcombine.low %v6469_v57, %v6473_v22 }
 0x4f6   :  { %11538 = vmatpush1.bf16.msra.mxu1 %v15309_v55  ;;  %11574 = vmatprep.subr.bf16.mxu0 %v15454_v27  ;;  %v6477_v27 = vld [vmem:[#allocation10 + $0xb08] sm:$0xff]  ;;  %v15541_v19 = vcombine.low %v6629_v14, %v6633_v0 }
 0x4f7   :  { %11539 = vmatprep.subr.bf16.mxu1 %v15302_v28  ;;  %v6481_v28 = vld [vmem:[#allocation10 + $0xb28] sm:$0xff] }
 0x4f8   :  { %v6465_v34 = vld [vmem:[#allocation10 + $0xaa8] sm:$0xff] }
 0x4f9   :  { %11575 = vmatpush1.bf16.msra.mxu0 %v15453_v39  ;;  %v15542_v39 = vcombine.high %v6629_v14, %v6633_v0  ;;  %v6457_v16 = vld [vmem:[#allocation10 + $0xa68] sm:$0xff] }
 0x4fa   :  { %11540 = vmatpush1.bf16.msra.mxu1 %v15301_v35  ;;  %11576 = vmatprep.subr.bf16.mxu0 %v15446_v59  ;;  %v6621_v35 = vld [vmem:[#allocation10 + $0xf88] sm:$0xff] }
 0x4fb   :  { %11541 = vmatprep.subr.bf16.mxu1 %v15294_v33  ;;  %v6625_v59 = vld [vmem:[#allocation10 + $0xfa8] sm:$0xff] }
 0x4fc   :  { %v15534_v40 = vcombine.high %v6621_v35, %v6625_v59  ;;  %v15533_v3 = vcombine.low %v6621_v35, %v6625_v59 }
 0x4fd   :  { %11577 = vmatpush1.bf16.msra.mxu0 %v15445_v44  ;;  %v15382_v44 = vcombine.high %v6469_v57, %v6473_v22  ;;  %v6585_v57 = vld [vmem:[#allocation10 + $0xe68] sm:$0xff] }
 0x4fe   :  { %11542 = vmatpush1.bf16.msra.mxu1 %v15293_v7  ;;  %11578 = vmatprep.subr.bf16.mxu0 %v15438_v58  ;;  %v6613_v7 = vld [vmem:[#allocation10 + $0xf48] sm:$0xff] }
 0x4ff   :  { %11543 = vmatprep.subr.bf16.mxu1 %v15414_v12  ;;  %v6617_v58 = vld [vmem:[#allocation10 + $0xf68] sm:$0xff] }
 0x500   :  { %v6461_v12 = vld [vmem:[#allocation10 + $0xa88] sm:$0xff]  ;;  %v15526_v53 = vcombine.high %v6613_v7, %v6617_v58  ;;  %v15525_v17 = vcombine.low %v6613_v7, %v6617_v58 }
 0x501   :  { %11579 = vmatpush1.bf16.msra.mxu0 %v15437_v8  ;;  %v15374_v8 = vcombine.high %v6461_v12, %v6465_v34  ;;  %v15373_v5 = vcombine.low %v6461_v12, %v6465_v34  ;;  %v6685_v22 = vld [vmem:[#allocation10 + $0x1188] sm:$0xff] }
 0x502   :  { %v11274_v2 = vpop.f32.mrf.mxu0  ;;  %11544 = vmatpush2.bf16.msra.mxu1 %v15413_v23  ;;  %11580 = vmatprep.subr.bf16.mxu0 %v15430_v51  ;;  %v6605_v23 = vld [vmem:[#allocation10 + $0xf08] sm:$0xff] }
 0x503   :  { %v18329_v25 = vadd.f32 %v11274_v2, %v18321_v60  ;;  %11545 = vmatprep.subr.bf16.mxu1 %v15406_v18  ;;  %v15390_v60 = vcombine.high %v6477_v27, %v6481_v28  ;;  %v6609_v51 = vld [vmem:[#allocation10 + $0xf28] sm:$0xff] }
 0x504   :  { %v11276_v55 = vpop.f32.mrf.mxu0  ;;  %v6453_v18 = vld [vmem:[#allocation10 + $0xa48] sm:$0xff]  ;;  %v15518_v21 = vcombine.high %v6605_v23, %v6609_v51  ;;  %v15517_v14 = vcombine.low %v6605_v23, %v6609_v51 }
 0x505   :  { %v18332_v50 = vadd.f32 %v11276_v55, %v18324_v32  ;;  %11581 = vmatpush1.bf16.msra.mxu0 %v15429_v36  ;;  %v15389_v32 = vcombine.low %v6477_v27, %v6481_v28  ;;  %v15366_v36 = vcombine.high %v6453_v18, %v6457_v16  ;;  %v6597_v2 = vld [vmem:[#allocation10 + $0xec8] sm:$0xff]  ;;  %v15365_v0 = vcombine.low %v6453_v18, %v6457_v16 }
 0x506   :  { %v11278_v9 = vpop.f32.mrf.mxu0  ;;  %11546 = vmatpush2.bf16.msra.mxu1 %v15405_v38  ;;  %11582 = vmatprep.subr.bf16.mxu0 %v15422_v24  ;;  %v6601_v38 = vld [vmem:[#allocation10 + $0xee8] sm:$0xff] }
 0x507   :  { %11547 = vmatprep.subr.bf16.mxu1 %v15398_v54  ;;  %v6445_v24 = vld [vmem:[#allocation10 + $0xa08] sm:$0xff]  ;;  %v15510_v55 = vcombine.high %v6597_v2, %v6601_v38 }
 0x508   :  { %v11279_v33 = vpop.f32.mrf.mxu0  ;;  %v6449_v54 = vld [vmem:[#allocation10 + $0xa28] sm:$0xff] }
 0x509   :  { %11583 = vmatpush1.bf16.msra.mxu0 %v15421_v52  ;;  %v15358_v27 = vcombine.high %v6445_v24, %v6449_v54  ;;  %v6589_v28 = vld [vmem:[#allocation10 + $0xe88] sm:$0xff] }
 0x50a   :  { %11548 = vmatpush2.bf16.msra.mxu1 %v15397_v31  ;;  %11584 = vmatprep.subr.bf16.mxu0 %v15542_v39  ;;  %v6593_v52 = vld [vmem:[#allocation10 + $0xea8] sm:$0xff]  ;;  %v15509_v39 = vcombine.low %v6597_v2, %v6601_v38 }
 0x50b   :  { %11549 = vmatprep.subr.bf16.mxu1 %v15390_v60  ;;  %v6693_v9 = vld [vmem:[#allocation10 + $0x11c8] sm:$0xff]  ;;  %v15357_v60 = vcombine.low %v6445_v24, %v6449_v54  ;;  %v15502_v35 = vcombine.high %v6589_v28, %v6593_v52 }
 0x50c   :  { %v6697_v31 = vld [vmem:[#allocation10 + $0x11e8] sm:$0xff] }
 0x50d   :  { %11585 = vmatpush2.bf16.msra.mxu0 %v15541_v19  ;;  %v15606_v59 = vcombine.high %v6693_v9, %v6697_v31  ;;  %v6581_v33 = vld [vmem:[#allocation10 + $0xe48] sm:$0xff] }
 0x50e   :  { %11550 = vmatpush2.bf16.msra.mxu1 %v15389_v32  ;;  %11586 = vmatprep.subr.bf16.mxu0 %v15534_v40  ;;  %v6689_v19 = vld [vmem:[#allocation10 + $0x11a8] sm:$0xff]  ;;  %v15501_v32 = vcombine.low %v6589_v28, %v6593_v52  ;;  %v15605_v40 = vcombine.low %v6693_v9, %v6697_v31 }
 0x50f   :  { %11551 = vmatprep.subr.bf16.mxu1 %v15382_v44  ;;  %v15494_v44 = vcombine.high %v6581_v33, %v6585_v57  ;;  %v15598_v7 = vcombine.high %v6685_v22, %v6689_v19  ;;  %v6573_v58 = vld [vmem:[#allocation10 + $0xe08] sm:$0xff]  ;;  %v15597_v23 = vcombine.low %v6685_v22, %v6689_v19 }
 0x510   :  { %v6577_v12 = vld [vmem:[#allocation10 + $0xe28] sm:$0xff] }
 0x511   :  { %11587 = vmatpush2.bf16.msra.mxu0 %v15533_v3  ;;  %v6677_v34 = vld [vmem:[#allocation10 + $0x1148] sm:$0xff]  ;;  %v15486_v51 = vcombine.high %v6573_v58, %v6577_v12 }
 0x512   :  { %11552 = vmatpush2.bf16.msra.mxu1 %v15381_v43  ;;  %11588 = vmatprep.subr.bf16.mxu0 %v15526_v53  ;;  %v6681_v3 = vld [vmem:[#allocation10 + $0x1168] sm:$0xff]  ;;  %v15493_v53 = vcombine.low %v6581_v33, %v6585_v57 }
 0x513   :  { %11553 = vmatprep.subr.bf16.mxu1 %v15374_v8  ;;  %v15590_v16 = vcombine.high %v6677_v34, %v6681_v3  ;;  %v6673_v2 = vld [vmem:[#allocation10 + $0x1128] sm:$0xff]  ;;  %v15589_v24 = vcombine.low %v6677_v34, %v6681_v3 }
 0x514   :  { %v6661_v28 = vld [vmem:[#allocation10 + $0x10c8] sm:$0xff] }
 0x515   :  { %11589 = vmatpush2.bf16.msra.mxu0 %v15525_v17  ;;  %v6821_v17 = vld [vmem:[#allocation10 + $0x15c8] sm:$0xff] }
 0x516   :  { %11554 = vmatpush2.bf16.msra.mxu1 %v15373_v5  ;;  %11590 = vmatprep.subr.bf16.mxu0 %v15518_v21  ;;  %v6825_v5 = vld [vmem:[#allocation10 + $0x15e8] sm:$0xff] }
 0x517   :  { %11555 = vmatprep.subr.bf16.mxu1 %v15366_v36  ;;  %v6669_v36 = vld [vmem:[#allocation10 + $0x1108] sm:$0xff]  ;;  %v15734_v54 = vcombine.high %v6821_v17, %v6825_v5  ;;  %v15733_v9 = vcombine.low %v6821_v17, %v6825_v5 }
 0x518   :  { %v6665_v52 = vld [vmem:[#allocation10 + $0x10e8] sm:$0xff] }
 0x519   :  { %11591 = vmatpush2.bf16.msra.mxu0 %v15517_v14  ;;  %v6657_v33 = vld [vmem:[#allocation10 + $0x10a8] sm:$0xff]  ;;  %v15573_v22 = vcombine.low %v6661_v28, %v6665_v52 }
 0x51a   :  { %11556 = vmatpush2.bf16.msra.mxu1 %v15365_v0  ;;  %11592 = vmatprep.subr.bf16.mxu0 %v15510_v55  ;;  %v15582_v0 = vcombine.high %v6669_v36, %v6673_v2  ;;  %v6813_v55 = vld [vmem:[#allocation10 + $0x1588] sm:$0xff] }
 0x51b   :  { %11557 = vmatprep.subr.bf16.mxu1 %v15358_v27  ;;  %v6817_v27 = vld [vmem:[#allocation10 + $0x15a8] sm:$0xff] }
 0x51c   :  { %v15726_v31 = vcombine.high %v6813_v55, %v6817_v27  ;;  %v15725_v57 = vcombine.low %v6813_v55, %v6817_v27  ;;  %v6773_v27 = vld [vmem:[#allocation10 + $0x1448] sm:$0xff] }
 0x51d   :  { %11593 = vmatpush2.bf16.msra.mxu0 %v15509_v39  ;;  %v15574_v39 = vcombine.high %v6661_v28, %v6665_v52  ;;  %v6777_v28 = vld [vmem:[#allocation10 + $0x1468] sm:$0xff] }
 0x51e   :  { %11558 = vmatpush2.bf16.msra.mxu1 %v15357_v60  ;;  %11594 = vmatprep.subr.bf16.mxu0 %v15502_v35  ;;  %v6805_v60 = vld [vmem:[#allocation10 + $0x1548] sm:$0xff] }
 0x51f   :  { %11609 = vmatprep.subr.bf16.mxu1 %v15606_v59  ;;  %v6809_v35 = vld [vmem:[#allocation10 + $0x1568] sm:$0xff] }
 0x520   :  { %v6653_v59 = vld [vmem:[#allocation10 + $0x1088] sm:$0xff]  ;;  %v15718_v19 = vcombine.high %v6805_v60, %v6809_v35 }
 0x521   :  { %11595 = vmatpush2.bf16.msra.mxu0 %v15501_v32  ;;  %v11315_v43 = vpop.f32.mrf.mxu1  ;;  %11560 = vmatmul.mubr.bf16.vlgmr.msra.gmra.mxu1 %v18258_v56  ;;  %v15566_v32 = vcombine.high %v6653_v59, %v6657_v33  ;;  %v15565_v34 = vcombine.low %v6653_v59, %v6657_v33  ;;  %v6749_v52 = vld [vmem:[#allocation10 + $0x1388] sm:$0xff] }
 0x522   :  { %v18336_v8 = vadd.f32 %v11315_v43, %v18329_v25  ;;  %11610 = vmatpush1.bf16.msra.mxu1 %v15605_v40  ;;  %11641 = vmatprep.mubr.bf16.mxu1 %v18260_v13  ;;  %v15485_v25 = vcombine.low %v6573_v58, %v6577_v12  ;;  %v6797_v40 = vld [vmem:[#allocation10 + $0x1508] sm:$0xff]  ;;  %v15717_v12 = vcombine.low %v6805_v60, %v6809_v35 }
 0x523   :  { %v11317_v18 = vpop.f32.mrf.mxu1  ;;  %11596 = vmatprep.subr.bf16.mxu0 %v15494_v44  ;;  %11611 = vmatprep.subr.bf16.mxu1 %v15598_v7  ;;  %v6801_v44 = vld [vmem:[#allocation10 + $0x1528] sm:$0xff] }
 0x524   :  { %v18340_v21 = vadd.f32 %v11317_v18, %v18332_v50  ;;  %v15581_v50 = vcombine.low %v6669_v36, %v6673_v2  ;;  %v6645_v7 = vld [vmem:[#allocation10 + $0x1048] sm:$0xff]  ;;  %v15710_v3 = vcombine.high %v6797_v40, %v6801_v44 }
 0x525   :  { %11597 = vmatpush2.bf16.msra.mxu0 %v15493_v53  ;;  %v11319_v38 = vpop.f32.mrf.mxu1  ;;  %v6649_v58 = vld [vmem:[#allocation10 + $0x1068] sm:$0xff] }
 0x526   :  { %11612 = vmatpush1.bf16.msra.mxu1 %v15597_v23  ;;  %11598 = vmatprep.subr.bf16.mxu0 %v15486_v51  ;;  %v15558_v43 = vcombine.high %v6645_v7, %v6649_v58  ;;  %v6789_v53 = vld [vmem:[#allocation10 + $0x14c8] sm:$0xff]  ;;  %v15557_v17 = vcombine.low %v6645_v7, %v6649_v58 }
 0x527   :  { %v11320_v14 = vpop.f32.mrf.mxu1  ;;  %11613 = vmatprep.subr.bf16.mxu1 %v15590_v16  ;;  %v6793_v23 = vld [vmem:[#allocation10 + $0x14e8] sm:$0xff]  ;;  %v15709_v16 = vcombine.low %v6797_v40, %v6801_v44 }
 0x528   :  { %v6637_v51 = vld [vmem:[#allocation10 + $0x1008] sm:$0xff]  ;;  %v15702_v5 = vcombine.high %v6789_v53, %v6793_v23 }
 0x529   :  { %11599 = vmatpush2.bf16.msra.mxu0 %v15485_v25  ;;  %v6641_v18 = vld [vmem:[#allocation10 + $0x1028] sm:$0xff] }
 0x52a   :  { %11614 = vmatpush1.bf16.msra.mxu1 %v15589_v24  ;;  %11650 = vmatprep.subr.bf16.mxu0 %v15734_v54  ;;  %v15550_v36 = vcombine.high %v6637_v51, %v6641_v18  ;;  %v6781_v2 = vld [vmem:[#allocation10 + $0x1488] sm:$0xff]  ;;  %v15701_v54 = vcombine.low %v6789_v53, %v6793_v23  ;;  %v15549_v14 = vcombine.low %v6637_v51, %v6641_v18 }
 0x52b   :  { %11615 = vmatprep.subr.bf16.mxu1 %v15582_v0  ;;  %v6785_v38 = vld [vmem:[#allocation10 + $0x14a8] sm:$0xff] }
 0x52c   :  { %11601 = vmatmul.mubr.bf16.vlgmr.msra.gmra.mxu0 %v18267_v4  ;;  %v6757_v25 = vld [vmem:[#allocation10 + $0x13c8] sm:$0xff]  ;;  %v15694_v0 = vcombine.high %v6781_v2, %v6785_v38 }
 0x52d   :  { %11651 = vmatpush1.bf16.msra.mxu0 %v15733_v9  ;;  %11682 = vmatprep.mubr.bf16.mxu0 %v18275_v46  ;;  %v6761_v24 = vld [vmem:[#allocation10 + $0x13e8] sm:$0xff] }
 0x52e   :  { %11616 = vmatpush1.bf16.msra.mxu1 %v15581_v50  ;;  %11652 = vmatprep.subr.bf16.mxu0 %v15726_v31  ;;  %v15670_v55 = vcombine.high %v6757_v25, %v6761_v24  ;;  %v6753_v9 = vld [vmem:[#allocation10 + $0x13a8] sm:$0xff]  ;;  %v15693_v50 = vcombine.low %v6781_v2, %v6785_v38  ;;  %v15669_v31 = vcombine.low %v6757_v25, %v6761_v24 }
 0x52f   :  { %11617 = vmatprep.subr.bf16.mxu1 %v15574_v39  ;;  %v15686_v39 = vcombine.high %v6773_v27, %v6777_v28  ;;  %v15662_v60 = vcombine.high %v6749_v52, %v6753_v9  ;;  %v6765_v35 = vld [vmem:[#allocation10 + $0x1408] sm:$0xff] }
 0x530   :  { %v6769_v59 = vld [vmem:[#allocation10 + $0x1428] sm:$0xff] }
 0x531   :  { %11653 = vmatpush1.bf16.msra.mxu0 %v15725_v57  ;;  %v6741_v33 = vld [vmem:[#allocation10 + $0x1348] sm:$0xff]  ;;  %v15678_v40 = vcombine.high %v6765_v35, %v6769_v59  ;;  %v15677_v23 = vcombine.low %v6765_v35, %v6769_v59 }
 0x532   :  { %11618 = vmatpush1.bf16.msra.mxu1 %v15573_v22  ;;  %11654 = vmatprep.subr.bf16.mxu0 %v15718_v19  ;;  %v6745_v57 = vld [vmem:[#allocation10 + $0x1368] sm:$0xff]  ;;  %v15685_v22 = vcombine.low %v6773_v27, %v6777_v28 }
 0x533   :  { %11619 = vmatprep.subr.bf16.mxu1 %v15566_v32  ;;  %v15661_v32 = vcombine.low %v6749_v52, %v6753_v9  ;;  %v15654_v7 = vcombine.high %v6741_v33, %v6745_v57  ;;  %v6885_v58 = vld [vmem:[#allocation10 + $0x17c8] sm:$0xff]  ;;  %v15653_v18 = vcombine.low %v6741_v33, %v6745_v57 }
 0x534   :  { %v6725_v2 = vld [vmem:[#allocation10 + $0x12c8] sm:$0xff] }
 0x535   :  { %11655 = vmatpush1.bf16.msra.mxu0 %v15717_v12  ;;  %v6889_v12 = vld [vmem:[#allocation10 + $0x17e8] sm:$0xff] }
 0x536   :  { %11620 = vmatpush1.bf16.msra.mxu1 %v15565_v34  ;;  %11656 = vmatprep.subr.bf16.mxu0 %v15710_v3  ;;  %v6733_v3 = vld [vmem:[#allocation10 + $0x1308] sm:$0xff]  ;;  %v15797_v25 = vcombine.low %v6885_v58, %v6889_v12 }
 0x537   :  { %11621 = vmatprep.subr.bf16.mxu1 %v15558_v43  ;;  %v6737_v43 = vld [vmem:[#allocation10 + $0x1328] sm:$0xff] }
 0x538   :  { %v6729_v38 = vld [vmem:[#allocation10 + $0x12e8] sm:$0xff] }
 0x539   :  { %11657 = vmatpush1.bf16.msra.mxu0 %v15709_v16  ;;  %v15798_v16 = vcombine.high %v6885_v58, %v6889_v12  ;;  %v6721_v27 = vld [vmem:[#allocation10 + $0x12a8] sm:$0xff]  ;;  %v15637_v52 = vcombine.low %v6725_v2, %v6729_v38 }
 0x53a   :  { %11622 = vmatpush1.bf16.msra.mxu1 %v15557_v17  ;;  %11658 = vmatprep.subr.bf16.mxu0 %v15702_v5  ;;  %v6877_v17 = vld [vmem:[#allocation10 + $0x1788] sm:$0xff] }
 0x53b   :  { %11623 = vmatprep.subr.bf16.mxu1 %v15550_v36  ;;  %v6881_v5 = vld [vmem:[#allocation10 + $0x17a8] sm:$0xff] }
 0x53c   :  { %v15790_v24 = vcombine.high %v6877_v17, %v6881_v5  ;;  %v15789_v28 = vcombine.low %v6877_v17, %v6881_v5  ;;  %v6713_v35 = vld [vmem:[#allocation10 + $0x1268] sm:$0xff] }
 0x53d   :  { %11659 = vmatpush1.bf16.msra.mxu0 %v15701_v54  ;;  %v15638_v54 = vcombine.high %v6725_v2, %v6729_v38  ;;  %v6841_v2 = vld [vmem:[#allocation10 + $0x1668] sm:$0xff] }
 0x53e   :  { %11624 = vmatpush1.bf16.msra.mxu1 %v15549_v14  ;;  %11660 = vmatprep.subr.bf16.mxu0 %v15694_v0  ;;  %v6869_v14 = vld [vmem:[#allocation10 + $0x1748] sm:$0xff] }
 0x53f   :  { %11625 = vmatprep.subr.bf16.mxu1 %v15670_v55  ;;  %v6873_v0 = vld [vmem:[#allocation10 + $0x1768] sm:$0xff] }
 0x540   :  { %v6717_v55 = vld [vmem:[#allocation10 + $0x1288] sm:$0xff]  ;;  %v15782_v9 = vcombine.high %v6869_v14, %v6873_v0  ;;  %v15781_v59 = vcombine.low %v6869_v14, %v6873_v0 }
 0x541   :  { %11661 = vmatpush1.bf16.msra.mxu0 %v15693_v50  ;;  %v15630_v50 = vcombine.high %v6717_v55, %v6721_v27  ;;  %v15629_v33 = vcombine.low %v6717_v55, %v6721_v27  ;;  %v6941_v38 = vld [vmem:[#allocation10 + $0x1988] sm:$0xff] }
 0x542   :  { %v11356_v19 = vpop.f32.mrf.mxu0  ;;  %11626 = vmatpush2.bf16.msra.mxu1 %v15669_v31  ;;  %11662 = vmatprep.subr.bf16.mxu0 %v15686_v39  ;;  %v6861_v31 = vld [vmem:[#allocation10 + $0x1708] sm:$0xff] }
 0x543   :  { %v18345_v44 = vadd.f32 %v11356_v19, %v18336_v8  ;;  %11627 = vmatprep.subr.bf16.mxu1 %v15662_v60  ;;  %v15646_v8 = vcombine.high %v6733_v3, %v6737_v43  ;;  %v6865_v39 = vld [vmem:[#allocation10 + $0x1728] sm:$0xff] }
 0x544   :  { %v11358_v34 = vpop.f32.mrf.mxu0  ;;  %v6709_v60 = vld [vmem:[#allocation10 + $0x1248] sm:$0xff]  ;;  %v15774_v57 = vcombine.high %v6861_v31, %v6865_v39  ;;  %v15773_v58 = vcombine.low %v6861_v31, %v6865_v39 }
 0x545   :  { %v18348_v53 = vadd.f32 %v11358_v34, %v18340_v21  ;;  %11663 = vmatpush1.bf16.msra.mxu0 %v15685_v22  ;;  %v15645_v21 = vcombine.low %v6733_v3, %v6737_v43  ;;  %v15622_v22 = vcombine.high %v6709_v60, %v6713_v35  ;;  %v6853_v19 = vld [vmem:[#allocation10 + $0x16c8] sm:$0xff]  ;;  %v15621_v12 = vcombine.low %v6709_v60, %v6713_v35 }
 0x546   :  { %v11360_v51 = vpop.f32.mrf.mxu0  ;;  %11628 = vmatpush2.bf16.msra.mxu1 %v15661_v32  ;;  %11664 = vmatprep.subr.bf16.mxu0 %v15678_v40  ;;  %v6857_v32 = vld [vmem:[#allocation10 + $0x16e8] sm:$0xff] }
 0x547   :  { %11629 = vmatprep.subr.bf16.mxu1 %v15654_v7  ;;  %v6701_v40 = vld [vmem:[#allocation10 + $0x1208] sm:$0xff]  ;;  %v15766_v34 = vcombine.high %v6853_v19, %v6857_v32 }
 0x548   :  { %v11361_v36 = vpop.f32.mrf.mxu0  ;;  %v6705_v7 = vld [vmem:[#allocation10 + $0x1228] sm:$0xff] }
 0x549   :  { %11665 = vmatpush1.bf16.msra.mxu0 %v15677_v23  ;;  %v15614_v3 = vcombine.high %v6701_v40, %v6705_v7  ;;  %v6845_v43 = vld [vmem:[#allocation10 + $0x1688] sm:$0xff] }
 0x54a   :  { %11630 = vmatpush2.bf16.msra.mxu1 %v15653_v18  ;;  %11666 = vmatprep.subr.bf16.mxu0 %v15798_v16  ;;  %v6849_v23 = vld [vmem:[#allocation10 + $0x16a8] sm:$0xff]  ;;  %v15765_v16 = vcombine.low %v6853_v19, %v6857_v32 }
 0x54b   :  { %11631 = vmatprep.subr.bf16.mxu1 %v15646_v8  ;;  %v6949_v51 = vld [vmem:[#allocation10 + $0x19c8] sm:$0xff]  ;;  %v15613_v8 = vcombine.low %v6701_v40, %v6705_v7  ;;  %v15758_v17 = vcombine.high %v6845_v43, %v6849_v23 }
 0x54c   :  { %v6953_v18 = vld [vmem:[#allocation10 + $0x19e8] sm:$0xff] }
 0x54d   :  { %11667 = vmatpush2.bf16.msra.mxu0 %v15797_v25  ;;  %v15862_v5 = vcombine.high %v6949_v51, %v6953_v18  ;;  %v6837_v36 = vld [vmem:[#allocation10 + $0x1648] sm:$0xff] }
 0x54e   :  { %11632 = vmatpush2.bf16.msra.mxu1 %v15645_v21  ;;  %11668 = vmatprep.subr.bf16.mxu0 %v15790_v24  ;;  %v6945_v25 = vld [vmem:[#allocation10 + $0x19a8] sm:$0xff]  ;;  %v15757_v21 = vcombine.low %v6845_v43, %v6849_v23  ;;  %v15861_v24 = vcombine.low %v6949_v51, %v6953_v18 }
 0x54f   :  { %11633 = vmatprep.subr.bf16.mxu1 %v15638_v54  ;;  %v15750_v54 = vcombine.high %v6837_v36, %v6841_v2  ;;  %v15854_v14 = vcombine.high %v6941_v38, %v6945_v25  ;;  %v6829_v0 = vld [vmem:[#allocation10 + $0x1608] sm:$0xff]  ;;  %v15853_v31 = vcombine.low %v6941_v38, %v6945_v25 }
 0x550   :  { %v6833_v55 = vld [vmem:[#allocation10 + $0x1628] sm:$0xff] }
 0x551   :  { %11669 = vmatpush2.bf16.msra.mxu0 %v15789_v28  ;;  %v6933_v27 = vld [vmem:[#allocation10 + $0x1948] sm:$0xff]  ;;  %v15742_v39 = vcombine.high %v6829_v0, %v6833_v55  ;;  %v15741_v40 = vcombine.low %v6829_v0, %v6833_v55  ;;  %v6158_v55 = vld [vmem:[#allocation10 + $0x110] sm:$0xff] }
 0x552   :  { %11634 = vmatpush2.bf16.msra.mxu1 %v15637_v52  ;;  %11670 = vmatprep.subr.bf16.mxu0 %v15782_v9  ;;  %v6937_v28 = vld [vmem:[#allocation10 + $0x1968] sm:$0xff]  ;;  %v15749_v9 = vcombine.low %v6837_v36, %v6841_v2 }
 0x553   :  { %11635 = vmatprep.subr.bf16.mxu1 %v15630_v50  ;;  %v15846_v35 = vcombine.high %v6933_v27, %v6937_v28  ;;  %v6929_v19 = vld [vmem:[#allocation10 + $0x1928] sm:$0xff] }
 0x554   :  { %v6917_v43 = vld [vmem:[#allocation10 + $0x18c8] sm:$0xff] }
 0x555   :  { %11671 = vmatpush2.bf16.msra.mxu0 %v15781_v59  ;;  %v6182_v59 = vld [vmem:[#allocation10 + $0x1d0] sm:$0xff]  ;;  %v6921_v23 = vld [vmem:[#allocation10 + $0x18e8] sm:$0xff] }
 0x556   :  { %11636 = vmatpush2.bf16.msra.mxu1 %v15629_v33  ;;  %11672 = vmatprep.subr.bf16.mxu0 %v15774_v57  ;;  %v6186_v33 = vld [vmem:[#allocation10 + $0x1f0] sm:$0xff]  ;;  %v6909_v36 = vld [vmem:[#allocation10 + $0x1888] sm:$0xff] }
 0x557   :  { %11637 = vmatprep.subr.bf16.mxu1 %v15622_v22  ;;  %v6925_v22 = vld [vmem:[#allocation10 + $0x1908] sm:$0xff]  ;;  %v15096_v7 = vcombine.high %v6182_v59, %v6186_v33  ;;  %v15095_v51 = vcombine.low %v6182_v59, %v6186_v33  ;;  %v6150_v59 = vld [vmem:[#allocation10 + $0xd0] sm:$0xff] }
 0x558   :  { %v6913_v2 = vld [vmem:[#allocation10 + $0x18a8] sm:$0xff]  ;;  %v6154_v33 = vld [vmem:[#allocation10 + $0xf0] sm:$0xff] }
 0x559   :  { %11673 = vmatpush2.bf16.msra.mxu0 %v15773_v58  ;;  %v15822_v0 = vcombine.high %v6909_v36, %v6913_v2 }
 0x55a   :  { %11638 = vmatpush2.bf16.msra.mxu1 %v15621_v12  ;;  %11674 = vmatprep.subr.bf16.mxu0 %v15766_v34  ;;  %v15838_v12 = vcombine.high %v6925_v22, %v6929_v19  ;;  %v6174_v34 = vld [vmem:[#allocation10 + $0x190] sm:$0xff] }
 0x55b   :  { %11639 = vmatprep.subr.bf16.mxu1 %v15614_v3  ;;  %v6178_v3 = vld [vmem:[#allocation10 + $0x1b0] sm:$0xff] }
 0x55c   :  { %v15088_v18 = vcombine.high %v6174_v34, %v6178_v3  ;;  %v15087_v25 = vcombine.low %v6174_v34, %v6178_v3  ;;  %v6314_v34 = vld [vmem:[#allocation10 + $0x5f0] sm:$0xff]  ;;  %v15063_v3 = vcombine.low %v6150_v59, %v6154_v33 }
 0x55d   :  { %11675 = vmatpush2.bf16.msra.mxu0 %v15765_v16  ;;  %v15830_v16 = vcombine.high %v6917_v43, %v6921_v23 }
 0x55e   :  { %11640 = vmatpush2.bf16.msra.mxu1 %v15613_v8  ;;  %11676 = vmatprep.subr.bf16.mxu0 %v15758_v17  ;;  %v6166_v8 = vld [vmem:[#allocation10 + $0x150] sm:$0xff] }
 0x55f   :  { %11691 = vmatprep.subr.bf16.mxu1 %v15862_v5  ;;  %v6170_v17 = vld [vmem:[#allocation10 + $0x170] sm:$0xff] }
 0x561   :  { %11677 = vmatpush2.bf16.msra.mxu0 %v15757_v21  ;;  %v11397_v52 = vpop.f32.mrf.mxu1  ;;  %11642 = vmatmul.mubr.bf16.vlgmr.msra.gmra.mxu1 %v18279_v63 }
 0x562   :  { %v11398_v50 = vadd.f32 %v11397_v52, %v18345_v44  ;;  %11692 = vmatpush1.bf16.msra.mxu1 %v15861_v24  ;;  %11678 = vmatprep.subr.bf16.mxu0 %v15750_v54  ;;  %v15845_v44 = vcombine.low %v6933_v27, %v6937_v28  ;;  %v15829_v24 = vcombine.low %v6917_v43, %v6921_v23  ;;  %v6162_v27 = vld [vmem:[#allocation10 + $0x130] sm:$0xff]  ;;  %v6901_v52 = vld [vmem:[#allocation10 + $0x1848] sm:$0xff] }
 0x563   :  { %v11399_v60 = vpop.f32.mrf.mxu1  ;;  %11693 = vmatprep.subr.bf16.mxu1 %v15854_v14  ;;  %11723 = vmatprep.mubr.bf16.mxu1 %v17934_v1  ;;  %v15080_v54 = vcombine.high %v6166_v8, %v6170_v17 }
 0x564   :  { %v11400_v57 = vadd.f32 %v11399_v60, %v18348_v53  ;;  %v15837_v53 = vcombine.low %v6925_v22, %v6929_v19  ;;  %v15072_v60 = vcombine.high %v6158_v55, %v6162_v27  ;;  %v6897_v22 = vld [vmem:[#allocation10 + $0x1828] sm:$0xff]  ;;  %v15071_v19 = vcombine.low %v6158_v55, %v6162_v27 }
 0x565   :  { %11679 = vmatpush2.bf16.msra.mxu0 %v15749_v9  ;;  %v11401_v32 = vpop.f32.mrf.mxu1  ;;  %v6905_v9 = vld [vmem:[#allocation10 + $0x1868] sm:$0xff] }
 0x566   :  { %11694 = vmatpush1.bf16.msra.mxu1 %v15853_v31  ;;  %11680 = vmatprep.subr.bf16.mxu0 %v15742_v39  ;;  %v15821_v39 = vcombine.low %v6909_v36, %v6913_v2  ;;  %v15813_v32 = vcombine.low %v6901_v52, %v6905_v9 }
 0x567   :  { %v11402_v58 = vpop.f32.mrf.mxu1  ;;  %11695 = vmatprep.subr.bf16.mxu1 %v15846_v35  ;;  %v15814_v35 = vcombine.high %v6901_v52, %v6905_v9  ;;  %v6246_v52 = vld [vmem:[#allocation10 + $0x3d0] sm:$0xff] }
 0x568   :  { %v6146_v58 = vld [vmem:[#allocation10 + $0xb0] sm:$0xff] }
 0x569   :  { %11681 = vmatpush2.bf16.msra.mxu0 %v15741_v40  ;;  %v15064_v40 = vcombine.high %v6150_v59, %v6154_v33  ;;  %v6250_v9 = vld [vmem:[#allocation10 + $0x3f0] sm:$0xff] }
 0x56a   :  { %11696 = vmatpush1.bf16.msra.mxu1 %v15845_v44  ;;  %11732 = vmatprep.subr.bf16.mxu0 %v15096_v7  ;;  %v6142_v7 = vld [vmem:[#allocation10 + $0x90] sm:$0xff] }
 0x56b   :  { %11697 = vmatprep.subr.bf16.mxu1 %v15838_v12  ;;  %v6310_v12 = vld [vmem:[#allocation10 + $0x5d0] sm:$0xff]  ;;  %v15056_v23 = vcombine.high %v6142_v7, %v6146_v58 }
 0x56c   :  { %11683 = vmatmul.mubr.bf16.vlgmr.msra.gmra.mxu0 %v18302_v61  ;;  %v11438_v5 = vpop.f32.mrf.mxu0  ;;  %v6238_v33 = vld [vmem:[#allocation10 + $0x390] sm:$0xff] }
 0x56d   :  { %v18355_v38 = vadd.f32 %v11438_v5, %v11398_v50  ;;  %11733 = vmatpush1.bf16.msra.mxu0 %v15095_v51  ;;  %11764 = vmatprep.mubr.bf16.mxu0 %v18210_v11  ;;  %v15079_v50 = vcombine.low %v6166_v8, %v6170_v17  ;;  %v15224_v51 = vcombine.high %v6310_v12, %v6314_v34  ;;  %v6306_v8 = vld [vmem:[#allocation10 + $0x5b0] sm:$0xff] }
 0x56e   :  { %v11440_v21 = vpop.f32.mrf.mxu0  ;;  %11698 = vmatpush1.bf16.msra.mxu1 %v15837_v53  ;;  %11734 = vmatprep.subr.bf16.mxu0 %v15088_v18  ;;  %v6134_v53 = vld [vmem:[#allocation10 + $0x50] sm:$0xff]  ;;  %v15055_v17 = vcombine.low %v6142_v7, %v6146_v58  ;;  %v15223_v5 = vcombine.low %v6310_v12, %v6314_v34 }
 0x56f   :  { %v18358_v14 = vadd.f32 %v11440_v21, %v11400_v57  ;;  %11699 = vmatprep.subr.bf16.mxu1 %v15830_v16  ;;  %v6893_v57 = vld [vmem:[#allocation10 + $0x1808] sm:$0xff]  ;;  %v6138_v18 = vld [vmem:[#allocation10 + $0x70] sm:$0xff] }
 0x570   :  { %v11442_v28 = vpop.f32.mrf.mxu0  ;;  %v15806_v44 = vcombine.high %v6893_v57, %v6897_v22  ;;  %v15805_v43 = vcombine.low %v6893_v57, %v6897_v22  ;;  %v6302_v16 = vld [vmem:[#allocation10 + $0x590] sm:$0xff]  ;;  %v15048_v36 = vcombine.high %v6134_v53, %v6138_v18 }
 0x571   :  { %11735 = vmatpush1.bf16.msra.mxu0 %v15087_v25  ;;  %v15216_v2 = vcombine.high %v6302_v16, %v6306_v8  ;;  %v6126_v25 = vld [vmem:[#allocation10 + $0x10] sm:$0xff]  ;;  %v15215_v55 = vcombine.low %v6302_v16, %v6306_v8 }
 0x572   :  { %v11443_v31 = vpop.f32.mrf.mxu0  ;;  %11700 = vmatpush1.bf16.msra.mxu1 %v15829_v24  ;;  %11736 = vmatprep.subr.bf16.mxu0 %v15080_v54  ;;  %v6130_v21 = vld [vmem:[#allocation10 + $0x30] sm:$0xff] }
 0x573   :  { %11701 = vmatprep.subr.bf16.mxu1 %v15822_v0  ;;  %v6294_v24 = vld [vmem:[#allocation10 + $0x550] sm:$0xff]  ;;  %v15047_v0 = vcombine.low %v6134_v53, %v6138_v18  ;;  %v15040_v27 = vcombine.high %v6126_v25, %v6130_v21 }
 0x574   :  { %v6298_v54 = vld [vmem:[#allocation10 + $0x570] sm:$0xff] }
 0x575   :  { %11737 = vmatpush1.bf16.msra.mxu0 %v15079_v50  ;;  %v15208_v28 = vcombine.high %v6294_v24, %v6298_v54  ;;  %v6286_v50 = vld [vmem:[#allocation10 + $0x510] sm:$0xff] }
 0x576   :  { %11702 = vmatpush1.bf16.msra.mxu1 %v15821_v39  ;;  %11738 = vmatprep.subr.bf16.mxu0 %v15072_v60  ;;  %v6290_v31 = vld [vmem:[#allocation10 + $0x530] sm:$0xff]  ;;  %v15039_v39 = vcombine.low %v6126_v25, %v6130_v21  ;;  %v15207_v60 = vcombine.low %v6294_v24, %v6298_v54 }
 0x577   :  { %11703 = vmatprep.subr.bf16.mxu1 %v15814_v35  ;;  %v15160_v35 = vcombine.high %v6246_v52, %v6250_v9  ;;  %v15200_v59 = vcombine.high %v6286_v50, %v6290_v31  ;;  %v6242_v57 = vld [vmem:[#allocation10 + $0x3b0] sm:$0xff] }
 0x578   :  { %v6278_v22 = vld [vmem:[#allocation10 + $0x4d0] sm:$0xff] }
 0x579   :  { %11739 = vmatpush1.bf16.msra.mxu0 %v15071_v19  ;;  %v6282_v19 = vld [vmem:[#allocation10 + $0x4f0] sm:$0xff] }
 0x57a   :  { %11704 = vmatpush1.bf16.msra.mxu1 %v15813_v32  ;;  %11740 = vmatprep.subr.bf16.mxu0 %v15064_v40  ;;  %v15159_v32 = vcombine.low %v6246_v52, %v6250_v9  ;;  %v15199_v40 = vcombine.low %v6286_v50, %v6290_v31  ;;  %v15192_v7 = vcombine.high %v6278_v22, %v6282_v19  ;;  %v6230_v58 = vld [vmem:[#allocation10 + $0x350] sm:$0xff] }
 0x57b   :  { %11705 = vmatprep.subr.bf16.mxu1 %v15806_v44  ;;  %v15152_v44 = vcombine.high %v6238_v33, %v6242_v57  ;;  %v6234_v12 = vld [vmem:[#allocation10 + $0x370] sm:$0xff] }
 0x57c   :  { %v6270_v34 = vld [vmem:[#allocation10 + $0x490] sm:$0xff] }
 0x57d   :  { %11741 = vmatpush1.bf16.msra.mxu0 %v15063_v3  ;;  %v6274_v3 = vld [vmem:[#allocation10 + $0x4b0] sm:$0xff] }
 0x57e   :  { %11706 = vmatpush1.bf16.msra.mxu1 %v15805_v43  ;;  %11742 = vmatprep.subr.bf16.mxu0 %v15056_v23  ;;  %v15151_v43 = vcombine.low %v6238_v33, %v6242_v57  ;;  %v15191_v23 = vcombine.low %v6278_v22, %v6282_v19  ;;  %v15184_v53 = vcombine.high %v6270_v34, %v6274_v3  ;;  %v6222_v18 = vld [vmem:[#allocation10 + $0x310] sm:$0xff] }
 0x57f   :  { %11773 = vmatprep.subr.bf16.mxu1 %v15224_v51  ;;  %v15144_v51 = vcombine.high %v6230_v58, %v6234_v12  ;;  %v6226_v16 = vld [vmem:[#allocation10 + $0x330] sm:$0xff] }
 0x580   :  { %v6262_v8 = vld [vmem:[#allocation10 + $0x450] sm:$0xff] }
 0x581   :  { %11743 = vmatpush1.bf16.msra.mxu0 %v15055_v17  ;;  %11724 = vmatmul.mubr.bf16.vlgmr.msra.gmra.mxu1 %v18308_v20  ;;  %v6266_v17 = vld [vmem:[#allocation10 + $0x470] sm:$0xff] }
 0x582   :  { %11774 = vmatpush1.bf16.msra.mxu1 %v15223_v5  ;;  %11805 = vmatprep.mubr.bf16.mxu1 %v18220_v62  ;;  %v15143_v5 = vcombine.low %v6230_v58, %v6234_v12  ;;  %v15176_v25 = vcombine.high %v6262_v8, %v6266_v17  ;;  %v6214_v21 = vld [vmem:[#allocation10 + $0x2d0] sm:$0xff] }
 0x583   :  { %11744 = vmatprep.subr.bf16.mxu0 %v15048_v36  ;;  %11775 = vmatprep.subr.bf16.mxu1 %v15216_v2  ;;  %v15183_v36 = vcombine.low %v6270_v34, %v6274_v3  ;;  %v15136_v2 = vcombine.high %v6222_v18, %v6226_v16  ;;  %v6218_v24 = vld [vmem:[#allocation10 + $0x2f0] sm:$0xff] }
 0x584   :  { %v6254_v54 = vld [vmem:[#allocation10 + $0x410] sm:$0xff] }
 0x585   :  { %11745 = vmatpush1.bf16.msra.mxu0 %v15047_v0  ;;  %v6258_v0 = vld [vmem:[#allocation10 + $0x430] sm:$0xff] }
 0x586   :  { %11776 = vmatpush1.bf16.msra.mxu1 %v15215_v55  ;;  %11746 = vmatprep.subr.bf16.mxu0 %v15040_v27  ;;  %v15135_v55 = vcombine.low %v6222_v18, %v6226_v16  ;;  %v15175_v27 = vcombine.low %v6262_v8, %v6266_v17  ;;  %v15168_v52 = vcombine.high %v6254_v54, %v6258_v0  ;;  %v6206_v9 = vld [vmem:[#allocation10 + $0x290] sm:$0xff] }
 0x587   :  { %11777 = vmatprep.subr.bf16.mxu1 %v15208_v28  ;;  %v15128_v28 = vcombine.high %v6214_v21, %v6218_v24  ;;  %v6210_v50 = vld [vmem:[#allocation10 + $0x2b0] sm:$0xff] }
 0x588   :  { %v6374_v31 = vld [vmem:[#allocation10 + $0x7d0] sm:$0xff] }
 0x589   :  { %11747 = vmatpush1.bf16.msra.mxu0 %v15039_v39  ;;  %v6378_v39 = vld [vmem:[#allocation10 + $0x7f0] sm:$0xff] }
 0x58a   :  { %11778 = vmatpush1.bf16.msra.mxu1 %v15207_v60  ;;  %11748 = vmatprep.subr.bf16.mxu0 %v15160_v35  ;;  %v15127_v60 = vcombine.low %v6214_v21, %v6218_v24  ;;  %v15167_v35 = vcombine.low %v6254_v54, %v6258_v0  ;;  %v15288_v33 = vcombine.high %v6374_v31, %v6378_v39  ;;  %v6198_v57 = vld [vmem:[#allocation10 + $0x250] sm:$0xff]  ;;  %v17724_v0 = vld [vmem:[#allocation11] sm:$0xff] }
 0x58b   :  { %11779 = vmatprep.subr.bf16.mxu1 %v15200_v59  ;;  %v15120_v59 = vcombine.high %v6206_v9, %v6210_v50  ;;  %v6202_v22 = vld [vmem:[#allocation10 + $0x270] sm:$0xff] }
 0x58c   :  { %v6366_v19 = vld [vmem:[#allocation10 + $0x790] sm:$0xff] }
 0x58d   :  { %11749 = vmatpush2.bf16.msra.mxu0 %v15159_v32  ;;  %v6370_v32 = vld [vmem:[#allocation10 + $0x7b0] sm:$0xff] }
 0x58e   :  { %11780 = vmatpush1.bf16.msra.mxu1 %v15199_v40  ;;  %11750 = vmatprep.subr.bf16.mxu0 %v15152_v44  ;;  %v15119_v40 = vcombine.low %v6206_v9, %v6210_v50  ;;  %v15287_v44 = vcombine.low %v6374_v31, %v6378_v39  ;;  %v15280_v58 = vcombine.high %v6366_v19, %v6370_v32  ;;  %v6190_v12 = vld [vmem:[#allocation10 + $0x210] sm:$0xff] }
 0x58f   :  { %11781 = vmatprep.subr.bf16.mxu1 %v15192_v7  ;;  %v15112_v7 = vcombine.high %v6198_v57, %v6202_v22  ;;  %v6194_v34 = vld [vmem:[#allocation10 + $0x230] sm:$0xff]  ;;  %v6973_v39 = vrot.slane %v17724_v0, %v18078_v10 }
 0x590   :  { %v6358_v3 = vld [vmem:[#allocation10 + $0x750] sm:$0xff]  ;;  %v15104_v18 = vcombine.high %v6190_v12, %v6194_v34  ;;  %v15103_v21 = vcombine.low %v6190_v12, %v6194_v34 }
 0x591   :  { %11751 = vmatpush2.bf16.msra.mxu0 %v15151_v43  ;;  %v6362_v43 = vld [vmem:[#allocation10 + $0x770] sm:$0xff] }
 0x592   :  { %11782 = vmatpush1.bf16.msra.mxu1 %v15191_v23  ;;  %11752 = vmatprep.subr.bf16.mxu0 %v15144_v51  ;;  %v15111_v51 = vcombine.low %v6198_v57, %v6202_v22  ;;  %v15272_v8 = vcombine.high %v6358_v3, %v6362_v43  ;;  %v6438_v17 = vld [vmem:[#allocation10 + $0x9d0] sm:$0xff]  ;;  %v15271_v24 = vcombine.low %v6358_v3, %v6362_v43 }
 0x593   :  { %11783 = vmatprep.subr.bf16.mxu1 %v15184_v53  ;;  %v15279_v53 = vcombine.low %v6366_v19, %v6370_v32  ;;  %v6434_v9 = vld [vmem:[#allocation10 + $0x9b0] sm:$0xff] }
 0x594   :  { %v6342_v50 = vld [vmem:[#allocation10 + $0x6d0] sm:$0xff] }
 0x595   :  { %11753 = vmatpush2.bf16.msra.mxu0 %v15143_v5  ;;  %v6442_v5 = vld [vmem:[#allocation10 + $0x9f0] sm:$0xff] }
 0x596   :  { %11784 = vmatpush1.bf16.msra.mxu1 %v15183_v36  ;;  %11754 = vmatprep.subr.bf16.mxu0 %v15136_v2  ;;  %v6350_v36 = vld [vmem:[#allocation10 + $0x710] sm:$0xff]  ;;  %v15352_v54 = vcombine.high %v6438_v17, %v6442_v5 }
 0x597   :  { %11785 = vmatprep.subr.bf16.mxu1 %v15176_v25  ;;  %v6354_v2 = vld [vmem:[#allocation10 + $0x730] sm:$0xff] }
 0x598   :  { %v6346_v31 = vld [vmem:[#allocation10 + $0x6f0] sm:$0xff] }
 0x599   :  { %11755 = vmatpush2.bf16.msra.mxu0 %v15135_v55  ;;  %v6969_v55 = vrot.slane %v17724_v0, %v18075_v47  ;;  %v15256_v57 = vcombine.high %v6342_v50, %v6346_v31  ;;  %v6422_v22 = vld [vmem:[#allocation10 + $0x950] sm:$0xff]  ;;  %v15255_v3 = vcombine.low %v6342_v50, %v6346_v31 }
 0x59a   :  { %11786 = vmatpush1.bf16.msra.mxu1 %v15175_v27  ;;  %11756 = vmatprep.subr.bf16.mxu0 %v15128_v28  ;;  %v15264_v28 = vcombine.high %v6350_v36, %v6354_v2  ;;  %v6426_v19 = vld [vmem:[#allocation10 + $0x970] sm:$0xff] }
 0x59b   :  { %11787 = vmatprep.subr.bf16.mxu1 %v15168_v52  ;;  %v6430_v52 = vld [vmem:[#allocation10 + $0x990] sm:$0xff]  ;;  %v15336_v43 = vcombine.high %v6422_v22, %v6426_v19 }
 0x59c   :  { %v15343_v12 = vcombine.low %v6430_v52, %v6434_v9  ;;  %v6318_v0 = vld [vmem:[#allocation10 + $0x610] sm:$0xff] }
 0x59d   :  { %11757 = vmatpush2.bf16.msra.mxu0 %v15127_v60  ;;  %v15351_v60 = vcombine.low %v6438_v17, %v6442_v5  ;;  %v6326_v17 = vld [vmem:[#allocation10 + $0x650] sm:$0xff]  ;;  %v15335_v5 = vcombine.low %v6422_v22, %v6426_v19 }
 0x59e   :  { %11788 = vmatpush1.bf16.msra.mxu1 %v15167_v35  ;;  %11758 = vmatprep.subr.bf16.mxu0 %v15120_v59  ;;  %v15263_v35 = vcombine.low %v6350_v36, %v6354_v2  ;;  %v15344_v59 = vcombine.high %v6430_v52, %v6434_v9  ;;  %v6398_v50 = vld [vmem:[#allocation10 + $0x890] sm:$0xff] }
 0x59f   :  { %11789 = vmatprep.subr.bf16.mxu1 %v15288_v33  ;;  %v6402_v31 = vld [vmem:[#allocation10 + $0x8b0] sm:$0xff] }
 0x5a0   :  { %v6390_v22 = vld [vmem:[#allocation10 + $0x850] sm:$0xff] }
 0x5a1   :  { %11759 = vmatpush2.bf16.msra.mxu0 %v15119_v40  ;;  %v11479_v23 = vpop.f32.mrf.mxu1  ;;  %v6334_v40 = vld [vmem:[#allocation10 + $0x690] sm:$0xff] }
 0x5a2   :  { %11790 = vmatpush2.bf16.msra.mxu1 %v15287_v44  ;;  %11760 = vmatprep.subr.bf16.mxu0 %v15112_v7  ;;  %v11480_v33 = vadd.f32 %v11479_v23, %v6969_v55  ;;  %v6338_v44 = vld [vmem:[#allocation10 + $0x6b0] sm:$0xff] }
 0x5a3   :  { %v11481_v16 = vpop.f32.mrf.mxu1  ;;  %11791 = vmatprep.subr.bf16.mxu1 %v15280_v58  ;;  %v15247_v2 = vcombine.low %v6334_v40, %v6338_v44  ;;  %v6322_v55 = vld [vmem:[#allocation10 + $0x630] sm:$0xff] }
 0x5a4   :  { %v11482_v7 = vadd.f32 %v11481_v16, %v6973_v39  ;;  %v6330_v16 = vld [vmem:[#allocation10 + $0x670] sm:$0xff]  ;;  %v15232_v9 = vcombine.high %v6318_v0, %v6322_v55 }
 0x5a5   :  { %11761 = vmatpush2.bf16.msra.mxu0 %v15111_v51  ;;  %v11483_v25 = vpop.f32.mrf.mxu1  ;;  %v15248_v51 = vcombine.high %v6334_v40, %v6338_v44  ;;  %v6566_v39 = vld [vmem:[#allocation10 + $0xdd0] sm:$0xff]  ;;  %v15311_v44 = vcombine.low %v6398_v50, %v6402_v31 }
 0x5a6   :  { %11792 = vmatpush2.bf16.msra.mxu1 %v15279_v53  ;;  %11762 = vmatprep.subr.bf16.mxu0 %v15104_v18  ;;  %v6414_v53 = vld [vmem:[#allocation10 + $0x910] sm:$0xff] }
 0x5a7   :  { %v11484_v27 = vpop.f32.mrf.mxu1  ;;  %11793 = vmatprep.subr.bf16.mxu1 %v15272_v8  ;;  %v6418_v18 = vld [vmem:[#allocation10 + $0x930] sm:$0xff] }
 0x5a8   :  { %v15328_v25 = vcombine.high %v6414_v53, %v6418_v18  ;;  %v15327_v27 = vcombine.low %v6414_v53, %v6418_v18  ;;  %v6394_v19 = vld [vmem:[#allocation10 + $0x870] sm:$0xff] }
 0x5a9   :  { %11763 = vmatpush2.bf16.msra.mxu0 %v15103_v21  ;;  %v15240_v21 = vcombine.high %v6326_v17, %v6330_v16  ;;  %v6562_v40 = vld [vmem:[#allocation10 + $0xdb0] sm:$0xff]  ;;  %v15303_v18 = vcombine.low %v6390_v22, %v6394_v19 }
 0x5aa   :  { %11794 = vmatpush2.bf16.msra.mxu1 %v15271_v24  ;;  %11814 = vmatprep.subr.bf16.mxu0 %v15352_v54  ;;  %v6406_v24 = vld [vmem:[#allocation10 + $0x8d0] sm:$0xff] }
 0x5ab   :  { %11795 = vmatprep.subr.bf16.mxu1 %v15264_v28  ;;  %v6410_v54 = vld [vmem:[#allocation10 + $0x8f0] sm:$0xff]  ;;  %v15239_v28 = vcombine.low %v6326_v17, %v6330_v16 }
 0x5ac   :  { %v11520_v32 = vpop.f32.mrf.mxu0  ;;  %11765 = vmatmul.mubr.bf16.vlgmr.msra.gmra.mxu0 %v18232_v6  ;;  %v15320_v52 = vcombine.high %v6406_v24, %v6410_v54  ;;  %v6554_v53 = vld [vmem:[#allocation10 + $0xd70] sm:$0xff] }
 0x5ad   :  { %v18365_v58 = vadd.f32 %v11520_v32, %v11480_v33  ;;  %11815 = vmatpush1.bf16.msra.mxu0 %v15351_v60  ;;  %11846 = vmatprep.mubr.bf16.mxu0 %v18234_v15  ;;  %v6570_v60 = vld [vmem:[#allocation10 + $0xdf0] sm:$0xff]  ;;  %v15312_v33 = vcombine.high %v6398_v50, %v6402_v31 }
 0x5ae   :  { %v11522_v34 = vpop.f32.mrf.mxu0  ;;  %11796 = vmatpush2.bf16.msra.mxu1 %v15263_v35  ;;  %11816 = vmatprep.subr.bf16.mxu0 %v15344_v59  ;;  %v15319_v35 = vcombine.low %v6406_v24, %v6410_v54  ;;  %v15231_v59 = vcombine.low %v6318_v0, %v6322_v55  ;;  %v6558_v32 = vld [vmem:[#allocation10 + $0xd90] sm:$0xff] }
 0x5af   :  { %v18368_v23 = vadd.f32 %v11522_v34, %v11482_v7  ;;  %11797 = vmatprep.subr.bf16.mxu1 %v15256_v57  ;;  %v15480_v57 = vcombine.high %v6566_v39, %v6570_v60  ;;  %v15479_v7 = vcombine.low %v6566_v39, %v6570_v60  ;;  %v15472_v34 = vcombine.high %v6558_v32, %v6562_v40  ;;  %v6494_v55 = vld [vmem:[#allocation10 + $0xb90] sm:$0xff] }
 0x5b0   :  { %v11524_v8 = vpop.f32.mrf.mxu0  ;;  %v6486_v60 = vld [vmem:[#allocation10 + $0xb50] sm:$0xff] }
 0x5b1   :  { %11817 = vmatpush1.bf16.msra.mxu0 %v15343_v12  ;;  %v15304_v12 = vcombine.high %v6390_v22, %v6394_v19  ;;  %v15471_v8 = vcombine.low %v6558_v32, %v6562_v40  ;;  %v6478_v40 = vld [vmem:[#allocation10 + $0xb10] sm:$0xff] }
 0x5b2   :  { %v11525_v36 = vpop.f32.mrf.mxu0  ;;  %11798 = vmatpush2.bf16.msra.mxu1 %v15255_v3  ;;  %11818 = vmatprep.subr.bf16.mxu0 %v15336_v43  ;;  %v6382_v3 = vld [vmem:[#allocation10 + $0x810] sm:$0xff] }
 0x5b3   :  { %11799 = vmatprep.subr.bf16.mxu1 %v15248_v51  ;;  %v6386_v43 = vld [vmem:[#allocation10 + $0x830] sm:$0xff] }
 0x5b4   :  { %v6550_v51 = vld [vmem:[#allocation10 + $0xd50] sm:$0xff]  ;;  %v15296_v17 = vcombine.high %v6382_v3, %v6386_v43 }
 0x5b5   :  { %11819 = vmatpush1.bf16.msra.mxu0 %v15335_v5  ;;  %v15464_v16 = vcombine.high %v6550_v51, %v6554_v53  ;;  %v6502_v5 = vld [vmem:[#allocation10 + $0xbd0] sm:$0xff]  ;;  %v15463_v24 = vcombine.low %v6550_v51, %v6554_v53 }
 0x5b6   :  { %11800 = vmatpush2.bf16.msra.mxu1 %v15247_v2  ;;  %11820 = vmatprep.subr.bf16.mxu0 %v15328_v25  ;;  %v6506_v36 = vld [vmem:[#allocation10 + $0xbf0] sm:$0xff] }
 0x5b7   :  { %11801 = vmatprep.subr.bf16.mxu1 %v15240_v21  ;;  %v6542_v2 = vld [vmem:[#allocation10 + $0xd10] sm:$0xff]  ;;  %v15295_v21 = vcombine.low %v6382_v3, %v6386_v43  ;;  %v15416_v54 = vcombine.high %v6502_v5, %v6506_v36 }
 0x5b8   :  { %v6546_v25 = vld [vmem:[#allocation10 + $0xd30] sm:$0xff] }
 0x5b9   :  { %11821 = vmatpush1.bf16.msra.mxu0 %v15327_v27  ;;  %v15456_v0 = vcombine.high %v6542_v2, %v6546_v25  ;;  %v6498_v27 = vld [vmem:[#allocation10 + $0xbb0] sm:$0xff]  ;;  %v15455_v50 = vcombine.low %v6542_v2, %v6546_v25 }
 0x5ba   :  { %11802 = vmatpush2.bf16.msra.mxu1 %v15239_v28  ;;  %11822 = vmatprep.subr.bf16.mxu0 %v15320_v52  ;;  %v6534_v28 = vld [vmem:[#allocation10 + $0xcd0] sm:$0xff]  ;;  %v15408_v31 = vcombine.high %v6494_v55, %v6498_v27 }
 0x5bb   :  { %11803 = vmatprep.subr.bf16.mxu1 %v15232_v9  ;;  %v6538_v52 = vld [vmem:[#allocation10 + $0xcf0] sm:$0xff]  ;;  %v15415_v9 = vcombine.low %v6502_v5, %v6506_v36 }
 0x5bc   :  { %v15448_v39 = vcombine.high %v6534_v28, %v6538_v52  ;;  %v15447_v22 = vcombine.low %v6534_v28, %v6538_v52  ;;  %v6470_v53 = vld [vmem:[#allocation10 + $0xad0] sm:$0xff] }
 0x5bd   :  { %11823 = vmatpush1.bf16.msra.mxu0 %v15319_v35  ;;  %v6490_v35 = vld [vmem:[#allocation10 + $0xb70] sm:$0xff] }
 0x5be   :  { %11804 = vmatpush2.bf16.msra.mxu1 %v15231_v59  ;;  %11824 = vmatprep.subr.bf16.mxu0 %v15312_v33  ;;  %v6526_v59 = vld [vmem:[#allocation10 + $0xc90] sm:$0xff]  ;;  %v15400_v19 = vcombine.high %v6486_v60, %v6490_v35 }
 0x5bf   :  { %11855 = vmatprep.subr.bf16.mxu1 %v15480_v57  ;;  %v6530_v33 = vld [vmem:[#allocation10 + $0xcb0] sm:$0xff]  ;;  %v15407_v57 = vcombine.low %v6494_v55, %v6498_v27 }
 0x5c0   :  { %v15440_v32 = vcombine.high %v6526_v59, %v6530_v33  ;;  %v15439_v3 = vcombine.low %v6526_v59, %v6530_v33  ;;  %v6462_v25 = vld [vmem:[#allocation10 + $0xa90] sm:$0xff] }
 0x5c1   :  { %11825 = vmatpush1.bf16.msra.mxu0 %v15311_v44  ;;  %11806 = vmatmul.mubr.bf16.vlgmr.msra.gmra.mxu1 %v18240_v42  ;;  %v6482_v44 = vld [vmem:[#allocation10 + $0xb30] sm:$0xff] }
 0x5c2   :  { %11856 = vmatpush1.bf16.msra.mxu1 %v15479_v7  ;;  %11887 = vmatprep.mubr.bf16.mxu1 %v18242_v37  ;;  %v6518_v7 = vld [vmem:[#allocation10 + $0xc50] sm:$0xff]  ;;  %v15392_v43 = vcombine.high %v6478_v40, %v6482_v44 }
 0x5c3   :  { %11826 = vmatprep.subr.bf16.mxu0 %v15304_v12  ;;  %11857 = vmatprep.subr.bf16.mxu1 %v15472_v34  ;;  %v6522_v12 = vld [vmem:[#allocation10 + $0xc70] sm:$0xff]  ;;  %v15399_v34 = vcombine.low %v6486_v60, %v6490_v35 }
 0x5c4   :  { %v15432_v51 = vcombine.high %v6518_v7, %v6522_v12  ;;  %v15431_v5 = vcombine.low %v6518_v7, %v6522_v12  ;;  %v6454_v52 = vld [vmem:[#allocation10 + $0xa50] sm:$0xff] }
 0x5c5   :  { %11827 = vmatpush1.bf16.msra.mxu0 %v15303_v18  ;;  %v6474_v18 = vld [vmem:[#allocation10 + $0xaf0] sm:$0xff] }
 0x5c6   :  { %11858 = vmatpush1.bf16.msra.mxu1 %v15471_v8  ;;  %11828 = vmatprep.subr.bf16.mxu0 %v15296_v17  ;;  %v6510_v8 = vld [vmem:[#allocation10 + $0xc10] sm:$0xff]  ;;  %v15384_v36 = vcombine.high %v6470_v53, %v6474_v18 }
 0x5c7   :  { %11859 = vmatprep.subr.bf16.mxu1 %v15464_v16  ;;  %v6514_v17 = vld [vmem:[#allocation10 + $0xc30] sm:$0xff]  ;;  %v15391_v16 = vcombine.low %v6478_v40, %v6482_v44 }
 0x5c8   :  { %v15424_v2 = vcombine.high %v6510_v8, %v6514_v17  ;;  %v15423_v55 = vcombine.low %v6510_v8, %v6514_v17  ;;  %v6446_v33 = vld [vmem:[#allocation10 + $0xa10] sm:$0xff] }
 0x5c9   :  { %11829 = vmatpush1.bf16.msra.mxu0 %v15295_v21  ;;  %v6466_v21 = vld [vmem:[#allocation10 + $0xab0] sm:$0xff] }
 0x5ca   :  { %11860 = vmatpush1.bf16.msra.mxu1 %v15463_v24  ;;  %11830 = vmatprep.subr.bf16.mxu0 %v15416_v54  ;;  %v6630_v24 = vld [vmem:[#allocation10 + $0xfd0] sm:$0xff]  ;;  %v15376_v27 = vcombine.high %v6462_v25, %v6466_v21 }
 0x5cb   :  { %11861 = vmatprep.subr.bf16.mxu1 %v15456_v0  ;;  %v6634_v54 = vld [vmem:[#allocation10 + $0xff0] sm:$0xff]  ;;  %v15383_v0 = vcombine.low %v6470_v53, %v6474_v18 }
 0x5cc   :  { %v15544_v28 = vcombine.high %v6630_v24, %v6634_v54  ;;  %v15543_v60 = vcombine.low %v6630_v24, %v6634_v54  ;;  %v6606_v18 = vld [vmem:[#allocation10 + $0xf10] sm:$0xff] }
 0x5cd   :  { %11831 = vmatpush2.bf16.msra.mxu0 %v15415_v9  ;;  %v6458_v9 = vld [vmem:[#allocation10 + $0xa70] sm:$0xff] }
 0x5ce   :  { %11862 = vmatpush1.bf16.msra.mxu1 %v15455_v50  ;;  %11832 = vmatprep.subr.bf16.mxu0 %v15408_v31  ;;  %v6622_v50 = vld [vmem:[#allocation10 + $0xf90] sm:$0xff]  ;;  %v15368_v35 = vcombine.high %v6454_v52, %v6458_v9  ;;  %v15367_v40 = vcombine.low %v6454_v52, %v6458_v9 }
 0x5cf   :  { %11863 = vmatprep.subr.bf16.mxu1 %v15448_v39  ;;  %v6626_v31 = vld [vmem:[#allocation10 + $0xfb0] sm:$0xff]  ;;  %v15375_v39 = vcombine.low %v6462_v25, %v6466_v21 }
 0x5d0   :  { %v15536_v59 = vcombine.high %v6622_v50, %v6626_v31  ;;  %v15535_v7 = vcombine.low %v6622_v50, %v6626_v31  ;;  %v6610_v8 = vld [vmem:[#allocation10 + $0xf30] sm:$0xff] }
 0x5d1   :  { %11833 = vmatpush2.bf16.msra.mxu0 %v15407_v57  ;;  %v6450_v57 = vld [vmem:[#allocation10 + $0xa30] sm:$0xff] }
 0x5d2   :  { %11864 = vmatpush1.bf16.msra.mxu1 %v15447_v22  ;;  %11834 = vmatprep.subr.bf16.mxu0 %v15400_v19  ;;  %v6614_v22 = vld [vmem:[#allocation10 + $0xf50] sm:$0xff]  ;;  %v15360_v12 = vcombine.high %v6446_v33, %v6450_v57 }
 0x5d3   :  { %11865 = vmatprep.subr.bf16.mxu1 %v15440_v32  ;;  %v6618_v19 = vld [vmem:[#allocation10 + $0xf70] sm:$0xff] }
 0x5d4   :  { %v6686_v25 = vld [vmem:[#allocation10 + $0x1190] sm:$0xff] }
 0x5d5   :  { %11835 = vmatpush2.bf16.msra.mxu0 %v15399_v34  ;;  %v6690_v21 = vld [vmem:[#allocation10 + $0x11b0] sm:$0xff] }
 0x5d6   :  { %11866 = vmatpush1.bf16.msra.mxu1 %v15439_v3  ;;  %11836 = vmatprep.subr.bf16.mxu0 %v15392_v43  ;;  %v15528_v3 = vcombine.high %v6614_v22, %v6618_v19  ;;  %v6694_v43 = vld [vmem:[#allocation10 + $0x11d0] sm:$0xff] }
 0x5d7   :  { %11867 = vmatprep.subr.bf16.mxu1 %v15432_v51  ;;  %v6698_v51 = vld [vmem:[#allocation10 + $0x11f0] sm:$0xff] }
 0x5d8   :  { %v6598_v24 = vld [vmem:[#allocation10 + $0xed0] sm:$0xff] }
 0x5d9   :  { %11837 = vmatpush2.bf16.msra.mxu0 %v15391_v16  ;;  %v15359_v16 = vcombine.low %v6446_v33, %v6450_v57  ;;  %v6602_v54 = vld [vmem:[#allocation10 + $0xef0] sm:$0xff] }
 0x5da   :  { %11868 = vmatpush1.bf16.msra.mxu1 %v15431_v5  ;;  %11838 = vmatprep.subr.bf16.mxu0 %v15384_v36  ;;  %v15527_v5 = vcombine.low %v6614_v22, %v6618_v19  ;;  %v6682_v52 = vld [vmem:[#allocation10 + $0x1170] sm:$0xff] }
 0x5db   :  { %11869 = vmatprep.subr.bf16.mxu1 %v15424_v2  ;;  %v15520_v2 = vcombine.high %v6606_v18, %v6610_v8  ;;  %v6590_v50 = vld [vmem:[#allocation10 + $0xe90] sm:$0xff] }
 0x5dc   :  { %v6594_v31 = vld [vmem:[#allocation10 + $0xeb0] sm:$0xff] }
 0x5dd   :  { %11839 = vmatpush2.bf16.msra.mxu0 %v15383_v0  ;;  %v15607_v0 = vcombine.low %v6694_v43, %v6698_v51  ;;  %v15504_v22 = vcombine.high %v6590_v50, %v6594_v31  ;;  %v6670_v19 = vld [vmem:[#allocation10 + $0x1110] sm:$0xff] }
 0x5de   :  { %11870 = vmatpush1.bf16.msra.mxu1 %v15423_v55  ;;  %11840 = vmatprep.subr.bf16.mxu0 %v15376_v27  ;;  %v15600_v55 = vcombine.high %v6686_v25, %v6690_v21  ;;  %v15512_v27 = vcombine.high %v6598_v24, %v6602_v54 }
 0x5df   :  { %11871 = vmatprep.subr.bf16.mxu1 %v15544_v28  ;;  %v6678_v28 = vld [vmem:[#allocation10 + $0x1150] sm:$0xff] }
 0x5e0   :  { %v15592_v33 = vcombine.high %v6678_v28, %v6682_v52 }
 0x5e1   :  { %11841 = vmatpush2.bf16.msra.mxu0 %v15375_v39  ;;  %v11561_v32 = vpop.f32.mrf.mxu1 }
 0x5e2   :  { %v11562_v44 = vadd.f32 %v11561_v32, %v18365_v58  ;;  %11872 = vmatpush2.bf16.msra.mxu1 %v15543_v60  ;;  %11842 = vmatprep.subr.bf16.mxu0 %v15368_v35  ;;  %v15608_v58 = vcombine.high %v6694_v43, %v6698_v51  ;;  %v15599_v60 = vcombine.low %v6686_v25, %v6690_v21  ;;  %v6674_v32 = vld [vmem:[#allocation10 + $0x1130] sm:$0xff] }
 0x5e3   :  { %v11563_v34 = vpop.f32.mrf.mxu1  ;;  %11873 = vmatprep.subr.bf16.mxu1 %v15536_v59  ;;  %v15511_v59 = vcombine.low %v6598_v24, %v6602_v54  ;;  %v15584_v43 = vcombine.high %v6670_v19, %v6674_v32  ;;  %v6658_v25 = vld [vmem:[#allocation10 + $0x10b0] sm:$0xff] }
 0x5e4   :  { %v11564_v53 = vadd.f32 %v11563_v34, %v18368_v23  ;;  %v15519_v23 = vcombine.low %v6606_v18, %v6610_v8  ;;  %v6662_v18 = vld [vmem:[#allocation10 + $0x10d0] sm:$0xff] }
 0x5e5   :  { %11843 = vmatpush2.bf16.msra.mxu0 %v15367_v40  ;;  %v11565_v17 = vpop.f32.mrf.mxu1  ;;  %v6666_v8 = vld [vmem:[#allocation10 + $0x10f0] sm:$0xff] }
 0x5e6   :  { %11874 = vmatpush2.bf16.msra.mxu1 %v15535_v7  ;;  %11844 = vmatprep.subr.bf16.mxu0 %v15360_v12  ;;  %v6582_v7 = vld [vmem:[#allocation10 + $0xe50] sm:$0xff]  ;;  %v15575_v54 = vcombine.low %v6662_v18, %v6666_v8 }
 0x5e7   :  { %v11566_v36 = vpop.f32.mrf.mxu1  ;;  %11875 = vmatprep.subr.bf16.mxu1 %v15528_v3  ;;  %v6586_v12 = vld [vmem:[#allocation10 + $0xe70] sm:$0xff]  ;;  %v15503_v3 = vcombine.low %v6590_v50, %v6594_v31 }
 0x5e8   :  { %v15496_v51 = vcombine.high %v6582_v7, %v6586_v12  ;;  %v6578_v17 = vld [vmem:[#allocation10 + $0xe30] sm:$0xff] }
 0x5e9   :  { %11845 = vmatpush2.bf16.msra.mxu0 %v15359_v16  ;;  %v15583_v16 = vcombine.low %v6670_v19, %v6674_v32  ;;  %v6822_v21 = vld [vmem:[#allocation10 + $0x15d0] sm:$0xff] }
 0x5ea   :  { %11876 = vmatpush2.bf16.msra.mxu1 %v15527_v5  ;;  %11896 = vmatprep.subr.bf16.mxu0 %v15608_v58  ;;  %v15495_v5 = vcombine.low %v6582_v7, %v6586_v12  ;;  %v15576_v58 = vcombine.high %v6662_v18, %v6666_v8  ;;  %v6826_v24 = vld [vmem:[#allocation10 + $0x15f0] sm:$0xff] }
 0x5eb   :  { %11877 = vmatprep.subr.bf16.mxu1 %v15520_v2  ;;  %v6654_v2 = vld [vmem:[#allocation10 + $0x1090] sm:$0xff]  ;;  %v15735_v31 = vcombine.low %v6822_v21, %v6826_v24 }
 0x5ec   :  { %v11602_v9 = vpop.f32.mrf.mxu0  ;;  %11847 = vmatmul.mubr.bf16.vlgmr.msra.gmra.mxu0 %v18258_v56  ;;  %v15567_v50 = vcombine.low %v6654_v2, %v6658_v25  ;;  %v6810_v19 = vld [vmem:[#allocation10 + $0x1570] sm:$0xff] }
 0x5ed   :  { %v18375_v39 = vadd.f32 %v11602_v9, %v11562_v44  ;;  %11897 = vmatpush1.bf16.msra.mxu0 %v15607_v0  ;;  %11928 = vmatprep.mubr.bf16.mxu0 %v18260_v13  ;;  %v15591_v44 = vcombine.low %v6678_v28, %v6682_v52  ;;  %v6650_v28 = vld [vmem:[#allocation10 + $0x1070] sm:$0xff] }
 0x5ee   :  { %v11604_v35 = vpop.f32.mrf.mxu0  ;;  %11878 = vmatpush2.bf16.msra.mxu1 %v15519_v23  ;;  %11898 = vmatprep.subr.bf16.mxu0 %v15600_v55  ;;  %v15568_v23 = vcombine.high %v6654_v2, %v6658_v25  ;;  %v15736_v55 = vcombine.high %v6822_v21, %v6826_v24  ;;  %v6814_v52 = vld [vmem:[#allocation10 + $0x1590] sm:$0xff] }
 0x5ef   :  { %v18378_v57 = vadd.f32 %v11604_v35, %v11564_v53  ;;  %11879 = vmatprep.subr.bf16.mxu1 %v15512_v27  ;;  %v6574_v53 = vld [vmem:[#allocation10 + $0xe10] sm:$0xff] }
 0x5f0   :  { %v11606_v40 = vpop.f32.mrf.mxu0  ;;  %v15488_v36 = vcombine.high %v6574_v53, %v6578_v17  ;;  %v15487_v0 = vcombine.low %v6574_v53, %v6578_v17  ;;  %v6646_v27 = vld [vmem:[#allocation10 + $0x1050] sm:$0xff] }
 0x5f1   :  { %11899 = vmatpush1.bf16.msra.mxu0 %v15599_v60  ;;  %v6818_v9 = vld [vmem:[#allocation10 + $0x15b0] sm:$0xff]  ;;  %v15560_v60 = vcombine.high %v6646_v27, %v6650_v28  ;;  %v15559_v32 = vcombine.low %v6646_v27, %v6650_v28 }
 0x5f2   :  { %v11607_v34 = vpop.f32.mrf.mxu0  ;;  %11880 = vmatpush2.bf16.msra.mxu1 %v15511_v59  ;;  %11900 = vmatprep.subr.bf16.mxu0 %v15592_v33  ;;  %v15728_v35 = vcombine.high %v6814_v52, %v6818_v9  ;;  %v6638_v59 = vld [vmem:[#allocation10 + $0x1010] sm:$0xff]  ;;  %v15727_v40 = vcombine.low %v6814_v52, %v6818_v9 }
 0x5f3   :  { %11881 = vmatprep.subr.bf16.mxu1 %v15504_v22  ;;  %v6642_v33 = vld [vmem:[#allocation10 + $0x1030] sm:$0xff] }
 0x5f4   :  { %v6806_v22 = vld [vmem:[#allocation10 + $0x1550] sm:$0xff]  ;;  %v15552_v7 = vcombine.high %v6638_v59, %v6642_v33 }
 0x5f5   :  { %11901 = vmatpush1.bf16.msra.mxu0 %v15591_v44  ;;  %v15720_v12 = vcombine.high %v6806_v22, %v6810_v19  ;;  %v6758_v44 = vld [vmem:[#allocation10 + $0x13d0] sm:$0xff]  ;;  %v15719_v18 = vcombine.low %v6806_v22, %v6810_v19 }
 0x5f6   :  { %11882 = vmatpush2.bf16.msra.mxu1 %v15503_v3  ;;  %11902 = vmatprep.subr.bf16.mxu0 %v15584_v43  ;;  %v6762_v34 = vld [vmem:[#allocation10 + $0x13f0] sm:$0xff] }
 0x5f7   :  { %11883 = vmatprep.subr.bf16.mxu1 %v15496_v51  ;;  %v6798_v3 = vld [vmem:[#allocation10 + $0x1510] sm:$0xff]  ;;  %v15551_v51 = vcombine.low %v6638_v59, %v6642_v33  ;;  %v15672_v8 = vcombine.high %v6758_v44, %v6762_v34 }
 0x5f8   :  { %v6802_v43 = vld [vmem:[#allocation10 + $0x1530] sm:$0xff] }
 0x5f9   :  { %11903 = vmatpush1.bf16.msra.mxu0 %v15583_v16  ;;  %v15712_v53 = vcombine.high %v6798_v3, %v6802_v43  ;;  %v6750_v17 = vld [vmem:[#allocation10 + $0x1390] sm:$0xff]  ;;  %v15711_v2 = vcombine.low %v6798_v3, %v6802_v43 }
 0x5fa   :  { %11884 = vmatpush2.bf16.msra.mxu1 %v15495_v5  ;;  %11904 = vmatprep.subr.bf16.mxu0 %v15576_v58  ;;  %v6754_v16 = vld [vmem:[#allocation10 + $0x13b0] sm:$0xff] }
 0x5fb   :  { %11885 = vmatprep.subr.bf16.mxu1 %v15488_v36  ;;  %v6790_v5 = vld [vmem:[#allocation10 + $0x14d0] sm:$0xff]  ;;  %v15671_v36 = vcombine.low %v6758_v44, %v6762_v34  ;;  %v15664_v25 = vcombine.high %v6750_v17, %v6754_v16 }
 0x5fc   :  { %v6794_v58 = vld [vmem:[#allocation10 + $0x14f0] sm:$0xff] }
 0x5fd   :  { %11905 = vmatpush1.bf16.msra.mxu0 %v15575_v54  ;;  %v15704_v21 = vcombine.high %v6790_v5, %v6794_v58  ;;  %v6742_v24 = vld [vmem:[#allocation10 + $0x1350] sm:$0xff]  ;;  %v15703_v27 = vcombine.low %v6790_v5, %v6794_v58 }
 0x5fe   :  { %11886 = vmatpush2.bf16.msra.mxu1 %v15487_v0  ;;  %11906 = vmatprep.subr.bf16.mxu0 %v15568_v23  ;;  %v6746_v54 = vld [vmem:[#allocation10 + $0x1370] sm:$0xff] }
 0x5ff   :  { %11937 = vmatprep.subr.bf16.mxu1 %v15736_v55  ;;  %v6782_v0 = vld [vmem:[#allocation10 + $0x1490] sm:$0xff]  ;;  %v15663_v55 = vcombine.low %v6750_v17, %v6754_v16  ;;  %v15656_v28 = vcombine.high %v6742_v24, %v6746_v54 }
 0x600   :  { %v6786_v23 = vld [vmem:[#allocation10 + $0x14b0] sm:$0xff] }
 0x601   :  { %11907 = vmatpush1.bf16.msra.mxu0 %v15567_v50  ;;  %11888 = vmatmul.mubr.bf16.vlgmr.msra.gmra.mxu1 %v18267_v4  ;;  %v15696_v52 = vcombine.high %v6782_v0, %v6786_v23  ;;  %v6734_v9 = vld [vmem:[#allocation10 + $0x1310] sm:$0xff]  ;;  %v15695_v59 = vcombine.low %v6782_v0, %v6786_v23 }
 0x602   :  { %11938 = vmatpush1.bf16.msra.mxu1 %v15735_v31  ;;  %11969 = vmatprep.mubr.bf16.mxu1 %v18275_v46  ;;  %v6738_v50 = vld [vmem:[#allocation10 + $0x1330] sm:$0xff] }
 0x603   :  { %11908 = vmatprep.subr.bf16.mxu0 %v15560_v60  ;;  %11939 = vmatprep.subr.bf16.mxu1 %v15728_v35  ;;  %v6774_v31 = vld [vmem:[#allocation10 + $0x1450] sm:$0xff]  ;;  %v15655_v35 = vcombine.low %v6742_v24, %v6746_v54  ;;  %v15648_v33 = vcombine.high %v6734_v9, %v6738_v50 }
 0x604   :  { %v6778_v60 = vld [vmem:[#allocation10 + $0x1470] sm:$0xff] }
 0x605   :  { %11909 = vmatpush1.bf16.msra.mxu0 %v15559_v32  ;;  %v15688_v22 = vcombine.high %v6774_v31, %v6778_v60  ;;  %v6726_v19 = vld [vmem:[#allocation10 + $0x12d0] sm:$0xff]  ;;  %v15687_v44 = vcombine.low %v6774_v31, %v6778_v60 }
 0x606   :  { %11940 = vmatpush1.bf16.msra.mxu1 %v15727_v40  ;;  %11910 = vmatprep.subr.bf16.mxu0 %v15552_v7  ;;  %v6730_v32 = vld [vmem:[#allocation10 + $0x12f0] sm:$0xff] }
 0x607   :  { %11941 = vmatprep.subr.bf16.mxu1 %v15720_v12  ;;  %v6766_v40 = vld [vmem:[#allocation10 + $0x1410] sm:$0xff]  ;;  %v15647_v12 = vcombine.low %v6734_v9, %v6738_v50  ;;  %v15640_v34 = vcombine.high %v6726_v19, %v6730_v32 }
 0x608   :  { %v6770_v7 = vld [vmem:[#allocation10 + $0x1430] sm:$0xff] }
 0x609   :  { %11911 = vmatpush1.bf16.msra.mxu0 %v15551_v51  ;;  %v15680_v3 = vcombine.high %v6766_v40, %v6770_v7  ;;  %v6718_v43 = vld [vmem:[#allocation10 + $0x1290] sm:$0xff]  ;;  %v15679_v17 = vcombine.low %v6766_v40, %v6770_v7 }
 0x60a   :  { %11942 = vmatpush1.bf16.msra.mxu1 %v15719_v18  ;;  %11912 = vmatprep.subr.bf16.mxu0 %v15672_v8  ;;  %v6722_v51 = vld [vmem:[#allocation10 + $0x12b0] sm:$0xff] }
 0x60b   :  { %11943 = vmatprep.subr.bf16.mxu1 %v15712_v53  ;;  %v6886_v18 = vld [vmem:[#allocation10 + $0x17d0] sm:$0xff]  ;;  %v15639_v53 = vcombine.low %v6726_v19, %v6730_v32  ;;  %v15632_v16 = vcombine.high %v6718_v43, %v6722_v51 }
 0x60c   :  { %v6890_v8 = vld [vmem:[#allocation10 + $0x17f0] sm:$0xff] }
 0x60d   :  { %11913 = vmatpush2.bf16.msra.mxu0 %v15671_v36  ;;  %v15800_v5 = vcombine.high %v6886_v18, %v6890_v8  ;;  %v6710_v58 = vld [vmem:[#allocation10 + $0x1250] sm:$0xff]  ;;  %v15799_v24 = vcombine.low %v6886_v18, %v6890_v8 }
 0x60e   :  { %11944 = vmatpush1.bf16.msra.mxu1 %v15711_v2  ;;  %11914 = vmatprep.subr.bf16.mxu0 %v15664_v25  ;;  %v6714_v36 = vld [vmem:[#allocation10 + $0x1270] sm:$0xff] }
 0x60f   :  { %11945 = vmatprep.subr.bf16.mxu1 %v15704_v21  ;;  %v6878_v2 = vld [vmem:[#allocation10 + $0x1790] sm:$0xff]  ;;  %v15631_v21 = vcombine.low %v6718_v43, %v6722_v51  ;;  %v15624_v54 = vcombine.high %v6710_v58, %v6714_v36  ;;  %v15623_v9 = vcombine.low %v6710_v58, %v6714_v36 }
 0x610   :  { %v6882_v25 = vld [vmem:[#allocation10 + $0x17b0] sm:$0xff] }
 0x611   :  { %11915 = vmatpush2.bf16.msra.mxu0 %v15663_v55  ;;  %v15792_v0 = vcombine.high %v6878_v2, %v6882_v25  ;;  %v6702_v23 = vld [vmem:[#allocation10 + $0x1210] sm:$0xff]  ;;  %v15791_v31 = vcombine.low %v6878_v2, %v6882_v25 }
 0x612   :  { %11946 = vmatpush1.bf16.msra.mxu1 %v15703_v27  ;;  %11916 = vmatprep.subr.bf16.mxu0 %v15656_v28  ;;  %v6706_v55 = vld [vmem:[#allocation10 + $0x1230] sm:$0xff] }
 0x613   :  { %11947 = vmatprep.subr.bf16.mxu1 %v15696_v52  ;;  %v6870_v27 = vld [vmem:[#allocation10 + $0x1750] sm:$0xff]  ;;  %v15616_v60 = vcombine.high %v6702_v23, %v6706_v55 }
 0x614   :  { %v6874_v28 = vld [vmem:[#allocation10 + $0x1770] sm:$0xff] }
 0x615   :  { %11917 = vmatpush2.bf16.msra.mxu0 %v15655_v35  ;;  %v6862_v32 = vld [vmem:[#allocation10 + $0x1710] sm:$0xff] }
 0x616   :  { %11948 = vmatpush1.bf16.msra.mxu1 %v15695_v59  ;;  %11918 = vmatprep.subr.bf16.mxu0 %v15648_v33  ;;  %v15784_v59 = vcombine.high %v6870_v27, %v6874_v28  ;;  %v6950_v33 = vld [vmem:[#allocation10 + $0x19d0] sm:$0xff] }
 0x617   :  { %11949 = vmatprep.subr.bf16.mxu1 %v15688_v22  ;;  %v6954_v22 = vld [vmem:[#allocation10 + $0x19f0] sm:$0xff] }
 0x618   :  { %v6866_v40 = vld [vmem:[#allocation10 + $0x1730] sm:$0xff] }
 0x619   :  { %11919 = vmatpush2.bf16.msra.mxu0 %v15647_v12  ;;  %v15615_v12 = vcombine.low %v6702_v23, %v6706_v55  ;;  %v6942_v43 = vld [vmem:[#allocation10 + $0x1990] sm:$0xff] }
 0x61a   :  { %11950 = vmatpush1.bf16.msra.mxu1 %v15687_v44  ;;  %11920 = vmatprep.subr.bf16.mxu0 %v15640_v34  ;;  %v15783_v44 = vcombine.low %v6870_v27, %v6874_v28  ;;  %v6946_v51 = vld [vmem:[#allocation10 + $0x19b0] sm:$0xff] }
 0x61b   :  { %11951 = vmatprep.subr.bf16.mxu1 %v15680_v3  ;;  %v15776_v3 = vcombine.high %v6862_v32, %v6866_v40  ;;  %v6854_v18 = vld [vmem:[#allocation10 + $0x16d0] sm:$0xff] }
 0x61c   :  { %v6858_v8 = vld [vmem:[#allocation10 + $0x16f0] sm:$0xff] }
 0x61d   :  { %11921 = vmatpush2.bf16.msra.mxu0 %v15639_v53  ;;  %v15863_v53 = vcombine.low %v6950_v33, %v6954_v22  ;;  %v6938_v58 = vld [vmem:[#allocation10 + $0x1970] sm:$0xff] }
 0x61e   :  { %11952 = vmatpush1.bf16.msra.mxu1 %v15679_v17  ;;  %11922 = vmatprep.subr.bf16.mxu0 %v15632_v16  ;;  %v15856_v17 = vcombine.high %v6942_v43, %v6946_v51  ;;  %v15768_v16 = vcombine.high %v6854_v18, %v6858_v8  ;;  %v6846_v2 = vld [vmem:[#allocation10 + $0x1690] sm:$0xff] }
 0x61f   :  { %11953 = vmatprep.subr.bf16.mxu1 %v15800_v5  ;;  %v6934_v5 = vld [vmem:[#allocation10 + $0x1950] sm:$0xff] }
 0x620   :  { %v6850_v25 = vld [vmem:[#allocation10 + $0x16b0] sm:$0xff]  ;;  %v15848_v23 = vcombine.high %v6934_v5, %v6938_v58 }
 0x621   :  { %11923 = vmatpush2.bf16.msra.mxu0 %v15631_v21  ;;  %v11643_v52 = vpop.f32.mrf.mxu1  ;;  %v15760_v27 = vcombine.high %v6846_v2, %v6850_v25  ;;  %v6926_v28 = vld [vmem:[#allocation10 + $0x1910] sm:$0xff] }
 0x622   :  { %v11644_v50 = vadd.f32 %v11643_v52, %v18375_v39  ;;  %11954 = vmatpush2.bf16.msra.mxu1 %v15799_v24  ;;  %11924 = vmatprep.subr.bf16.mxu0 %v15624_v54  ;;  %v15864_v39 = vcombine.high %v6950_v33, %v6954_v22  ;;  %v15855_v24 = vcombine.low %v6942_v43, %v6946_v51  ;;  %v6930_v52 = vld [vmem:[#allocation10 + $0x1930] sm:$0xff]  ;;  %v6183_v51 = vld [vmem:[#allocation10 + $0x1d8] sm:$0xff] }
 0x623   :  { %v11645_v35 = vpop.f32.mrf.mxu1  ;;  %11955 = vmatprep.subr.bf16.mxu1 %v15792_v0  ;;  %v15767_v0 = vcombine.low %v6854_v18, %v6858_v8  ;;  %v15840_v33 = vcombine.high %v6926_v28, %v6930_v52  ;;  %v6914_v43 = vld [vmem:[#allocation10 + $0x18b0] sm:$0xff]  ;;  %v6187_v18 = vld [vmem:[#allocation10 + $0x1f8] sm:$0xff] }
 0x624   :  { %v11646_v19 = vadd.f32 %v11645_v35, %v18378_v57  ;;  %v15775_v57 = vcombine.low %v6862_v32, %v6866_v40  ;;  %v6918_v32 = vld [vmem:[#allocation10 + $0x18d0] sm:$0xff] }
 0x625   :  { %11925 = vmatpush2.bf16.msra.mxu0 %v15623_v9  ;;  %v11647_v7 = vpop.f32.mrf.mxu1  ;;  %v6922_v40 = vld [vmem:[#allocation10 + $0x18f0] sm:$0xff] }
 0x626   :  { %11956 = vmatpush2.bf16.msra.mxu1 %v15791_v31  ;;  %11926 = vmatprep.subr.bf16.mxu0 %v15616_v60  ;;  %v6838_v31 = vld [vmem:[#allocation10 + $0x1650] sm:$0xff]  ;;  %v15831_v8 = vcombine.low %v6918_v32, %v6922_v40 }
 0x627   :  { %v11648_v34 = vpop.f32.mrf.mxu1  ;;  %11957 = vmatprep.subr.bf16.mxu1 %v15784_v59  ;;  %v6842_v60 = vld [vmem:[#allocation10 + $0x1670] sm:$0xff]  ;;  %v15759_v59 = vcombine.low %v6846_v2, %v6850_v25  ;;  %v15097_v25 = vcombine.low %v6183_v51, %v6187_v18 }
 0x628   :  { %v15752_v22 = vcombine.high %v6838_v31, %v6842_v60  ;;  %v6834_v7 = vld [vmem:[#allocation10 + $0x1630] sm:$0xff] }
 0x629   :  { %11927 = vmatpush2.bf16.msra.mxu0 %v15615_v12  ;;  %v15839_v12 = vcombine.low %v6926_v28, %v6930_v52  ;;  %v6171_v28 = vld [vmem:[#allocation10 + $0x178] sm:$0xff] }
 0x62a   :  { %11958 = vmatpush2.bf16.msra.mxu1 %v15783_v44  ;;  %11978 = vmatprep.subr.bf16.mxu0 %v15864_v39  ;;  %v15751_v44 = vcombine.low %v6838_v31, %v6842_v60  ;;  %v15832_v39 = vcombine.high %v6918_v32, %v6922_v40  ;;  %v6159_v40 = vld [vmem:[#allocation10 + $0x118] sm:$0xff] }
 0x62b   :  { %11959 = vmatprep.subr.bf16.mxu1 %v15776_v3  ;;  %v6910_v3 = vld [vmem:[#allocation10 + $0x1890] sm:$0xff] }
 0x62c   :  { %v11684_v36 = vpop.f32.mrf.mxu0  ;;  %11929 = vmatmul.mubr.bf16.vlgmr.msra.gmra.mxu0 %v18279_v63  ;;  %v15823_v2 = vcombine.low %v6910_v3, %v6914_v43 }
 0x62d   :  { %v18385_v21 = vadd.f32 %v11684_v36, %v11644_v50  ;;  %11979 = vmatpush1.bf16.msra.mxu0 %v15863_v53  ;;  %12010 = vmatprep.mubr.bf16.mxu0 %v17934_v1  ;;  %v15847_v50 = vcombine.low %v6934_v5, %v6938_v58  ;;  %v6906_v5 = vld [vmem:[#allocation10 + $0x1870] sm:$0xff]  ;;  %v6175_v58 = vld [vmem:[#allocation10 + $0x198] sm:$0xff] }
 0x62e   :  { %v11686_v54 = vpop.f32.mrf.mxu0  ;;  %11960 = vmatpush2.bf16.msra.mxu1 %v15775_v57  ;;  %11980 = vmatprep.subr.bf16.mxu0 %v15856_v17  ;;  %v15824_v57 = vcombine.high %v6910_v3, %v6914_v43  ;;  %v15098_v17 = vcombine.high %v6183_v51, %v6187_v18  ;;  %v6179_v36 = vld [vmem:[#allocation10 + $0x1b8] sm:$0xff] }
 0x62f   :  { %v18388_v55 = vadd.f32 %v11686_v54, %v11646_v19  ;;  %11961 = vmatprep.subr.bf16.mxu1 %v15768_v16  ;;  %v6830_v19 = vld [vmem:[#allocation10 + $0x1610] sm:$0xff]  ;;  %v15090_v54 = vcombine.high %v6175_v58, %v6179_v36  ;;  %v15089_v60 = vcombine.low %v6175_v58, %v6179_v36  ;;  %v6307_v3 = vld [vmem:[#allocation10 + $0x5b8] sm:$0xff] }
 0x630   :  { %v11688_v9 = vpop.f32.mrf.mxu0  ;;  %v15744_v34 = vcombine.high %v6830_v19, %v6834_v7  ;;  %v15743_v53 = vcombine.low %v6830_v19, %v6834_v7  ;;  %v6902_v16 = vld [vmem:[#allocation10 + $0x1850] sm:$0xff]  ;;  %v6163_v19 = vld [vmem:[#allocation10 + $0x138] sm:$0xff] }
 0x631   :  { %11981 = vmatpush1.bf16.msra.mxu0 %v15855_v24  ;;  %v15816_v24 = vcombine.high %v6902_v16, %v6906_v5  ;;  %v15815_v9 = vcombine.low %v6902_v16, %v6906_v5  ;;  %v6151_v43 = vld [vmem:[#allocation10 + $0xd8] sm:$0xff] }
 0x632   :  { %v11689_v35 = vpop.f32.mrf.mxu0  ;;  %11962 = vmatpush2.bf16.msra.mxu1 %v15767_v0  ;;  %11982 = vmatprep.subr.bf16.mxu0 %v15848_v23  ;;  %v6894_v0 = vld [vmem:[#allocation10 + $0x1810] sm:$0xff]  ;;  %v6155_v51 = vld [vmem:[#allocation10 + $0xf8] sm:$0xff] }
 0x633   :  { %11963 = vmatprep.subr.bf16.mxu1 %v15760_v27  ;;  %v6898_v23 = vld [vmem:[#allocation10 + $0x1830] sm:$0xff]  ;;  %v6167_v27 = vld [vmem:[#allocation10 + $0x158] sm:$0xff]  ;;  %v15065_v36 = vcombine.low %v6151_v43, %v6155_v51 }
 0x634   :  { %v6143_v16 = vld [vmem:[#allocation10 + $0x98] sm:$0xff] }
 0x635   :  { %11983 = vmatpush1.bf16.msra.mxu0 %v15847_v50  ;;  %v15808_v50 = vcombine.high %v6894_v0, %v6898_v23  ;;  %v6147_v5 = vld [vmem:[#allocation10 + $0xb8] sm:$0xff] }
 0x636   :  { %11964 = vmatpush2.bf16.msra.mxu1 %v15759_v59  ;;  %11984 = vmatprep.subr.bf16.mxu0 %v15840_v33  ;;  %v15082_v59 = vcombine.high %v6167_v27, %v6171_v28  ;;  %v6311_v33 = vld [vmem:[#allocation10 + $0x5d8] sm:$0xff] }
 0x637   :  { %11965 = vmatprep.subr.bf16.mxu1 %v15752_v22  ;;  %v6315_v22 = vld [vmem:[#allocation10 + $0x5f8] sm:$0xff] }
 0x638   :  { %v15225_v18 = vcombine.low %v6311_v33, %v6315_v22 }
 0x639   :  { %11985 = vmatpush1.bf16.msra.mxu0 %v15839_v12  ;;  %v15081_v12 = vcombine.low %v6167_v27, %v6171_v28  ;;  %v15057_v28 = vcombine.low %v6143_v16, %v6147_v5 }
 0x63a   :  { %11966 = vmatpush2.bf16.msra.mxu1 %v15751_v44  ;;  %11986 = vmatprep.subr.bf16.mxu0 %v15832_v39  ;;  %v15074_v39 = vcombine.high %v6159_v40, %v6163_v19 }
 0x63b   :  { %11967 = vmatprep.subr.bf16.mxu1 %v15744_v34  ;;  %v6303_v34 = vld [vmem:[#allocation10 + $0x598] sm:$0xff] }
 0x63c   :  { %v15217_v58 = vcombine.low %v6303_v34, %v6307_v3 }
 0x63d   :  { %11987 = vmatpush1.bf16.msra.mxu0 %v15831_v8  ;;  %v15218_v8 = vcombine.high %v6303_v34, %v6307_v3  ;;  %v6263_v3 = vld [vmem:[#allocation10 + $0x458] sm:$0xff] }
 0x63e   :  { %11968 = vmatpush2.bf16.msra.mxu1 %v15743_v53  ;;  %11988 = vmatprep.subr.bf16.mxu0 %v15824_v57  ;;  %v15066_v53 = vcombine.high %v6151_v43, %v6155_v51  ;;  %v6295_v57 = vld [vmem:[#allocation10 + $0x558] sm:$0xff] }
 0x63f   :  { %12019 = vmatprep.subr.bf16.mxu1 %v15098_v17  ;;  %v6299_v17 = vld [vmem:[#allocation10 + $0x578] sm:$0xff] }
 0x640   :  { %v15209_v27 = vcombine.low %v6295_v57, %v6299_v17  ;;  %v6267_v43 = vld [vmem:[#allocation10 + $0x478] sm:$0xff] }
 0x641   :  { %11989 = vmatpush1.bf16.msra.mxu0 %v15823_v2  ;;  %v11725_v52 = vpop.f32.mrf.mxu1  ;;  %11970 = vmatmul.mubr.bf16.vlgmr.msra.gmra.mxu1 %v18302_v61  ;;  %v15210_v2 = vcombine.high %v6295_v57, %v6299_v17  ;;  %v6239_v51 = vld [vmem:[#allocation10 + $0x398] sm:$0xff] }
 0x642   :  { %v18392_v31 = vadd.f32 %v11725_v52, %v18385_v21  ;;  %12020 = vmatpush1.bf16.msra.mxu1 %v15097_v25  ;;  %12051 = vmatprep.mubr.bf16.mxu1 %v18210_v11  ;;  %v15807_v21 = vcombine.low %v6894_v0, %v6898_v23  ;;  %v15226_v11 = vcombine.high %v6311_v33, %v6315_v22  ;;  %v6135_v0 = vld [vmem:[#allocation10 + $0x58] sm:$0xff] }
 0x643   :  { %v11727_v35 = vpop.f32.mrf.mxu1  ;;  %11990 = vmatprep.subr.bf16.mxu0 %v15816_v24  ;;  %12021 = vmatprep.subr.bf16.mxu1 %v15090_v54  ;;  %v15058_v25 = vcombine.high %v6143_v16, %v6147_v5  ;;  %v6287_v24 = vld [vmem:[#allocation10 + $0x518] sm:$0xff] }
 0x644   :  { %v18396_v32 = vadd.f32 %v11727_v35, %v18388_v55  ;;  %v15073_v55 = vcombine.low %v6159_v40, %v6163_v19  ;;  %v6291_v54 = vld [vmem:[#allocation10 + $0x538] sm:$0xff] }
 0x645   :  { %11991 = vmatpush1.bf16.msra.mxu0 %v15815_v9  ;;  %v11729_v7 = vpop.f32.mrf.mxu1  ;;  %v6139_v23 = vld [vmem:[#allocation10 + $0x78] sm:$0xff]  ;;  %v15202_v52 = vcombine.high %v6287_v24, %v6291_v54 }
 0x646   :  { %12022 = vmatpush1.bf16.msra.mxu1 %v15089_v60  ;;  %11992 = vmatprep.subr.bf16.mxu0 %v15808_v50  ;;  %v15050_v9 = vcombine.high %v6135_v0, %v6139_v23  ;;  %v6283_v60 = vld [vmem:[#allocation10 + $0x4f8] sm:$0xff]  ;;  %v15049_v33 = vcombine.low %v6135_v0, %v6139_v23 }
 0x647   :  { %v11730_v44 = vpop.f32.mrf.mxu1  ;;  %12023 = vmatprep.subr.bf16.mxu1 %v15082_v59  ;;  %v6127_v50 = vld [vmem:[#allocation10 + $0x18] sm:$0xff]  ;;  %v15201_v59 = vcombine.low %v6287_v24, %v6291_v54 }
 0x648   :  { %v6131_v35 = vld [vmem:[#allocation10 + $0x38] sm:$0xff] }
 0x649   :  { %11993 = vmatpush1.bf16.msra.mxu0 %v15807_v21  ;;  %v15042_v40 = vcombine.high %v6127_v50, %v6131_v35  ;;  %v6271_v19 = vld [vmem:[#allocation10 + $0x498] sm:$0xff]  ;;  %v15041_v44 = vcombine.low %v6127_v50, %v6131_v35 }
 0x64a   :  { %12024 = vmatpush1.bf16.msra.mxu1 %v15081_v12  ;;  %12060 = vmatprep.subr.bf16.mxu0 %v15226_v11  ;;  %v6275_v7 = vld [vmem:[#allocation10 + $0x4b8] sm:$0xff] }
 0x64b   :  { %12025 = vmatprep.subr.bf16.mxu1 %v15074_v39  ;;  %v6247_v21 = vld [vmem:[#allocation10 + $0x3d8] sm:$0xff]  ;;  %v15186_v39 = vcombine.high %v6271_v19, %v6275_v7 }
 0x64c   :  { %12011 = vmatmul.mubr.bf16.vlgmr.msra.gmra.mxu0 %v18308_v20  ;;  %v6251_v12 = vld [vmem:[#allocation10 + $0x3f8] sm:$0xff] }
 0x64d   :  { %12061 = vmatpush1.bf16.msra.mxu0 %v15225_v18  ;;  %12092 = vmatprep.mubr.bf16.mxu0 %v18220_v62  ;;  %v6279_v62 = vld [vmem:[#allocation10 + $0x4d8] sm:$0xff]  ;;  %v15162_v34 = vcombine.high %v6247_v21, %v6251_v12 }
 0x64e   :  { %12026 = vmatpush1.bf16.msra.mxu1 %v15073_v55  ;;  %12062 = vmatprep.subr.bf16.mxu0 %v15218_v8  ;;  %v15194_v22 = vcombine.high %v6279_v62, %v6283_v60  ;;  %v15193_v11 = vcombine.low %v6279_v62, %v6283_v60  ;;  %v6243_v18 = vld [vmem:[#allocation10 + $0x3b8] sm:$0xff]  ;;  %v15185_v55 = vcombine.low %v6271_v19, %v6275_v7 }
 0x64f   :  { %12027 = vmatprep.subr.bf16.mxu1 %v15066_v53  ;;  %v15161_v8 = vcombine.low %v6247_v21, %v6251_v12  ;;  %v15178_v53 = vcombine.high %v6263_v3, %v6267_v43  ;;  %v15154_v57 = vcombine.high %v6239_v51, %v6243_v18  ;;  %v6255_v17 = vld [vmem:[#allocation10 + $0x418] sm:$0xff] }
 0x650   :  { %v6259_v16 = vld [vmem:[#allocation10 + $0x438] sm:$0xff] }
 0x651   :  { %12063 = vmatpush1.bf16.msra.mxu0 %v15217_v58  ;;  %v6231_v5 = vld [vmem:[#allocation10 + $0x358] sm:$0xff] }
 0x652   :  { %12028 = vmatpush1.bf16.msra.mxu1 %v15065_v36  ;;  %12064 = vmatprep.subr.bf16.mxu0 %v15210_v2  ;;  %v6235_v58 = vld [vmem:[#allocation10 + $0x378] sm:$0xff]  ;;  %v15177_v36 = vcombine.low %v6263_v3, %v6267_v43  ;;  %v15153_v2 = vcombine.low %v6239_v51, %v6243_v18 }
 0x653   :  { %12029 = vmatprep.subr.bf16.mxu1 %v15058_v25  ;;  %v15170_v25 = vcombine.high %v6255_v17, %v6259_v16  ;;  %v15146_v24 = vcombine.high %v6231_v5, %v6235_v58  ;;  %v6375_v54 = vld [vmem:[#allocation10 + $0x7d8] sm:$0xff] }
 0x654   :  { %v6379_v0 = vld [vmem:[#allocation10 + $0x7f8] sm:$0xff] }
 0x655   :  { %12065 = vmatpush1.bf16.msra.mxu0 %v15209_v27  ;;  %v6223_v23 = vld [vmem:[#allocation10 + $0x318] sm:$0xff] }
 0x656   :  { %12030 = vmatpush1.bf16.msra.mxu1 %v15057_v28  ;;  %12066 = vmatprep.subr.bf16.mxu0 %v15202_v52  ;;  %v6227_v27 = vld [vmem:[#allocation10 + $0x338] sm:$0xff]  ;;  %v15169_v28 = vcombine.low %v6255_v17, %v6259_v16  ;;  %v15145_v52 = vcombine.low %v6231_v5, %v6235_v58 }
 0x657   :  { %12031 = vmatprep.subr.bf16.mxu1 %v15050_v9  ;;  %v15290_v9 = vcombine.high %v6375_v54, %v6379_v0  ;;  %v15138_v62 = vcombine.high %v6223_v23, %v6227_v27  ;;  %v6367_v60 = vld [vmem:[#allocation10 + $0x798] sm:$0xff] }
 0x658   :  { %v6371_v50 = vld [vmem:[#allocation10 + $0x7b8] sm:$0xff] }
 0x659   :  { %12067 = vmatpush1.bf16.msra.mxu0 %v15201_v59  ;;  %v6215_v35 = vld [vmem:[#allocation10 + $0x2d8] sm:$0xff] }
 0x65a   :  { %12032 = vmatpush1.bf16.msra.mxu1 %v15049_v33  ;;  %12068 = vmatprep.subr.bf16.mxu0 %v15194_v22  ;;  %v6219_v59 = vld [vmem:[#allocation10 + $0x2f8] sm:$0xff]  ;;  %v15289_v33 = vcombine.low %v6375_v54, %v6379_v0  ;;  %v15137_v22 = vcombine.low %v6223_v23, %v6227_v27 }
 0x65b   :  { %12033 = vmatprep.subr.bf16.mxu1 %v15042_v40  ;;  %v15282_v40 = vcombine.high %v6367_v60, %v6371_v50  ;;  %v15130_v19 = vcombine.high %v6215_v35, %v6219_v59  ;;  %v6359_v7 = vld [vmem:[#allocation10 + $0x758] sm:$0xff]  ;;  %v15129_v3 = vcombine.low %v6215_v35, %v6219_v59 }
 0x65c   :  { %v6363_v21 = vld [vmem:[#allocation10 + $0x778] sm:$0xff] }
 0x65d   :  { %12069 = vmatpush1.bf16.msra.mxu0 %v15193_v11  ;;  %v6207_v11 = vld [vmem:[#allocation10 + $0x298] sm:$0xff]  ;;  %v15274_v43 = vcombine.high %v6359_v7, %v6363_v21  ;;  %v15273_v17 = vcombine.low %v6359_v7, %v6363_v21 }
 0x65e   :  { %12034 = vmatpush1.bf16.msra.mxu1 %v15041_v44  ;;  %12070 = vmatprep.subr.bf16.mxu0 %v15186_v39  ;;  %v6211_v44 = vld [vmem:[#allocation10 + $0x2b8] sm:$0xff]  ;;  %v15281_v39 = vcombine.low %v6367_v60, %v6371_v50 }
 0x65f   :  { %12035 = vmatprep.subr.bf16.mxu1 %v15162_v34  ;;  %v15122_v51 = vcombine.high %v6207_v11, %v6211_v44  ;;  %v6351_v18 = vld [vmem:[#allocation10 + $0x718] sm:$0xff]  ;;  %v15121_v5 = vcombine.low %v6207_v11, %v6211_v44 }
 0x660   :  { %v6195_v54 = vld [vmem:[#allocation10 + $0x238] sm:$0xff] }
 0x661   :  { %12071 = vmatpush1.bf16.msra.mxu0 %v15185_v55  ;;  %v6355_v55 = vld [vmem:[#allocation10 + $0x738] sm:$0xff] }
 0x662   :  { %12036 = vmatpush2.bf16.msra.mxu1 %v15161_v8  ;;  %12072 = vmatprep.subr.bf16.mxu0 %v15178_v53  ;;  %v6199_v53 = vld [vmem:[#allocation10 + $0x258] sm:$0xff]  ;;  %v15266_v58 = vcombine.high %v6351_v18, %v6355_v55  ;;  %v15265_v0 = vcombine.low %v6351_v18, %v6355_v55 }
 0x663   :  { %12037 = vmatprep.subr.bf16.mxu1 %v15154_v57  ;;  %v6203_v57 = vld [vmem:[#allocation10 + $0x278] sm:$0xff] }
 0x664   :  { %v15113_v23 = vcombine.low %v6199_v53, %v6203_v57  ;;  %v6443_v60 = vld [vmem:[#allocation10 + $0x9f8] sm:$0xff] }
 0x665   :  { %12073 = vmatpush1.bf16.msra.mxu0 %v15177_v36  ;;  %v15114_v36 = vcombine.high %v6199_v53, %v6203_v57  ;;  %v6331_v7 = vld [vmem:[#allocation10 + $0x678] sm:$0xff] }
 0x666   :  { %12038 = vmatpush2.bf16.msra.mxu1 %v15153_v2  ;;  %12074 = vmatprep.subr.bf16.mxu0 %v15170_v25  ;;  %v6343_v2 = vld [vmem:[#allocation10 + $0x6d8] sm:$0xff] }
 0x667   :  { %12039 = vmatprep.subr.bf16.mxu1 %v15146_v24  ;;  %v6347_v25 = vld [vmem:[#allocation10 + $0x6f8] sm:$0xff] }
 0x668   :  { %v6191_v24 = vld [vmem:[#allocation10 + $0x218] sm:$0xff]  ;;  %v15258_v27 = vcombine.high %v6343_v2, %v6347_v25  ;;  %v15257_v50 = vcombine.low %v6343_v2, %v6347_v25 }
 0x669   :  { %12075 = vmatpush1.bf16.msra.mxu0 %v15169_v28  ;;  %v15106_v28 = vcombine.high %v6191_v24, %v6195_v54  ;;  %v15105_v35 = vcombine.low %v6191_v24, %v6195_v54  ;;  %v6431_v21 = vld [vmem:[#allocation10 + $0x998] sm:$0xff] }
 0x66a   :  { %12040 = vmatpush2.bf16.msra.mxu1 %v15145_v52  ;;  %12076 = vmatprep.subr.bf16.mxu0 %v15290_v9  ;;  %v6335_v52 = vld [vmem:[#allocation10 + $0x698] sm:$0xff] }
 0x66b   :  { %12041 = vmatprep.subr.bf16.mxu1 %v15138_v62  ;;  %v6339_v9 = vld [vmem:[#allocation10 + $0x6b8] sm:$0xff] }
 0x66c   :  { %v18400_v12 = vpop.f32.mrf.mxu0  ;;  %v6439_v62 = vld [vmem:[#allocation10 + $0x9d8] sm:$0xff]  ;;  %v15250_v59 = vcombine.high %v6335_v52, %v6339_v9  ;;  %v15249_v44 = vcombine.low %v6335_v52, %v6339_v9 }
 0x66d   :  { %12077 = vmatpush2.bf16.msra.mxu0 %v15289_v33  ;;  %v15354_v33 = vcombine.high %v6439_v62, %v6443_v60  ;;  %v6435_v11 = vld [vmem:[#allocation10 + $0x9b8] sm:$0xff] }
 0x66e   :  { %v18402_v34 = vpop.f32.mrf.mxu0  ;;  %12042 = vmatpush2.bf16.msra.mxu1 %v15137_v22  ;;  %12078 = vmatprep.subr.bf16.mxu0 %v15282_v40  ;;  %v6327_v22 = vld [vmem:[#allocation10 + $0x658] sm:$0xff]  ;;  %v17725_v40 = vld [vmem:[#allocation11] sm:$0xff] }
 0x66f   :  { %12043 = vmatprep.subr.bf16.mxu1 %v15130_v19  ;;  %v6977_v19 = vrot.slane %v17725_v40, %v18092_v26  ;;  %v6319_v18 = vld [vmem:[#allocation10 + $0x618] sm:$0xff] }
 0x670   :  { %v11770_v8 = vpop.f32.mrf.mxu0  ;;  %v6323_v55 = vld [vmem:[#allocation10 + $0x638] sm:$0xff] }
 0x671   :  { %12079 = vmatpush2.bf16.msra.mxu0 %v15281_v39  ;;  %v6981_v39 = vrot.slane %v17725_v40, %v18095_v30  ;;  %v11767_v8 = vadd.f32 %v18400_v12, %v6977_v19  ;;  %v6423_v53 = vld [vmem:[#allocation10 + $0x958] sm:$0xff] }
 0x672   :  { %v11771_v16 = vpop.f32.mrf.mxu0  ;;  %12044 = vmatpush2.bf16.msra.mxu1 %v15129_v3  ;;  %12080 = vmatprep.subr.bf16.mxu0 %v15274_v43  ;;  %v15353_v3 = vcombine.low %v6439_v62, %v6443_v60  ;;  %v15242_v43 = vcombine.high %v6327_v22, %v6331_v7  ;;  %v6427_v57 = vld [vmem:[#allocation10 + $0x978] sm:$0xff] }
 0x673   :  { %12045 = vmatprep.subr.bf16.mxu1 %v15122_v51  ;;  %v15346_v51 = vcombine.high %v6431_v21, %v6435_v11  ;;  %v15345_v16 = vcombine.low %v6431_v21, %v6435_v11  ;;  %v11769_v30 = vadd.f32 %v18402_v34, %v6981_v39  ;;  %v15338_v12 = vcombine.high %v6423_v53, %v6427_v57  ;;  %v6567_v2 = vld [vmem:[#allocation10 + $0xdd8] sm:$0xff] }
 0x674   :  { %v6571_v25 = vld [vmem:[#allocation10 + $0xdf8] sm:$0xff]  ;;  %v15337_v34 = vcombine.low %v6423_v53, %v6427_v57 }
 0x675   :  { %12081 = vmatpush2.bf16.msra.mxu0 %v15273_v17  ;;  %v15241_v17 = vcombine.low %v6327_v22, %v6331_v7  ;;  %v6415_v54 = vld [vmem:[#allocation10 + $0x918] sm:$0xff] }
 0x676   :  { %12046 = vmatpush2.bf16.msra.mxu1 %v15121_v5  ;;  %12082 = vmatprep.subr.bf16.mxu0 %v15266_v58  ;;  %v15234_v58 = vcombine.high %v6319_v18, %v6323_v55  ;;  %v6559_v52 = vld [vmem:[#allocation10 + $0xd98] sm:$0xff] }
 0x677   :  { %12047 = vmatprep.subr.bf16.mxu1 %v15114_v36  ;;  %v6563_v9 = vld [vmem:[#allocation10 + $0xdb8] sm:$0xff] }
 0x678   :  { %v6407_v62 = vld [vmem:[#allocation10 + $0x8d8] sm:$0xff]  ;;  %v15473_v21 = vcombine.low %v6559_v52, %v6563_v9 }
 0x679   :  { %12083 = vmatpush2.bf16.msra.mxu0 %v15265_v0  ;;  %v6411_v60 = vld [vmem:[#allocation10 + $0x8f8] sm:$0xff] }
 0x67a   :  { %12048 = vmatpush2.bf16.msra.mxu1 %v15113_v23  ;;  %12084 = vmatprep.subr.bf16.mxu0 %v15258_v27  ;;  %v15233_v23 = vcombine.low %v6319_v18, %v6323_v55  ;;  %v15482_v27 = vcombine.high %v6567_v2, %v6571_v25  ;;  %v6551_v22 = vld [vmem:[#allocation10 + $0xd58] sm:$0xff]  ;;  %v15321_v11 = vcombine.low %v6407_v62, %v6411_v60 }
 0x67b   :  { %12049 = vmatprep.subr.bf16.mxu1 %v15106_v28  ;;  %v6555_v40 = vld [vmem:[#allocation10 + $0xd78] sm:$0xff] }
 0x67c   :  { %v6399_v19 = vld [vmem:[#allocation10 + $0x898] sm:$0xff]  ;;  %v15465_v55 = vcombine.low %v6551_v22, %v6555_v40 }
 0x67d   :  { %12085 = vmatpush2.bf16.msra.mxu0 %v15257_v50  ;;  %v15481_v50 = vcombine.low %v6567_v2, %v6571_v25  ;;  %v6403_v7 = vld [vmem:[#allocation10 + $0x8b8] sm:$0xff] }
 0x67e   :  { %12050 = vmatpush2.bf16.msra.mxu1 %v15105_v35  ;;  %12086 = vmatprep.subr.bf16.mxu0 %v15250_v59  ;;  %v15474_v59 = vcombine.high %v6559_v52, %v6563_v9  ;;  %v15314_v39 = vcombine.high %v6399_v19, %v6403_v7  ;;  %v6395_v18 = vld [vmem:[#allocation10 + $0x878] sm:$0xff] }
 0x67f   :  { %12101 = vmatprep.subr.bf16.mxu1 %v15354_v33  ;;  %v15322_v33 = vcombine.high %v6407_v62, %v6411_v60  ;;  %v6539_v57 = vld [vmem:[#allocation10 + $0xcf8] sm:$0xff] }
 0x680   :  { %v6531_v2 = vld [vmem:[#allocation10 + $0xcb8] sm:$0xff] }
 0x681   :  { %12087 = vmatpush2.bf16.msra.mxu0 %v15249_v44  ;;  %v11807_v26 = vpop.f32.mrf.mxu1  ;;  %12052 = vmatmul.mubr.bf16.vlgmr.msra.gmra.mxu1 %v18232_v6  ;;  %v6419_v6 = vld [vmem:[#allocation10 + $0x938] sm:$0xff]  ;;  %v15466_v44 = vcombine.high %v6551_v22, %v6555_v40 }
 0x682   :  { %v18409_v5 = vadd.f32 %v11807_v26, %v11767_v8  ;;  %12102 = vmatpush1.bf16.msra.mxu1 %v15353_v3  ;;  %12133 = vmatprep.mubr.bf16.mxu1 %v18234_v15  ;;  %v15330_v15 = vcombine.high %v6415_v54, %v6419_v6  ;;  %v15329_v35 = vcombine.low %v6415_v54, %v6419_v6  ;;  %v6543_v3 = vld [vmem:[#allocation10 + $0xd18] sm:$0xff] }
 0x683   :  { %v11809_v36 = vpop.f32.mrf.mxu1  ;;  %12088 = vmatprep.subr.bf16.mxu0 %v15242_v43  ;;  %12103 = vmatprep.subr.bf16.mxu1 %v15346_v51  ;;  %v6547_v43 = vld [vmem:[#allocation10 + $0xd38] sm:$0xff] }
 0x684   :  { %v18412_v24 = vadd.f32 %v11809_v36, %v11769_v30  ;;  %v6391_v51 = vld [vmem:[#allocation10 + $0x858] sm:$0xff]  ;;  %v15458_v8 = vcombine.high %v6543_v3, %v6547_v43 }
 0x685   :  { %12089 = vmatpush2.bf16.msra.mxu0 %v15241_v17  ;;  %v11811_v0 = vpop.f32.mrf.mxu1  ;;  %v15306_v53 = vcombine.high %v6391_v51, %v6395_v18  ;;  %v6383_v26 = vld [vmem:[#allocation10 + $0x818] sm:$0xff]  ;;  %v15305_v30 = vcombine.low %v6391_v51, %v6395_v18 }
 0x686   :  { %12104 = vmatpush1.bf16.msra.mxu1 %v15345_v16  ;;  %12090 = vmatprep.subr.bf16.mxu0 %v15234_v58  ;;  %v6387_v17 = vld [vmem:[#allocation10 + $0x838] sm:$0xff]  ;;  %v15457_v16 = vcombine.low %v6543_v3, %v6547_v43 }
 0x687   :  { %v11812_v28 = vpop.f32.mrf.mxu1  ;;  %12105 = vmatprep.subr.bf16.mxu1 %v15338_v12  ;;  %v15298_v36 = vcombine.high %v6383_v26, %v6387_v17  ;;  %v6527_v12 = vld [vmem:[#allocation10 + $0xc98] sm:$0xff]  ;;  %v15297_v0 = vcombine.low %v6383_v26, %v6387_v17 }
 0x688   :  { %v6503_v25 = vld [vmem:[#allocation10 + $0xbd8] sm:$0xff]  ;;  %v15441_v9 = vcombine.low %v6527_v12, %v6531_v2 }
 0x689   :  { %12091 = vmatpush2.bf16.msra.mxu0 %v15233_v23  ;;  %v6507_v54 = vld [vmem:[#allocation10 + $0xbf8] sm:$0xff]  ;;  %v15442_v23 = vcombine.high %v6527_v12, %v6531_v2 }
 0x68a   :  { %12106 = vmatpush1.bf16.msra.mxu1 %v15337_v34  ;;  %12142 = vmatprep.subr.bf16.mxu0 %v15482_v27  ;;  %v15418_v34 = vcombine.high %v6503_v25, %v6507_v54  ;;  %v6519_v27 = vld [vmem:[#allocation10 + $0xc58] sm:$0xff]  ;;  %v15417_v62 = vcombine.low %v6503_v25, %v6507_v54 }
 0x68b   :  { %12107 = vmatprep.subr.bf16.mxu1 %v15330_v15  ;;  %v6523_v28 = vld [vmem:[#allocation10 + $0xc78] sm:$0xff] }
 0x68c   :  { %12093 = vmatmul.mubr.bf16.vlgmr.msra.gmra.mxu0 %v18240_v42  ;;  %v15313_v42 = vcombine.low %v6399_v19, %v6403_v7  ;;  %v6495_v15 = vld [vmem:[#allocation10 + $0xb98] sm:$0xff]  ;;  %v15434_v60 = vcombine.high %v6519_v27, %v6523_v28  ;;  %v15433_v40 = vcombine.low %v6519_v27, %v6523_v28 }
 0x68d   :  { %12143 = vmatpush1.bf16.msra.mxu0 %v15481_v50  ;;  %12174 = vmatprep.mubr.bf16.mxu0 %v18242_v37  ;;  %v6535_v37 = vld [vmem:[#allocation10 + $0xcd8] sm:$0xff] }
 0x68e   :  { %12108 = vmatpush1.bf16.msra.mxu1 %v15329_v35  ;;  %12144 = vmatprep.subr.bf16.mxu0 %v15474_v59  ;;  %v15450_v58 = vcombine.high %v6535_v37, %v6539_v57  ;;  %v15449_v6 = vcombine.low %v6535_v37, %v6539_v57  ;;  %v6499_v52 = vld [vmem:[#allocation10 + $0xbb8] sm:$0xff] }
 0x68f   :  { %12109 = vmatprep.subr.bf16.mxu1 %v15322_v33  ;;  %v15410_v50 = vcombine.high %v6495_v15, %v6499_v52  ;;  %v6511_v35 = vld [vmem:[#allocation10 + $0xc18] sm:$0xff]  ;;  %v15409_v19 = vcombine.low %v6495_v15, %v6499_v52 }
 0x690   :  { %v6515_v59 = vld [vmem:[#allocation10 + $0xc38] sm:$0xff] }
 0x691   :  { %12145 = vmatpush1.bf16.msra.mxu0 %v15473_v21  ;;  %v6487_v33 = vld [vmem:[#allocation10 + $0xb58] sm:$0xff]  ;;  %v15426_v7 = vcombine.high %v6511_v35, %v6515_v59  ;;  %v15425_v43 = vcombine.low %v6511_v35, %v6515_v59 }
 0x692   :  { %12110 = vmatpush1.bf16.msra.mxu1 %v15321_v11  ;;  %12146 = vmatprep.subr.bf16.mxu0 %v15466_v44  ;;  %v6491_v22 = vld [vmem:[#allocation10 + $0xb78] sm:$0xff] }
 0x693   :  { %12111 = vmatprep.subr.bf16.mxu1 %v15314_v39  ;;  %v15402_v21 = vcombine.high %v6487_v33, %v6491_v22  ;;  %v6631_v11 = vld [vmem:[#allocation10 + $0xfd8] sm:$0xff]  ;;  %v15401_v51 = vcombine.low %v6487_v33, %v6491_v22 }
 0x694   :  { %v6635_v44 = vld [vmem:[#allocation10 + $0xff8] sm:$0xff] }
 0x695   :  { %12147 = vmatpush1.bf16.msra.mxu0 %v15465_v55  ;;  %v6479_v39 = vld [vmem:[#allocation10 + $0xb18] sm:$0xff]  ;;  %v15546_v18 = vcombine.high %v6631_v11, %v6635_v44  ;;  %v15545_v57 = vcombine.low %v6631_v11, %v6635_v44 }
 0x696   :  { %12112 = vmatpush1.bf16.msra.mxu1 %v15313_v42  ;;  %12148 = vmatprep.subr.bf16.mxu0 %v15458_v8  ;;  %v6483_v3 = vld [vmem:[#allocation10 + $0xb38] sm:$0xff] }
 0x697   :  { %12113 = vmatprep.subr.bf16.mxu1 %v15306_v53  ;;  %v15394_v55 = vcombine.high %v6479_v39, %v6483_v3  ;;  %v6623_v42 = vld [vmem:[#allocation10 + $0xf98] sm:$0xff]  ;;  %v15393_v26 = vcombine.low %v6479_v39, %v6483_v3 }
 0x698   :  { %v6627_v8 = vld [vmem:[#allocation10 + $0xfb8] sm:$0xff] }
 0x699   :  { %12149 = vmatpush1.bf16.msra.mxu0 %v15457_v16  ;;  %v6471_v53 = vld [vmem:[#allocation10 + $0xad8] sm:$0xff]  ;;  %v15538_v17 = vcombine.high %v6623_v42, %v6627_v8  ;;  %v15537_v54 = vcombine.low %v6623_v42, %v6627_v8 }
 0x69a   :  { %12114 = vmatpush1.bf16.msra.mxu1 %v15305_v30  ;;  %12150 = vmatprep.subr.bf16.mxu0 %v15450_v58  ;;  %v6475_v37 = vld [vmem:[#allocation10 + $0xaf8] sm:$0xff] }
 0x69b   :  { %12115 = vmatprep.subr.bf16.mxu1 %v15298_v36  ;;  %v15386_v16 = vcombine.high %v6471_v53, %v6475_v37  ;;  %v6615_v30 = vld [vmem:[#allocation10 + $0xf58] sm:$0xff] }
 0x69c   :  { %v6619_v58 = vld [vmem:[#allocation10 + $0xf78] sm:$0xff] }
 0x69d   :  { %12151 = vmatpush1.bf16.msra.mxu0 %v15449_v6  ;;  %v6463_v12 = vld [vmem:[#allocation10 + $0xa98] sm:$0xff] }
 0x69e   :  { %12116 = vmatpush1.bf16.msra.mxu1 %v15297_v0  ;;  %12152 = vmatprep.subr.bf16.mxu0 %v15442_v23  ;;  %v6467_v2 = vld [vmem:[#allocation10 + $0xab8] sm:$0xff]  ;;  %v15385_v0 = vcombine.low %v6471_v53, %v6475_v37  ;;  %v15530_v23 = vcombine.high %v6615_v30, %v6619_v58 }
 0x69f   :  { %12117 = vmatprep.subr.bf16.mxu1 %v15418_v34  ;;  %v15378_v27 = vcombine.high %v6463_v12, %v6467_v2  ;;  %v6607_v28 = vld [vmem:[#allocation10 + $0xf18] sm:$0xff] }
 0x6a0   :  { %v6611_v15 = vld [vmem:[#allocation10 + $0xf38] sm:$0xff] }
 0x6a1   :  { %12153 = vmatpush1.bf16.msra.mxu0 %v15441_v9  ;;  %v6455_v9 = vld [vmem:[#allocation10 + $0xa58] sm:$0xff]  ;;  %v15522_v35 = vcombine.high %v6607_v28, %v6611_v15 }
 0x6a2   :  { %12118 = vmatpush2.bf16.msra.mxu1 %v15417_v62  ;;  %12154 = vmatprep.subr.bf16.mxu0 %v15434_v60  ;;  %v6459_v62 = vld [vmem:[#allocation10 + $0xa78] sm:$0xff] }
 0x6a3   :  { %12119 = vmatprep.subr.bf16.mxu1 %v15410_v50  ;;  %v15377_v50 = vcombine.low %v6463_v12, %v6467_v2  ;;  %v15370_v59 = vcombine.high %v6455_v9, %v6459_v62  ;;  %v6599_v33 = vld [vmem:[#allocation10 + $0xed8] sm:$0xff] }
 0x6a4   :  { %v6603_v22 = vld [vmem:[#allocation10 + $0xef8] sm:$0xff] }
 0x6a5   :  { %12155 = vmatpush1.bf16.msra.mxu0 %v15433_v40  ;;  %v6451_v40 = vld [vmem:[#allocation10 + $0xa38] sm:$0xff] }
 0x6a6   :  { %12120 = vmatpush2.bf16.msra.mxu1 %v15409_v19  ;;  %12156 = vmatprep.subr.bf16.mxu0 %v15426_v7  ;;  %v15521_v19 = vcombine.low %v6607_v28, %v6611_v15  ;;  %v15369_v7 = vcombine.low %v6455_v9, %v6459_v62  ;;  %v6591_v44 = vld [vmem:[#allocation10 + $0xe98] sm:$0xff] }
 0x6a7   :  { %12121 = vmatprep.subr.bf16.mxu1 %v15402_v21  ;;  %v15514_v21 = vcombine.high %v6599_v33, %v6603_v22  ;;  %v6595_v39 = vld [vmem:[#allocation10 + $0xeb8] sm:$0xff] }
 0x6a8   :  { %v6695_v3 = vld [vmem:[#allocation10 + $0x11d8] sm:$0xff] }
 0x6a9   :  { %12157 = vmatpush1.bf16.msra.mxu0 %v15425_v43  ;;  %v6699_v43 = vld [vmem:[#allocation10 + $0x11f8] sm:$0xff] }
 0x6aa   :  { %12122 = vmatpush2.bf16.msra.mxu1 %v15401_v51  ;;  %12158 = vmatprep.subr.bf16.mxu0 %v15546_v18  ;;  %v15513_v51 = vcombine.low %v6599_v33, %v6603_v22  ;;  %v15610_v42 = vcombine.high %v6695_v3, %v6699_v43  ;;  %v6583_v8 = vld [vmem:[#allocation10 + $0xe58] sm:$0xff] }
 0x6ab   :  { %12123 = vmatprep.subr.bf16.mxu1 %v15394_v55  ;;  %v15506_v55 = vcombine.high %v6591_v44, %v6595_v39  ;;  %v6587_v53 = vld [vmem:[#allocation10 + $0xe78] sm:$0xff] }
 0x6ac   :  { %v11848_v36 = vpop.f32.mrf.mxu0  ;;  %v6687_v37 = vld [vmem:[#allocation10 + $0x1198] sm:$0xff] }
 0x6ad   :  { %v18417_v25 = vadd.f32 %v11848_v36, %v18409_v5  ;;  %12159 = vmatpush2.bf16.msra.mxu0 %v15545_v57  ;;  %v15529_v5 = vcombine.low %v6615_v30, %v6619_v58  ;;  %v6691_v57 = vld [vmem:[#allocation10 + $0x11b8] sm:$0xff] }
 0x6ae   :  { %v11850_v6 = vpop.f32.mrf.mxu0  ;;  %12124 = vmatpush2.bf16.msra.mxu1 %v15393_v26  ;;  %12160 = vmatprep.subr.bf16.mxu0 %v15538_v17  ;;  %v15505_v26 = vcombine.low %v6591_v44, %v6595_v39  ;;  %v15609_v17 = vcombine.low %v6695_v3, %v6699_v43  ;;  %v15602_v30 = vcombine.high %v6687_v37, %v6691_v57  ;;  %v6575_v58 = vld [vmem:[#allocation10 + $0xe18] sm:$0xff] }
 0x6af   :  { %v18420_v34 = vadd.f32 %v11850_v6, %v18412_v24  ;;  %12125 = vmatprep.subr.bf16.mxu1 %v15386_v16  ;;  %v6447_v24 = vld [vmem:[#allocation10 + $0xa18] sm:$0xff]  ;;  %v15498_v16 = vcombine.high %v6583_v8, %v6587_v53  ;;  %v15497_v6 = vcombine.low %v6583_v8, %v6587_v53 }
 0x6b0   :  { %v11852_v52 = vpop.f32.mrf.mxu0  ;;  %v15362_v11 = vcombine.high %v6447_v24, %v6451_v40  ;;  %v15361_v18 = vcombine.low %v6447_v24, %v6451_v40  ;;  %v6579_v36 = vld [vmem:[#allocation10 + $0xe38] sm:$0xff] }
 0x6b1   :  { %12161 = vmatpush2.bf16.msra.mxu0 %v15537_v54  ;;  %v6679_v12 = vld [vmem:[#allocation10 + $0x1158] sm:$0xff] }
 0x6b2   :  { %v11853_v60 = vpop.f32.mrf.mxu0  ;;  %12126 = vmatpush2.bf16.msra.mxu1 %v15385_v0  ;;  %12162 = vmatprep.subr.bf16.mxu0 %v15530_v23  ;;  %v6683_v2 = vld [vmem:[#allocation10 + $0x1178] sm:$0xff]  ;;  %v15601_v23 = vcombine.low %v6687_v37, %v6691_v57 }
 0x6b3   :  { %12127 = vmatprep.subr.bf16.mxu1 %v15378_v27  ;;  %v15490_v27 = vcombine.high %v6575_v58, %v6579_v36  ;;  %v15594_v15 = vcombine.high %v6679_v12, %v6683_v2  ;;  %v6823_v52 = vld [vmem:[#allocation10 + $0x15d8] sm:$0xff] }
 0x6b4   :  { %v6827_v9 = vld [vmem:[#allocation10 + $0x15f8] sm:$0xff] }
 0x6b5   :  { %12163 = vmatpush2.bf16.msra.mxu0 %v15529_v5  ;;  %v6671_v5 = vld [vmem:[#allocation10 + $0x1118] sm:$0xff] }
 0x6b6   :  { %12128 = vmatpush2.bf16.msra.mxu1 %v15377_v50  ;;  %12164 = vmatprep.subr.bf16.mxu0 %v15522_v35  ;;  %v15593_v50 = vcombine.low %v6679_v12, %v6683_v2  ;;  %v6815_v33 = vld [vmem:[#allocation10 + $0x1598] sm:$0xff] }
 0x6b7   :  { %12129 = vmatprep.subr.bf16.mxu1 %v15370_v59  ;;  %v6819_v22 = vld [vmem:[#allocation10 + $0x15b8] sm:$0xff] }
 0x6b8   :  { %v6663_v24 = vld [vmem:[#allocation10 + $0x10d8] sm:$0xff]  ;;  %v15729_v43 = vcombine.low %v6815_v33, %v6819_v22 }
 0x6b9   :  { %12165 = vmatpush2.bf16.msra.mxu0 %v15521_v19  ;;  %v6667_v40 = vld [vmem:[#allocation10 + $0x10f8] sm:$0xff]  ;;  %v15737_v19 = vcombine.low %v6823_v52, %v6827_v9 }
 0x6ba   :  { %12130 = vmatpush2.bf16.msra.mxu1 %v15369_v7  ;;  %12166 = vmatprep.subr.bf16.mxu0 %v15514_v21  ;;  %v15730_v7 = vcombine.high %v6815_v33, %v6819_v22  ;;  %v15578_v21 = vcombine.high %v6663_v24, %v6667_v40  ;;  %v6811_v44 = vld [vmem:[#allocation10 + $0x1578] sm:$0xff] }
 0x6bb   :  { %12131 = vmatprep.subr.bf16.mxu1 %v15362_v11  ;;  %v6807_v11 = vld [vmem:[#allocation10 + $0x1558] sm:$0xff] }
 0x6bc   :  { %v6655_v39 = vld [vmem:[#allocation10 + $0x1098] sm:$0xff]  ;;  %v15721_v57 = vcombine.low %v6807_v11, %v6811_v44 }
 0x6bd   :  { %12167 = vmatpush2.bf16.msra.mxu0 %v15513_v51  ;;  %v6659_v3 = vld [vmem:[#allocation10 + $0x10b8] sm:$0xff]  ;;  %v15577_v51 = vcombine.low %v6663_v24, %v6667_v40 }
 0x6be   :  { %12132 = vmatpush2.bf16.msra.mxu1 %v15361_v18  ;;  %12168 = vmatprep.subr.bf16.mxu0 %v15506_v55  ;;  %v15722_v18 = vcombine.high %v6807_v11, %v6811_v44  ;;  %v15570_v55 = vcombine.high %v6655_v39, %v6659_v3  ;;  %v6803_v8 = vld [vmem:[#allocation10 + $0x1538] sm:$0xff] }
 0x6bf   :  { %12183 = vmatprep.subr.bf16.mxu1 %v15610_v42  ;;  %v6799_v42 = vld [vmem:[#allocation10 + $0x1518] sm:$0xff] }
 0x6c0   :  { %v6647_v53 = vld [vmem:[#allocation10 + $0x1058] sm:$0xff] }
 0x6c1   :  { %12169 = vmatpush2.bf16.msra.mxu0 %v15505_v26  ;;  %v11889_v54 = vpop.f32.mrf.mxu1  ;;  %12134 = vmatmul.mubr.bf16.vlgmr.msra.gmra.mxu1 %v18258_v56  ;;  %v6675_v56 = vld [vmem:[#allocation10 + $0x1138] sm:$0xff]  ;;  %v15714_v26 = vcombine.high %v6799_v42, %v6803_v8 }
 0x6c2   :  { %v18424_v0 = vadd.f32 %v11889_v54, %v18417_v25  ;;  %12184 = vmatpush1.bf16.msra.mxu1 %v15609_v17  ;;  %12215 = vmatprep.mubr.bf16.mxu1 %v18260_v13  ;;  %v15489_v25 = vcombine.low %v6575_v58, %v6579_v36  ;;  %v15738_v13 = vcombine.high %v6823_v52, %v6827_v9  ;;  %v6651_v37 = vld [vmem:[#allocation10 + $0x1078] sm:$0xff] }
 0x6c3   :  { %v11891_v28 = vpop.f32.mrf.mxu1  ;;  %12170 = vmatprep.subr.bf16.mxu0 %v15498_v16  ;;  %12185 = vmatprep.subr.bf16.mxu1 %v15602_v30  ;;  %v15586_v59 = vcombine.high %v6671_v5, %v6675_v56  ;;  %v15562_v17 = vcombine.high %v6647_v53, %v6651_v37  ;;  %v6795_v16 = vld [vmem:[#allocation10 + $0x14f8] sm:$0xff]  ;;  %v15713_v36 = vcombine.low %v6799_v42, %v6803_v8 }
 0x6c4   :  { %v18428_v62 = vadd.f32 %v11891_v28, %v18420_v34  ;;  %v15585_v34 = vcombine.low %v6671_v5, %v6675_v56  ;;  %v6639_v30 = vld [vmem:[#allocation10 + $0x1018] sm:$0xff]  ;;  %v15561_v12 = vcombine.low %v6647_v53, %v6651_v37 }
 0x6c5   :  { %12171 = vmatpush2.bf16.msra.mxu0 %v15497_v6  ;;  %v11893_v60 = vpop.f32.mrf.mxu1  ;;  %v6643_v58 = vld [vmem:[#allocation10 + $0x1038] sm:$0xff] }
 0x6c6   :  { %12186 = vmatpush1.bf16.msra.mxu1 %v15601_v23  ;;  %12172 = vmatprep.subr.bf16.mxu0 %v15490_v27  ;;  %v15554_v54 = vcombine.high %v6639_v30, %v6643_v58  ;;  %v6783_v6 = vld [vmem:[#allocation10 + $0x1498] sm:$0xff]  ;;  %v15553_v52 = vcombine.low %v6639_v30, %v6643_v58 }
 0x6c7   :  { %v11894_v35 = vpop.f32.mrf.mxu1  ;;  %12187 = vmatprep.subr.bf16.mxu1 %v15594_v15  ;;  %v6787_v23 = vld [vmem:[#allocation10 + $0x14b8] sm:$0xff] }
 0x6c8   :  { %v6759_v27 = vld [vmem:[#allocation10 + $0x13d8] sm:$0xff]  ;;  %v15698_v9 = vcombine.high %v6783_v6, %v6787_v23 }
 0x6c9   :  { %12173 = vmatpush2.bf16.msra.mxu0 %v15489_v25  ;;  %v6763_v28 = vld [vmem:[#allocation10 + $0x13f8] sm:$0xff] }
 0x6ca   :  { %12188 = vmatpush1.bf16.msra.mxu1 %v15593_v50  ;;  %12224 = vmatprep.subr.bf16.mxu0 %v15738_v13  ;;  %v15674_v5 = vcombine.high %v6759_v27, %v6763_v28  ;;  %v6775_v56 = vld [vmem:[#allocation10 + $0x1458] sm:$0xff]  ;;  %v15697_v13 = vcombine.low %v6783_v6, %v6787_v23  ;;  %v15673_v35 = vcombine.low %v6759_v27, %v6763_v28 }
 0x6cb   :  { %12189 = vmatprep.subr.bf16.mxu1 %v15586_v59  ;;  %v6779_v60 = vld [vmem:[#allocation10 + $0x1478] sm:$0xff] }
 0x6cc   :  { %12175 = vmatmul.mubr.bf16.vlgmr.msra.gmra.mxu0 %v18267_v4  ;;  %v15569_v4 = vcombine.low %v6655_v39, %v6659_v3  ;;  %v6751_v25 = vld [vmem:[#allocation10 + $0x1398] sm:$0xff]  ;;  %v15690_v59 = vcombine.high %v6775_v56, %v6779_v60 }
 0x6cd   :  { %12225 = vmatpush1.bf16.msra.mxu0 %v15737_v19  ;;  %12256 = vmatprep.mubr.bf16.mxu0 %v18275_v46  ;;  %v6791_v46 = vld [vmem:[#allocation10 + $0x14d8] sm:$0xff] }
 0x6ce   :  { %12190 = vmatpush1.bf16.msra.mxu1 %v15585_v34  ;;  %12226 = vmatprep.subr.bf16.mxu0 %v15730_v7  ;;  %v15706_v2 = vcombine.high %v6791_v46, %v6795_v16  ;;  %v15705_v15 = vcombine.low %v6791_v46, %v6795_v16  ;;  %v6755_v50 = vld [vmem:[#allocation10 + $0x13b8] sm:$0xff]  ;;  %v15689_v34 = vcombine.low %v6775_v56, %v6779_v60 }
 0x6cf   :  { %12191 = vmatprep.subr.bf16.mxu1 %v15578_v21  ;;  %v15666_v33 = vcombine.high %v6751_v25, %v6755_v50  ;;  %v6767_v22 = vld [vmem:[#allocation10 + $0x1418] sm:$0xff]  ;;  %v15665_v7 = vcombine.low %v6751_v25, %v6755_v50 }
 0x6d0   :  { %v6771_v24 = vld [vmem:[#allocation10 + $0x1438] sm:$0xff] }
 0x6d1   :  { %12227 = vmatpush1.bf16.msra.mxu0 %v15729_v43  ;;  %v6743_v40 = vld [vmem:[#allocation10 + $0x1358] sm:$0xff]  ;;  %v15682_v21 = vcombine.high %v6767_v22, %v6771_v24 }
 0x6d2   :  { %12192 = vmatpush1.bf16.msra.mxu1 %v15577_v51  ;;  %12228 = vmatprep.subr.bf16.mxu0 %v15722_v18  ;;  %v6747_v19 = vld [vmem:[#allocation10 + $0x1378] sm:$0xff]  ;;  %v15681_v51 = vcombine.low %v6767_v22, %v6771_v24 }
 0x6d3   :  { %12193 = vmatprep.subr.bf16.mxu1 %v15570_v55  ;;  %v15658_v11 = vcombine.high %v6743_v40, %v6747_v19  ;;  %v6887_v44 = vld [vmem:[#allocation10 + $0x17d8] sm:$0xff]  ;;  %v15657_v18 = vcombine.low %v6743_v40, %v6747_v19 }
 0x6d4   :  { %v6891_v39 = vld [vmem:[#allocation10 + $0x17f8] sm:$0xff] }
 0x6d5   :  { %12229 = vmatpush1.bf16.msra.mxu0 %v15721_v57  ;;  %v6735_v3 = vld [vmem:[#allocation10 + $0x1318] sm:$0xff]  ;;  %v15802_v55 = vcombine.high %v6887_v44, %v6891_v39 }
 0x6d6   :  { %12194 = vmatpush1.bf16.msra.mxu1 %v15569_v4  ;;  %12230 = vmatprep.subr.bf16.mxu0 %v15714_v26  ;;  %v6739_v43 = vld [vmem:[#allocation10 + $0x1338] sm:$0xff]  ;;  %v15801_v4 = vcombine.low %v6887_v44, %v6891_v39 }
 0x6d7   :  { %12195 = vmatprep.subr.bf16.mxu1 %v15562_v17  ;;  %v15650_v42 = vcombine.high %v6735_v3, %v6739_v43  ;;  %v6879_v8 = vld [vmem:[#allocation10 + $0x1798] sm:$0xff]  ;;  %v15649_v26 = vcombine.low %v6735_v3, %v6739_v43 }
 0x6d8   :  { %v6883_v53 = vld [vmem:[#allocation10 + $0x17b8] sm:$0xff] }
 0x6d9   :  { %12231 = vmatpush1.bf16.msra.mxu0 %v15713_v36  ;;  %v6727_v37 = vld [vmem:[#allocation10 + $0x12d8] sm:$0xff]  ;;  %v15794_v17 = vcombine.high %v6879_v8, %v6883_v53 }
 0x6da   :  { %12196 = vmatpush1.bf16.msra.mxu1 %v15561_v12  ;;  %12232 = vmatprep.subr.bf16.mxu0 %v15706_v2  ;;  %v6731_v57 = vld [vmem:[#allocation10 + $0x12f8] sm:$0xff] }
 0x6db   :  { %12197 = vmatprep.subr.bf16.mxu1 %v15554_v54  ;;  %v15642_v46 = vcombine.high %v6727_v37, %v6731_v57  ;;  %v6871_v16 = vld [vmem:[#allocation10 + $0x1758] sm:$0xff]  ;;  %v15793_v54 = vcombine.low %v6879_v8, %v6883_v53  ;;  %v15641_v23 = vcombine.low %v6727_v37, %v6731_v57 }
 0x6dc   :  { %v6875_v30 = vld [vmem:[#allocation10 + $0x1778] sm:$0xff] }
 0x6dd   :  { %12233 = vmatpush1.bf16.msra.mxu0 %v15705_v15  ;;  %v6719_v36 = vld [vmem:[#allocation10 + $0x1298] sm:$0xff]  ;;  %v15786_v27 = vcombine.high %v6871_v16, %v6875_v30 }
 0x6de   :  { %12198 = vmatpush1.bf16.msra.mxu1 %v15553_v52  ;;  %12234 = vmatprep.subr.bf16.mxu0 %v15698_v9  ;;  %v6723_v12 = vld [vmem:[#allocation10 + $0x12b8] sm:$0xff] }
 0x6df   :  { %12199 = vmatprep.subr.bf16.mxu1 %v15674_v5  ;;  %v15634_v15 = vcombine.high %v6719_v36, %v6723_v12  ;;  %v6863_v52 = vld [vmem:[#allocation10 + $0x1718] sm:$0xff]  ;;  %v15633_v50 = vcombine.low %v6719_v36, %v6723_v12 }
 0x6e0   :  { %v6867_v9 = vld [vmem:[#allocation10 + $0x1738] sm:$0xff] }
 0x6e1   :  { %12235 = vmatpush1.bf16.msra.mxu0 %v15697_v13  ;;  %v6711_v56 = vld [vmem:[#allocation10 + $0x1258] sm:$0xff]  ;;  %v15778_v13 = vcombine.high %v6863_v52, %v6867_v9  ;;  %v15777_v24 = vcombine.low %v6863_v52, %v6867_v9 }
 0x6e2   :  { %12200 = vmatpush2.bf16.msra.mxu1 %v15673_v35  ;;  %12236 = vmatprep.subr.bf16.mxu0 %v15690_v59  ;;  %v6715_v60 = vld [vmem:[#allocation10 + $0x1278] sm:$0xff] }
 0x6e3   :  { %12201 = vmatprep.subr.bf16.mxu1 %v15666_v33  ;;  %v15626_v35 = vcombine.high %v6711_v56, %v6715_v60  ;;  %v6855_v59 = vld [vmem:[#allocation10 + $0x16d8] sm:$0xff]  ;;  %v15625_v40 = vcombine.low %v6711_v56, %v6715_v60  ;;  %v12307_v56 = vmax.f32 %v18358_v14, 0.0 }
 0x6e4   :  { %v6859_v33 = vld [vmem:[#allocation10 + $0x16f8] sm:$0xff] }
 0x6e5   :  { %12237 = vmatpush1.bf16.msra.mxu0 %v15689_v34  ;;  %v6707_v22 = vld [vmem:[#allocation10 + $0x1238] sm:$0xff]  ;;  %v15770_v19 = vcombine.high %v6855_v59, %v6859_v33  ;;  %v15769_v39 = vcombine.low %v6855_v59, %v6859_v33 }
 0x6e6   :  { %12202 = vmatpush2.bf16.msra.mxu1 %v15665_v7  ;;  %12238 = vmatprep.subr.bf16.mxu0 %v15682_v21  ;;  %v6847_v7 = vld [vmem:[#allocation10 + $0x1698] sm:$0xff] }
 0x6e7   :  { %12203 = vmatprep.subr.bf16.mxu1 %v15658_v11  ;;  %v6851_v21 = vld [vmem:[#allocation10 + $0x16b8] sm:$0xff] }
 0x6e8   :  { %v6951_v11 = vld [vmem:[#allocation10 + $0x19d8] sm:$0xff]  ;;  %v15762_v43 = vcombine.high %v6847_v7, %v6851_v21  ;;  %v15761_v53 = vcombine.low %v6847_v7, %v6851_v21 }
 0x6e9   :  { %12239 = vmatpush1.bf16.msra.mxu0 %v15681_v51  ;;  %v6955_v44 = vld [vmem:[#allocation10 + $0x19f8] sm:$0xff] }
 0x6ea   :  { %12204 = vmatpush2.bf16.msra.mxu1 %v15657_v18  ;;  %12240 = vmatprep.subr.bf16.mxu0 %v15802_v55  ;;  %v15866_v51 = vcombine.high %v6951_v11, %v6955_v44  ;;  %v6839_v18 = vld [vmem:[#allocation10 + $0x1658] sm:$0xff]  ;;  %v15865_v37 = vcombine.low %v6951_v11, %v6955_v44 }
 0x6eb   :  { %12205 = vmatprep.subr.bf16.mxu1 %v15650_v42  ;;  %v6843_v55 = vld [vmem:[#allocation10 + $0x1678] sm:$0xff] }
 0x6ec   :  { %v11930_v58 = vpop.f32.mrf.mxu0  ;;  %v6943_v42 = vld [vmem:[#allocation10 + $0x1998] sm:$0xff]  ;;  %v15754_v57 = vcombine.high %v6839_v18, %v6843_v55 }
 0x6ed   :  { %v18433_v2 = vadd.f32 %v11930_v58, %v18424_v0  ;;  %12241 = vmatpush2.bf16.msra.mxu0 %v15801_v4  ;;  %v15785_v0 = vcombine.low %v6871_v16, %v6875_v30  ;;  %v6947_v8 = vld [vmem:[#allocation10 + $0x19b8] sm:$0xff]  ;;  %v15753_v58 = vcombine.low %v6839_v18, %v6843_v55 }
 0x6ee   :  { %v11932_v6 = vpop.f32.mrf.mxu0  ;;  %12206 = vmatpush2.bf16.msra.mxu1 %v15649_v26  ;;  %12242 = vmatprep.subr.bf16.mxu0 %v15794_v17  ;;  %v15858_v4 = vcombine.high %v6943_v42, %v6947_v8  ;;  %v6831_v26 = vld [vmem:[#allocation10 + $0x1618] sm:$0xff]  ;;  %v15857_v12 = vcombine.low %v6943_v42, %v6947_v8 }
 0x6ef   :  { %v18436_v28 = vadd.f32 %v11932_v6, %v18428_v62  ;;  %12207 = vmatprep.subr.bf16.mxu1 %v15642_v46  ;;  %v6703_v62 = vld [vmem:[#allocation10 + $0x1218] sm:$0xff] }
 0x6f0   :  { %v11934_v5 = vpop.f32.mrf.mxu0  ;;  %v15618_v34 = vcombine.high %v6703_v62, %v6707_v22  ;;  %v15617_v3 = vcombine.low %v6703_v62, %v6707_v22  ;;  %v6835_v17 = vld [vmem:[#allocation10 + $0x1638] sm:$0xff] }
 0x6f1   :  { %12243 = vmatpush2.bf16.msra.mxu0 %v15793_v54  ;;  %v6935_v46 = vld [vmem:[#allocation10 + $0x1958] sm:$0xff]  ;;  %v15746_v54 = vcombine.high %v6831_v26, %v6835_v17 }
 0x6f2   :  { %v11935_v25 = vpop.f32.mrf.mxu0  ;;  %12208 = vmatpush2.bf16.msra.mxu1 %v15641_v23  ;;  %12244 = vmatprep.subr.bf16.mxu0 %v15786_v27  ;;  %v6939_v16 = vld [vmem:[#allocation10 + $0x1978] sm:$0xff] }
 0x6f3   :  { %12209 = vmatprep.subr.bf16.mxu1 %v15634_v15  ;;  %v15850_v23 = vcombine.high %v6935_v46, %v6939_v16  ;;  %v6927_v15 = vld [vmem:[#allocation10 + $0x1918] sm:$0xff] }
 0x6f4   :  { %v6931_v52 = vld [vmem:[#allocation10 + $0x1938] sm:$0xff] }
 0x6f5   :  { %12245 = vmatpush2.bf16.msra.mxu0 %v15785_v0  ;;  %v17340_v5 = vld [vmem:[#allocation13 + $0xe4] ss:$16 sps:$4 sm:$0xff]   ;;  %v15842_v0 = vcombine.high %v6927_v15, %v6931_v52  ;;  %v17347_v42 = vld [vmem:[#allocation13 + $0x80] ss:$16 sps:$4 sm:$0xff]  }
 0x6f6   :  { %12210 = vmatpush2.bf16.msra.mxu1 %v15633_v50  ;;  %12246 = vmatprep.subr.bf16.mxu0 %v15778_v13  ;;  %v6919_v25 = vld [vmem:[#allocation10 + $0x18d8] sm:$0xff] }
 0x6f7   :  { %12211 = vmatprep.subr.bf16.mxu1 %v15626_v35  ;;  %v6923_v50 = vld [vmem:[#allocation10 + $0x18f8] sm:$0xff]  ;;  %v18445_v35 = vpack.c.bf16 %v12307_v56, %v12307_v56 }
 0x6f8   :  { %v17343_v13 = vld [vmem:[#allocation13 + $0xc4] ss:$16 sps:$4 sm:$0xff]   ;;  %v15834_v59 = vcombine.high %v6919_v25, %v6923_v50 }
 0x6f9   :  { %12247 = vmatpush2.bf16.msra.mxu0 %v15777_v24  ;;  %v6911_v62 = vld [vmem:[#allocation10 + $0x1898] sm:$0xff] }
 0x6fa   :  { %12212 = vmatpush2.bf16.msra.mxu1 %v15625_v40  ;;  %12248 = vmatprep.subr.bf16.mxu0 %v15770_v19  ;;  %v6915_v14 = vld [vmem:[#allocation10 + $0x18b8] sm:$0xff]  ;;  %v15833_v19 = vcombine.low %v6919_v25, %v6923_v50 }
 0x6fb   :  { %12213 = vmatprep.subr.bf16.mxu1 %v15618_v34  ;;  %v17341_v24 = vld [vmem:[#allocation13 + $0xc0] ss:$16 sps:$4 sm:$0xff]   ;;  %v17346_v34 = vld [vmem:[#allocation13 + $0xa4] ss:$16 sps:$4 sm:$0xff]   ;;  %v15826_v7 = vcombine.high %v6911_v62, %v6915_v14 }
 0x6fc   :  { %v6903_v11 = vld [vmem:[#allocation10 + $0x1858] sm:$0xff] }
 0x6fd   :  { %12249 = vmatpush2.bf16.msra.mxu0 %v15769_v39  ;;  %v6907_v44 = vld [vmem:[#allocation10 + $0x1878] sm:$0xff] }
 0x6fe   :  { %12214 = vmatpush2.bf16.msra.mxu1 %v15617_v3  ;;  %12250 = vmatprep.subr.bf16.mxu0 %v15762_v43  ;;  %v15825_v3 = vcombine.low %v6911_v62, %v6915_v14  ;;  %v17349_v43 = vld [vmem:[#allocation13 + $0x84] ss:$16 sps:$4 sm:$0xff]   ;;  %v15817_v8 = vcombine.low %v6903_v11, %v6907_v44  ;;  %v17392_v62 = vld [vmem:[#allocation13 + $0x220] ss:$16 sps:$4 sm:$0xff]  }
 0x6ff   :  { %12265 = vmatprep.subr.bf16.mxu1 %v15866_v51  ;;  %v15818_v51 = vcombine.high %v6903_v11, %v6907_v44  ;;  %v6895_v18 = vld [vmem:[#allocation10 + $0x1818] sm:$0xff] }
 0x700   :  { %v6899_v55 = vld [vmem:[#allocation10 + $0x1838] sm:$0xff] }
 0x701   :  { %12251 = vmatpush2.bf16.msra.mxu0 %v15761_v53  ;;  %v11971_v30 = vpop.f32.mrf.mxu1  ;;  %12216 = vmatmul.mubr.bf16.vlgmr.msra.gmra.mxu1 %v18279_v63  ;;  %v15745_v63 = vcombine.low %v6831_v26, %v6835_v17  ;;  %v17352_v53 = vld [vmem:[#allocation13 + $0x64] ss:$16 sps:$4 sm:$0xff]   ;;  %v17401_v11 = vld [vmem:[#allocation13 + $0x140] ss:$16 sps:$4 sm:$0xff]  }
 0x702   :  { %v11972_v36 = vadd.f32 %v11971_v30, %v18433_v2  ;;  %12266 = vmatpush1.bf16.msra.mxu1 %v15865_v37  ;;  %12252 = vmatprep.subr.bf16.mxu0 %v15754_v57  ;;  %v15849_v2 = vcombine.low %v6935_v46, %v6939_v16  ;;  %v15810_v37 = vcombine.high %v6895_v18, %v6899_v55  ;;  %v17350_v57 = vld [vmem:[#allocation13 + $0x60] ss:$16 sps:$4 sm:$0xff]   ;;  %v17355_v26 = vld [vmem:[#allocation13 + $0x44] ss:$16 sps:$4 sm:$0xff]   ;;  %v12309_v46 = vmax.f32 %v18396_v32, 0.0 }
 0x703   :  { %v11973_v6 = vpop.f32.mrf.mxu1  ;;  %12267 = vmatprep.subr.bf16.mxu1 %v15858_v4  ;;  %12297 = vmatprep.mubr.bf16.mxu1 %v17934_v1  ;;  %v17338_v1 = vld [vmem:[#allocation13 + $0xe0] ss:$16 sps:$4 sm:$0xff]   ;;  %v15809_v4 = vcombine.low %v6895_v18, %v6899_v55  ;;  %v17358_v17 = vld [vmem:[#allocation13 + $0x2e4] ss:$16 sps:$4 sm:$0xff]  }
 0x704   :  { %v18442_v27 = vadd.f32 %v11973_v6, %v18436_v28  ;;  %v15841_v28 = vcombine.low %v6927_v15, %v6931_v52  ;;  %v17353_v16 = vld [vmem:[#allocation13 + $0x40] ss:$16 sps:$4 sm:$0xff]   ;;  %v17370_v32 = vld [vmem:[#allocation13 + $0x2a4] ss:$16 sps:$4 sm:$0xff]  }
 0x705   :  { %12253 = vmatpush2.bf16.msra.mxu0 %v15753_v58  ;;  %v11975_v9 = vpop.f32.mrf.mxu1  ;;  %v17356_v30 = vld [vmem:[#allocation13 + $0x2e0] ss:$16 sps:$4 sm:$0xff]   ;;  %v17361_v58 = vld [vmem:[#allocation13 + $0x24] ss:$16 sps:$4 sm:$0xff]  }
 0x706   :  { %12268 = vmatpush1.bf16.msra.mxu1 %v15857_v12  ;;  %12254 = vmatprep.subr.bf16.mxu0 %v15746_v54  ;;  %v18454_v12 = vpack.c.bf16 %v12309_v46, %v12309_v46  ;;  %v17359_v54 = vld [vmem:[#allocation13 + $0x20] ss:$16 sps:$4 sm:$0xff]   ;;  %v17373_v9 = vld [vmem:[#allocation13 + $0x1e4] ss:$16 sps:$4 sm:$0xff]   ;;  %v17726_v46 = vld [vmem:[#allocation11] sm:$0xff] }
 0x707   :  { %v11976_v60 = vpop.f32.mrf.mxu1  ;;  %12269 = vmatprep.subr.bf16.mxu1 %v15850_v23  ;;  %v17362_v6 = vld [vmem:[#allocation13 + $0x2c0] ss:$16 sps:$4 sm:$0xff]   ;;  %v17367_v23 = vld [vmem:[#allocation13 + $0x4] ss:$16 sps:$4 sm:$0xff]  }
 0x708   :  { %v17365_v15 = vld [vmem:[#allocation13] ss:$16 sps:$4 sm:$0xff]   ;;  %v17382_v56 = vld [vmem:[#allocation13 + $0x264] ss:$16 sps:$4 sm:$0xff]  }
 0x709   :  { %12255 = vmatpush2.bf16.msra.mxu0 %v15745_v63  ;;  %v17368_v52 = vld [vmem:[#allocation13 + $0x2a0] ss:$16 sps:$4 sm:$0xff]   ;;  %v17376_v63 = vld [vmem:[#allocation13 + $0x284] ss:$16 sps:$4 sm:$0xff]  }
 0x70a   :  { %12270 = vmatpush1.bf16.msra.mxu1 %v15849_v2  ;;  %13880 = vmatprep.subr.bf16.mxu0 %v17340_v5  ;;  %v17371_v2 = vld [vmem:[#allocation13 + $0x1e0] ss:$16 sps:$4 sm:$0xff]   ;;  %v17379_v5 = vld [vmem:[#allocation13 + $0x1c4] ss:$16 sps:$4 sm:$0xff]  }
 0x70b   :  { %12271 = vmatprep.subr.bf16.mxu1 %v15842_v0  ;;  %v17377_v60 = vld [vmem:[#allocation13 + $0x1c0] ss:$16 sps:$4 sm:$0xff]   ;;  %v17385_v25 = vld [vmem:[#allocation13 + $0x1a4] ss:$16 sps:$4 sm:$0xff]  }
 0x70c   :  { %v12012_v33 = vpop.f32.mrf.mxu0  ;;  %12257 = vmatmul.mubr.bf16.vlgmr.msra.gmra.mxu0 %v18302_v61  ;;  %v17344_v61 = vld [vmem:[#allocation13 + $0xa0] ss:$16 sps:$4 sm:$0xff]   ;;  %v17388_v50 = vld [vmem:[#allocation13 + $0x244] ss:$16 sps:$4 sm:$0xff]  }
 0x70d   :  { %v18448_v22 = vadd.f32 %v12012_v33, %v11972_v36  ;;  %13881 = vmatpush1.bf16.msra.mxu0 %v17338_v1  ;;  %13912 = vmatprep.mubr.bf16.mxu0 %v18445_v35  ;;  %v17364_v36 = vld [vmem:[#allocation13 + $0x2c4] ss:$16 sps:$4 sm:$0xff]   ;;  %v17380_v0 = vld [vmem:[#allocation13 + $0x260] ss:$16 sps:$4 sm:$0xff]  }
 0x70e   :  { %v18451_v40 = vpop.f32.mrf.mxu0  ;;  %12272 = vmatpush1.bf16.msra.mxu1 %v15841_v28  ;;  %13882 = vmatprep.subr.bf16.mxu0 %v17343_v13  ;;  %v17383_v1 = vld [vmem:[#allocation13 + $0x1a0] ss:$16 sps:$4 sm:$0xff]   ;;  %v17391_v13 = vld [vmem:[#allocation13 + $0x184] ss:$16 sps:$4 sm:$0xff]  }
 0x70f   :  { %12273 = vmatprep.subr.bf16.mxu1 %v15834_v59  ;;  %v17386_v28 = vld [vmem:[#allocation13 + $0x240] ss:$16 sps:$4 sm:$0xff]   ;;  %v17394_v59 = vld [vmem:[#allocation13 + $0x224] ss:$16 sps:$4 sm:$0xff]   ;;  %v12015_v55 = vadd.f32 %v18451_v40, %v18442_v27  ;;  %v6989_v40 = vrot.slane %v17726_v46, %v2037_v49 }
 0x710   :  { %v12016_v21 = vpop.f32.mrf.mxu0  ;;  %v17389_v33 = vld [vmem:[#allocation13 + $0x180] ss:$16 sps:$4 sm:$0xff]   ;;  %v17397_v14 = vld [vmem:[#allocation13 + $0x164] ss:$16 sps:$4 sm:$0xff]  }
 0x711   :  { %13883 = vmatpush1.bf16.msra.mxu0 %v17341_v24  ;;  %v17400_v24 = vld [vmem:[#allocation13 + $0x204] ss:$16 sps:$4 sm:$0xff]   ;;  %v17404_v44 = vld [vmem:[#allocation13 + $0x3e0] ss:$16 sps:$4 sm:$0xff]  }
 0x712   :  { %v12017_v39 = vpop.f32.mrf.mxu0  ;;  %12274 = vmatpush1.bf16.msra.mxu1 %v15833_v19  ;;  %13884 = vmatprep.subr.bf16.mxu0 %v17346_v34  ;;  %v17395_v19 = vld [vmem:[#allocation13 + $0x160] ss:$16 sps:$4 sm:$0xff]   ;;  %v17406_v21 = vld [vmem:[#allocation13 + $0x3e4] ss:$16 sps:$4 sm:$0xff]  }
 0x713   :  { %12275 = vmatprep.subr.bf16.mxu1 %v15826_v7  ;;  %v17398_v34 = vld [vmem:[#allocation13 + $0x200] ss:$16 sps:$4 sm:$0xff]   ;;  %v17403_v7 = vld [vmem:[#allocation13 + $0x144] ss:$16 sps:$4 sm:$0xff]  }
 0x714   :  { %v17412_v39 = vld [vmem:[#allocation13 + $0x3c4] ss:$16 sps:$4 sm:$0xff]  }
 0x715   :  { %13885 = vmatpush1.bf16.msra.mxu0 %v17344_v61  ;;  %v17409_v61 = vld [vmem:[#allocation13 + $0x124] ss:$16 sps:$4 sm:$0xff]  }
 0x716   :  { %12276 = vmatpush1.bf16.msra.mxu1 %v15825_v3  ;;  %13886 = vmatprep.subr.bf16.mxu0 %v17349_v43  ;;  %v17407_v43 = vld [vmem:[#allocation13 + $0x120] ss:$16 sps:$4 sm:$0xff]   ;;  %v17415_v18 = vld [vmem:[#allocation13 + $0x104] ss:$16 sps:$4 sm:$0xff]  }
 0x717   :  { %12277 = vmatprep.subr.bf16.mxu1 %v15818_v51  ;;  %v17410_v51 = vld [vmem:[#allocation13 + $0x3c0] ss:$16 sps:$4 sm:$0xff]   ;;  %v17424_v27 = vld [vmem:[#allocation13 + $0x384] ss:$16 sps:$4 sm:$0xff]  }
 0x719   :  { %13887 = vmatpush1.bf16.msra.mxu0 %v17347_v42 }
 0x71a   :  { %12278 = vmatpush1.bf16.msra.mxu1 %v15817_v8  ;;  %13888 = vmatprep.subr.bf16.mxu0 %v17352_v53  ;;  %v17418_v8 = vld [vmem:[#allocation13 + $0x3a4] ss:$16 sps:$4 sm:$0xff]  }
 0x71b   :  { %12279 = vmatprep.subr.bf16.mxu1 %v15810_v37  ;;  %v17413_v37 = vld [vmem:[#allocation13 + $0x100] ss:$16 sps:$4 sm:$0xff]  }
 0x71d   :  { %13889 = vmatpush1.bf16.msra.mxu0 %v17350_v57  ;;  %v12306_v57 = vmax.f32 %v18355_v38, 0.0  ;;  %v17422_v38 = vld [vmem:[#allocation13 + $0x380] ss:$16 sps:$4 sm:$0xff]  }
 0x71e   :  { %12280 = vmatpush1.bf16.msra.mxu1 %v15809_v4  ;;  %13890 = vmatprep.subr.bf16.mxu0 %v17355_v26  ;;  %v17416_v4 = vld [vmem:[#allocation13 + $0x3a0] ss:$16 sps:$4 sm:$0xff]   ;;  %v17421_v26 = vld [vmem:[#allocation13 + $0x4e4] ss:$16 sps:$4 sm:$0xff]  }
 0x71f   :  { %13921 = vmatprep.subr.bf16.mxu1 %v17358_v17  ;;  %v12311_v17 = vmax.f32 %v12015_v55, 0.0  ;;  %v17526_v55 = vld [vmem:[#allocation13 + $0x684] ss:$16 sps:$4 sm:$0xff]  }
 0x721   :  { %13891 = vmatpush1.bf16.msra.mxu0 %v17353_v16  ;;  %12298 = vmatmul.mubr.bf16.vlgmr.msra.gmra.mxu1 %v18308_v20  ;;  %v17374_v20 = vld [vmem:[#allocation13 + $0x280] ss:$16 sps:$4 sm:$0xff]   ;;  %v6985_v16 = vrot.slane %v17726_v46, %v2033_v41 }
 0x722   :  { %13922 = vmatpush1.bf16.msra.mxu1 %v17356_v30  ;;  %13953 = vmatprep.mubr.bf16.mxu1 %v18454_v12  ;;  %v17464_v46 = vld [vmem:[#allocation13 + $0x5a0] ss:$16 sps:$4 sm:$0xff]  }
 0x723   :  { %13892 = vmatprep.subr.bf16.mxu0 %v17361_v58  ;;  %13923 = vmatprep.subr.bf16.mxu1 %v17364_v36  ;;  %v17419_v58 = vld [vmem:[#allocation13 + $0x4e0] ss:$16 sps:$4 sm:$0xff]   ;;  %v18465_v36 = vpack.c.bf16 %v12306_v57, %v12306_v57 }
 0x724   :  { %v17461_v57 = vld [vmem:[#allocation13 + $0x5c0] ss:$16 sps:$4 sm:$0xff]  }
 0x725   :  { %13893 = vmatpush1.bf16.msra.mxu0 %v17359_v54  ;;  %v17427_v54 = vld [vmem:[#allocation13 + $0x4c4] ss:$16 sps:$4 sm:$0xff]  }
 0x726   :  { %13924 = vmatpush1.bf16.msra.mxu1 %v17362_v6  ;;  %13894 = vmatprep.subr.bf16.mxu0 %v17367_v23  ;;  %v18467_v6 = vpack.c.bf16 %v12311_v17, %v12311_v17  ;;  %v17538_v17 = vld [vmem:[#allocation13 + $0x644] ss:$16 sps:$4 sm:$0xff]  }
 0x727   :  { %13925 = vmatprep.subr.bf16.mxu1 %v17370_v32  ;;  %v17430_v32 = vld [vmem:[#allocation13 + $0x364] ss:$16 sps:$4 sm:$0xff]  }
 0x729   :  { %13895 = vmatpush1.bf16.msra.mxu0 %v17365_v15 }
 0x72a   :  { %13926 = vmatpush1.bf16.msra.mxu1 %v17368_v52  ;;  %13896 = vmatprep.subr.bf16.mxu0 %v17373_v9  ;;  %v17428_v9 = vld [vmem:[#allocation13 + $0x360] ss:$16 sps:$4 sm:$0xff]  }
 0x72b   :  { %13927 = vmatprep.subr.bf16.mxu1 %v17376_v63  ;;  %v17433_v63 = vld [vmem:[#allocation13 + $0x4a4] ss:$16 sps:$4 sm:$0xff]  }
 0x72d   :  { %13897 = vmatpush2.bf16.msra.mxu0 %v17371_v2 }
 0x72e   :  { %13928 = vmatpush1.bf16.msra.mxu1 %v17374_v20  ;;  %13898 = vmatprep.subr.bf16.mxu0 %v17379_v5  ;;  %v17436_v20 = vld [vmem:[#allocation13 + $0x344] ss:$16 sps:$4 sm:$0xff]  }
 0x72f   :  { %13929 = vmatprep.subr.bf16.mxu1 %v17382_v56  ;;  %v17431_v56 = vld [vmem:[#allocation13 + $0x4a0] ss:$16 sps:$4 sm:$0xff]  }
 0x731   :  { %13899 = vmatpush2.bf16.msra.mxu0 %v17377_v60 }
 0x732   :  { %13930 = vmatpush1.bf16.msra.mxu1 %v17380_v0  ;;  %13900 = vmatprep.subr.bf16.mxu0 %v17385_v25  ;;  %v17434_v0 = vld [vmem:[#allocation13 + $0x340] ss:$16 sps:$4 sm:$0xff]   ;;  %v17439_v25 = vld [vmem:[#allocation13 + $0x484] ss:$16 sps:$4 sm:$0xff]  }
 0x733   :  { %13931 = vmatprep.subr.bf16.mxu1 %v17388_v50  ;;  %v17442_v50 = vld [vmem:[#allocation13 + $0x324] ss:$16 sps:$4 sm:$0xff]  }
 0x735   :  { %13901 = vmatpush2.bf16.msra.mxu0 %v17383_v1  ;;  %v17437_v1 = vld [vmem:[#allocation13 + $0x480] ss:$16 sps:$4 sm:$0xff]  }
 0x736   :  { %13932 = vmatpush1.bf16.msra.mxu1 %v17386_v28  ;;  %13902 = vmatprep.subr.bf16.mxu0 %v17391_v13  ;;  %v17440_v28 = vld [vmem:[#allocation13 + $0x320] ss:$16 sps:$4 sm:$0xff]   ;;  %v17445_v13 = vld [vmem:[#allocation13 + $0x464] ss:$16 sps:$4 sm:$0xff]  }
 0x737   :  { %13933 = vmatprep.subr.bf16.mxu1 %v17394_v59  ;;  %v17448_v59 = vld [vmem:[#allocation13 + $0x304] ss:$16 sps:$4 sm:$0xff]  }
 0x739   :  { %13903 = vmatpush2.bf16.msra.mxu0 %v17389_v33  ;;  %v17443_v33 = vld [vmem:[#allocation13 + $0x460] ss:$16 sps:$4 sm:$0xff]  }
 0x73a   :  { %13934 = vmatpush1.bf16.msra.mxu1 %v17392_v62  ;;  %13904 = vmatprep.subr.bf16.mxu0 %v17397_v14  ;;  %v17446_v62 = vld [vmem:[#allocation13 + $0x300] ss:$16 sps:$4 sm:$0xff]   ;;  %v17451_v14 = vld [vmem:[#allocation13 + $0x444] ss:$16 sps:$4 sm:$0xff]  }
 0x73b   :  { %13935 = vmatprep.subr.bf16.mxu1 %v17400_v24  ;;  %v12308_v24 = vmax.f32 %v18392_v31, 0.0  ;;  %v17512_v31 = vld [vmem:[#allocation13 + $0x6c0] ss:$16 sps:$4 sm:$0xff]  }
 0x73d   :  { %13905 = vmatpush2.bf16.msra.mxu0 %v17395_v19  ;;  %v17508_v19 = vld [vmem:[#allocation13 + $0x6e4] ss:$16 sps:$4 sm:$0xff]  }
 0x73e   :  { %13936 = vmatpush1.bf16.msra.mxu1 %v17398_v34  ;;  %13906 = vmatprep.subr.bf16.mxu0 %v17403_v7  ;;  %v17449_v34 = vld [vmem:[#allocation13 + $0x440] ss:$16 sps:$4 sm:$0xff]   ;;  %v17454_v7 = vld [vmem:[#allocation13 + $0x424] ss:$16 sps:$4 sm:$0xff]  }
 0x73f   :  { %13937 = vmatprep.subr.bf16.mxu1 %v17406_v21  ;;  %v17506_v21 = vld [vmem:[#allocation13 + $0x6e0] ss:$16 sps:$4 sm:$0xff]  }
 0x741   :  { %13907 = vmatpush2.bf16.msra.mxu0 %v17401_v11  ;;  %v12053_v3 = vpop.f32.mrf.mxu1  ;;  %v18476_v11 = vpack.c.bf16 %v12308_v24, %v12308_v24  ;;  %v17482_v24 = vld [vmem:[#allocation13 + $0xe8] ss:$16 sps:$4 sm:$0xff]  }
 0x742   :  { %13938 = vmatpush2.bf16.msra.mxu1 %v17404_v44  ;;  %13908 = vmatprep.subr.bf16.mxu0 %v17409_v61  ;;  %v12054_v23 = vadd.f32 %v12053_v3, %v6985_v16  ;;  %v17514_v44 = vld [vmem:[#allocation13 + $0x6c4] ss:$16 sps:$4 sm:$0xff]   ;;  %v17452_v61 = vld [vmem:[#allocation13 + $0x420] ss:$16 sps:$4 sm:$0xff]  }
 0x743   :  { %v12055_v42 = vpop.f32.mrf.mxu1  ;;  %13939 = vmatprep.subr.bf16.mxu1 %v17412_v39  ;;  %v17457_v39 = vld [vmem:[#allocation13 + $0x404] ss:$16 sps:$4 sm:$0xff]  }
 0x744   :  { %v12056_v15 = vadd.f32 %v12055_v42, %v6989_v40  ;;  %v17520_v3 = vld [vmem:[#allocation13 + $0x6a4] ss:$16 sps:$4 sm:$0xff]   ;;  %v17458_v42 = vld [vmem:[#allocation13 + $0x5e0] ss:$16 sps:$4 sm:$0xff]  }
 0x745   :  { %13909 = vmatpush2.bf16.msra.mxu0 %v17407_v43  ;;  %v12057_v53 = vpop.f32.mrf.mxu1  ;;  %v17455_v43 = vld [vmem:[#allocation13 + $0x400] ss:$16 sps:$4 sm:$0xff]   ;;  %v17469_v16 = vld [vmem:[#allocation13 + $0x584] ss:$16 sps:$4 sm:$0xff]  }
 0x746   :  { %13940 = vmatpush2.bf16.msra.mxu1 %v17410_v51  ;;  %13910 = vmatprep.subr.bf16.mxu0 %v17415_v18  ;;  %v17460_v51 = vld [vmem:[#allocation13 + $0x5e4] ss:$16 sps:$4 sm:$0xff]   ;;  %v17518_v18 = vld [vmem:[#allocation13 + $0x6a0] ss:$16 sps:$4 sm:$0xff]  }
 0x747   :  { %v12058_v30 = vpop.f32.mrf.mxu1  ;;  %13941 = vmatprep.subr.bf16.mxu1 %v17418_v8  ;;  %v17463_v8 = vld [vmem:[#allocation13 + $0x5c4] ss:$16 sps:$4 sm:$0xff]   ;;  %v17524_v53 = vld [vmem:[#allocation13 + $0x680] ss:$16 sps:$4 sm:$0xff]  }
 0x748   :  { %v17536_v30 = vld [vmem:[#allocation13 + $0x640] ss:$16 sps:$4 sm:$0xff]  }
 0x749   :  { %13911 = vmatpush2.bf16.msra.mxu0 %v17413_v37  ;;  %v17532_v37 = vld [vmem:[#allocation13 + $0x664] ss:$16 sps:$4 sm:$0xff]   ;;  %v17467_v40 = vld [vmem:[#allocation13 + $0x580] ss:$16 sps:$4 sm:$0xff]  }
 0x74a   :  { %13942 = vmatpush2.bf16.msra.mxu1 %v17416_v4  ;;  %13962 = vmatprep.subr.bf16.mxu0 %v17421_v26  ;;  %v17466_v4 = vld [vmem:[#allocation13 + $0x5a4] ss:$16 sps:$4 sm:$0xff]   ;;  %v17530_v26 = vld [vmem:[#allocation13 + $0x660] ss:$16 sps:$4 sm:$0xff]  }
 0x74b   :  { %13943 = vmatprep.subr.bf16.mxu1 %v17424_v27  ;;  %v17544_v27 = vld [vmem:[#allocation13 + $0x624] ss:$16 sps:$4 sm:$0xff]  }
 0x74c   :  { %v12094_v41 = vpop.f32.mrf.mxu0  ;;  %13913 = vmatmul.mubr.bf16.vlgmr.msra.gmra.mxu0 %v18465_v36 }
 0x74d   :  { %v18470_v52 = vadd.f32 %v12094_v41, %v12054_v23  ;;  %13963 = vmatpush1.bf16.msra.mxu0 %v17419_v58  ;;  %13994 = vmatprep.mubr.bf16.mxu0 %v18467_v6  ;;  %v17472_v58 = vld [vmem:[#allocation13 + $0x564] ss:$16 sps:$4 sm:$0xff]   ;;  %v17470_v23 = vld [vmem:[#allocation13 + $0x560] ss:$16 sps:$4 sm:$0xff]  }
 0x74e   :  { %v12096_v49 = vpop.f32.mrf.mxu0  ;;  %13944 = vmatpush2.bf16.msra.mxu1 %v17422_v38  ;;  %13964 = vmatprep.subr.bf16.mxu0 %v17427_v54  ;;  %v17542_v38 = vld [vmem:[#allocation13 + $0x620] ss:$16 sps:$4 sm:$0xff]   ;;  %v17550_v54 = vld [vmem:[#allocation13 + $0x604] ss:$16 sps:$4 sm:$0xff]  }
 0x74f   :  { %v18473_v2 = vadd.f32 %v12096_v49, %v12056_v15  ;;  %13945 = vmatprep.subr.bf16.mxu1 %v17430_v32  ;;  %v17475_v32 = vld [vmem:[#allocation13 + $0x544] ss:$16 sps:$4 sm:$0xff]   ;;  %v17548_v41 = vld [vmem:[#allocation13 + $0x600] ss:$16 sps:$4 sm:$0xff]  }
 0x750   :  { %v12098_v5 = vpop.f32.mrf.mxu0  ;;  %v17556_v15 = vld [vmem:[#allocation13 + $0x7e4] ss:$16 sps:$4 sm:$0xff]  }
 0x751   :  { %13965 = vmatpush1.bf16.msra.mxu0 %v17425_v29  ;;  %v17473_v29 = vld [vmem:[#allocation13 + $0x540] ss:$16 sps:$4 sm:$0xff]   ;;  %v17478_v49 = vld [vmem:[#allocation13 + $0x524] ss:$16 sps:$4 sm:$0xff]  }
 0x752   :  { %v12099_v60 = vpop.f32.mrf.mxu0  ;;  %13946 = vmatpush2.bf16.msra.mxu1 %v17428_v9  ;;  %13966 = vmatprep.subr.bf16.mxu0 %v17433_v63  ;;  %v17554_v9 = vld [vmem:[#allocation13 + $0x7e0] ss:$16 sps:$4 sm:$0xff]   ;;  %v17562_v63 = vld [vmem:[#allocation13 + $0x7c4] ss:$16 sps:$4 sm:$0xff]  }
 0x753   :  { %13947 = vmatprep.subr.bf16.mxu1 %v17436_v20  ;;  %v17476_v5 = vld [vmem:[#allocation13 + $0x520] ss:$16 sps:$4 sm:$0xff]   ;;  %v17481_v60 = vld [vmem:[#allocation13 + $0x504] ss:$16 sps:$4 sm:$0xff]  }
 0x755   :  { %13967 = vmatpush1.bf16.msra.mxu0 %v17431_v56 }
 0x756   :  { %13948 = vmatpush2.bf16.msra.mxu1 %v17434_v0  ;;  %13968 = vmatprep.subr.bf16.mxu0 %v17439_v25  ;;  %v17560_v0 = vld [vmem:[#allocation13 + $0x7c0] ss:$16 sps:$4 sm:$0xff]  }
 0x757   :  { %13949 = vmatprep.subr.bf16.mxu1 %v17442_v50  ;;  %v17568_v50 = vld [vmem:[#allocation13 + $0x7a4] ss:$16 sps:$4 sm:$0xff]  }
 0x759   :  { %13969 = vmatpush1.bf16.msra.mxu0 %v17437_v1 }
 0x75a   :  { %13950 = vmatpush2.bf16.msra.mxu1 %v17440_v28  ;;  %13970 = vmatprep.subr.bf16.mxu0 %v17445_v13  ;;  %v17479_v13 = vld [vmem:[#allocation13 + $0x500] ss:$16 sps:$4 sm:$0xff]  }
 0x75b   :  { %13951 = vmatprep.subr.bf16.mxu1 %v17448_v59  ;;  %v12310_v59 = vmax.f32 %v18448_v22, 0.0 }
 0x75d   :  { %13971 = vmatpush1.bf16.msra.mxu0 %v17443_v33  ;;  %v17484_v33 = vld [vmem:[#allocation13 + $0xec] ss:$16 sps:$4 sm:$0xff]  }
 0x75e   :  { %13952 = vmatpush2.bf16.msra.mxu1 %v17446_v62  ;;  %13972 = vmatprep.subr.bf16.mxu0 %v17451_v14  ;;  %v17566_v62 = vld [vmem:[#allocation13 + $0x7a0] ss:$16 sps:$4 sm:$0xff]  }
 0x75f   :  { %14003 = vmatprep.subr.bf16.mxu1 %v17508_v19  ;;  %v18482_v19 = vpack.c.bf16 %v12310_v59, %v12310_v59  ;;  %v17559_v59 = vld [vmem:[#allocation13 + $0x4ec] ss:$16 sps:$4 sm:$0xff]  }
 0x761   :  { %13973 = vmatpush1.bf16.msra.mxu0 %v17449_v34  ;;  %13954 = vmatmul.mubr.bf16.vlgmr.msra.gmra.mxu1 %v18476_v11  ;;  %v17487_v34 = vld [vmem:[#allocation13 + $0xcc] ss:$16 sps:$4 sm:$0xff]  }
 0x762   :  { %13974 = vmatprep.subr.bf16.mxu0 %v17454_v7  ;;  %14004 = vmatpush1.bf16.msra.mxu1 %v17506_v21  ;;  %v17580_v7 = vld [vmem:[#allocation13 + $0x764] ss:$16 sps:$4 sm:$0xff]  }
 0x763   :  { %14005 = vmatprep.subr.bf16.mxu1 %v17514_v44  ;;  %v17485_v44 = vld [vmem:[#allocation13 + $0xc8] ss:$16 sps:$4 sm:$0xff]  }
 0x765   :  { %13975 = vmatpush1.bf16.msra.mxu0 %v17452_v61 }
 0x766   :  { %13976 = vmatprep.subr.bf16.mxu0 %v17457_v39  ;;  %14006 = vmatpush1.bf16.msra.mxu1 %v17512_v31  ;;  %v17490_v39 = vld [vmem:[#allocation13 + $0xac] ss:$16 sps:$4 sm:$0xff]   ;;  %v17578_v31 = vld [vmem:[#allocation13 + $0x760] ss:$16 sps:$4 sm:$0xff]  }
 0x767   :  { %14007 = vmatprep.subr.bf16.mxu1 %v17520_v3 }
 0x769   :  { %13977 = vmatpush1.bf16.msra.mxu0 %v17455_v43  ;;  %v17586_v43 = vld [vmem:[#allocation13 + $0x744] ss:$16 sps:$4 sm:$0xff]  }
 0x76a   :  { %13978 = vmatprep.subr.bf16.mxu0 %v17460_v51  ;;  %14008 = vmatpush1.bf16.msra.mxu1 %v17518_v18  ;;  %v17488_v18 = vld [vmem:[#allocation13 + $0xa8] ss:$16 sps:$4 sm:$0xff]  }
 0x76b   :  { %14009 = vmatprep.subr.bf16.mxu1 %v17526_v55 }
 0x76d   :  { %13979 = vmatpush2.bf16.msra.mxu0 %v17458_v42  ;;  %v17493_v42 = vld [vmem:[#allocation13 + $0x8c] ss:$16 sps:$4 sm:$0xff]  }
 0x76e   :  { %13980 = vmatprep.subr.bf16.mxu0 %v17463_v8  ;;  %14010 = vmatpush1.bf16.msra.mxu1 %v17524_v53  ;;  %v17584_v8 = vld [vmem:[#allocation13 + $0x740] ss:$16 sps:$4 sm:$0xff]   ;;  %v17491_v53 = vld [vmem:[#allocation13 + $0x88] ss:$16 sps:$4 sm:$0xff]  }
 0x76f   :  { %14011 = vmatprep.subr.bf16.mxu1 %v17532_v37  ;;  %v17496_v37 = vld [vmem:[#allocation13 + $0x6c] ss:$16 sps:$4 sm:$0xff]  }
 0x771   :  { %13981 = vmatpush2.bf16.msra.mxu0 %v17461_v57  ;;  %v17590_v57 = vld [vmem:[#allocation13 + $0x720] ss:$16 sps:$4 sm:$0xff]  }
 0x772   :  { %13982 = vmatprep.subr.bf16.mxu0 %v17466_v4  ;;  %14012 = vmatpush1.bf16.msra.mxu1 %v17530_v26  ;;  %v17598_v4 = vld [vmem:[#allocation13 + $0x704] ss:$16 sps:$4 sm:$0xff]   ;;  %v17494_v26 = vld [vmem:[#allocation13 + $0x68] ss:$16 sps:$4 sm:$0xff]  }
 0x773   :  { %14013 = vmatprep.subr.bf16.mxu1 %v17538_v17  ;;  %v17499_v17 = vld [vmem:[#allocation13 + $0x4c] ss:$16 sps:$4 sm:$0xff]  }
 0x775   :  { %13983 = vmatpush2.bf16.msra.mxu0 %v17464_v46  ;;  %v17596_v46 = vld [vmem:[#allocation13 + $0x700] ss:$16 sps:$4 sm:$0xff]  }
 0x776   :  { %13984 = vmatprep.subr.bf16.mxu0 %v17469_v16  ;;  %14014 = vmatpush1.bf16.msra.mxu1 %v17536_v30  ;;  %v17604_v16 = vld [vmem:[#allocation13 + $0x2ec] ss:$16 sps:$4 sm:$0xff]   ;;  %v17497_v30 = vld [vmem:[#allocation13 + $0x48] ss:$16 sps:$4 sm:$0xff]  }
 0x777   :  { %14015 = vmatprep.subr.bf16.mxu1 %v17544_v27  ;;  %v17502_v27 = vld [vmem:[#allocation13 + $0x2c] ss:$16 sps:$4 sm:$0xff]  }
 0x779   :  { %13985 = vmatpush2.bf16.msra.mxu0 %v17467_v40  ;;  %v17500_v40 = vld [vmem:[#allocation13 + $0x28] ss:$16 sps:$4 sm:$0xff]  }
 0x77a   :  { %13986 = vmatprep.subr.bf16.mxu0 %v17472_v58  ;;  %14016 = vmatpush1.bf16.msra.mxu1 %v17542_v38  ;;  %v17505_v58 = vld [vmem:[#allocation13 + $0xc] ss:$16 sps:$4 sm:$0xff]   ;;  %v17503_v38 = vld [vmem:[#allocation13 + $0x8] ss:$16 sps:$4 sm:$0xff]  }
 0x77b   :  { %14017 = vmatprep.subr.bf16.mxu1 %v17550_v54  ;;  %v17511_v54 = vld [vmem:[#allocation13 + $0x1ec] ss:$16 sps:$4 sm:$0xff]  }
 0x77d   :  { %13987 = vmatpush2.bf16.msra.mxu0 %v17470_v23  ;;  %v17509_v23 = vld [vmem:[#allocation13 + $0x1e8] ss:$16 sps:$4 sm:$0xff]  }
 0x77e   :  { %13988 = vmatprep.subr.bf16.mxu0 %v17475_v32  ;;  %14018 = vmatpush1.bf16.msra.mxu1 %v17548_v41  ;;  %v17517_v32 = vld [vmem:[#allocation13 + $0x1cc] ss:$16 sps:$4 sm:$0xff]   ;;  %v17515_v41 = vld [vmem:[#allocation13 + $0x1c8] ss:$16 sps:$4 sm:$0xff]  }
 0x77f   :  { %14019 = vmatprep.subr.bf16.mxu1 %v17556_v15  ;;  %v17523_v15 = vld [vmem:[#allocation13 + $0x1ac] ss:$16 sps:$4 sm:$0xff]  }
 0x781   :  { %13989 = vmatpush2.bf16.msra.mxu0 %v17473_v29  ;;  %v12135_v20 = vpop.f32.mrf.mxu1  ;;  %v17521_v29 = vld [vmem:[#allocation13 + $0x1a8] ss:$16 sps:$4 sm:$0xff]  }
 0x782   :  { %v12136_v56 = vadd.f32 %v12135_v20, %v18470_v52  ;;  %13990 = vmatprep.subr.bf16.mxu0 %v17478_v49  ;;  %14020 = vmatpush2.bf16.msra.mxu1 %v17554_v9  ;;  %v17574_v52 = vld [vmem:[#allocation13 + $0x784] ss:$16 sps:$4 sm:$0xff]   ;;  %v17529_v49 = vld [vmem:[#allocation13 + $0x18c] ss:$16 sps:$4 sm:$0xff]   ;;  %v17527_v9 = vld [vmem:[#allocation13 + $0x188] ss:$16 sps:$4 sm:$0xff]  }
 0x783   :  { %v12137_v25 = vpop.f32.mrf.mxu1  ;;  %14021 = vmatprep.subr.bf16.mxu1 %v17562_v63  ;;  %v17535_v63 = vld [vmem:[#allocation13 + $0x16c] ss:$16 sps:$4 sm:$0xff]   ;;  %v17533_v20 = vld [vmem:[#allocation13 + $0x168] ss:$16 sps:$4 sm:$0xff]  }
 0x784   :  { %v12138_v1 = vadd.f32 %v12137_v25, %v18473_v2  ;;  %v17572_v2 = vld [vmem:[#allocation13 + $0x780] ss:$16 sps:$4 sm:$0xff]   ;;  %v17545_v25 = vld [vmem:[#allocation13 + $0x128] ss:$16 sps:$4 sm:$0xff]  }
 0x785   :  { %13991 = vmatpush2.bf16.msra.mxu0 %v17476_v5  ;;  %v12139_v28 = vpop.f32.mrf.mxu1  ;;  %v17541_v5 = vld [vmem:[#allocation13 + $0x14c] ss:$16 sps:$4 sm:$0xff]  }
 0x786   :  { %13992 = vmatprep.subr.bf16.mxu0 %v17481_v60  ;;  %14022 = vmatpush2.bf16.msra.mxu1 %v17560_v0  ;;  %v17547_v60 = vld [vmem:[#allocation13 + $0x12c] ss:$16 sps:$4 sm:$0xff]  }
 0x787   :  { %v12140_v14 = vpop.f32.mrf.mxu1  ;;  %14023 = vmatprep.subr.bf16.mxu1 %v17568_v50  ;;  %v17553_v50 = vld [vmem:[#allocation13 + $0x10c] ss:$16 sps:$4 sm:$0xff]  }
 0x788   :  { %v17565_v14 = vld [vmem:[#allocation13 + $0x4cc] ss:$16 sps:$4 sm:$0xff]  }
 0x789   :  { %13993 = vmatpush2.bf16.msra.mxu0 %v17479_v13  ;;  %v17551_v13 = vld [vmem:[#allocation13 + $0x108] ss:$16 sps:$4 sm:$0xff]  }
 0x78a   :  { %14044 = vmatprep.subr.bf16.mxu0 %v17484_v33  ;;  %14024 = vmatpush2.bf16.msra.mxu1 %v17566_v62  ;;  %v17557_v62 = vld [vmem:[#allocation13 + $0x4e8] ss:$16 sps:$4 sm:$0xff]  }
 0x78b   :  { %14025 = vmatprep.subr.bf16.mxu1 %v17574_v52 }
 0x78c   :  { %v12176_v21 = vpop.f32.mrf.mxu0  ;;  %13995 = vmatmul.mubr.bf16.vlgmr.msra.gmra.mxu0 %v18482_v19 }
 0x78d   :  { %v18485_v22 = vadd.f32 %v12176_v21, %v12136_v56  ;;  %14045 = vmatpush1.bf16.msra.mxu0 %v17482_v24  ;;  %14076 = vmatprep.mubr.bf16.mxu0 %v18445_v35  ;;  %v17592_v35 = vld [vmem:[#allocation13 + $0x724] ss:$16 sps:$4 sm:$0xff]   ;;  %v17539_v56 = vld [vmem:[#allocation13 + $0x148] ss:$16 sps:$4 sm:$0xff]  }
 0x78e   :  { %v12178_v61 = vpop.f32.mrf.mxu0  ;;  %14046 = vmatprep.subr.bf16.mxu0 %v17487_v34  ;;  %14026 = vmatpush2.bf16.msra.mxu1 %v17572_v2  ;;  %v17563_v24 = vld [vmem:[#allocation13 + $0x4c8] ss:$16 sps:$4 sm:$0xff]   ;;  %v17571_v2 = vld [vmem:[#allocation13 + $0x4ac] ss:$16 sps:$4 sm:$0xff]  }
 0x78f   :  { %v18488_v3 = vadd.f32 %v12178_v61, %v12138_v1  ;;  %14027 = vmatprep.subr.bf16.mxu1 %v17580_v7  ;;  %v17569_v21 = vld [vmem:[#allocation13 + $0x4a8] ss:$16 sps:$4 sm:$0xff]   ;;  %v17577_v61 = vld [vmem:[#allocation13 + $0x48c] ss:$16 sps:$4 sm:$0xff]  }
 0x790   :  { %v12180_v51 = vpop.f32.mrf.mxu0 }
 0x791   :  { %14047 = vmatpush1.bf16.msra.mxu0 %v17485_v44 }
 0x792   :  { %v12181_v55 = vpop.f32.mrf.mxu0  ;;  %14048 = vmatprep.subr.bf16.mxu0 %v17490_v39  ;;  %14028 = vmatpush2.bf16.msra.mxu1 %v17578_v31  ;;  %v17575_v39 = vld [vmem:[#allocation13 + $0x488] ss:$16 sps:$4 sm:$0xff]   ;;  %v17583_v31 = vld [vmem:[#allocation13 + $0x46c] ss:$16 sps:$4 sm:$0xff]  }
 0x793   :  { %14029 = vmatprep.subr.bf16.mxu1 %v17586_v43  ;;  %v17581_v43 = vld [vmem:[#allocation13 + $0x468] ss:$16 sps:$4 sm:$0xff]  }
 0x795   :  { %14049 = vmatpush1.bf16.msra.mxu0 %v17488_v18  ;;  %v17595_v18 = vld [vmem:[#allocation13 + $0x42c] ss:$16 sps:$4 sm:$0xff]  }
 0x796   :  { %14050 = vmatprep.subr.bf16.mxu0 %v17493_v42  ;;  %14030 = vmatpush2.bf16.msra.mxu1 %v17584_v8 }
 0x797   :  { %14031 = vmatprep.subr.bf16.mxu1 %v17592_v35  ;;  %v17593_v35 = vld [vmem:[#allocation13 + $0x428] ss:$16 sps:$4 sm:$0xff]  }
 0x799   :  { %14051 = vmatpush1.bf16.msra.mxu0 %v17491_v53 }
 0x79a   :  { %14052 = vmatprep.subr.bf16.mxu0 %v17496_v37  ;;  %14032 = vmatpush2.bf16.msra.mxu1 %v17590_v57  ;;  %v17601_v57 = vld [vmem:[#allocation13 + $0x40c] ss:$16 sps:$4 sm:$0xff]  }
 0x79b   :  { %14033 = vmatprep.subr.bf16.mxu1 %v17598_v4 }
 0x79d   :  { %14053 = vmatpush1.bf16.msra.mxu0 %v17494_v26 }
 0x79e   :  { %14054 = vmatprep.subr.bf16.mxu0 %v17499_v17  ;;  %14034 = vmatpush2.bf16.msra.mxu1 %v17596_v46 }
 0x79f   :  { %14085 = vmatprep.subr.bf16.mxu1 %v17604_v16  ;;  %v17599_v16 = vld [vmem:[#allocation13 + $0x408] ss:$16 sps:$4 sm:$0xff]  }
 0x7a1   :  { %14055 = vmatpush1.bf16.msra.mxu0 %v17497_v30 }
 0x7a2   :  { %14056 = vmatprep.subr.bf16.mxu0 %v17502_v27 }
 0x7a5   :  { %14057 = vmatpush1.bf16.msra.mxu0 %v17500_v40 }
 0x7a6   :  { %14058 = vmatprep.subr.bf16.mxu0 %v17505_v58 }
 0x7a9   :  { %14059 = vmatpush1.bf16.msra.mxu0 %v17503_v38  ;;  %v17605_v38 = vld [vmem:[#allocation13 + $0x5e8] ss:$16 sps:$4 sm:$0xff]  }
 0x7aa   :  { %14060 = vmatprep.subr.bf16.mxu0 %v17511_v54  ;;  %v17610_v54 = vld [vmem:[#allocation13 + $0x2cc] ss:$16 sps:$4 sm:$0xff]  }
 0x7ad   :  { %14061 = vmatpush2.bf16.msra.mxu0 %v17509_v23  ;;  %v17613_v23 = vld [vmem:[#allocation13 + $0x5cc] ss:$16 sps:$4 sm:$0xff]  }
 0x7ae   :  { %14062 = vmatprep.subr.bf16.mxu0 %v17517_v32  ;;  %v17608_v32 = vld [vmem:[#allocation13 + $0x2c8] ss:$16 sps:$4 sm:$0xff]  }
 0x7b1   :  { %14063 = vmatpush2.bf16.msra.mxu0 %v17515_v41  ;;  %v17611_v41 = vld [vmem:[#allocation13 + $0x5c8] ss:$16 sps:$4 sm:$0xff]  }
 0x7b2   :  { %14064 = vmatprep.subr.bf16.mxu0 %v17523_v15  ;;  %v17616_v15 = vld [vmem:[#allocation13 + $0x2ac] ss:$16 sps:$4 sm:$0xff]  }
 0x7b5   :  { %14065 = vmatpush2.bf16.msra.mxu0 %v17521_v29  ;;  %v17619_v29 = vld [vmem:[#allocation13 + $0x5ac] ss:$16 sps:$4 sm:$0xff]  }
 0x7b6   :  { %14066 = vmatprep.subr.bf16.mxu0 %v17529_v49  ;;  %v17614_v49 = vld [vmem:[#allocation13 + $0x2a8] ss:$16 sps:$4 sm:$0xff]  }
 0x7b9   :  { %14067 = vmatpush2.bf16.msra.mxu0 %v17527_v9  ;;  %v17617_v9 = vld [vmem:[#allocation13 + $0x5a8] ss:$16 sps:$4 sm:$0xff]  }
 0x7ba   :  { %14068 = vmatprep.subr.bf16.mxu0 %v17535_v63  ;;  %v17622_v63 = vld [vmem:[#allocation13 + $0x28c] ss:$16 sps:$4 sm:$0xff]  }
 0x7bd   :  { %14069 = vmatpush2.bf16.msra.mxu0 %v17533_v20  ;;  %v17625_v20 = vld [vmem:[#allocation13 + $0x58c] ss:$16 sps:$4 sm:$0xff]  }
 0x7be   :  { %14070 = vmatprep.subr.bf16.mxu0 %v17541_v5  ;;  %v17620_v5 = vld [vmem:[#allocation13 + $0x288] ss:$16 sps:$4 sm:$0xff]  }
 0x7c1   :  { %14071 = vmatpush2.bf16.msra.mxu0 %v17539_v56  ;;  %v12217_v0 = vpop.f32.mrf.mxu1  ;;  %v17628_v56 = vld [vmem:[#allocation13 + $0x26c] ss:$16 sps:$4 sm:$0xff]  }
 0x7c2   :  { %14072 = vmatprep.subr.bf16.mxu0 %v17547_v60  ;;  %v12218_v51 = vadd.f32 %v12217_v0, %v18485_v22  ;;  %v17607_v22 = vld [vmem:[#allocation13 + $0x5ec] ss:$16 sps:$4 sm:$0xff]   ;;  %v17626_v0 = vld [vmem:[#allocation13 + $0x268] ss:$16 sps:$4 sm:$0xff]  }
 0x7c3   :  { %v12219_v1 = vpop.f32.mrf.mxu1  ;;  %v17631_v60 = vld [vmem:[#allocation13 + $0x56c] ss:$16 sps:$4 sm:$0xff]  }
 0x7c4   :  { %v12220_v55 = vadd.f32 %v12219_v1, %v18488_v3  ;;  %v17602_v3 = vld [vmem:[#allocation13 + $0x2e8] ss:$16 sps:$4 sm:$0xff]   ;;  %v17637_v1 = vld [vmem:[#allocation13 + $0x54c] ss:$16 sps:$4 sm:$0xff]  }
 0x7c5   :  { %14073 = vmatpush2.bf16.msra.mxu0 %v17545_v25  ;;  %v12221_v28 = vpop.f32.mrf.mxu1  ;;  %v17629_v25 = vld [vmem:[#allocation13 + $0x568] ss:$16 sps:$4 sm:$0xff]  }
 0x7c6   :  { %14074 = vmatprep.subr.bf16.mxu0 %v17553_v50  ;;  %v17634_v50 = vld [vmem:[#allocation13 + $0x24c] ss:$16 sps:$4 sm:$0xff]   ;;  %v17632_v28 = vld [vmem:[#allocation13 + $0x248] ss:$16 sps:$4 sm:$0xff]  }
 0x7c7   :  { %v12222_v33 = vpop.f32.mrf.mxu1 }
 0x7c8   :  { %v17643_v33 = vld [vmem:[#allocation13 + $0x52c] ss:$16 sps:$4 sm:$0xff]  }
 0x7c9   :  { %14075 = vmatpush2.bf16.msra.mxu0 %v17551_v13  ;;  %v17635_v13 = vld [vmem:[#allocation13 + $0x548] ss:$16 sps:$4 sm:$0xff]  }
 0x7ca   :  { %14126 = vmatprep.subr.bf16.mxu0 %v17559_v59  ;;  %v17640_v59 = vld [vmem:[#allocation13 + $0x22c] ss:$16 sps:$4 sm:$0xff]  }
 0x7cc   :  { %v12258_v52 = vpop.f32.mrf.mxu0  ;;  %14077 = vmatmul.mubr.bf16.vlgmr.msra.gmra.mxu0 %v18465_v36  ;;  %v17589_v36 = vld [vmem:[#allocation13 + $0x44c] ss:$16 sps:$4 sm:$0xff]  }
 0x7cd   :  { %14127 = vmatpush1.bf16.msra.mxu0 %v17557_v62  ;;  %14158 = vmatprep.mubr.bf16.mxu0 %v18467_v6  ;;  %v17587_v6 = vld [vmem:[#allocation13 + $0x448] ss:$16 sps:$4 sm:$0xff]   ;;  %v12259_v42 = vadd.f32 %v12258_v52, %v12218_v51  ;;  %v17646_v52 = vld [vmem:[#allocation13 + $0x20c] ss:$16 sps:$4 sm:$0xff]  }
 0x7ce   :  { %v12260_v34 = vpop.f32.mrf.mxu0  ;;  %14128 = vmatprep.subr.bf16.mxu0 %v17565_v14  ;;  %v17638_v62 = vld [vmem:[#allocation13 + $0x228] ss:$16 sps:$4 sm:$0xff]   ;;  %v17661_v51 = vld [vmem:[#allocation13 + $0x38c] ss:$16 sps:$4 sm:$0xff]  }
 0x7cf   :  { %v12261_v53 = vadd.f32 %v12260_v34, %v12220_v55  ;;  %v17641_v14 = vld [vmem:[#allocation13 + $0x528] ss:$16 sps:$4 sm:$0xff]  }
 0x7d0   :  { %v12262_v7 = vpop.f32.mrf.mxu0  ;;  %v17644_v34 = vld [vmem:[#allocation13 + $0x208] ss:$16 sps:$4 sm:$0xff]  }
 0x7d1   :  { %14129 = vmatpush1.bf16.msra.mxu0 %v17563_v24  ;;  %v17649_v24 = vld [vmem:[#allocation13 + $0x50c] ss:$16 sps:$4 sm:$0xff]   ;;  %v17659_v55 = vld [vmem:[#allocation13 + $0x388] ss:$16 sps:$4 sm:$0xff]  }
 0x7d2   :  { %v12263_v44 = vpop.f32.mrf.mxu0  ;;  %14130 = vmatprep.subr.bf16.mxu0 %v17571_v2  ;;  %v17647_v2 = vld [vmem:[#allocation13 + $0x508] ss:$16 sps:$4 sm:$0xff]   ;;  %v17652_v7 = vld [vmem:[#allocation13 + $0x3ec] ss:$16 sps:$4 sm:$0xff]  }
 0x7d3   :  { %v17655_v44 = vld [vmem:[#allocation13 + $0x3cc] ss:$16 sps:$4 sm:$0xff]  }
 0x7d5   :  { %14131 = vmatpush1.bf16.msra.mxu0 %v17569_v21  ;;  %v17650_v21 = vld [vmem:[#allocation13 + $0x3e8] ss:$16 sps:$4 sm:$0xff]  }
 0x7d6   :  { %14132 = vmatprep.subr.bf16.mxu0 %v17577_v61 }
 0x7d9   :  { %14133 = vmatpush1.bf16.msra.mxu0 %v17575_v39  ;;  %v17653_v39 = vld [vmem:[#allocation13 + $0x3c8] ss:$16 sps:$4 sm:$0xff]  }
 0x7da   :  { %14134 = vmatprep.subr.bf16.mxu0 %v17583_v31  ;;  %v17658_v31 = vld [vmem:[#allocation13 + $0x3ac] ss:$16 sps:$4 sm:$0xff]  }
 0x7dd   :  { %14135 = vmatpush1.bf16.msra.mxu0 %v17581_v43 }
 0x7de   :  { %14136 = vmatprep.subr.bf16.mxu0 %v17589_v36 }
 0x7e1   :  { %14137 = vmatpush1.bf16.msra.mxu0 %v17587_v6  ;;  %v12299_v8 = vpop.f32.mrf.mxu1  ;;  %v17656_v6 = vld [vmem:[#allocation13 + $0x3a8] ss:$16 sps:$4 sm:$0xff]  }
 0x7e2   :  { %v12300_v37 = vadd.f32 %v12299_v8, %v12259_v42  ;;  %14138 = vmatprep.subr.bf16.mxu0 %v17595_v18  ;;  %v17664_v42 = vld [vmem:[#allocation13 + $0x36c] ss:$16 sps:$4 sm:$0xff]   ;;  %v17662_v8 = vld [vmem:[#allocation13 + $0x368] ss:$16 sps:$4 sm:$0xff]  }
 0x7e3   :  { %v12301_v4 = vpop.f32.mrf.mxu1 }
 0x7e4   :  { %v12302_v26 = vadd.f32 %v12301_v4, %v12261_v53  ;;  %v12312_v17 = vmax.f32 %v12300_v37, 0.0  ;;  %v17665_v37 = vld [vmem:[#allocation13 + $0x348] ss:$16 sps:$4 sm:$0xff]  }
 0x7e5   :  { %14139 = vmatpush1.bf16.msra.mxu0 %v17593_v35  ;;  %v12303_v46 = vpop.f32.mrf.mxu1  ;;  %v18502_v35 = vld [vmem:[#allocation14] sm:$0xf] }
 0x7e6   :  { %v12313_v30 = vmax.f32 %v12302_v26, 0.0  ;;  %14140 = vmatprep.subr.bf16.mxu0 %v17601_v57  ;;  %v18496_v58 = vpack.c.bf16 %v12312_v17, %v12312_v17  ;;  %v12583_v53 = vrot.slane %v18502_v35, %v18057_v45  ;;  %v17670_v57 = vld [vmem:[#allocation13 + $0x32c] ss:$16 sps:$4 sm:$0xff]   ;;  %v12587_v4 = vrot.slane %v18502_v35, %v18062_v48  ;;  %v17668_v17 = vld [vmem:[#allocation13 + $0x328] ss:$16 sps:$4 sm:$0xff]  }
 0x7e7   :  { %v12304_v27 = vpop.f32.mrf.mxu1 }
 0x7e8   :  { %v18494_v40 = vpack.c.bf16 %v12313_v30, %v12313_v30 }
 0x7e9   :  { %14141 = vmatpush1.bf16.msra.mxu0 %v17599_v16  ;;  %v17673_v16 = vld [vmem:[#allocation13 + $0x30c] ss:$16 sps:$4 sm:$0xff]  }
 0x7ea   :  { %14035 = vmatprep.mubr.bf16.mxu1 %v18494_v40  ;;  %14142 = vmatprep.subr.bf16.mxu0 %v17607_v22 }
 0x7eb   :  { %14036 = vmatmul.mubr.bf16.vlgmr.msra.gmra.mxu1 %v18496_v58 }
 0x7ec   :  { %14086 = vmatpush1.bf16.msra.mxu1 %v17602_v3  ;;  %14117 = vmatprep.mubr.bf16.mxu1 %v18454_v12  ;;  %v17623_v12 = vld [vmem:[#allocation13 + $0x588] ss:$16 sps:$4 sm:$0xff]  }
 0x7ed   :  { %14143 = vmatpush2.bf16.msra.mxu0 %v17605_v38  ;;  %14087 = vmatprep.subr.bf16.mxu1 %v17610_v54  ;;  %v17671_v38 = vld [vmem:[#allocation13 + $0x308] ss:$16 sps:$4 sm:$0xff]  }
 0x7ee   :  { %14144 = vmatprep.subr.bf16.mxu0 %v17613_v23  ;;  %v17676_v23 = vld [vmem:[#allocation13 + $0x6ec] ss:$16 sps:$4 sm:$0xff]  }
 0x7f0   :  { %14088 = vmatpush1.bf16.msra.mxu1 %v17608_v32 }
 0x7f1   :  { %14145 = vmatpush2.bf16.msra.mxu0 %v17611_v41  ;;  %14089 = vmatprep.subr.bf16.mxu1 %v17616_v15  ;;  %v17674_v41 = vld [vmem:[#allocation13 + $0x6e8] ss:$16 sps:$4 sm:$0xff]   ;;  %v17679_v15 = vld [vmem:[#allocation13 + $0x6cc] ss:$16 sps:$4 sm:$0xff]  }
 0x7f2   :  { %14146 = vmatprep.subr.bf16.mxu0 %v17619_v29  ;;  %v17677_v29 = vld [vmem:[#allocation13 + $0x6c8] ss:$16 sps:$4 sm:$0xff]  }
 0x7f4   :  { %14090 = vmatpush1.bf16.msra.mxu1 %v17614_v49  ;;  %v17682_v49 = vld [vmem:[#allocation13 + $0x6ac] ss:$16 sps:$4 sm:$0xff]  }
 0x7f5   :  { %14147 = vmatpush2.bf16.msra.mxu0 %v17617_v9  ;;  %14091 = vmatprep.subr.bf16.mxu1 %v17622_v63  ;;  %v17680_v9 = vld [vmem:[#allocation13 + $0x6a8] ss:$16 sps:$4 sm:$0xff]   ;;  %v17685_v63 = vld [vmem:[#allocation13 + $0x68c] ss:$16 sps:$4 sm:$0xff]  }
 0x7f6   :  { %14148 = vmatprep.subr.bf16.mxu0 %v17625_v20  ;;  %v17683_v20 = vld [vmem:[#allocation13 + $0x688] ss:$16 sps:$4 sm:$0xff]  }
 0x7f8   :  { %14092 = vmatpush1.bf16.msra.mxu1 %v17620_v5  ;;  %v17688_v5 = vld [vmem:[#allocation13 + $0x66c] ss:$16 sps:$4 sm:$0xff]  }
 0x7f9   :  { %14149 = vmatpush2.bf16.msra.mxu0 %v17623_v12  ;;  %14093 = vmatprep.subr.bf16.mxu1 %v17628_v56  ;;  %v17686_v12 = vld [vmem:[#allocation13 + $0x668] ss:$16 sps:$4 sm:$0xff]   ;;  %v17691_v56 = vld [vmem:[#allocation13 + $0x64c] ss:$16 sps:$4 sm:$0xff]  }
 0x7fa   :  { %14150 = vmatprep.subr.bf16.mxu0 %v17631_v60  ;;  %v17694_v60 = vld [vmem:[#allocation13 + $0x62c] ss:$16 sps:$4 sm:$0xff]  }
 0x7fc   :  { %14094 = vmatpush1.bf16.msra.mxu1 %v17626_v0  ;;  %v17697_v0 = vld [vmem:[#allocation13 + $0x60c] ss:$16 sps:$4 sm:$0xff]  }
 0x7fd   :  { %14151 = vmatpush2.bf16.msra.mxu0 %v17629_v25  ;;  %14095 = vmatprep.subr.bf16.mxu1 %v17634_v50  ;;  %v17695_v25 = vld [vmem:[#allocation13 + $0x608] ss:$16 sps:$4 sm:$0xff]   ;;  %v17700_v50 = vld [vmem:[#allocation13 + $0x7ec] ss:$16 sps:$4 sm:$0xff]  }
 0x7fe   :  { %14152 = vmatprep.subr.bf16.mxu0 %v17637_v1  ;;  %v17698_v1 = vld [vmem:[#allocation13 + $0x7e8] ss:$16 sps:$4 sm:$0xff]  }
 0x800   :  { %14096 = vmatpush1.bf16.msra.mxu1 %v17632_v28  ;;  %v17703_v28 = vld [vmem:[#allocation13 + $0x7cc] ss:$16 sps:$4 sm:$0xff]  }
 0x801   :  { %14153 = vmatpush2.bf16.msra.mxu0 %v17635_v13  ;;  %14097 = vmatprep.subr.bf16.mxu1 %v17640_v59  ;;  %v17701_v59 = vld [vmem:[#allocation13 + $0x7c8] ss:$16 sps:$4 sm:$0xff]  }
 0x802   :  { %14154 = vmatprep.subr.bf16.mxu0 %v17643_v33 }
 0x804   :  { %14098 = vmatpush1.bf16.msra.mxu1 %v17638_v62  ;;  %v17706_v62 = vld [vmem:[#allocation13 + $0x7ac] ss:$16 sps:$4 sm:$0xff]  }
 0x805   :  { %14155 = vmatpush2.bf16.msra.mxu0 %v17641_v14  ;;  %14099 = vmatprep.subr.bf16.mxu1 %v17646_v52 }
 0x806   :  { %14156 = vmatprep.subr.bf16.mxu0 %v17649_v24 }
 0x808   :  { %14100 = vmatpush1.bf16.msra.mxu1 %v17644_v34  ;;  %v17704_v34 = vld [vmem:[#allocation13 + $0x7a8] ss:$16 sps:$4 sm:$0xff]  }
 0x809   :  { %14157 = vmatpush2.bf16.msra.mxu0 %v17647_v2  ;;  %14101 = vmatprep.subr.bf16.mxu1 %v17652_v7  ;;  %v17709_v2 = vld [vmem:[#allocation13 + $0x78c] ss:$16 sps:$4 sm:$0xff]  }
 0x80c   :  { %v13914_v61 = vpop.f32.mrf.mxu0  ;;  %14102 = vmatpush2.bf16.msra.mxu1 %v17650_v21  ;;  %14159 = vmatmul.mubr.bf16.vlgmr.msra.gmra.mxu0 %v18482_v19  ;;  %v17667_v19 = vld [vmem:[#allocation13 + $0x34c] ss:$16 sps:$4 sm:$0xff]   ;;  %v17707_v21 = vld [vmem:[#allocation13 + $0x788] ss:$16 sps:$4 sm:$0xff]  }
 0x80d   :  { %14103 = vmatprep.subr.bf16.mxu1 %v17655_v44  ;;  %v13915_v26 = vadd.f32 %v13914_v61, %v12583_v53  ;;  %v17712_v44 = vld [vmem:[#allocation13 + $0x76c] ss:$16 sps:$4 sm:$0xff]   ;;  %v17710_v61 = vld [vmem:[#allocation13 + $0x768] ss:$16 sps:$4 sm:$0xff]  }
 0x80e   :  { %v13916_v43 = vpop.f32.mrf.mxu0 }
 0x80f   :  { %v13917_v30 = vadd.f32 %v13916_v43, %v12587_v4  ;;  %v17718_v43 = vld [vmem:[#allocation13 + $0x72c] ss:$16 sps:$4 sm:$0xff]  }
 0x810   :  { %v13918_v36 = vpop.f32.mrf.mxu0  ;;  %14104 = vmatpush2.bf16.msra.mxu1 %v17653_v39  ;;  %v17715_v39 = vld [vmem:[#allocation13 + $0x74c] ss:$16 sps:$4 sm:$0xff]  }
 0x811   :  { %14105 = vmatprep.subr.bf16.mxu1 %v17658_v31  ;;  %v17713_v31 = vld [vmem:[#allocation13 + $0x748] ss:$16 sps:$4 sm:$0xff]  }
 0x812   :  { %v13919_v18 = vpop.f32.mrf.mxu0  ;;  %v17716_v36 = vld [vmem:[#allocation13 + $0x728] ss:$16 sps:$4 sm:$0xff]  }
 0x814   :  { %14106 = vmatpush2.bf16.msra.mxu1 %v17656_v6  ;;  %v17721_v6 = vld [vmem:[#allocation13 + $0x70c] ss:$16 sps:$4 sm:$0xff]  }
 0x815   :  { %14107 = vmatprep.subr.bf16.mxu1 %v17661_v51  ;;  %v17719_v51 = vld [vmem:[#allocation13 + $0x708] ss:$16 sps:$4 sm:$0xff]  }
 0x818   :  { %14108 = vmatpush2.bf16.msra.mxu1 %v17659_v55 }
 0x819   :  { %14109 = vmatprep.subr.bf16.mxu1 %v17664_v42 }
 0x81c   :  { %14110 = vmatpush2.bf16.msra.mxu1 %v17662_v8 }
 0x81d   :  { %14111 = vmatprep.subr.bf16.mxu1 %v17667_v19  ;;  %v14212_v19 = vld [vmem:[#allocation16] sm:$0xf] }
 0x820   :  { %14112 = vmatpush2.bf16.msra.mxu1 %v17665_v37 }
 0x821   :  { %v13955_v46 = vpop.f32.mrf.mxu1  ;;  %14113 = vmatprep.subr.bf16.mxu1 %v17670_v57  ;;  %v14217_v57 = vrot.slane %v14212_v19, %v18057_v45 }
 0x822   :  { %v13956_v22 = vadd.f32 %v13955_v46, %v13915_v26  ;;  %v14221_v46 = vrot.slane %v14212_v19, %v18062_v48  ;;  %v12595_v48 = vrot.slane %v18502_v35, %v18078_v10 }
 0x823   :  { %v13957_v27 = vpop.f32.mrf.mxu1 }
 0x824   :  { %v13958_v3 = vadd.f32 %v13957_v27, %v13917_v30  ;;  %14114 = vmatpush2.bf16.msra.mxu1 %v17668_v17 }
 0x825   :  { %v13959_v54 = vpop.f32.mrf.mxu1  ;;  %14115 = vmatprep.subr.bf16.mxu1 %v17673_v16 }
 0x827   :  { %v13960_v32 = vpop.f32.mrf.mxu1 }
 0x828   :  { %14116 = vmatpush2.bf16.msra.mxu1 %v17671_v38 }
 0x829   :  { %14167 = vmatprep.subr.bf16.mxu1 %v17676_v23 }
 0x82b   :  { %14118 = vmatmul.mubr.bf16.vlgmr.msra.gmra.mxu1 %v18476_v11  ;;  %v17689_v11 = vld [vmem:[#allocation13 + $0x648] ss:$16 sps:$4 sm:$0xff]  }
 0x82c   :  { %14168 = vmatpush1.bf16.msra.mxu1 %v17674_v41  ;;  %14199 = vmatprep.mubr.bf16.mxu1 %v18494_v40  ;;  %v17692_v40 = vld [vmem:[#allocation13 + $0x628] ss:$16 sps:$4 sm:$0xff]  }
 0x82d   :  { %14169 = vmatprep.subr.bf16.mxu1 %v17679_v15  ;;  %v12591_v15 = vrot.slane %v18502_v35, %v18075_v47 }
 0x830   :  { %14170 = vmatpush1.bf16.msra.mxu1 %v17677_v29 }
 0x831   :  { %14171 = vmatprep.subr.bf16.mxu1 %v17682_v49 }
 0x834   :  { %14172 = vmatpush1.bf16.msra.mxu1 %v17680_v9 }
 0x835   :  { %14173 = vmatprep.subr.bf16.mxu1 %v17685_v63 }
 0x838   :  { %14174 = vmatpush1.bf16.msra.mxu1 %v17683_v20 }
 0x839   :  { %14175 = vmatprep.subr.bf16.mxu1 %v17688_v5 }
 0x83c   :  { %14176 = vmatpush1.bf16.msra.mxu1 %v17686_v12 }
 0x83d   :  { %14177 = vmatprep.subr.bf16.mxu1 %v17691_v56 }
 0x840   :  { %14178 = vmatpush1.bf16.msra.mxu1 %v17689_v11 }
 0x841   :  { %14179 = vmatprep.subr.bf16.mxu1 %v17694_v60 }
 0x844   :  { %14180 = vmatpush1.bf16.msra.mxu1 %v17692_v40 }
 0x845   :  { %14181 = vmatprep.subr.bf16.mxu1 %v17697_v0 }
 0x848   :  { %14182 = vmatpush1.bf16.msra.mxu1 %v17695_v25  ;;  %v14225_v25 = vrot.slane %v14212_v19, %v18075_v47 }
 0x849   :  { %14183 = vmatprep.subr.bf16.mxu1 %v17700_v50 }
 0x84c   :  { %v13996_v13 = vpop.f32.mrf.mxu0  ;;  %14184 = vmatpush2.bf16.msra.mxu1 %v17698_v1 }
 0x84d   :  { %v13997_v33 = vadd.f32 %v13996_v13, %v13956_v22  ;;  %14185 = vmatprep.subr.bf16.mxu1 %v17703_v28  ;;  %v14229_v13 = vrot.slane %v14212_v19, %v18078_v10 }
 0x84e   :  { %v13998_v14 = vpop.f32.mrf.mxu0 }
 0x84f   :  { %v13999_v52 = vadd.f32 %v13998_v14, %v13958_v3 }
 0x850   :  { %v14000_v24 = vpop.f32.mrf.mxu0  ;;  %14186 = vmatpush2.bf16.msra.mxu1 %v17701_v59 }
 0x851   :  { %14187 = vmatprep.subr.bf16.mxu1 %v17706_v62 }
 0x852   :  { %v14001_v7 = vpop.f32.mrf.mxu0 }
 0x853   :  { %v16123_v7 = vld [vmem:[#allocation2] ss:$0 sm:$0xff] }
 0x854   :  { %14188 = vmatpush2.bf16.msra.mxu1 %v17704_v34 }
 0x855   :  { %14189 = vmatprep.subr.bf16.mxu1 %v17709_v2 }
 0x858   :  { %14190 = vmatpush2.bf16.msra.mxu1 %v17707_v21 }
 0x859   :  { %14191 = vmatprep.subr.bf16.mxu1 %v17712_v44 }
 0x85c   :  { %14192 = vmatpush2.bf16.msra.mxu1 %v17710_v61 }
 0x85d   :  { %14193 = vmatprep.subr.bf16.mxu1 %v17715_v39 }
 0x860   :  { %14194 = vmatpush2.bf16.msra.mxu1 %v17713_v31 }
 0x861   :  { %14195 = vmatprep.subr.bf16.mxu1 %v17718_v43 }
 0x864   :  { %14196 = vmatpush2.bf16.msra.mxu1 %v17716_v36 }
 0x865   :  { %14197 = vmatprep.subr.bf16.mxu1 %v17721_v6 }
 0x868   :  { %14198 = vmatpush2.bf16.msra.mxu1 %v17719_v51 }
 0x86b   :  { %14200 = vmatmul.mubr.bf16.vlgmr.msra.gmra.mxu1 %v18496_v58 }
 0x88c   :  { %v14078_v18 = vpop.f32.mrf.mxu0 }
 0x88d   :  { %v14079_v29 = vadd.f32 %v14078_v18, %v12591_v15 }
 0x88e   :  { %v14080_v55 = vpop.f32.mrf.mxu0 }
 0x88f   :  { %v14081_v9 = vadd.f32 %v14080_v55, %v12595_v48 }
 0x890   :  { %v14082_v42 = vpop.f32.mrf.mxu0 }
 0x892   :  { %v14083_v8 = vpop.f32.mrf.mxu0 }
 0x8ab   :  { %v14037_v53 = vpop.f32.mrf.mxu1 }
 0x8ac   :  { %v14038_v37 = vadd.f32 %v14037_v53, %v13997_v33 }
 0x8ad   :  { %v14039_v4 = vpop.f32.mrf.mxu1 }
 0x8ae   :  { %v14208_v26 = vmax.f32 %v14038_v37, 0.0  ;;  %v14040_v17 = vadd.f32 %v14039_v4, %v13999_v52 }
 0x8af   :  { %v14041_v16 = vpop.f32.mrf.mxu1 }
 0x8b0   :  { %v14234_v30 = vmul.f32 %v14217_v57, %v14208_v26  ;;  %v14209_v22 = vmax.f32 %v14040_v17, 0.0 }
 0x8b1   :  { %v14042_v27 = vpop.f32.mrf.mxu1 }
 0x8b2   :  { %v14235_v58 = vmul.f32 %v14221_v46, %v14209_v22  ;;  %v14239_v3 = vsel %vm14238_vm0, %v14234_v30, 0.0 }
 0x8b4   :  { %v14240_v38 = vsel %vm14238_vm0, %v14235_v58, 0.0 }
 0x8b5   :  { %v14241_v54 = vadd.f32 %v14240_v38, %v14239_v3 }
 0x8cc   :  { %v14160_v23 = vpop.f32.mrf.mxu0 }
 0x8ce   :  { %v14162_v32 = vpop.f32.mrf.mxu0 }
 0x8d0   :  { %v14164_v41 = vpop.f32.mrf.mxu0 }
 0x8d2   :  { %v14165_v45 = vpop.f32.mrf.mxu0 }
 0x8eb   :  { %v14119_v49 = vpop.f32.mrf.mxu1 }
 0x8ec   :  { %v14120_v63 = vadd.f32 %v14119_v49, %v14079_v29 }
 0x8ed   :  { %v14121_v20 = vpop.f32.mrf.mxu1 }
 0x8ee   :  { %v14122_v5 = vadd.f32 %v14121_v20, %v14081_v9  ;;  %v14161_v12 = vadd.f32 %v14160_v23, %v14120_v63 }
 0x8ef   :  { %v14123_v56 = vpop.f32.mrf.mxu1 }
 0x8f0   :  { %v14163_v11 = vadd.f32 %v14162_v32, %v14122_v5 }
 0x8f1   :  { %v14124_v60 = vpop.f32.mrf.mxu1 }
 0x92b   :  { %v14201_v40 = vpop.f32.mrf.mxu1 }
 0x92c   :  { %v14202_v0 = vadd.f32 %v14201_v40, %v14161_v12 }
 0x92d   :  { %v14203_v50 = vpop.f32.mrf.mxu1 }
 0x92e   :  { %v14210_v1 = vmax.f32 %v14202_v0, 0.0  ;;  %v14204_v28 = vadd.f32 %v14203_v50, %v14163_v11 }
 0x92f   :  { %v14205_v35 = vpop.f32.mrf.mxu1 }
 0x930   :  { %v14236_v59 = vmul.f32 %v14225_v25, %v14210_v1  ;;  %v14211_v33 = vmax.f32 %v14204_v28, 0.0 }
 0x931   :  { %v14206_v62 = vpop.f32.mrf.mxu1 }
 0x932   :  { %v14237_v14 = vmul.f32 %v14229_v13, %v14211_v33  ;;  %v14242_v52 = vsel %vm14238_vm0, %v14236_v59, 0.0 }
 0x933   :  { %v14243_v24 = vadd.f32 %v14242_v52, %v14241_v54 }
 0x934   :  { %v14244_v34 = vsel %vm14238_vm0, %v14237_v14, 0.0 }
 0x935   :  { %v14245_v2 = vadd.f32 %v14244_v34, %v14243_v24 }
 0x937   :  { %14246 = vadd.xlane.f32.xlu0 %v14245_v2 }
 0x9c0   :  { %v14247_v21 = vpop.xlane.xlu0 %14246 }
 0x9c1   :  { %v14255_v47 = vadd.f32 %v16123_v7, %v14247_v21 }
 0x9c3   :  { %14257 = vst.msk [vmem:[%s18537_s11] sm:$0x3] %vm14256_vm1, %v14255_v47 }
 0x9c4   :  { %14262 = vsyncpa [#allocation4], 1 }
 0x9c5   :  { %14263 = vsyncpa [#allocation6], 1 }
 0x9c6   :  { %14264 = vsyncpa [#allocation9], 1 }
 0x9c7   :  { %14265 = vsyncpa [#allocation12], 1 }
 0x9c8   :  { %14266 = vsyncpa [#allocation15], 1 }

</bundles_post_ra>
